<compile_context>
chip_gen: v6e
topology: v6e:2x2x1
jax: 0.10.0
libtpu: 0.0.40
codegen_flags: <defaults>
</compile_context>

<pallas_src>
import functools
import math

import jax
import jax.numpy as jnp
from jax.experimental import pallas as pl
from jax.experimental.pallas import tpu as pltpu


# ----------------------------------------------------------------------------
# small helpers
# ----------------------------------------------------------------------------

def _pick_divisor_tile(n, cap, mult=8):
    """Largest tile <= cap that divides n and is a multiple of `mult` (else n)."""
    if n <= cap:
        return n
    for d in range(cap, 0, -1):
        if n % d == 0 and d % mult == 0:
            return d
    return n


def _group_mask(c, groups):
    g = jnp.arange(c) // (c // groups)
    return (g[:, None] == g[None, :]).astype(jnp.float32)   # (C, C) block-diagonal ones


def _silu(y):
    # one EUP transcendental per element: sigmoid(y) = 0.5*(tanh(0.5*y)+1)
    return y * (0.5 * (jnp.tanh(0.5 * y) + 1.0))


# ----------------------------------------------------------------------------
# Pallas kernels
# ----------------------------------------------------------------------------

def _conv3x3_kernel(x_ref, w_ref, b_ref, *rest, hw, w_stride, has_res):
    """3x3 'same' conv as 3 row-shifted, K-folded matmuls.

    x_ref : (1, (H+2)*W, 3*Cin) bf16 -- for each output pixel, lanes hold the three
            dx-shifted input pixels (built by the wrapper); the three dy taps are the
            sublane-aligned row windows starting at 0, W, 2W.
    w_ref : (3, 3*Cin, Cout) bf16;  b_ref: (1, Cout) f32.
    Optional residual (1, HW, Cout) is added before the final cast.
    """
    if has_res:
        res_ref, o_ref = rest
    else:
        (o_ref,) = rest
    acc = jnp.dot(x_ref[0, 0:hw, :], w_ref[0],
                  preferred_element_type=jnp.float32)
    acc = acc + jnp.dot(x_ref[0, w_stride:w_stride + hw, :], w_ref[1],
                        preferred_element_type=jnp.float32)
    acc = acc + jnp.dot(x_ref[0, 2 * w_stride:2 * w_stride + hw, :], w_ref[2],
                        preferred_element_type=jnp.float32)
    y = acc + b_ref[...]
    if has_res:
        y = y + res_ref[0].astype(jnp.float32)
    o_ref[0] = y.astype(o_ref.dtype)


def _gn_normalize(x_ref, mask_ref, g_ref, beta_ref, *, inv_n, eps):
    """Single-pass GroupNorm on a fully-resident (HW, C) block, f32 math.

    Group mean/var come from per-channel sum/sumsq reduced within each contiguous
    channel group via one tiny (2,C)@(C,C) block-diagonal matmul; this runs once per
    image (not per token tile), so its MXU/VMEM cost is negligible.
    """
    x = x_ref[0].astype(jnp.float32)                       # (HW, C)
    s = jnp.sum(x, axis=0, keepdims=True)                  # (1, C)
    sq = jnp.sum(x * x, axis=0, keepdims=True)             # (1, C)
    stats = jnp.concatenate([s, sq], axis=0)               # (2, C)
    gs = jnp.dot(stats, mask_ref[...], preferred_element_type=jnp.float32)
    mean = gs[0:1, :] * inv_n
    var = gs[1:2, :] * inv_n - mean * mean
    scale = jax.lax.rsqrt(var + eps) * g_ref[...]
    shift = beta_ref[...] - mean * scale
    return x * scale + shift


def _gn_act_kernel(x_ref, mask_ref, g_ref, beta_ref, o_ref, *, inv_n, eps, silu):
    """Fused single-pass GroupNorm (+ SiLU)."""
    y = _gn_normalize(x_ref, mask_ref, g_ref, beta_ref, inv_n=inv_n, eps=eps)
    if silu:
        y = _silu(y)
    o_ref[0] = y.astype(o_ref.dtype)


def _gn_qkv_kernel(x_ref, mask_ref, g_ref, beta_ref, w_ref, b_ref, o_ref, *, inv_n, eps):
    """Single-pass GroupNorm fused with one packed (C, 3C) QKV projection
    (lane-dense output; attention scale already folded into the q slice of w/b)."""
    y = _gn_normalize(x_ref, mask_ref, g_ref, beta_ref, inv_n=inv_n, eps=eps)
    yb = y.astype(w_ref.dtype)
    o_ref[0] = (jnp.dot(yb, w_ref[...], preferred_element_type=jnp.float32)
                + b_ref[...]).astype(o_ref.dtype)


def _attn_proj_kernel(qkv_ref, kv_ref, wp_ref, bp_ref, res_ref, o_ref,
                      m_sc, l_sc, acc_sc, *, c):
    """Single-head spatial self-attention (KV-tiled online softmax) consuming the
    packed QKV buffer; the output projection + residual add are fused into the
    finalize step."""
    ki = pl.program_id(2)

    @pl.when(ki == 0)
    def _():
        m_sc[...] = jnp.full(m_sc.shape, -jnp.inf, jnp.float32)
        l_sc[...] = jnp.zeros(l_sc.shape, jnp.float32)
        acc_sc[...] = jnp.zeros(acc_sc.shape, jnp.float32)

    q = qkv_ref[0][:, 0:c]                                  # (TQ, C) bf16, pre-scaled
    kv = kv_ref[0]                                          # (TK, 3C) bf16
    k = kv[:, c:2 * c]
    v = kv[:, 2 * c:3 * c]

    s = jax.lax.dot_general(q, k, (((1,), (1,)), ((), ())),
                            preferred_element_type=jnp.float32)     # (TQ, TK)
    m_prev = m_sc[...]
    m_new = jnp.maximum(m_prev, jnp.max(s, axis=-1, keepdims=True))
    alpha = jnp.exp(m_prev - m_new)
    p = jnp.exp(s - m_new)
    l_sc[...] = alpha * l_sc[...] + jnp.sum(p, axis=-1, keepdims=True)
    acc_sc[...] = alpha * acc_sc[...] + jnp.dot(p.astype(v.dtype), v,
                                                preferred_element_type=jnp.float32)
    m_sc[...] = m_new

    @pl.when(ki == pl.num_programs(2) - 1)
    def _():
        ctx = acc_sc[...] * pl.reciprocal(l_sc[...], approx=True)   # (TQ, C) f32
        out = jnp.dot(ctx.astype(wp_ref.dtype), wp_ref[...],
                      preferred_element_type=jnp.float32) + bp_ref[...]
        o_ref[0] = (out + res_ref[0].astype(jnp.float32)).astype(o_ref.dtype)


# ----------------------------------------------------------------------------
# Pallas wrappers
# ----------------------------------------------------------------------------

def conv3x3(x, p, *, residual=None, out_dtype=jnp.bfloat16):
    """'same' 3x3 conv, stride 1.  x: (B, H, W, Cin) -> (B, H, W, Cout)."""
    B, H, W, Cin = x.shape
    w = p["w"].astype(jnp.bfloat16)                         # (3, 3*Cin, Cout)
    b = p["b"].astype(jnp.float32)                          # (1, Cout)
    Cout = w.shape[-1]
    HW = H * W

    # Wrapper-side im2col over dx only: lanes hold [x(h,w) | x(h,w+1) | x(h,w+2)] of the
    # zero-padded image; dy stays as in-kernel row shifts at sublane-aligned offsets.
    xb = x.astype(jnp.bfloat16)
    xp = jnp.pad(xb, ((0, 0), (1, 1), (1, 1), (0, 0)))      # (B, H+2, W+2, Cin)
    xcat = jnp.concatenate(
        [xp[:, :, 0:W, :], xp[:, :, 1:W + 1, :], xp[:, :, 2:W + 2, :]], axis=-1)
    xflat = xcat.reshape(B, (H + 2) * W, 3 * Cin)           # (B, (H+2)*W, 3*Cin)

    in_specs = [
        pl.BlockSpec((1, (H + 2) * W, 3 * Cin), lambda bb: (bb, 0, 0)),
        pl.BlockSpec((3, 3 * Cin, Cout), lambda bb: (0, 0, 0)),
        pl.BlockSpec((1, Cout), lambda bb: (0, 0)),
    ]
    args = [xflat, w, b]
    if residual is not None:
        in_specs.append(pl.BlockSpec((1, HW, Cout), lambda bb: (bb, 0, 0)))
        args.append(residual.reshape(B, HW, Cout).astype(jnp.bfloat16))

    kernel = functools.partial(_conv3x3_kernel, hw=HW, w_stride=W,
                               has_res=residual is not None)
    y = pl.pallas_call(
        kernel,
        out_shape=jax.ShapeDtypeStruct((B, HW, Cout), out_dtype),
        grid=(B,),
        in_specs=in_specs,
        out_specs=pl.BlockSpec((1, HW, Cout), lambda bb: (bb, 0, 0)),
        compiler_params=pltpu.CompilerParams(dimension_semantics=("parallel",)),
    )(*args)
    return y.reshape(B, H, W, Cout)


def group_norm_silu(x, gn, *, silu=True, num_groups=32, eps=1e-6):
    """Fused single-pass GroupNorm (+SiLU). x: (B, H, W, C)."""
    B, H, W, C = x.shape
    HW = H * W
    xt = x.reshape(B, HW, C).astype(jnp.bfloat16)
    mask = _group_mask(C, num_groups)
    kernel = functools.partial(_gn_act_kernel,
                               inv_n=1.0 / (HW * (C // num_groups)), eps=eps, silu=silu)
    y = pl.pallas_call(
        kernel,
        out_shape=jax.ShapeDtypeStruct((B, HW, C), jnp.bfloat16),
        grid=(B,),
        in_specs=[pl.BlockSpec((1, HW, C), lambda bb: (bb, 0, 0)),
                  pl.BlockSpec((C, C), lambda bb: (0, 0)),
                  pl.BlockSpec((1, C), lambda bb: (0, 0)),
                  pl.BlockSpec((1, C), lambda bb: (0, 0))],
        out_specs=pl.BlockSpec((1, HW, C), lambda bb: (bb, 0, 0)),
        compiler_params=pltpu.CompilerParams(dimension_semantics=("parallel",)),
    )(xt, mask, gn["gamma"].astype(jnp.float32), gn["beta"].astype(jnp.float32))
    return y.reshape(B, H, W, C)


def attention_block(x, p, *, num_groups=32, eps=1e-6):
    """diffusers AttentionBlock: GN -> QKV -> softmax(QK^T/sqrt(C)) V -> proj + residual."""
    B, H, W, C = x.shape
    HW = H * W
    xt = x.reshape(B, HW, C).astype(jnp.bfloat16)
    mask = _group_mask(C, num_groups)

    # 1/sqrt(C) (single head) folded into the q projection; q|k|v packed -> one
    # (C, 3C) matmul and one lane-dense store.
    scale = 1.0 / math.sqrt(C)
    wqkv = jnp.concatenate([p["wq"] * scale, p["wk"], p["wv"]], axis=1).astype(jnp.bfloat16)
    bqkv = jnp.concatenate([p["bq"] * scale, p["bk"], p["bv"]], axis=1).astype(jnp.float32)

    gn_kernel = functools.partial(_gn_qkv_kernel,
                                  inv_n=1.0 / (HW * (C // num_groups)), eps=eps)
    qkv = pl.pallas_call(
        gn_kernel,
        out_shape=jax.ShapeDtypeStruct((B, HW, 3 * C), jnp.bfloat16),
        grid=(B,),
        in_specs=[pl.BlockSpec((1, HW, C), lambda bb: (bb, 0, 0)),
                  pl.BlockSpec((C, C), lambda bb: (0, 0)),
                  pl.BlockSpec((1, C), lambda bb: (0, 0)),
                  pl.BlockSpec((1, C), lambda bb: (0, 0)),
                  pl.BlockSpec((C, 3 * C), lambda bb: (0, 0)),
                  pl.BlockSpec((1, 3 * C), lambda bb: (0, 0))],
        out_specs=pl.BlockSpec((1, HW, 3 * C), lambda bb: (bb, 0, 0)),
        compiler_params=pltpu.CompilerParams(dimension_semantics=("parallel",)),
    )(xt, mask, p["gn"]["gamma"].astype(jnp.float32), p["gn"]["beta"].astype(jnp.float32),
      wqkv, bqkv)

    tq = _pick_divisor_tile(HW, 256)
    tk = _pick_divisor_tile(HW, 128)
    attn_kernel = functools.partial(_attn_proj_kernel, c=C)
    out = pl.pallas_call(
        attn_kernel,
        out_shape=jax.ShapeDtypeStruct((B, HW, C), jnp.bfloat16),
        grid=(B, HW // tq, HW // tk),
        in_specs=[pl.BlockSpec((1, tq, 3 * C), lambda bb, qi, ki: (bb, qi, 0)),
                  pl.BlockSpec((1, tk, 3 * C), lambda bb, qi, ki: (bb, ki, 0)),
                  pl.BlockSpec((C, C), lambda bb, qi, ki: (0, 0)),
                  pl.BlockSpec((1, C), lambda bb, qi, ki: (0, 0)),
                  pl.BlockSpec((1, tq, C), lambda bb, qi, ki: (bb, qi, 0))],
        out_specs=pl.BlockSpec((1, tq, C), lambda bb, qi, ki: (bb, qi, 0)),
        scratch_shapes=[pltpu.VMEM((tq, 1), jnp.float32),
                        pltpu.VMEM((tq, 1), jnp.float32),
                        pltpu.VMEM((tq, C), jnp.float32)],
        compiler_params=pltpu.CompilerParams(
            dimension_semantics=("parallel", "parallel", "arbitrary")),
    )(qkv, qkv, p["wp"].astype(jnp.bfloat16), p["bp"].astype(jnp.float32), xt)
    return out.reshape(B, H, W, C)


def resnet_block(x, p):
    """ResnetBlock2D (temb=None, in==out -> identity shortcut, output scale 1)."""
    h = group_norm_silu(x, p["gn1"], silu=True)
    h = conv3x3(h, p["conv1"])
    h = group_norm_silu(h, p["gn2"], silu=True)
    # residual add fused into conv2's epilogue
    return conv3x3(h, p["conv2"], residual=x)


def mid_block(x, p):
    h = resnet_block(x, p["res1"])
    h = attention_block(h, p["attn"])
    h = resnet_block(h, p["res2"])
    return h


# ----------------------------------------------------------------------------
# Parameter initialization (deterministic, synthetic — matches module shapes)
# ----------------------------------------------------------------------------

def _init_conv3(key, cin, cout):
    k1, k2 = jax.random.split(key)
    bound = 1.0 / math.sqrt(cin * 9)
    w = jax.random.uniform(k1, (3, 3 * cin, cout), jnp.float32, -bound, bound)
    b = jax.random.uniform(k2, (1, cout), jnp.float32, -bound, bound)
    return {"w": w, "b": b}


def _init_linear(key, cin, cout):
    k1, k2 = jax.random.split(key)
    bound = 1.0 / math.sqrt(cin)
    return {"w": jax.random.uniform(k1, (cin, cout), jnp.float32, -bound, bound),
            "b": jax.random.uniform(k2, (1, cout), jnp.float32, -bound, bound)}


def _init_gn(c):
    return {"gamma": jnp.ones((1, c), jnp.float32), "beta": jnp.zeros((1, c), jnp.float32)}


def _init_resnet(key, c):
    k1, k2 = jax.random.split(key)
    return {"gn1": _init_gn(c), "conv1": _init_conv3(k1, c, c),
            "gn2": _init_gn(c), "conv2": _init_conv3(k2, c, c)}


def _init_attn(key, c):
    kq, kk, kv, kp = jax.random.split(key, 4)
    q, k, v, o = (_init_linear(kx, c, c) for kx in (kq, kk, kv, kp))
    return {"gn": _init_gn(c),
            "wq": q["w"], "bq": q["b"], "wk": k["w"], "bk": k["b"],
            "wv": v["w"], "bv": v["b"], "wp": o["w"], "bp": o["b"]}


def _init_mid(key, c):
    k1, k2, k3 = jax.random.split(key, 3)
    return {"res1": _init_resnet(k1, c), "attn": _init_attn(k2, c),
            "res2": _init_resnet(k3, c)}


def init_params(key, in_ch=3, out_ch=3, base=64, latent=4):
    ks = jax.random.split(key, 11)
    enc = {"conv_in": _init_conv3(ks[0], in_ch, base),
           "down_res": _init_resnet(ks[1], base),
           "mid": _init_mid(ks[2], base),
           "gn_out": _init_gn(base),
           "conv_out": _init_conv3(ks[3], base, 2 * latent)}
    dec = {"conv_in": _init_conv3(ks[4], latent, base),
           "mid": _init_mid(ks[5], base),
           "up_res0": _init_resnet(ks[6], base),
           "up_res1": _init_resnet(ks[7], base),
           "gn_out": _init_gn(base),
           "conv_out": _init_conv3(ks[8], base, out_ch)}
    return {"enc": enc, "dec": dec,
            "quant_conv": _init_linear(ks[9], 2 * latent, 2 * latent),
            "post_quant_conv": _init_linear(ks[10], latent, latent)}


# ----------------------------------------------------------------------------
# Full AutoencoderKL forward (sample_posterior=False -> posterior.mode())
# ----------------------------------------------------------------------------

def autoencoder_kl_forward(params, sample_nchw, latent=4):
    x = jnp.transpose(sample_nchw, (0, 2, 3, 1)).astype(jnp.bfloat16)   # NCHW -> NHWC bf16

    # ----- Encoder -----
    enc = params["enc"]
    h = conv3x3(x, enc["conv_in"])
    h = resnet_block(h, enc["down_res"])          # DownEncoderBlock2D (1 resnet, no downsample)
    h = mid_block(h, enc["mid"])
    h = group_norm_silu(h, enc["gn_out"], silu=True)

    # quant_conv (1x1) -> DiagonalGaussianDistribution(moments).mode() == mean (first
    # `latent` channels) -> post_quant_conv (1x1): all linear -> folded exactly into
    # the encoder conv_out weights (deletes one projection kernel + an HBM round trip).
    wq, bq = params["quant_conv"]["w"], params["quant_conv"]["b"]
    wpq, bpq = params["post_quant_conv"]["w"], params["post_quant_conv"]["b"]
    w_fold = wq[:, :latent] @ wpq                 # (2L, L)
    b_fold = bq[:, :latent] @ wpq + bpq           # (1, L)
    co = enc["conv_out"]
    w_eff = co["w"].astype(jnp.float32) @ w_fold  # (3, 3*C, L)
    b_eff = co["b"].astype(jnp.float32) @ w_fold + b_fold
    z = conv3x3(h, {"w": w_eff, "b": b_eff})      # (B, H, W, latent)
    # TODO(synk): posterior.sample()/kl()/nll() (torch.randn path) not exercised; forward uses mode().

    # ----- Decoder -----
    dec = params["dec"]
    d = conv3x3(z, dec["conv_in"])
    d = mid_block(d, dec["mid"])
    d = resnet_block(d, dec["up_res0"])           # UpDecoderBlock2D (2 resnets, no upsample)
    d = resnet_block(d, dec["up_res1"])
    d = group_norm_silu(d, dec["gn_out"], silu=True)
    d = conv3x3(d, dec["conv_out"], out_dtype=jnp.float32)
    return jnp.transpose(d, (0, 3, 1, 2))         # NHWC -> NCHW, f32


if __name__ == "__main__":
    key = jax.random.PRNGKey(0)
    pkey, xkey = jax.random.split(key)
    params = init_params(pkey)

    # PyTorch-convention input: NCHW, batch=2, channels=3, spatial=16
    sample = jax.random.normal(xkey, (2, 3, 16, 16), jnp.float32)

    fwd = jax.jit(autoencoder_kl_forward)
    out = jax.block_until_ready(fwd(params, sample))
    assert out.shape == (2, 3, 16, 16), out.shape
    assert out.dtype == jnp.float32
    assert bool(jnp.all(jnp.isfinite(out)))
    print("KERNEL_OK")
</pallas_src>

<mosaic_0001>
module attributes {stable_mosaic.version = 11 : i64} {
  func.func @_gn_act_kernel(%arg0: i32, %arg1: memref<1x256x64xbf16, #tpu.memory_space<vmem>>, %arg2: memref<64x64xf32, #tpu.memory_space<vmem>>, %arg3: memref<1x64xf32, #tpu.memory_space<vmem>>, %arg4: memref<1x64xf32, #tpu.memory_space<vmem>>, %arg5: memref<1x256x64xbf16, #tpu.memory_space<vmem>>) attributes {dimension_semantics = [#tpu.dimension_semantics<parallel>], iteration_bounds = array<i64: 2>, scalar_prefetch = 0 : i64, scratch_operands = 0 : i64, tpu.core_type = #tpu.core_type<tc>, window_params = [{transform_indices = @transform_0, window_bounds = array<i64: 1, 256, 64>}, {pipeline_mode = #tpu.pipeline_mode<synchronous>, transform_indices = @transform_1, window_bounds = array<i64: 64, 64>}, {pipeline_mode = #tpu.pipeline_mode<synchronous>, transform_indices = @transform_2, window_bounds = array<i64: 1, 64>}, {pipeline_mode = #tpu.pipeline_mode<synchronous>, transform_indices = @transform_3, window_bounds = array<i64: 1, 64>}, {transform_indices = @transform_4, window_bounds = array<i64: 1, 256, 64>}]} {
    %c0 = arith.constant 0 : index
    %c0_0 = arith.constant 0 : index
    %c0_1 = arith.constant 0 : index
    %0 = vector.load %arg1[%c0, %c0_0, %c0_1] : memref<1x256x64xbf16, #tpu.memory_space<vmem>>, vector<1x256x64xbf16>
    %1 = vector.shape_cast %0 : vector<1x256x64xbf16> to vector<256x64xbf16>
    %2 = arith.extf %1 : vector<256x64xbf16> to vector<256x64xf32>
    %cst = arith.constant dense<0.000000e+00> : vector<64xf32>
    %3 = vector.multi_reduction <add>, %2, %cst [0] : vector<256x64xf32> to vector<64xf32>
    %4 = vector.shape_cast %3 : vector<64xf32> to vector<1x64xf32>
    %5 = arith.mulf %2, %2 : vector<256x64xf32>
    %cst_2 = arith.constant dense<0.000000e+00> : vector<64xf32>
    %6 = vector.multi_reduction <add>, %5, %cst_2 [0] : vector<256x64xf32> to vector<64xf32>
    %7 = vector.shape_cast %6 : vector<64xf32> to vector<1x64xf32>
    %8 = tpu.concatenate %4, %7 in 0 : vector<1x64xf32>, vector<1x64xf32> -> vector<2x64xf32>
    %c0_3 = arith.constant 0 : index
    %c0_4 = arith.constant 0 : index
    %9 = vector.load %arg2[%c0_3, %c0_4] : memref<64x64xf32, #tpu.memory_space<vmem>>, vector<64x64xf32>
    %cst_5 = arith.constant dense<0.000000e+00> : vector<2x64xf32>
    %10 = tpu.matmul %8, %9, %cst_5 {dimension_numbers = #tpu.dot_dimension_numbers<[1], [0], [0], [1], [0, 0, 1, 1], [], []>} : vector<2x64xf32>, vector<64x64xf32>, vector<2x64xf32> -> vector<2x64xf32>
    %11 = vector.extract_strided_slice %10 {offsets = [0, 0], sizes = [1, 64], strides = [1, 1]} : vector<2x64xf32> to vector<1x64xf32>
    %cst_6 = arith.constant 0.001953125 : f32
    %12 = vector.broadcast %cst_6 : f32 to vector<1x64xf32>
    %13 = arith.mulf %11, %12 : vector<1x64xf32>
    %14 = vector.extract_strided_slice %10 {offsets = [1, 0], sizes = [1, 64], strides = [1, 1]} : vector<2x64xf32> to vector<1x64xf32>
    %cst_7 = arith.constant 0.001953125 : f32
    %15 = vector.broadcast %cst_7 : f32 to vector<1x64xf32>
    %16 = arith.mulf %14, %15 : vector<1x64xf32>
    %17 = arith.mulf %13, %13 : vector<1x64xf32>
    %18 = arith.subf %16, %17 : vector<1x64xf32>
    %cst_8 = arith.constant 9.99999997E-7 : f32
    %19 = vector.broadcast %cst_8 : f32 to vector<1x64xf32>
    %20 = arith.addf %18, %19 : vector<1x64xf32>
    %21 = math.rsqrt %20 : vector<1x64xf32>
    %c0_9 = arith.constant 0 : index
    %c0_10 = arith.constant 0 : index
    %22 = vector.load %arg3[%c0_9, %c0_10] : memref<1x64xf32, #tpu.memory_space<vmem>>, vector<1x64xf32>
    %23 = arith.mulf %21, %22 : vector<1x64xf32>
    %c0_11 = arith.constant 0 : index
    %c0_12 = arith.constant 0 : index
    %24 = vector.load %arg4[%c0_11, %c0_12] : memref<1x64xf32, #tpu.memory_space<vmem>>, vector<1x64xf32>
    %25 = arith.mulf %13, %23 : vector<1x64xf32>
    %26 = arith.subf %24, %25 : vector<1x64xf32>
    %27 = vector.broadcast %23 : vector<1x64xf32> to vector<256x64xf32>
    %28 = arith.mulf %2, %27 : vector<256x64xf32>
    %29 = vector.broadcast %26 : vector<1x64xf32> to vector<256x64xf32>
    %30 = arith.addf %28, %29 : vector<256x64xf32>
    %cst_13 = arith.constant 5.000000e-01 : f32
    %31 = vector.broadcast %cst_13 : f32 to vector<256x64xf32>
    %32 = arith.mulf %31, %30 : vector<256x64xf32>
    %33 = math.tanh %32 : vector<256x64xf32>
    %cst_14 = arith.constant 1.000000e+00 : f32
    %34 = vector.broadcast %cst_14 : f32 to vector<256x64xf32>
    %35 = arith.addf %33, %34 : vector<256x64xf32>
    %cst_15 = arith.constant 5.000000e-01 : f32
    %36 = vector.broadcast %cst_15 : f32 to vector<256x64xf32>
    %37 = arith.mulf %36, %35 : vector<256x64xf32>
    %38 = arith.mulf %30, %37 : vector<256x64xf32>
    %39 = arith.truncf %38 : vector<256x64xf32> to vector<256x64xbf16>
    %c0_16 = arith.constant 0 : index
    %c0_17 = arith.constant 0 : index
    %c0_18 = arith.constant 0 : index
    %40 = vector.load %arg5[%c0_16, %c0_17, %c0_18] : memref<1x256x64xbf16, #tpu.memory_space<vmem>>, vector<1x256x64xbf16>
    %41 = vector.shape_cast %40 : vector<1x256x64xbf16> to vector<256x64xbf16>
    %42 = vector.shape_cast %39 : vector<256x64xbf16> to vector<1x256x64xbf16>
    tpu.vector_store %arg5[%c0_16, %c0_17, %c0_18], %42 {strides = array<i32>} : memref<1x256x64xbf16, #tpu.memory_space<vmem>>, vector<1x256x64xbf16>,
    return
  }
  func.func @transform_0(%arg0: i32) -> (i32, i32, i32) {
    %c0_i32 = arith.constant 0 : i32
    %c0_i32_0 = arith.constant 0 : i32
    %c0_i32_1 = arith.constant 0 : i32
    return %arg0, %c0_i32, %c0_i32_0 : i32, i32, i32
  }
  func.func @transform_1(%arg0: i32) -> (i32, i32) {
    %c0_i32 = arith.constant 0 : i32
    %c0_i32_0 = arith.constant 0 : i32
    %c0_i32_1 = arith.constant 0 : i32
    return %c0_i32, %c0_i32_0 : i32, i32
  }
  func.func @transform_2(%arg0: i32) -> (i32, i32) {
    %c0_i32 = arith.constant 0 : i32
    %c0_i32_0 = arith.constant 0 : i32
    %c0_i32_1 = arith.constant 0 : i32
    return %c0_i32, %c0_i32_0 : i32, i32
  }
  func.func @transform_3(%arg0: i32) -> (i32, i32) {
    %c0_i32 = arith.constant 0 : i32
    %c0_i32_0 = arith.constant 0 : i32
    %c0_i32_1 = arith.constant 0 : i32
    return %c0_i32, %c0_i32_0 : i32, i32
  }
  func.func @transform_4(%arg0: i32) -> (i32, i32, i32) {
    %c0_i32 = arith.constant 0 : i32
    %c0_i32_0 = arith.constant 0 : i32
    %c0_i32_1 = arith.constant 0 : i32
    return %arg0, %c0_i32, %c0_i32_0 : i32, i32, i32
  }
}

module attributes {stable_mosaic.version = 11 : i64} {
  func.func @_conv3x3_kernel(%arg0: i32, %arg1: memref<1x288x9xbf16, #tpu.memory_space<vmem>>, %arg2: memref<3x9x64xbf16, #tpu.memory_space<vmem>>, %arg3: memref<1x64xf32, #tpu.memory_space<vmem>>, %arg4: memref<1x256x64xbf16, #tpu.memory_space<vmem>>) attributes {dimension_semantics = [#tpu.dimension_semantics<parallel>], iteration_bounds = array<i64: 2>, scalar_prefetch = 0 : i64, scratch_operands = 0 : i64, tpu.core_type = #tpu.core_type<tc>, window_params = [{transform_indices = @transform_0, window_bounds = array<i64: 1, 288, 9>}, {pipeline_mode = #tpu.pipeline_mode<synchronous>, transform_indices = @transform_1, window_bounds = array<i64: 3, 9, 64>}, {pipeline_mode = #tpu.pipeline_mode<synchronous>, transform_indices = @transform_2, window_bounds = array<i64: 1, 64>}, {transform_indices = @transform_3, window_bounds = array<i64: 1, 256, 64>}]} {
    %c0 = arith.constant 0 : index
    %c0_0 = arith.constant 0 : index
    %c0_1 = arith.constant 0 : index
    %0 = vector.load %arg1[%c0, %c0_0, %c0_1] : memref<1x288x9xbf16, #tpu.memory_space<vmem>>, vector<1x256x9xbf16>
    %1 = vector.shape_cast %0 : vector<1x256x9xbf16> to vector<256x9xbf16>
    %c0_2 = arith.constant 0 : index
    %c0_3 = arith.constant 0 : index
    %c0_4 = arith.constant 0 : index
    %2 = vector.load %arg2[%c0_2, %c0_3, %c0_4] : memref<3x9x64xbf16, #tpu.memory_space<vmem>>, vector<1x9x64xbf16>
    %3 = vector.shape_cast %2 : vector<1x9x64xbf16> to vector<9x64xbf16>
    %cst = arith.constant dense<0.000000e+00> : vector<256x64xf32>
    %4 = tpu.matmul %1, %3, %cst {dimension_numbers = #tpu.dot_dimension_numbers<[1], [0], [0], [1], [0, 0, 1, 1], [], []>} : vector<256x9xbf16>, vector<9x64xbf16>, vector<256x64xf32> -> vector<256x64xf32>
    %c0_5 = arith.constant 0 : index
    %c16 = arith.constant 16 : index
    %c0_6 = arith.constant 0 : index
    %5 = vector.load %arg1[%c0_5, %c16, %c0_6] : memref<1x288x9xbf16, #tpu.memory_space<vmem>>, vector<1x256x9xbf16>
    %6 = vector.shape_cast %5 : vector<1x256x9xbf16> to vector<256x9xbf16>
    %c1 = arith.constant 1 : index
    %c0_7 = arith.constant 0 : index
    %c0_8 = arith.constant 0 : index
    %7 = vector.load %arg2[%c1, %c0_7, %c0_8] : memref<3x9x64xbf16, #tpu.memory_space<vmem>>, vector<1x9x64xbf16>
    %8 = vector.shape_cast %7 : vector<1x9x64xbf16> to vector<9x64xbf16>
    %cst_9 = arith.constant dense<0.000000e+00> : vector<256x64xf32>
    %9 = tpu.matmul %6, %8, %cst_9 {dimension_numbers = #tpu.dot_dimension_numbers<[1], [0], [0], [1], [0, 0, 1, 1], [], []>} : vector<256x9xbf16>, vector<9x64xbf16>, vector<256x64xf32> -> vector<256x64xf32>
    %10 = arith.addf %4, %9 : vector<256x64xf32>
    %c0_10 = arith.constant 0 : index
    %c32 = arith.constant 32 : index
    %c0_11 = arith.constant 0 : index
    %11 = vector.load %arg1[%c0_10, %c32, %c0_11] : memref<1x288x9xbf16, #tpu.memory_space<vmem>>, vector<1x256x9xbf16>
    %12 = vector.shape_cast %11 : vector<1x256x9xbf16> to vector<256x9xbf16>
    %c2 = arith.constant 2 : index
    %c0_12 = arith.constant 0 : index
    %c0_13 = arith.constant 0 : index
    %13 = vector.load %arg2[%c2, %c0_12, %c0_13] : memref<3x9x64xbf16, #tpu.memory_space<vmem>>, vector<1x9x64xbf16>
    %14 = vector.shape_cast %13 : vector<1x9x64xbf16> to vector<9x64xbf16>
    %cst_14 = arith.constant dense<0.000000e+00> : vector<256x64xf32>
    %15 = tpu.matmul %12, %14, %cst_14 {dimension_numbers = #tpu.dot_dimension_numbers<[1], [0], [0], [1], [0, 0, 1, 1], [], []>} : vector<256x9xbf16>, vector<9x64xbf16>, vector<256x64xf32> -> vector<256x64xf32>
    %16 = arith.addf %10, %15 : vector<256x64xf32>
    %c0_15 = arith.constant 0 : index
    %c0_16 = arith.constant 0 : index
    %17 = vector.load %arg3[%c0_15, %c0_16] : memref<1x64xf32, #tpu.memory_space<vmem>>, vector<1x64xf32>
    %18 = vector.broadcast %17 : vector<1x64xf32> to vector<256x64xf32>
    %19 = arith.addf %16, %18 : vector<256x64xf32>
    %20 = arith.truncf %19 : vector<256x64xf32> to vector<256x64xbf16>
    %c0_17 = arith.constant 0 : index
    %c0_18 = arith.constant 0 : index
    %c0_19 = arith.constant 0 : index
    %21 = vector.load %arg4[%c0_17, %c0_18, %c0_19] : memref<1x256x64xbf16, #tpu.memory_space<vmem>>, vector<1x256x64xbf16>
    %22 = vector.shape_cast %21 : vector<1x256x64xbf16> to vector<256x64xbf16>
    %23 = vector.shape_cast %20 : vector<256x64xbf16> to vector<1x256x64xbf16>
    tpu.vector_store %arg4[%c0_17, %c0_18, %c0_19], %23 {strides = array<i32>} : memref<1x256x64xbf16, #tpu.memory_space<vmem>>, vector<1x256x64xbf16>,
    return
  }
  func.func @transform_0(%arg0: i32) -> (i32, i32, i32) {
    %c0_i32 = arith.constant 0 : i32
    %c0_i32_0 = arith.constant 0 : i32
    %c0_i32_1 = arith.constant 0 : i32
    return %arg0, %c0_i32, %c0_i32_0 : i32, i32, i32
  }
  func.func @transform_1(%arg0: i32) -> (i32, i32, i32) {
    %c0_i32 = arith.constant 0 : i32
    %c0_i32_0 = arith.constant 0 : i32
    %c0_i32_1 = arith.constant 0 : i32
    %c0_i32_2 = arith.constant 0 : i32
    return %c0_i32, %c0_i32_0, %c0_i32_1 : i32, i32, i32
  }
  func.func @transform_2(%arg0: i32) -> (i32, i32) {
    %c0_i32 = arith.constant 0 : i32
    %c0_i32_0 = arith.constant 0 : i32
    %c0_i32_1 = arith.constant 0 : i32
    return %c0_i32, %c0_i32_0 : i32, i32
  }
  func.func @transform_3(%arg0: i32) -> (i32, i32, i32) {
    %c0_i32 = arith.constant 0 : i32
    %c0_i32_0 = arith.constant 0 : i32
    %c0_i32_1 = arith.constant 0 : i32
    return %arg0, %c0_i32, %c0_i32_0 : i32, i32, i32
  }
}

module attributes {stable_mosaic.version = 11 : i64} {
  func.func @_conv3x3_kernel(%arg0: i32, %arg1: memref<1x288x192xbf16, #tpu.memory_space<vmem>>, %arg2: memref<3x192x64xbf16, #tpu.memory_space<vmem>>, %arg3: memref<1x64xf32, #tpu.memory_space<vmem>>, %arg4: memref<1x256x64xbf16, #tpu.memory_space<vmem>>) attributes {dimension_semantics = [#tpu.dimension_semantics<parallel>], iteration_bounds = array<i64: 2>, scalar_prefetch = 0 : i64, scratch_operands = 0 : i64, tpu.core_type = #tpu.core_type<tc>, window_params = [{transform_indices = @transform_0, window_bounds = array<i64: 1, 288, 192>}, {pipeline_mode = #tpu.pipeline_mode<synchronous>, transform_indices = @transform_1, window_bounds = array<i64: 3, 192, 64>}, {pipeline_mode = #tpu.pipeline_mode<synchronous>, transform_indices = @transform_2, window_bounds = array<i64: 1, 64>}, {transform_indices = @transform_3, window_bounds = array<i64: 1, 256, 64>}]} {
    %c0 = arith.constant 0 : index
    %c0_0 = arith.constant 0 : index
    %c0_1 = arith.constant 0 : index
    %0 = vector.load %arg1[%c0, %c0_0, %c0_1] : memref<1x288x192xbf16, #tpu.memory_space<vmem>>, vector<1x256x192xbf16>
    %1 = vector.shape_cast %0 : vector<1x256x192xbf16> to vector<256x192xbf16>
    %c0_2 = arith.constant 0 : index
    %c0_3 = arith.constant 0 : index
    %c0_4 = arith.constant 0 : index
    %2 = vector.load %arg2[%c0_2, %c0_3, %c0_4] : memref<3x192x64xbf16, #tpu.memory_space<vmem>>, vector<1x192x64xbf16>
    %3 = vector.shape_cast %2 : vector<1x192x64xbf16> to vector<192x64xbf16>
    %cst = arith.constant dense<0.000000e+00> : vector<256x64xf32>
    %4 = tpu.matmul %1, %3, %cst {dimension_numbers = #tpu.dot_dimension_numbers<[1], [0], [0], [1], [0, 0, 1, 1], [], []>} : vector<256x192xbf16>, vector<192x64xbf16>, vector<256x64xf32> -> vector<256x64xf32>
    %c0_5 = arith.constant 0 : index
    %c16 = arith.constant 16 : index
    %c0_6 = arith.constant 0 : index
    %5 = vector.load %arg1[%c0_5, %c16, %c0_6] : memref<1x288x192xbf16, #tpu.memory_space<vmem>>, vector<1x256x192xbf16>
    %6 = vector.shape_cast %5 : vector<1x256x192xbf16> to vector<256x192xbf16>
    %c1 = arith.constant 1 : index
    %c0_7 = arith.constant 0 : index
    %c0_8 = arith.constant 0 : index
    %7 = vector.load %arg2[%c1, %c0_7, %c0_8] : memref<3x192x64xbf16, #tpu.memory_space<vmem>>, vector<1x192x64xbf16>
    %8 = vector.shape_cast %7 : vector<1x192x64xbf16> to vector<192x64xbf16>
    %cst_9 = arith.constant dense<0.000000e+00> : vector<256x64xf32>
    %9 = tpu.matmul %6, %8, %cst_9 {dimension_numbers = #tpu.dot_dimension_numbers<[1], [0], [0], [1], [0, 0, 1, 1], [], []>} : vector<256x192xbf16>, vector<192x64xbf16>, vector<256x64xf32> -> vector<256x64xf32>
    %10 = arith.addf %4, %9 : vector<256x64xf32>
    %c0_10 = arith.constant 0 : index
    %c32 = arith.constant 32 : index
    %c0_11 = arith.constant 0 : index
    %11 = vector.load %arg1[%c0_10, %c32, %c0_11] : memref<1x288x192xbf16, #tpu.memory_space<vmem>>, vector<1x256x192xbf16>
    %12 = vector.shape_cast %11 : vector<1x256x192xbf16> to vector<256x192xbf16>
    %c2 = arith.constant 2 : index
    %c0_12 = arith.constant 0 : index
    %c0_13 = arith.constant 0 : index
    %13 = vector.load %arg2[%c2, %c0_12, %c0_13] : memref<3x192x64xbf16, #tpu.memory_space<vmem>>, vector<1x192x64xbf16>
    %14 = vector.shape_cast %13 : vector<1x192x64xbf16> to vector<192x64xbf16>
    %cst_14 = arith.constant dense<0.000000e+00> : vector<256x64xf32>
    %15 = tpu.matmul %12, %14, %cst_14 {dimension_numbers = #tpu.dot_dimension_numbers<[1], [0], [0], [1], [0, 0, 1, 1], [], []>} : vector<256x192xbf16>, vector<192x64xbf16>, vector<256x64xf32> -> vector<256x64xf32>
    %16 = arith.addf %10, %15 : vector<256x64xf32>
    %c0_15 = arith.constant 0 : index
    %c0_16 = arith.constant 0 : index
    %17 = vector.load %arg3[%c0_15, %c0_16] : memref<1x64xf32, #tpu.memory_space<vmem>>, vector<1x64xf32>
    %18 = vector.broadcast %17 : vector<1x64xf32> to vector<256x64xf32>
    %19 = arith.addf %16, %18 : vector<256x64xf32>
    %20 = arith.truncf %19 : vector<256x64xf32> to vector<256x64xbf16>
    %c0_17 = arith.constant 0 : index
    %c0_18 = arith.constant 0 : index
    %c0_19 = arith.constant 0 : index
    %21 = vector.load %arg4[%c0_17, %c0_18, %c0_19] : memref<1x256x64xbf16, #tpu.memory_space<vmem>>, vector<1x256x64xbf16>
    %22 = vector.shape_cast %21 : vector<1x256x64xbf16> to vector<256x64xbf16>
    %23 = vector.shape_cast %20 : vector<256x64xbf16> to vector<1x256x64xbf16>
    tpu.vector_store %arg4[%c0_17, %c0_18, %c0_19], %23 {strides = array<i32>} : memref<1x256x64xbf16, #tpu.memory_space<vmem>>, vector<1x256x64xbf16>,
    return
  }
  func.func @transform_0(%arg0: i32) -> (i32, i32, i32) {
    %c0_i32 = arith.constant 0 : i32
    %c0_i32_0 = arith.constant 0 : i32
    %c0_i32_1 = arith.constant 0 : i32
    return %arg0, %c0_i32, %c0_i32_0 : i32, i32, i32
  }
  func.func @transform_1(%arg0: i32) -> (i32, i32, i32) {
    %c0_i32 = arith.constant 0 : i32
    %c0_i32_0 = arith.constant 0 : i32
    %c0_i32_1 = arith.constant 0 : i32
    %c0_i32_2 = arith.constant 0 : i32
    return %c0_i32, %c0_i32_0, %c0_i32_1 : i32, i32, i32
  }
  func.func @transform_2(%arg0: i32) -> (i32, i32) {
    %c0_i32 = arith.constant 0 : i32
    %c0_i32_0 = arith.constant 0 : i32
    %c0_i32_1 = arith.constant 0 : i32
    return %c0_i32, %c0_i32_0 : i32, i32
  }
  func.func @transform_3(%arg0: i32) -> (i32, i32, i32) {
    %c0_i32 = arith.constant 0 : i32
    %c0_i32_0 = arith.constant 0 : i32
    %c0_i32_1 = arith.constant 0 : i32
    return %arg0, %c0_i32, %c0_i32_0 : i32, i32, i32
  }
}

module attributes {stable_mosaic.version = 11 : i64} {
  func.func @_conv3x3_kernel(%arg0: i32, %arg1: memref<1x288x192xbf16, #tpu.memory_space<vmem>>, %arg2: memref<3x192x64xbf16, #tpu.memory_space<vmem>>, %arg3: memref<1x64xf32, #tpu.memory_space<vmem>>, %arg4: memref<1x256x64xbf16, #tpu.memory_space<vmem>>, %arg5: memref<1x256x64xbf16, #tpu.memory_space<vmem>>) attributes {dimension_semantics = [#tpu.dimension_semantics<parallel>], iteration_bounds = array<i64: 2>, scalar_prefetch = 0 : i64, scratch_operands = 0 : i64, tpu.core_type = #tpu.core_type<tc>, window_params = [{transform_indices = @transform_0, window_bounds = array<i64: 1, 288, 192>}, {pipeline_mode = #tpu.pipeline_mode<synchronous>, transform_indices = @transform_1, window_bounds = array<i64: 3, 192, 64>}, {pipeline_mode = #tpu.pipeline_mode<synchronous>, transform_indices = @transform_2, window_bounds = array<i64: 1, 64>}, {transform_indices = @transform_3, window_bounds = array<i64: 1, 256, 64>}, {transform_indices = @transform_4, window_bounds = array<i64: 1, 256, 64>}]} {
    %c0 = arith.constant 0 : index
    %c0_0 = arith.constant 0 : index
    %c0_1 = arith.constant 0 : index
    %0 = vector.load %arg1[%c0, %c0_0, %c0_1] : memref<1x288x192xbf16, #tpu.memory_space<vmem>>, vector<1x256x192xbf16>
    %1 = vector.shape_cast %0 : vector<1x256x192xbf16> to vector<256x192xbf16>
    %c0_2 = arith.constant 0 : index
    %c0_3 = arith.constant 0 : index
    %c0_4 = arith.constant 0 : index
    %2 = vector.load %arg2[%c0_2, %c0_3, %c0_4] : memref<3x192x64xbf16, #tpu.memory_space<vmem>>, vector<1x192x64xbf16>
    %3 = vector.shape_cast %2 : vector<1x192x64xbf16> to vector<192x64xbf16>
    %cst = arith.constant dense<0.000000e+00> : vector<256x64xf32>
    %4 = tpu.matmul %1, %3, %cst {dimension_numbers = #tpu.dot_dimension_numbers<[1], [0], [0], [1], [0, 0, 1, 1], [], []>} : vector<256x192xbf16>, vector<192x64xbf16>, vector<256x64xf32> -> vector<256x64xf32>
    %c0_5 = arith.constant 0 : index
    %c16 = arith.constant 16 : index
    %c0_6 = arith.constant 0 : index
    %5 = vector.load %arg1[%c0_5, %c16, %c0_6] : memref<1x288x192xbf16, #tpu.memory_space<vmem>>, vector<1x256x192xbf16>
    %6 = vector.shape_cast %5 : vector<1x256x192xbf16> to vector<256x192xbf16>
    %c1 = arith.constant 1 : index
    %c0_7 = arith.constant 0 : index
    %c0_8 = arith.constant 0 : index
    %7 = vector.load %arg2[%c1, %c0_7, %c0_8] : memref<3x192x64xbf16, #tpu.memory_space<vmem>>, vector<1x192x64xbf16>
    %8 = vector.shape_cast %7 : vector<1x192x64xbf16> to vector<192x64xbf16>
    %cst_9 = arith.constant dense<0.000000e+00> : vector<256x64xf32>
    %9 = tpu.matmul %6, %8, %cst_9 {dimension_numbers = #tpu.dot_dimension_numbers<[1], [0], [0], [1], [0, 0, 1, 1], [], []>} : vector<256x192xbf16>, vector<192x64xbf16>, vector<256x64xf32> -> vector<256x64xf32>
    %10 = arith.addf %4, %9 : vector<256x64xf32>
    %c0_10 = arith.constant 0 : index
    %c32 = arith.constant 32 : index
    %c0_11 = arith.constant 0 : index
    %11 = vector.load %arg1[%c0_10, %c32, %c0_11] : memref<1x288x192xbf16, #tpu.memory_space<vmem>>, vector<1x256x192xbf16>
    %12 = vector.shape_cast %11 : vector<1x256x192xbf16> to vector<256x192xbf16>
    %c2 = arith.constant 2 : index
    %c0_12 = arith.constant 0 : index
    %c0_13 = arith.constant 0 : index
    %13 = vector.load %arg2[%c2, %c0_12, %c0_13] : memref<3x192x64xbf16, #tpu.memory_space<vmem>>, vector<1x192x64xbf16>
    %14 = vector.shape_cast %13 : vector<1x192x64xbf16> to vector<192x64xbf16>
    %cst_14 = arith.constant dense<0.000000e+00> : vector<256x64xf32>
    %15 = tpu.matmul %12, %14, %cst_14 {dimension_numbers = #tpu.dot_dimension_numbers<[1], [0], [0], [1], [0, 0, 1, 1], [], []>} : vector<256x192xbf16>, vector<192x64xbf16>, vector<256x64xf32> -> vector<256x64xf32>
    %16 = arith.addf %10, %15 : vector<256x64xf32>
    %c0_15 = arith.constant 0 : index
    %c0_16 = arith.constant 0 : index
    %17 = vector.load %arg3[%c0_15, %c0_16] : memref<1x64xf32, #tpu.memory_space<vmem>>, vector<1x64xf32>
    %18 = vector.broadcast %17 : vector<1x64xf32> to vector<256x64xf32>
    %19 = arith.addf %16, %18 : vector<256x64xf32>
    %c0_17 = arith.constant 0 : index
    %c0_18 = arith.constant 0 : index
    %c0_19 = arith.constant 0 : index
    %20 = vector.load %arg4[%c0_17, %c0_18, %c0_19] : memref<1x256x64xbf16, #tpu.memory_space<vmem>>, vector<1x256x64xbf16>
    %21 = vector.shape_cast %20 : vector<1x256x64xbf16> to vector<256x64xbf16>
    %22 = arith.extf %21 : vector<256x64xbf16> to vector<256x64xf32>
    %23 = arith.addf %19, %22 : vector<256x64xf32>
    %24 = arith.truncf %23 : vector<256x64xf32> to vector<256x64xbf16>
    %c0_20 = arith.constant 0 : index
    %c0_21 = arith.constant 0 : index
    %c0_22 = arith.constant 0 : index
    %25 = vector.load %arg5[%c0_20, %c0_21, %c0_22] : memref<1x256x64xbf16, #tpu.memory_space<vmem>>, vector<1x256x64xbf16>
    %26 = vector.shape_cast %25 : vector<1x256x64xbf16> to vector<256x64xbf16>
    %27 = vector.shape_cast %24 : vector<256x64xbf16> to vector<1x256x64xbf16>
    tpu.vector_store %arg5[%c0_20, %c0_21, %c0_22], %27 {strides = array<i32>} : memref<1x256x64xbf16, #tpu.memory_space<vmem>>, vector<1x256x64xbf16>,
    return
  }
  func.func @transform_0(%arg0: i32) -> (i32, i32, i32) {
    %c0_i32 = arith.constant 0 : i32
    %c0_i32_0 = arith.constant 0 : i32
    %c0_i32_1 = arith.constant 0 : i32
    return %arg0, %c0_i32, %c0_i32_0 : i32, i32, i32
  }
  func.func @transform_1(%arg0: i32) -> (i32, i32, i32) {
    %c0_i32 = arith.constant 0 : i32
    %c0_i32_0 = arith.constant 0 : i32
    %c0_i32_1 = arith.constant 0 : i32
    %c0_i32_2 = arith.constant 0 : i32
    return %c0_i32, %c0_i32_0, %c0_i32_1 : i32, i32, i32
  }
  func.func @transform_2(%arg0: i32) -> (i32, i32) {
    %c0_i32 = arith.constant 0 : i32
    %c0_i32_0 = arith.constant 0 : i32
    %c0_i32_1 = arith.constant 0 : i32
    return %c0_i32, %c0_i32_0 : i32, i32
  }
  func.func @transform_3(%arg0: i32) -> (i32, i32, i32) {
    %c0_i32 = arith.constant 0 : i32
    %c0_i32_0 = arith.constant 0 : i32
    %c0_i32_1 = arith.constant 0 : i32
    return %arg0, %c0_i32, %c0_i32_0 : i32, i32, i32
  }
  func.func @transform_4(%arg0: i32) -> (i32, i32, i32) {
    %c0_i32 = arith.constant 0 : i32
    %c0_i32_0 = arith.constant 0 : i32
    %c0_i32_1 = arith.constant 0 : i32
    return %arg0, %c0_i32, %c0_i32_0 : i32, i32, i32
  }
}

module attributes {stable_mosaic.version = 11 : i64} {
  func.func @_gn_qkv_kernel(%arg0: i32, %arg1: memref<1x256x64xbf16, #tpu.memory_space<vmem>>, %arg2: memref<64x64xf32, #tpu.memory_space<vmem>>, %arg3: memref<1x64xf32, #tpu.memory_space<vmem>>, %arg4: memref<1x64xf32, #tpu.memory_space<vmem>>, %arg5: memref<64x192xbf16, #tpu.memory_space<vmem>>, %arg6: memref<1x192xf32, #tpu.memory_space<vmem>>, %arg7: memref<1x256x192xbf16, #tpu.memory_space<vmem>>) attributes {dimension_semantics = [#tpu.dimension_semantics<parallel>], iteration_bounds = array<i64: 2>, scalar_prefetch = 0 : i64, scratch_operands = 0 : i64, tpu.core_type = #tpu.core_type<tc>, window_params = [{transform_indices = @transform_0, window_bounds = array<i64: 1, 256, 64>}, {pipeline_mode = #tpu.pipeline_mode<synchronous>, transform_indices = @transform_1, window_bounds = array<i64: 64, 64>}, {pipeline_mode = #tpu.pipeline_mode<synchronous>, transform_indices = @transform_2, window_bounds = array<i64: 1, 64>}, {pipeline_mode = #tpu.pipeline_mode<synchronous>, transform_indices = @transform_3, window_bounds = array<i64: 1, 64>}, {pipeline_mode = #tpu.pipeline_mode<synchronous>, transform_indices = @transform_4, window_bounds = array<i64: 64, 192>}, {pipeline_mode = #tpu.pipeline_mode<synchronous>, transform_indices = @transform_5, window_bounds = array<i64: 1, 192>}, {transform_indices = @transform_6, window_bounds = array<i64: 1, 256, 192>}]} {
    %c0 = arith.constant 0 : index
    %c0_0 = arith.constant 0 : index
    %c0_1 = arith.constant 0 : index
    %0 = vector.load %arg1[%c0, %c0_0, %c0_1] : memref<1x256x64xbf16, #tpu.memory_space<vmem>>, vector<1x256x64xbf16>
    %1 = vector.shape_cast %0 : vector<1x256x64xbf16> to vector<256x64xbf16>
    %2 = arith.extf %1 : vector<256x64xbf16> to vector<256x64xf32>
    %cst = arith.constant dense<0.000000e+00> : vector<64xf32>
    %3 = vector.multi_reduction <add>, %2, %cst [0] : vector<256x64xf32> to vector<64xf32>
    %4 = vector.shape_cast %3 : vector<64xf32> to vector<1x64xf32>
    %5 = arith.mulf %2, %2 : vector<256x64xf32>
    %cst_2 = arith.constant dense<0.000000e+00> : vector<64xf32>
    %6 = vector.multi_reduction <add>, %5, %cst_2 [0] : vector<256x64xf32> to vector<64xf32>
    %7 = vector.shape_cast %6 : vector<64xf32> to vector<1x64xf32>
    %8 = tpu.concatenate %4, %7 in 0 : vector<1x64xf32>, vector<1x64xf32> -> vector<2x64xf32>
    %c0_3 = arith.constant 0 : index
    %c0_4 = arith.constant 0 : index
    %9 = vector.load %arg2[%c0_3, %c0_4] : memref<64x64xf32, #tpu.memory_space<vmem>>, vector<64x64xf32>
    %cst_5 = arith.constant dense<0.000000e+00> : vector<2x64xf32>
    %10 = tpu.matmul %8, %9, %cst_5 {dimension_numbers = #tpu.dot_dimension_numbers<[1], [0], [0], [1], [0, 0, 1, 1], [], []>} : vector<2x64xf32>, vector<64x64xf32>, vector<2x64xf32> -> vector<2x64xf32>
    %11 = vector.extract_strided_slice %10 {offsets = [0, 0], sizes = [1, 64], strides = [1, 1]} : vector<2x64xf32> to vector<1x64xf32>
    %cst_6 = arith.constant 0.001953125 : f32
    %12 = vector.broadcast %cst_6 : f32 to vector<1x64xf32>
    %13 = arith.mulf %11, %12 : vector<1x64xf32>
    %14 = vector.extract_strided_slice %10 {offsets = [1, 0], sizes = [1, 64], strides = [1, 1]} : vector<2x64xf32> to vector<1x64xf32>
    %cst_7 = arith.constant 0.001953125 : f32
    %15 = vector.broadcast %cst_7 : f32 to vector<1x64xf32>
    %16 = arith.mulf %14, %15 : vector<1x64xf32>
    %17 = arith.mulf %13, %13 : vector<1x64xf32>
    %18 = arith.subf %16, %17 : vector<1x64xf32>
    %cst_8 = arith.constant 9.99999997E-7 : f32
    %19 = vector.broadcast %cst_8 : f32 to vector<1x64xf32>
    %20 = arith.addf %18, %19 : vector<1x64xf32>
    %21 = math.rsqrt %20 : vector<1x64xf32>
    %c0_9 = arith.constant 0 : index
    %c0_10 = arith.constant 0 : index
    %22 = vector.load %arg3[%c0_9, %c0_10] : memref<1x64xf32, #tpu.memory_space<vmem>>, vector<1x64xf32>
    %23 = arith.mulf %21, %22 : vector<1x64xf32>
    %c0_11 = arith.constant 0 : index
    %c0_12 = arith.constant 0 : index
    %24 = vector.load %arg4[%c0_11, %c0_12] : memref<1x64xf32, #tpu.memory_space<vmem>>, vector<1x64xf32>
    %25 = arith.mulf %13, %23 : vector<1x64xf32>
    %26 = arith.subf %24, %25 : vector<1x64xf32>
    %27 = vector.broadcast %23 : vector<1x64xf32> to vector<256x64xf32>
    %28 = arith.mulf %2, %27 : vector<256x64xf32>
    %29 = vector.broadcast %26 : vector<1x64xf32> to vector<256x64xf32>
    %30 = arith.addf %28, %29 : vector<256x64xf32>
    %31 = arith.truncf %30 : vector<256x64xf32> to vector<256x64xbf16>
    %c0_13 = arith.constant 0 : index
    %c0_14 = arith.constant 0 : index
    %32 = vector.load %arg5[%c0_13, %c0_14] : memref<64x192xbf16, #tpu.memory_space<vmem>>, vector<64x192xbf16>
    %cst_15 = arith.constant dense<0.000000e+00> : vector<256x192xf32>
    %33 = tpu.matmul %31, %32, %cst_15 {dimension_numbers = #tpu.dot_dimension_numbers<[1], [0], [0], [1], [0, 0, 1, 1], [], []>} : vector<256x64xbf16>, vector<64x192xbf16>, vector<256x192xf32> -> vector<256x192xf32>
    %c0_16 = arith.constant 0 : index
    %c0_17 = arith.constant 0 : index
    %34 = vector.load %arg6[%c0_16, %c0_17] : memref<1x192xf32, #tpu.memory_space<vmem>>, vector<1x192xf32>
    %35 = vector.broadcast %34 : vector<1x192xf32> to vector<256x192xf32>
    %36 = arith.addf %33, %35 : vector<256x192xf32>
    %37 = arith.truncf %36 : vector<256x192xf32> to vector<256x192xbf16>
    %c0_18 = arith.constant 0 : index
    %c0_19 = arith.constant 0 : index
    %c0_20 = arith.constant 0 : index
    %38 = vector.load %arg7[%c0_18, %c0_19, %c0_20] : memref<1x256x192xbf16, #tpu.memory_space<vmem>>, vector<1x256x192xbf16>
    %39 = vector.shape_cast %38 : vector<1x256x192xbf16> to vector<256x192xbf16>
    %40 = vector.shape_cast %37 : vector<256x192xbf16> to vector<1x256x192xbf16>
    tpu.vector_store %arg7[%c0_18, %c0_19, %c0_20], %40 {strides = array<i32>} : memref<1x256x192xbf16, #tpu.memory_space<vmem>>, vector<1x256x192xbf16>,
    return
  }
  func.func @transform_0(%arg0: i32) -> (i32, i32, i32) {
    %c0_i32 = arith.constant 0 : i32
    %c0_i32_0 = arith.constant 0 : i32
    %c0_i32_1 = arith.constant 0 : i32
    return %arg0, %c0_i32, %c0_i32_0 : i32, i32, i32
  }
  func.func @transform_1(%arg0: i32) -> (i32, i32) {
    %c0_i32 = arith.constant 0 : i32
    %c0_i32_0 = arith.constant 0 : i32
    %c0_i32_1 = arith.constant 0 : i32
    return %c0_i32, %c0_i32_0 : i32, i32
  }
  func.func @transform_2(%arg0: i32) -> (i32, i32) {
    %c0_i32 = arith.constant 0 : i32
    %c0_i32_0 = arith.constant 0 : i32
    %c0_i32_1 = arith.constant 0 : i32
    return %c0_i32, %c0_i32_0 : i32, i32
  }
  func.func @transform_3(%arg0: i32) -> (i32, i32) {
    %c0_i32 = arith.constant 0 : i32
    %c0_i32_0 = arith.constant 0 : i32
    %c0_i32_1 = arith.constant 0 : i32
    return %c0_i32, %c0_i32_0 : i32, i32
  }
  func.func @transform_4(%arg0: i32) -> (i32, i32) {
    %c0_i32 = arith.constant 0 : i32
    %c0_i32_0 = arith.constant 0 : i32
    %c0_i32_1 = arith.constant 0 : i32
    return %c0_i32, %c0_i32_0 : i32, i32
  }
  func.func @transform_5(%arg0: i32) -> (i32, i32) {
    %c0_i32 = arith.constant 0 : i32
    %c0_i32_0 = arith.constant 0 : i32
    %c0_i32_1 = arith.constant 0 : i32
    return %c0_i32, %c0_i32_0 : i32, i32
  }
  func.func @transform_6(%arg0: i32) -> (i32, i32, i32) {
    %c0_i32 = arith.constant 0 : i32
    %c0_i32_0 = arith.constant 0 : i32
    %c0_i32_1 = arith.constant 0 : i32
    return %arg0, %c0_i32, %c0_i32_0 : i32, i32, i32
  }
}

module attributes {stable_mosaic.version = 11 : i64} {
  func.func @_attn_proj_kernel(%arg0: i32, %arg1: i32, %arg2: i32, %arg3: memref<1x256x192xbf16, #tpu.memory_space<vmem>>, %arg4: memref<1x128x192xbf16, #tpu.memory_space<vmem>>, %arg5: memref<64x64xbf16, #tpu.memory_space<vmem>>, %arg6: memref<1x64xf32, #tpu.memory_space<vmem>>, %arg7: memref<1x256x64xbf16, #tpu.memory_space<vmem>>, %arg8: memref<1x256x64xbf16, #tpu.memory_space<vmem>>, %arg9: memref<256x1xf32, #tpu.memory_space<vmem>>, %arg10: memref<256x1xf32, #tpu.memory_space<vmem>>, %arg11: memref<256x64xf32, #tpu.memory_space<vmem>>) attributes {dimension_semantics = [#tpu.dimension_semantics<parallel>, #tpu.dimension_semantics<parallel>, #tpu.dimension_semantics<arbitrary>], iteration_bounds = array<i64: 2, 1, 2>, scalar_prefetch = 0 : i64, scratch_operands = 3 : i64, tpu.core_type = #tpu.core_type<tc>, window_params = [{transform_indices = @transform_0, window_bounds = array<i64: 1, 256, 192>}, {transform_indices = @transform_1, window_bounds = array<i64: 1, 128, 192>}, {pipeline_mode = #tpu.pipeline_mode<synchronous>, transform_indices = @transform_2, window_bounds = array<i64: 64, 64>}, {pipeline_mode = #tpu.pipeline_mode<synchronous>, transform_indices = @transform_3, window_bounds = array<i64: 1, 64>}, {transform_indices = @transform_4, window_bounds = array<i64: 1, 256, 64>}, {transform_indices = @transform_5, window_bounds = array<i64: 1, 256, 64>}]} {
    %c0_i32 = arith.constant 0 : i32
    %0 = arith.cmpi eq, %arg2, %c0_i32 : i32
    %1 = arith.extui %0 : i1 to i32
    %c0_i32_0 = arith.constant 0 : i32
    %2 = arith.cmpi ne, %1, %c0_i32_0 : i32
    scf.if %2 {
      %cst_22 = arith.constant 0xFF800000 : f32
      %37 = vector.broadcast %cst_22 : f32 to vector<256x1xf32>
      %c0_23 = arith.constant 0 : index
      %c0_24 = arith.constant 0 : index
      %38 = vector.load %arg9[%c0_23, %c0_24] : memref<256x1xf32, #tpu.memory_space<vmem>>, vector<256x1xf32>
      tpu.vector_store %arg9[%c0_23, %c0_24], %37 {strides = array<i32>} : memref<256x1xf32, #tpu.memory_space<vmem>>, vector<256x1xf32>,
      %cst_25 = arith.constant 0.000000e+00 : f32
      %39 = vector.broadcast %cst_25 : f32 to vector<256x1xf32>
      %c0_26 = arith.constant 0 : index
      %c0_27 = arith.constant 0 : index
      %40 = vector.load %arg10[%c0_26, %c0_27] : memref<256x1xf32, #tpu.memory_space<vmem>>, vector<256x1xf32>
      tpu.vector_store %arg10[%c0_26, %c0_27], %39 {strides = array<i32>} : memref<256x1xf32, #tpu.memory_space<vmem>>, vector<256x1xf32>,
      %cst_28 = arith.constant 0.000000e+00 : f32
      %41 = vector.broadcast %cst_28 : f32 to vector<256x64xf32>
      %c0_29 = arith.constant 0 : index
      %c0_30 = arith.constant 0 : index
      %42 = vector.load %arg11[%c0_29, %c0_30] : memref<256x64xf32, #tpu.memory_space<vmem>>, vector<256x64xf32>
      tpu.vector_store %arg11[%c0_29, %c0_30], %41 {strides = array<i32>} : memref<256x64xf32, #tpu.memory_space<vmem>>, vector<256x64xf32>,
    } else {
    }
    %c0 = arith.constant 0 : index
    %c0_1 = arith.constant 0 : index
    %c0_2 = arith.constant 0 : index
    %3 = vector.load %arg3[%c0, %c0_1, %c0_2] : memref<1x256x192xbf16, #tpu.memory_space<vmem>>, vector<1x256x192xbf16>
    %4 = vector.shape_cast %3 : vector<1x256x192xbf16> to vector<256x192xbf16>
    %5 = vector.extract_strided_slice %4 {offsets = [0, 0], sizes = [256, 64], strides = [1, 1]} : vector<256x192xbf16> to vector<256x64xbf16>
    %c0_3 = arith.constant 0 : index
    %c0_4 = arith.constant 0 : index
    %c0_5 = arith.constant 0 : index
    %6 = vector.load %arg4[%c0_3, %c0_4, %c0_5] : memref<1x128x192xbf16, #tpu.memory_space<vmem>>, vector<1x128x192xbf16>
    %7 = vector.shape_cast %6 : vector<1x128x192xbf16> to vector<128x192xbf16>
    %8 = vector.extract_strided_slice %7 {offsets = [0, 64], sizes = [128, 64], strides = [1, 1]} : vector<128x192xbf16> to vector<128x64xbf16>
    %9 = vector.extract_strided_slice %7 {offsets = [0, 128], sizes = [128, 64], strides = [1, 1]} : vector<128x192xbf16> to vector<128x64xbf16>
    %cst = arith.constant dense<0.000000e+00> : vector<256x128xf32>
    %10 = tpu.matmul %5, %8, %cst {dimension_numbers = #tpu.dot_dimension_numbers<[1], [1], [0], [0], [0, 0, 1, 0], [], []>} : vector<256x64xbf16>, vector<128x64xbf16>, vector<256x128xf32> -> vector<256x128xf32>
    %c0_6 = arith.constant 0 : index
    %c0_7 = arith.constant 0 : index
    %11 = vector.load %arg9[%c0_6, %c0_7] : memref<256x1xf32, #tpu.memory_space<vmem>>, vector<256x1xf32>
    %cst_8 = arith.constant dense<0xFF800000> : vector<256xf32>
    %12 = vector.multi_reduction <maximumf>, %10, %cst_8 [1] : vector<256x128xf32> to vector<256xf32>
    %13 = vector.shape_cast %12 : vector<256xf32> to vector<256x1xf32>
    %14 = arith.maximumf %11, %13 : vector<256x1xf32>
    %15 = arith.subf %11, %14 : vector<256x1xf32>
    %16 = math.exp %15 : vector<256x1xf32>
    %17 = vector.broadcast %14 : vector<256x1xf32> to vector<256x128xf32>
    %18 = arith.subf %10, %17 : vector<256x128xf32>
    %19 = math.exp %18 : vector<256x128xf32>
    %c0_9 = arith.constant 0 : index
    %c0_10 = arith.constant 0 : index
    %20 = vector.load %arg10[%c0_9, %c0_10] : memref<256x1xf32, #tpu.memory_space<vmem>>, vector<256x1xf32>
    %21 = arith.mulf %16, %20 : vector<256x1xf32>
    %cst_11 = arith.constant dense<0.000000e+00> : vector<256xf32>
    %22 = vector.multi_reduction <add>, %19, %cst_11 [1] : vector<256x128xf32> to vector<256xf32>
    %23 = vector.shape_cast %22 : vector<256xf32> to vector<256x1xf32>
    %24 = arith.addf %21, %23 : vector<256x1xf32>
    %c0_12 = arith.constant 0 : index
    %c0_13 = arith.constant 0 : index
    %25 = vector.load %arg10[%c0_12, %c0_13] : memref<256x1xf32, #tpu.memory_space<vmem>>, vector<256x1xf32>
    tpu.vector_store %arg10[%c0_12, %c0_13], %24 {strides = array<i32>} : memref<256x1xf32, #tpu.memory_space<vmem>>, vector<256x1xf32>,
    %c0_14 = arith.constant 0 : index
    %c0_15 = arith.constant 0 : index
    %26 = vector.load %arg11[%c0_14, %c0_15] : memref<256x64xf32, #tpu.memory_space<vmem>>, vector<256x64xf32>
    %27 = vector.broadcast %16 : vector<256x1xf32> to vector<256x64xf32>
    %28 = arith.mulf %27, %26 : vector<256x64xf32>
    %29 = arith.truncf %19 : vector<256x128xf32> to vector<256x128xbf16>
    %cst_16 = arith.constant dense<0.000000e+00> : vector<256x64xf32>
    %30 = tpu.matmul %29, %9, %cst_16 {dimension_numbers = #tpu.dot_dimension_numbers<[1], [0], [0], [1], [0, 0, 1, 1], [], []>} : vector<256x128xbf16>, vector<128x64xbf16>, vector<256x64xf32> -> vector<256x64xf32>
    %31 = arith.addf %28, %30 : vector<256x64xf32>
    %c0_17 = arith.constant 0 : index
    %c0_18 = arith.constant 0 : index
    %32 = vector.load %arg11[%c0_17, %c0_18] : memref<256x64xf32, #tpu.memory_space<vmem>>, vector<256x64xf32>
    tpu.vector_store %arg11[%c0_17, %c0_18], %31 {strides = array<i32>} : memref<256x64xf32, #tpu.memory_space<vmem>>, vector<256x64xf32>,
    %c0_19 = arith.constant 0 : index
    %c0_20 = arith.constant 0 : index
    %33 = vector.load %arg9[%c0_19, %c0_20] : memref<256x1xf32, #tpu.memory_space<vmem>>, vector<256x1xf32>
    tpu.vector_store %arg9[%c0_19, %c0_20], %14 {strides = array<i32>} : memref<256x1xf32, #tpu.memory_space<vmem>>, vector<256x1xf32>,
    %c1_i32 = arith.constant 1 : i32
    %34 = arith.cmpi eq, %arg2, %c1_i32 : i32
    %35 = arith.extui %34 : i1 to i32
    %c0_i32_21 = arith.constant 0 : i32
    %36 = arith.cmpi ne, %35, %c0_i32_21 : i32
    scf.if %36 {
      %c0_22 = arith.constant 0 : index
      %c0_23 = arith.constant 0 : index
      %37 = vector.load %arg11[%c0_22, %c0_23] : memref<256x64xf32, #tpu.memory_space<vmem>>, vector<256x64xf32>
      %c0_24 = arith.constant 0 : index
      %c0_25 = arith.constant 0 : index
      %38 = vector.load %arg10[%c0_24, %c0_25] : memref<256x1xf32, #tpu.memory_space<vmem>>, vector<256x1xf32>
      %39 = tpu.reciprocal %38 {approx = true} : vector<256x1xf32> -> vector<256x1xf32>
      %40 = vector.broadcast %39 : vector<256x1xf32> to vector<256x64xf32>
      %41 = arith.mulf %37, %40 : vector<256x64xf32>
      %42 = arith.truncf %41 : vector<256x64xf32> to vector<256x64xbf16>
      %c0_26 = arith.constant 0 : index
      %c0_27 = arith.constant 0 : index
      %43 = vector.load %arg5[%c0_26, %c0_27] : memref<64x64xbf16, #tpu.memory_space<vmem>>, vector<64x64xbf16>
      %cst_28 = arith.constant dense<0.000000e+00> : vector<256x64xf32>
      %44 = tpu.matmul %42, %43, %cst_28 {dimension_numbers = #tpu.dot_dimension_numbers<[1], [0], [0], [1], [0, 0, 1, 1], [], []>} : vector<256x64xbf16>, vector<64x64xbf16>, vector<256x64xf32> -> vector<256x64xf32>
      %c0_29 = arith.constant 0 : index
      %c0_30 = arith.constant 0 : index
      %45 = vector.load %arg6[%c0_29, %c0_30] : memref<1x64xf32, #tpu.memory_space<vmem>>, vector<1x64xf32>
      %46 = vector.broadcast %45 : vector<1x64xf32> to vector<256x64xf32>
      %47 = arith.addf %44, %46 : vector<256x64xf32>
      %c0_31 = arith.constant 0 : index
      %c0_32 = arith.constant 0 : index
      %c0_33 = arith.constant 0 : index
      %48 = vector.load %arg7[%c0_31, %c0_32, %c0_33] : memref<1x256x64xbf16, #tpu.memory_space<vmem>>, vector<1x256x64xbf16>
      %49 = vector.shape_cast %48 : vector<1x256x64xbf16> to vector<256x64xbf16>
      %50 = arith.extf %49 : vector<256x64xbf16> to vector<256x64xf32>
      %51 = arith.addf %47, %50 : vector<256x64xf32>
      %52 = arith.truncf %51 : vector<256x64xf32> to vector<256x64xbf16>
      %c0_34 = arith.constant 0 : index
      %c0_35 = arith.constant 0 : index
      %c0_36 = arith.constant 0 : index
      %53 = vector.load %arg8[%c0_34, %c0_35, %c0_36] : memref<1x256x64xbf16, #tpu.memory_space<vmem>>, vector<1x256x64xbf16>
      %54 = vector.shape_cast %53 : vector<1x256x64xbf16> to vector<256x64xbf16>
      %55 = vector.shape_cast %52 : vector<256x64xbf16> to vector<1x256x64xbf16>
      tpu.vector_store %arg8[%c0_34, %c0_35, %c0_36], %55 {strides = array<i32>} : memref<1x256x64xbf16, #tpu.memory_space<vmem>>, vector<1x256x64xbf16>,
    } else {
    }
    return
  }
  func.func @transform_0(%arg0: i32, %arg1: i32, %arg2: i32) -> (i32, i32, i32) {
    %c0_i32 = arith.constant 0 : i32
    %c0_i32_0 = arith.constant 0 : i32
    return %arg0, %arg1, %c0_i32 : i32, i32, i32
  }
  func.func @transform_1(%arg0: i32, %arg1: i32, %arg2: i32) -> (i32, i32, i32) {
    %c0_i32 = arith.constant 0 : i32
    %c0_i32_0 = arith.constant 0 : i32
    return %arg0, %arg2, %c0_i32 : i32, i32, i32
  }
  func.func @transform_2(%arg0: i32, %arg1: i32, %arg2: i32) -> (i32, i32) {
    %c0_i32 = arith.constant 0 : i32
    %c0_i32_0 = arith.constant 0 : i32
    %c0_i32_1 = arith.constant 0 : i32
    return %c0_i32, %c0_i32_0 : i32, i32
  }
  func.func @transform_3(%arg0: i32, %arg1: i32, %arg2: i32) -> (i32, i32) {
    %c0_i32 = arith.constant 0 : i32
    %c0_i32_0 = arith.constant 0 : i32
    %c0_i32_1 = arith.constant 0 : i32
    return %c0_i32, %c0_i32_0 : i32, i32
  }
  func.func @transform_4(%arg0: i32, %arg1: i32, %arg2: i32) -> (i32, i32, i32) {
    %c0_i32 = arith.constant 0 : i32
    %c0_i32_0 = arith.constant 0 : i32
    return %arg0, %arg1, %c0_i32 : i32, i32, i32
  }
  func.func @transform_5(%arg0: i32, %arg1: i32, %arg2: i32) -> (i32, i32, i32) {
    %c0_i32 = arith.constant 0 : i32
    %c0_i32_0 = arith.constant 0 : i32
    return %arg0, %arg1, %c0_i32 : i32, i32, i32
  }
}

module attributes {stable_mosaic.version = 11 : i64} {
  func.func @_conv3x3_kernel(%arg0: i32, %arg1: memref<1x288x192xbf16, #tpu.memory_space<vmem>>, %arg2: memref<3x192x4xbf16, #tpu.memory_space<vmem>>, %arg3: memref<1x4xf32, #tpu.memory_space<vmem>>, %arg4: memref<1x256x4xbf16, #tpu.memory_space<vmem>>) attributes {dimension_semantics = [#tpu.dimension_semantics<parallel>], iteration_bounds = array<i64: 2>, scalar_prefetch = 0 : i64, scratch_operands = 0 : i64, tpu.core_type = #tpu.core_type<tc>, window_params = [{transform_indices = @transform_0, window_bounds = array<i64: 1, 288, 192>}, {pipeline_mode = #tpu.pipeline_mode<synchronous>, transform_indices = @transform_1, window_bounds = array<i64: 3, 192, 4>}, {pipeline_mode = #tpu.pipeline_mode<synchronous>, transform_indices = @transform_2, window_bounds = array<i64: 1, 4>}, {transform_indices = @transform_3, window_bounds = array<i64: 1, 256, 4>}]} {
    %c0 = arith.constant 0 : index
    %c0_0 = arith.constant 0 : index
    %c0_1 = arith.constant 0 : index
    %0 = vector.load %arg1[%c0, %c0_0, %c0_1] : memref<1x288x192xbf16, #tpu.memory_space<vmem>>, vector<1x256x192xbf16>
    %1 = vector.shape_cast %0 : vector<1x256x192xbf16> to vector<256x192xbf16>
    %c0_2 = arith.constant 0 : index
    %c0_3 = arith.constant 0 : index
    %c0_4 = arith.constant 0 : index
    %2 = vector.load %arg2[%c0_2, %c0_3, %c0_4] : memref<3x192x4xbf16, #tpu.memory_space<vmem>>, vector<1x192x4xbf16>
    %3 = vector.shape_cast %2 : vector<1x192x4xbf16> to vector<192x4xbf16>
    %cst = arith.constant dense<0.000000e+00> : vector<256x4xf32>
    %4 = tpu.matmul %1, %3, %cst {dimension_numbers = #tpu.dot_dimension_numbers<[1], [0], [0], [1], [0, 0, 1, 1], [], []>} : vector<256x192xbf16>, vector<192x4xbf16>, vector<256x4xf32> -> vector<256x4xf32>
    %c0_5 = arith.constant 0 : index
    %c16 = arith.constant 16 : index
    %c0_6 = arith.constant 0 : index
    %5 = vector.load %arg1[%c0_5, %c16, %c0_6] : memref<1x288x192xbf16, #tpu.memory_space<vmem>>, vector<1x256x192xbf16>
    %6 = vector.shape_cast %5 : vector<1x256x192xbf16> to vector<256x192xbf16>
    %c1 = arith.constant 1 : index
    %c0_7 = arith.constant 0 : index
    %c0_8 = arith.constant 0 : index
    %7 = vector.load %arg2[%c1, %c0_7, %c0_8] : memref<3x192x4xbf16, #tpu.memory_space<vmem>>, vector<1x192x4xbf16>
    %8 = vector.shape_cast %7 : vector<1x192x4xbf16> to vector<192x4xbf16>
    %cst_9 = arith.constant dense<0.000000e+00> : vector<256x4xf32>
    %9 = tpu.matmul %6, %8, %cst_9 {dimension_numbers = #tpu.dot_dimension_numbers<[1], [0], [0], [1], [0, 0, 1, 1], [], []>} : vector<256x192xbf16>, vector<192x4xbf16>, vector<256x4xf32> -> vector<256x4xf32>
    %10 = arith.addf %4, %9 : vector<256x4xf32>
    %c0_10 = arith.constant 0 : index
    %c32 = arith.constant 32 : index
    %c0_11 = arith.constant 0 : index
    %11 = vector.load %arg1[%c0_10, %c32, %c0_11] : memref<1x288x192xbf16, #tpu.memory_space<vmem>>, vector<1x256x192xbf16>
    %12 = vector.shape_cast %11 : vector<1x256x192xbf16> to vector<256x192xbf16>
    %c2 = arith.constant 2 : index
    %c0_12 = arith.constant 0 : index
    %c0_13 = arith.constant 0 : index
    %13 = vector.load %arg2[%c2, %c0_12, %c0_13] : memref<3x192x4xbf16, #tpu.memory_space<vmem>>, vector<1x192x4xbf16>
    %14 = vector.shape_cast %13 : vector<1x192x4xbf16> to vector<192x4xbf16>
    %cst_14 = arith.constant dense<0.000000e+00> : vector<256x4xf32>
    %15 = tpu.matmul %12, %14, %cst_14 {dimension_numbers = #tpu.dot_dimension_numbers<[1], [0], [0], [1], [0, 0, 1, 1], [], []>} : vector<256x192xbf16>, vector<192x4xbf16>, vector<256x4xf32> -> vector<256x4xf32>
    %16 = arith.addf %10, %15 : vector<256x4xf32>
    %c0_15 = arith.constant 0 : index
    %c0_16 = arith.constant 0 : index
    %17 = vector.load %arg3[%c0_15, %c0_16] : memref<1x4xf32, #tpu.memory_space<vmem>>, vector<1x4xf32>
    %18 = vector.broadcast %17 : vector<1x4xf32> to vector<256x4xf32>
    %19 = arith.addf %16, %18 : vector<256x4xf32>
    %20 = arith.truncf %19 : vector<256x4xf32> to vector<256x4xbf16>
    %c0_17 = arith.constant 0 : index
    %c0_18 = arith.constant 0 : index
    %c0_19 = arith.constant 0 : index
    %21 = vector.load %arg4[%c0_17, %c0_18, %c0_19] : memref<1x256x4xbf16, #tpu.memory_space<vmem>>, vector<1x256x4xbf16>
    %22 = vector.shape_cast %21 : vector<1x256x4xbf16> to vector<256x4xbf16>
    %23 = vector.shape_cast %20 : vector<256x4xbf16> to vector<1x256x4xbf16>
    tpu.vector_store %arg4[%c0_17, %c0_18, %c0_19], %23 {strides = array<i32>} : memref<1x256x4xbf16, #tpu.memory_space<vmem>>, vector<1x256x4xbf16>,
    return
  }
  func.func @transform_0(%arg0: i32) -> (i32, i32, i32) {
    %c0_i32 = arith.constant 0 : i32
    %c0_i32_0 = arith.constant 0 : i32
    %c0_i32_1 = arith.constant 0 : i32
    return %arg0, %c0_i32, %c0_i32_0 : i32, i32, i32
  }
  func.func @transform_1(%arg0: i32) -> (i32, i32, i32) {
    %c0_i32 = arith.constant 0 : i32
    %c0_i32_0 = arith.constant 0 : i32
    %c0_i32_1 = arith.constant 0 : i32
    %c0_i32_2 = arith.constant 0 : i32
    return %c0_i32, %c0_i32_0, %c0_i32_1 : i32, i32, i32
  }
  func.func @transform_2(%arg0: i32) -> (i32, i32) {
    %c0_i32 = arith.constant 0 : i32
    %c0_i32_0 = arith.constant 0 : i32
    %c0_i32_1 = arith.constant 0 : i32
    return %c0_i32, %c0_i32_0 : i32, i32
  }
  func.func @transform_3(%arg0: i32) -> (i32, i32, i32) {
    %c0_i32 = arith.constant 0 : i32
    %c0_i32_0 = arith.constant 0 : i32
    %c0_i32_1 = arith.constant 0 : i32
    return %arg0, %c0_i32, %c0_i32_0 : i32, i32, i32
  }
}

module attributes {stable_mosaic.version = 11 : i64} {
  func.func @_conv3x3_kernel(%arg0: i32, %arg1: memref<1x288x12xbf16, #tpu.memory_space<vmem>>, %arg2: memref<3x12x64xbf16, #tpu.memory_space<vmem>>, %arg3: memref<1x64xf32, #tpu.memory_space<vmem>>, %arg4: memref<1x256x64xbf16, #tpu.memory_space<vmem>>) attributes {dimension_semantics = [#tpu.dimension_semantics<parallel>], iteration_bounds = array<i64: 2>, scalar_prefetch = 0 : i64, scratch_operands = 0 : i64, tpu.core_type = #tpu.core_type<tc>, window_params = [{transform_indices = @transform_0, window_bounds = array<i64: 1, 288, 12>}, {pipeline_mode = #tpu.pipeline_mode<synchronous>, transform_indices = @transform_1, window_bounds = array<i64: 3, 12, 64>}, {pipeline_mode = #tpu.pipeline_mode<synchronous>, transform_indices = @transform_2, window_bounds = array<i64: 1, 64>}, {transform_indices = @transform_3, window_bounds = array<i64: 1, 256, 64>}]} {
    %c0 = arith.constant 0 : index
    %c0_0 = arith.constant 0 : index
    %c0_1 = arith.constant 0 : index
    %0 = vector.load %arg1[%c0, %c0_0, %c0_1] : memref<1x288x12xbf16, #tpu.memory_space<vmem>>, vector<1x256x12xbf16>
    %1 = vector.shape_cast %0 : vector<1x256x12xbf16> to vector<256x12xbf16>
    %c0_2 = arith.constant 0 : index
    %c0_3 = arith.constant 0 : index
    %c0_4 = arith.constant 0 : index
    %2 = vector.load %arg2[%c0_2, %c0_3, %c0_4] : memref<3x12x64xbf16, #tpu.memory_space<vmem>>, vector<1x12x64xbf16>
    %3 = vector.shape_cast %2 : vector<1x12x64xbf16> to vector<12x64xbf16>
    %cst = arith.constant dense<0.000000e+00> : vector<256x64xf32>
    %4 = tpu.matmul %1, %3, %cst {dimension_numbers = #tpu.dot_dimension_numbers<[1], [0], [0], [1], [0, 0, 1, 1], [], []>} : vector<256x12xbf16>, vector<12x64xbf16>, vector<256x64xf32> -> vector<256x64xf32>
    %c0_5 = arith.constant 0 : index
    %c16 = arith.constant 16 : index
    %c0_6 = arith.constant 0 : index
    %5 = vector.load %arg1[%c0_5, %c16, %c0_6] : memref<1x288x12xbf16, #tpu.memory_space<vmem>>, vector<1x256x12xbf16>
    %6 = vector.shape_cast %5 : vector<1x256x12xbf16> to vector<256x12xbf16>
    %c1 = arith.constant 1 : index
    %c0_7 = arith.constant 0 : index
    %c0_8 = arith.constant 0 : index
    %7 = vector.load %arg2[%c1, %c0_7, %c0_8] : memref<3x12x64xbf16, #tpu.memory_space<vmem>>, vector<1x12x64xbf16>
    %8 = vector.shape_cast %7 : vector<1x12x64xbf16> to vector<12x64xbf16>
    %cst_9 = arith.constant dense<0.000000e+00> : vector<256x64xf32>
    %9 = tpu.matmul %6, %8, %cst_9 {dimension_numbers = #tpu.dot_dimension_numbers<[1], [0], [0], [1], [0, 0, 1, 1], [], []>} : vector<256x12xbf16>, vector<12x64xbf16>, vector<256x64xf32> -> vector<256x64xf32>
    %10 = arith.addf %4, %9 : vector<256x64xf32>
    %c0_10 = arith.constant 0 : index
    %c32 = arith.constant 32 : index
    %c0_11 = arith.constant 0 : index
    %11 = vector.load %arg1[%c0_10, %c32, %c0_11] : memref<1x288x12xbf16, #tpu.memory_space<vmem>>, vector<1x256x12xbf16>
    %12 = vector.shape_cast %11 : vector<1x256x12xbf16> to vector<256x12xbf16>
    %c2 = arith.constant 2 : index
    %c0_12 = arith.constant 0 : index
    %c0_13 = arith.constant 0 : index
    %13 = vector.load %arg2[%c2, %c0_12, %c0_13] : memref<3x12x64xbf16, #tpu.memory_space<vmem>>, vector<1x12x64xbf16>
    %14 = vector.shape_cast %13 : vector<1x12x64xbf16> to vector<12x64xbf16>
    %cst_14 = arith.constant dense<0.000000e+00> : vector<256x64xf32>
    %15 = tpu.matmul %12, %14, %cst_14 {dimension_numbers = #tpu.dot_dimension_numbers<[1], [0], [0], [1], [0, 0, 1, 1], [], []>} : vector<256x12xbf16>, vector<12x64xbf16>, vector<256x64xf32> -> vector<256x64xf32>
    %16 = arith.addf %10, %15 : vector<256x64xf32>
    %c0_15 = arith.constant 0 : index
    %c0_16 = arith.constant 0 : index
    %17 = vector.load %arg3[%c0_15, %c0_16] : memref<1x64xf32, #tpu.memory_space<vmem>>, vector<1x64xf32>
    %18 = vector.broadcast %17 : vector<1x64xf32> to vector<256x64xf32>
    %19 = arith.addf %16, %18 : vector<256x64xf32>
    %20 = arith.truncf %19 : vector<256x64xf32> to vector<256x64xbf16>
    %c0_17 = arith.constant 0 : index
    %c0_18 = arith.constant 0 : index
    %c0_19 = arith.constant 0 : index
    %21 = vector.load %arg4[%c0_17, %c0_18, %c0_19] : memref<1x256x64xbf16, #tpu.memory_space<vmem>>, vector<1x256x64xbf16>
    %22 = vector.shape_cast %21 : vector<1x256x64xbf16> to vector<256x64xbf16>
    %23 = vector.shape_cast %20 : vector<256x64xbf16> to vector<1x256x64xbf16>
    tpu.vector_store %arg4[%c0_17, %c0_18, %c0_19], %23 {strides = array<i32>} : memref<1x256x64xbf16, #tpu.memory_space<vmem>>, vector<1x256x64xbf16>,
    return
  }
  func.func @transform_0(%arg0: i32) -> (i32, i32, i32) {
    %c0_i32 = arith.constant 0 : i32
    %c0_i32_0 = arith.constant 0 : i32
    %c0_i32_1 = arith.constant 0 : i32
    return %arg0, %c0_i32, %c0_i32_0 : i32, i32, i32
  }
  func.func @transform_1(%arg0: i32) -> (i32, i32, i32) {
    %c0_i32 = arith.constant 0 : i32
    %c0_i32_0 = arith.constant 0 : i32
    %c0_i32_1 = arith.constant 0 : i32
    %c0_i32_2 = arith.constant 0 : i32
    return %c0_i32, %c0_i32_0, %c0_i32_1 : i32, i32, i32
  }
  func.func @transform_2(%arg0: i32) -> (i32, i32) {
    %c0_i32 = arith.constant 0 : i32
    %c0_i32_0 = arith.constant 0 : i32
    %c0_i32_1 = arith.constant 0 : i32
    return %c0_i32, %c0_i32_0 : i32, i32
  }
  func.func @transform_3(%arg0: i32) -> (i32, i32, i32) {
    %c0_i32 = arith.constant 0 : i32
    %c0_i32_0 = arith.constant 0 : i32
    %c0_i32_1 = arith.constant 0 : i32
    return %arg0, %c0_i32, %c0_i32_0 : i32, i32, i32
  }
}

module attributes {stable_mosaic.version = 11 : i64} {
  func.func @_conv3x3_kernel(%arg0: i32, %arg1: memref<1x288x192xbf16, #tpu.memory_space<vmem>>, %arg2: memref<3x192x3xbf16, #tpu.memory_space<vmem>>, %arg3: memref<1x3xf32, #tpu.memory_space<vmem>>, %arg4: memref<1x256x3xf32, #tpu.memory_space<vmem>>) attributes {dimension_semantics = [#tpu.dimension_semantics<parallel>], iteration_bounds = array<i64: 2>, scalar_prefetch = 0 : i64, scratch_operands = 0 : i64, tpu.core_type = #tpu.core_type<tc>, window_params = [{transform_indices = @transform_0, window_bounds = array<i64: 1, 288, 192>}, {pipeline_mode = #tpu.pipeline_mode<synchronous>, transform_indices = @transform_1, window_bounds = array<i64: 3, 192, 3>}, {pipeline_mode = #tpu.pipeline_mode<synchronous>, transform_indices = @transform_2, window_bounds = array<i64: 1, 3>}, {transform_indices = @transform_3, window_bounds = array<i64: 1, 256, 3>}]} {
    %c0 = arith.constant 0 : index
    %c0_0 = arith.constant 0 : index
    %c0_1 = arith.constant 0 : index
    %0 = vector.load %arg1[%c0, %c0_0, %c0_1] : memref<1x288x192xbf16, #tpu.memory_space<vmem>>, vector<1x256x192xbf16>
    %1 = vector.shape_cast %0 : vector<1x256x192xbf16> to vector<256x192xbf16>
    %c0_2 = arith.constant 0 : index
    %c0_3 = arith.constant 0 : index
    %c0_4 = arith.constant 0 : index
    %2 = vector.load %arg2[%c0_2, %c0_3, %c0_4] : memref<3x192x3xbf16, #tpu.memory_space<vmem>>, vector<1x192x3xbf16>
    %3 = vector.shape_cast %2 : vector<1x192x3xbf16> to vector<192x3xbf16>
    %cst = arith.constant dense<0.000000e+00> : vector<256x3xf32>
    %4 = tpu.matmul %1, %3, %cst {dimension_numbers = #tpu.dot_dimension_numbers<[1], [0], [0], [1], [0, 0, 1, 1], [], []>} : vector<256x192xbf16>, vector<192x3xbf16>, vector<256x3xf32> -> vector<256x3xf32>
    %c0_5 = arith.constant 0 : index
    %c16 = arith.constant 16 : index
    %c0_6 = arith.constant 0 : index
    %5 = vector.load %arg1[%c0_5, %c16, %c0_6] : memref<1x288x192xbf16, #tpu.memory_space<vmem>>, vector<1x256x192xbf16>
    %6 = vector.shape_cast %5 : vector<1x256x192xbf16> to vector<256x192xbf16>
    %c1 = arith.constant 1 : index
    %c0_7 = arith.constant 0 : index
    %c0_8 = arith.constant 0 : index
    %7 = vector.load %arg2[%c1, %c0_7, %c0_8] : memref<3x192x3xbf16, #tpu.memory_space<vmem>>, vector<1x192x3xbf16>
    %8 = vector.shape_cast %7 : vector<1x192x3xbf16> to vector<192x3xbf16>
    %cst_9 = arith.constant dense<0.000000e+00> : vector<256x3xf32>
    %9 = tpu.matmul %6, %8, %cst_9 {dimension_numbers = #tpu.dot_dimension_numbers<[1], [0], [0], [1], [0, 0, 1, 1], [], []>} : vector<256x192xbf16>, vector<192x3xbf16>, vector<256x3xf32> -> vector<256x3xf32>
    %10 = arith.addf %4, %9 : vector<256x3xf32>
    %c0_10 = arith.constant 0 : index
    %c32 = arith.constant 32 : index
    %c0_11 = arith.constant 0 : index
    %11 = vector.load %arg1[%c0_10, %c32, %c0_11] : memref<1x288x192xbf16, #tpu.memory_space<vmem>>, vector<1x256x192xbf16>
    %12 = vector.shape_cast %11 : vector<1x256x192xbf16> to vector<256x192xbf16>
    %c2 = arith.constant 2 : index
    %c0_12 = arith.constant 0 : index
    %c0_13 = arith.constant 0 : index
    %13 = vector.load %arg2[%c2, %c0_12, %c0_13] : memref<3x192x3xbf16, #tpu.memory_space<vmem>>, vector<1x192x3xbf16>
    %14 = vector.shape_cast %13 : vector<1x192x3xbf16> to vector<192x3xbf16>
    %cst_14 = arith.constant dense<0.000000e+00> : vector<256x3xf32>
    %15 = tpu.matmul %12, %14, %cst_14 {dimension_numbers = #tpu.dot_dimension_numbers<[1], [0], [0], [1], [0, 0, 1, 1], [], []>} : vector<256x192xbf16>, vector<192x3xbf16>, vector<256x3xf32> -> vector<256x3xf32>
    %16 = arith.addf %10, %15 : vector<256x3xf32>
    %c0_15 = arith.constant 0 : index
    %c0_16 = arith.constant 0 : index
    %17 = vector.load %arg3[%c0_15, %c0_16] : memref<1x3xf32, #tpu.memory_space<vmem>>, vector<1x3xf32>
    %18 = vector.broadcast %17 : vector<1x3xf32> to vector<256x3xf32>
    %19 = arith.addf %16, %18 : vector<256x3xf32>
    %c0_17 = arith.constant 0 : index
    %c0_18 = arith.constant 0 : index
    %c0_19 = arith.constant 0 : index
    %20 = vector.load %arg4[%c0_17, %c0_18, %c0_19] : memref<1x256x3xf32, #tpu.memory_space<vmem>>, vector<1x256x3xf32>
    %21 = vector.shape_cast %20 : vector<1x256x3xf32> to vector<256x3xf32>
    %22 = vector.shape_cast %19 : vector<256x3xf32> to vector<1x256x3xf32>
    tpu.vector_store %arg4[%c0_17, %c0_18, %c0_19], %22 {strides = array<i32>} : memref<1x256x3xf32, #tpu.memory_space<vmem>>, vector<1x256x3xf32>,
    return
  }
  func.func @transform_0(%arg0: i32) -> (i32, i32, i32) {
    %c0_i32 = arith.constant 0 : i32
    %c0_i32_0 = arith.constant 0 : i32
    %c0_i32_1 = arith.constant 0 : i32
    return %arg0, %c0_i32, %c0_i32_0 : i32, i32, i32
  }
  func.func @transform_1(%arg0: i32) -> (i32, i32, i32) {
    %c0_i32 = arith.constant 0 : i32
    %c0_i32_0 = arith.constant 0 : i32
    %c0_i32_1 = arith.constant 0 : i32
    %c0_i32_2 = arith.constant 0 : i32
    return %c0_i32, %c0_i32_0, %c0_i32_1 : i32, i32, i32
  }
  func.func @transform_2(%arg0: i32) -> (i32, i32) {
    %c0_i32 = arith.constant 0 : i32
    %c0_i32_0 = arith.constant 0 : i32
    %c0_i32_1 = arith.constant 0 : i32
    return %c0_i32, %c0_i32_0 : i32, i32
  }
  func.func @transform_3(%arg0: i32) -> (i32, i32, i32) {
    %c0_i32 = arith.constant 0 : i32
    %c0_i32_0 = arith.constant 0 : i32
    %c0_i32_1 = arith.constant 0 : i32
    return %arg0, %c0_i32, %c0_i32_0 : i32, i32, i32
  }
}

</mosaic_0001>

<bundles_post_ra>
// kernel: autoencoder_kl_forward.39
= control target key start
LH: loop header
LB: loop body
LE: loop exit
PB: predicated region body
PF: predicated region fallthrough
CT: control target
= control target key end

     0   :  { %s1285_s15 = smov 0   ;;  %s1949_s0 = inlined_call_operand.vmem [shape: bf16[2,256,64], index: 0, kind: input, shape index: {}]   ;;  %s1950_s1 = inlined_call_operand.vmem [shape: f32[64,64], index: 1, kind: input, shape index: {}]   ;;  %s1951_s2 = inlined_call_operand.vmem [shape: f32[1,64], index: 2, kind: input, shape index: {}]   ;;  %s1952_s3 = inlined_call_operand.vmem [shape: f32[1,64], index: 3, kind: input, shape index: {}]   ;;  %s1953_s4 = inlined_call_operand.vmem [shape: bf16[2,256,64], index: 4, kind: output, shape index: {}]  }
   0x1 LB: > { %s988_s16 = sadd.s32 4294967295, %s1256_s15   ;;  %p992_p0 = scmp.ge.s32.totalorder %s1256_s15, 1  ;;  %s1256_s15 = sphi %s1285_s15, %s14_s15  }
   0x2   : > { %p162_p1 = scmp.lt.s32.totalorder %s1256_s15, 3 }
   0x4   : > { %p163_p2 = pnand %p992_p0, %p162_p1 }
   0x5   : > { %p188_p3 = scmp.lt.s32.totalorder (!%p163_p2), %s988_s16, 1 }
   0x6   : > { %166 = sbr.rel (%p163_p2) target bundleno = 393 (0x189), region = 36 }
   0xb   : > { %v442_v0 = vld [vmem:[%s1950_s1 + $0x38] sm:$0xff]  ;;  %v1258_v1 = vmov 0.0   ;;  %v441_v2 = vld [vmem:[%s1950_s1 + $0x30] sm:$0xff]  ;;  %vm1259_vm0 = vmmov 0   ;;  %s1955_s16 = smov (!%p188_p3, %s988_s16), 1  ;;  %v440_v3 = vld [vmem:[%s1950_s1 + $0x28] sm:$0xff] }
   0xc   : > { %1155 = vmatprep.subr.mxu0 %v1258_v1  ;;  %1171 = vmatprep.mubr.msk.f32.mxu0 %vm1259_vm0, %v1258_v1  ;;  %s1033_s23 = sshll.u32 %s1955_s16, 7  ;;  %v439_v4 = vld [vmem:[%s1950_s1 + $0x20] sm:$0xff]  ;;  %v438_v5 = vld [vmem:[%s1950_s1 + $0x18] sm:$0xff]  ;;  %v437_v6 = vld [vmem:[%s1950_s1 + $0x10] sm:$0xff]  ;;  %vm262_vm1 = vcmask 523264   ;;  %vm433_vm2 = vcmask 1040384  }
   0xd   : > { %1156 = vmatpush3.msra.mxu0 %v442_v0  ;;  %s1316_s30 = scalar_lea.vmem %s1949_s0, %s1033_s23  ;;  %v436_v9 = vld [vmem:[%s1950_s1 + $0x8] sm:$0xff]  ;;  %v435_v10 = vld [vmem:[%s1950_s1] sm:$0xff]  ;;  %vm900_vm3 = vcmask 519168   ;;  %s1794_s19 = scalar_lea.vmem %s1953_s4, %s1033_s23 }
   0xe   : > { %1157 = vmatprep.subr.mxu0 %v1258_v1  ;;  %v1068_v7 = vld [vmem:[%s1316_s30] sm:$0xff]   ;;  %v1131_v8 = vld [vmem:[%s1316_s30 + $0x8] sm:$0xff]   ;;  %v1132_v14 = vld [vmem:[%s1316_s30 + $0x10] sm:$0xff]  }
   0xf   : > { %1158 = vmatpush3.msra.mxu0 %v441_v2  ;;  %v1329_v11 = vunpack.c.l.bf16 %v1068_v7  ;;  %v1331_v12 = vunpack.c.h.bf16 %v1068_v7  ;;  %v1333_v13 = vunpack.c.l.bf16 %v1131_v8  ;;  %v1336_v15 = vunpack.c.h.bf16 %v1131_v8  ;;  %v1133_v22 = vld [vmem:[%s1316_s30 + $0x18] sm:$0xff]   ;;  %v1134_v29 = vld [vmem:[%s1316_s30 + $0x20] sm:$0xff]   ;;  %v1135_v35 = vld [vmem:[%s1316_s30 + $0x28] sm:$0xff]  }
  0x10   : > { %1159 = vmatprep.subr.mxu0 %v1258_v1  ;;  %v1344_v20 = vunpack.c.l.bf16 %v1132_v14  ;;  %v1349_v24 = vunpack.c.h.bf16 %v1132_v14  ;;  %v1353_v27 = vunpack.c.l.bf16 %v1133_v22  ;;  %v1358_v31 = vunpack.c.h.bf16 %v1133_v22  ;;  %v1136_v42 = vld [vmem:[%s1316_s30 + $0x30] sm:$0xff]   ;;  %v1137_v58 = vld [vmem:[%s1316_s30 + $0x38] sm:$0xff]   ;;  %v1138_v7 = vld [vmem:[%s1316_s30 + $0x40] sm:$0xff]  }
  0x11   : > { %1160 = vmatpush3.msra.mxu0 %v440_v3  ;;  %v263_v16 = vsel %vm262_vm1, %v1329_v11, 0.0  ;;  %v264_v17 = vsel %vm262_vm1, %v1331_v12, 0.0  ;;  %v266_v18 = vsel %vm262_vm1, %v1333_v13, 0.0  ;;  %v268_v21 = vsel %vm262_vm1, %v1336_v15, 0.0 }
  0x12   : > { %1161 = vmatprep.subr.mxu0 %v1258_v1  ;;  %v265_v19 = vadd.f32 %v264_v17, %v263_v16  ;;  %v270_v25 = vsel %vm262_vm1, %v1344_v20, 0.0  ;;  %v272_v28 = vsel %vm262_vm1, %v1349_v24, 0.0  ;;  %v274_v32 = vsel %vm262_vm1, %v1353_v27, 0.0 }
  0x13   : > { %1162 = vmatpush3.msra.mxu0 %v439_v4  ;;  %v1362_v34 = vunpack.c.l.bf16 %v1134_v29  ;;  %v276_v36 = vsel %vm262_vm1, %v1358_v31, 0.0  ;;  %v1367_v38 = vunpack.c.h.bf16 %v1134_v29  ;;  %v1371_v40 = vunpack.c.l.bf16 %v1135_v35 }
  0x14   : > { %1163 = vmatprep.subr.mxu0 %v1258_v1  ;;  %v267_v23 = vadd.f32 %v266_v18, %v265_v19  ;;  %v332_v44 = vmul.f32 %v1329_v11, %v1329_v11  ;;  %v333_v45 = vmul.f32 %v1331_v12, %v1331_v12  ;;  %v334_v46 = vmul.f32 %v1333_v13, %v1333_v13 }
  0x15   : > { %1164 = vmatpush3.msra.mxu0 %v438_v5  ;;  %v278_v39 = vsel %vm262_vm1, %v1362_v34, 0.0  ;;  %v280_v43 = vsel %vm262_vm1, %v1367_v38, 0.0  ;;  %v1382_v47 = vunpack.c.h.bf16 %v1135_v35  ;;  %v282_v49 = vsel %vm262_vm1, %v1371_v40, 0.0 }
  0x16   : > { %1165 = vmatprep.subr.mxu0 %v1258_v1  ;;  %v269_v26 = vadd.f32 %v268_v21, %v267_v23  ;;  %v335_v50 = vmul.f32 %v1336_v15, %v1336_v15  ;;  %v1388_v51 = vunpack.c.l.bf16 %v1136_v42  ;;  %v336_v54 = vmul.f32 %v1344_v20, %v1344_v20 }
  0x17   : > { %1166 = vmatpush3.msra.mxu0 %v437_v6  ;;  %v284_v53 = vsel %vm262_vm1, %v1382_v47, 0.0  ;;  %v364_v55 = vsel %vm262_vm1, %v332_v44, 0.0  ;;  %v365_v56 = vsel %vm262_vm1, %v333_v45, 0.0  ;;  %v367_v57 = vsel %vm262_vm1, %v334_v46, 0.0  ;;  %v1140_v44 = vld [vmem:[%s1316_s30 + $0x50] sm:$0xff]  }
  0x18   : > { %1167 = vmatprep.subr.mxu0 %v1258_v1  ;;  %v271_v30 = vadd.f32 %v270_v25, %v269_v26  ;;  %v366_v60 = vadd.f32 %v365_v56, %v364_v55  ;;  %v1398_v61 = vunpack.c.h.bf16 %v1136_v42  ;;  %v286_v62 = vsel %vm262_vm1, %v1388_v51, 0.0  ;;  %v1139_v26 = vld [vmem:[%s1316_s30 + $0x48] sm:$0xff]  }
  0x19   : > { %1168 = vmatpush3.msra.mxu0 %v436_v9  ;;  %v337_v63 = vmul.f32 %v1349_v24, %v1349_v24  ;;  %v369_v0 = vsel %vm262_vm1, %v335_v50, 0.0  ;;  %v1405_v3 = vunpack.c.l.bf16 %v1137_v58  ;;  %v338_v5 = vmul.f32 %v1353_v27, %v1353_v27 }
  0x1a   : > { %1169 = vmatprep.subr.mxu0 %v1258_v1  ;;  %v273_v33 = vadd.f32 %v272_v28, %v271_v30  ;;  %v368_v2 = vadd.f32 %v367_v57, %v366_v60  ;;  %v288_v4 = vsel %vm262_vm1, %v1398_v61, 0.0  ;;  %v371_v6 = vsel %vm262_vm1, %v336_v54, 0.0 }
  0x1b   : > { %1170 = vmatpush3.msra.mxu0 %v435_v10  ;;  %v1413_v10 = vunpack.c.h.bf16 %v1137_v58  ;;  %v290_v14 = vsel %vm262_vm1, %v1405_v3, 0.0  ;;  %v339_v16 = vmul.f32 %v1358_v31, %v1358_v31  ;;  %v373_v17 = vsel %vm262_vm1, %v337_v63, 0.0 }
  0x1c   : > { %v275_v37 = vadd.f32 %v274_v32, %v273_v33  ;;  %v370_v9 = vadd.f32 %v369_v0, %v368_v2  ;;  %v1420_v21 = vunpack.c.l.bf16 %v1138_v7  ;;  %v340_v23 = vmul.f32 %v1362_v34, %v1362_v34 }
  0x1d   : > { %v292_v22 = vsel %vm262_vm1, %v1413_v10, 0.0  ;;  %v375_v25 = vsel %vm262_vm1, %v338_v5, 0.0  ;;  %v1428_v30 = vunpack.c.h.bf16 %v1138_v7  ;;  %v341_v33 = vmul.f32 %v1367_v38, %v1367_v38 }
  0x1e   : > { %v277_v41 = vadd.f32 %v276_v36, %v275_v37  ;;  %v372_v19 = vadd.f32 %v371_v6, %v370_v9  ;;  %v294_v32 = vsel %vm262_vm1, %v1420_v21, 0.0  ;;  %v377_v35 = vsel %vm262_vm1, %v339_v16, 0.0 }
  0x1f   : > { %v342_v42 = vmul.f32 %v1371_v40, %v1371_v40  ;;  %v343_v50 = vmul.f32 %v1382_v47, %v1382_v47  ;;  %v1450_v55 = vunpack.c.l.bf16 %v1140_v44  ;;  %v344_v57 = vmul.f32 %v1388_v51, %v1388_v51 }
  0x20   : > { %v279_v48 = vadd.f32 %v278_v39, %v277_v41  ;;  %v374_v29 = vadd.f32 %v373_v17, %v372_v19  ;;  %v1435_v39 = vunpack.c.l.bf16 %v1139_v26  ;;  %v296_v41 = vsel %vm262_vm1, %v1428_v30, 0.0 }
  0x21   : > { %v383_v58 = vsel %vm262_vm1, %v342_v42, 0.0  ;;  %v1458_v63 = vunpack.c.h.bf16 %v1140_v44  ;;  %v302_v0 = vsel %vm262_vm1, %v1450_v55, 0.0  ;;  %v385_v2 = vsel %vm262_vm1, %v343_v50, 0.0 }
  0x22   : > { %v281_v52 = vadd.f32 %v280_v43, %v279_v48  ;;  %v376_v37 = vadd.f32 %v375_v25, %v374_v29  ;;  %v379_v43 = vsel %vm262_vm1, %v340_v23, 0.0  ;;  %v1443_v48 = vunpack.c.h.bf16 %v1139_v26 }
  0x23   : > { %v304_v7 = vsel %vm262_vm1, %v1458_v63, 0.0  ;;  %v387_v9 = vsel %vm262_vm1, %v344_v57, 0.0 }
  0x24   : > { %v283_v59 = vadd.f32 %v282_v49, %v281_v52  ;;  %v378_v46 = vadd.f32 %v377_v35, %v376_v37  ;;  %v298_v49 = vsel %vm262_vm1, %v1435_v39, 0.0  ;;  %v381_v52 = vsel %vm262_vm1, %v341_v33, 0.0  ;;  %v1143_v35 = vld [vmem:[%s1316_s30 + $0x68] sm:$0xff]  }
  0x25   : > { %v300_v56 = vsel %vm262_vm1, %v1443_v48, 0.0 }
  0x26   : > { %v285_v1 = vadd.f32 %v284_v53, %v283_v59  ;;  %v380_v54 = vadd.f32 %v379_v43, %v378_v46  ;;  %v1141_v59 = vld [vmem:[%s1316_s30 + $0x58] sm:$0xff]   ;;  %v349_v43 = vmul.f32 %v1428_v30, %v1428_v30 }
  0x27   : > { %v1465_v6 = vunpack.c.l.bf16 %v1141_v59 }
  0x28   : > { %v287_v8 = vadd.f32 %v286_v62, %v285_v1  ;;  %v382_v62 = vadd.f32 %v381_v52, %v380_v54  ;;  %v345_v1 = vmul.f32 %v1398_v61, %v1398_v61  ;;  %v350_v52 = vmul.f32 %v1435_v39, %v1435_v39  ;;  %v1144_v54 = vld [vmem:[%s1316_s30 + $0x70] sm:$0xff]  }
  0x29   : > { %v306_v19 = vsel %vm262_vm1, %v1465_v6, 0.0 }
  0x2a   : > { %v289_v18 = vadd.f32 %v288_v4, %v287_v8  ;;  %v384_v5 = vadd.f32 %v383_v58, %v382_v62  ;;  %v346_v8 = vmul.f32 %v1405_v3, %v1405_v3  ;;  %v389_v23 = vsel %vm262_vm1, %v345_v1, 0.0 }
  0x2b   : > { %v1503_v58 = vunpack.c.h.bf16 %v1143_v35  ;;  %v397_v62 = vsel %vm262_vm1, %v349_v43, 0.0 }
  0x2c   : > { %v291_v28 = vadd.f32 %v290_v14, %v289_v18  ;;  %v1142_v14 = vld [vmem:[%s1316_s30 + $0x60] sm:$0xff]   ;;  %v386_v17 = vadd.f32 %v385_v2, %v384_v5  ;;  %v1473_v18 = vunpack.c.h.bf16 %v1141_v59  ;;  %v391_v33 = vsel %vm262_vm1, %v346_v8, 0.0 }
  0x2d   : > { %v1510_v2 = vunpack.c.l.bf16 %v1144_v54  ;;  %v352_v5 = vmul.f32 %v1450_v55, %v1450_v55 }
  0x2e   : > { %v293_v36 = vadd.f32 %v292_v22, %v291_v28  ;;  %v347_v22 = vmul.f32 %v1413_v10, %v1413_v10  ;;  %v388_v26 = vadd.f32 %v387_v9, %v386_v17  ;;  %v1480_v28 = vunpack.c.l.bf16 %v1142_v14 }
  0x2f   : > { %v308_v29 = vsel %vm262_vm1, %v1473_v18, 0.0  ;;  %v353_v17 = vmul.f32 %v1458_v63, %v1458_v63 }
  0x30   : > { %v295_v45 = vadd.f32 %v294_v32, %v293_v36  ;;  %v348_v32 = vmul.f32 %v1420_v21, %v1420_v21  ;;  %v390_v37 = vadd.f32 %v389_v23, %v388_v26  ;;  %v310_v42 = vsel %vm262_vm1, %v1480_v28, 0.0 }
  0x31   : > { %v393_v44 = vsel %vm262_vm1, %v347_v22, 0.0  ;;  %v1145_v22 = vld [vmem:[%s1316_s30 + $0x78] sm:$0xff]  }
  0x32   : > { %v297_v53 = vadd.f32 %v296_v41, %v295_v45  ;;  %v1488_v41 = vunpack.c.h.bf16 %v1142_v14  ;;  %v392_v46 = vadd.f32 %v391_v33, %v390_v37  ;;  %v1517_v14 = vunpack.c.h.bf16 %v1144_v54 }
  0x33   : > { %v355_v37 = vmul.f32 %v1473_v18, %v1473_v18 }
  0x34   : > { %v299_v60 = vadd.f32 %v298_v49, %v297_v53  ;;  %v1495_v49 = vunpack.c.l.bf16 %v1143_v35  ;;  %v312_v50 = vsel %vm262_vm1, %v1488_v41, 0.0  ;;  %v395_v53 = vsel %vm262_vm1, %v348_v32, 0.0 }
  0x35   : > { %v394_v57 = vadd.f32 %v393_v44, %v392_v46  ;;  %v320_v26 = vsel %vm262_vm1, %v1517_v14, 0.0  ;;  %v403_v32 = vsel %vm262_vm1, %v352_v5, 0.0  ;;  %v356_v46 = vmul.f32 %v1480_v28, %v1480_v28 }
  0x36   : > { %v301_v4 = vadd.f32 %v300_v56, %v299_v60  ;;  %v314_v59 = vsel %vm262_vm1, %v1495_v49, 0.0  ;;  %v351_v60 = vmul.f32 %v1443_v48, %v1443_v48  ;;  %v357_v54 = vmul.f32 %v1488_v41, %v1488_v41 }
  0x37   : > { %v396_v1 = vadd.f32 %v395_v53, %v394_v57  ;;  %v1540_v53 = vunpack.c.h.bf16 %v1145_v22 }
  0x38   : > { %v303_v16 = vadd.f32 %v302_v0, %v301_v4  ;;  %v316_v4 = vsel %vm262_vm1, %v1503_v58, 0.0  ;;  %v413_v5 = vsel %vm262_vm1, %v357_v54, 0.0 }
  0x39   : > { %v398_v9 = vadd.f32 %v397_v62, %v396_v1  ;;  %v358_v62 = vmul.f32 %v1495_v49, %v1495_v49 }
  0x3a   : > { %v305_v25 = vadd.f32 %v304_v7, %v303_v16  ;;  %v399_v7 = vsel %vm262_vm1, %v350_v52, 0.0  ;;  %v318_v16 = vsel %vm262_vm1, %v1510_v2, 0.0 }
  0x3c   : > { %v307_v36 = vadd.f32 %v306_v19, %v305_v25  ;;  %v401_v19 = vsel %vm262_vm1, %v351_v60, 0.0  ;;  %v400_v25 = vadd.f32 %v399_v7, %v398_v9  ;;  %v324_v60 = vsel %vm262_vm1, %v1540_v53, 0.0 }
  0x3d   : > { %v360_v9 = vmul.f32 %v1510_v2, %v1510_v2 }
  0x3e   : > { %v309_v45 = vadd.f32 %v308_v29, %v307_v36  ;;  %v354_v29 = vmul.f32 %v1465_v6, %v1465_v6  ;;  %v402_v35 = vadd.f32 %v401_v19, %v400_v25  ;;  %v1530_v36 = vunpack.c.l.bf16 %v1145_v22 }
  0x3f   : > { %v361_v19 = vmul.f32 %v1517_v14, %v1517_v14 }
  0x40   : > { %v311_v56 = vadd.f32 %v310_v42, %v309_v45  ;;  %v405_v42 = vsel %vm262_vm1, %v353_v17, 0.0  ;;  %v404_v44 = vadd.f32 %v403_v32, %v402_v35  ;;  %v322_v45 = vsel %vm262_vm1, %v1530_v36, 0.0 }
  0x41   : > { %v421_v35 = vsel %vm262_vm1, %v361_v19, 0.0 }
  0x42   : > { %v313_v0 = vadd.f32 %v312_v50, %v311_v56  ;;  %v407_v50 = vsel %vm262_vm1, %v354_v29, 0.0  ;;  %v406_v52 = vadd.f32 %v405_v42, %v404_v44  ;;  %v409_v56 = vsel %vm262_vm1, %v355_v37, 0.0 }
  0x43   : > { %v419_v29 = vsel %vm262_vm1, %v360_v9, 0.0 }
  0x44   : > { %v315_v8 = vadd.f32 %v314_v59, %v313_v0  ;;  %v408_v59 = vadd.f32 %v407_v50, %v406_v52  ;;  %v411_v0 = vsel %vm262_vm1, %v356_v46, 0.0 }
  0x46   : > { %v317_v23 = vadd.f32 %v316_v4, %v315_v8  ;;  %v410_v1 = vadd.f32 %v409_v56, %v408_v59  ;;  %v359_v4 = vmul.f32 %v1503_v58, %v1503_v58 }
  0x48   : > { %v319_v33 = vadd.f32 %v318_v16, %v317_v23  ;;  %v412_v8 = vadd.f32 %v411_v0, %v410_v1  ;;  %v415_v16 = vsel %vm262_vm1, %v358_v62, 0.0  ;;  %v417_v22 = vsel %vm262_vm1, %v359_v4, 0.0 }
  0x4a   : > { %v321_v43 = vadd.f32 %v320_v26, %v319_v33  ;;  %v414_v17 = vadd.f32 %v413_v5, %v412_v8  ;;  %v362_v26 = vmul.f32 %v1530_v36, %v1530_v36  ;;  %v363_v33 = vmul.f32 %v1540_v53, %v1540_v53 }
  0x4c   : > { %v323_v57 = vadd.f32 %v322_v45, %v321_v43  ;;  %v416_v25 = vadd.f32 %v415_v16, %v414_v17  ;;  %v423_v43 = vsel %vm262_vm1, %v362_v26, 0.0  ;;  %v425_v45 = vsel %vm262_vm1, %v363_v33, 0.0 }
  0x4d   : > { %v538_v26 = vlaneseq }
  0x4e   : > { %v325_v7 = vadd.f32 %v324_v60, %v323_v57  ;;  %v418_v32 = vadd.f32 %v417_v22, %v416_v25  ;;  %v998_v25 = vld [vmem:[%s1951_s2] ss:$0 sm:$0xff] }
  0x50   : > { %v326_v23 = vrot.slane %v325_v7, 4  ;;  %v420_v42 = vadd.f32 %v419_v29, %v418_v32  ;;  %v539_v32 = vshrl.u32 %v538_v26, 7 }
  0x52   : > { %v327_v37 = vadd.f32 %v326_v23, %v325_v7  ;;  %v422_v44 = vadd.f32 %v421_v35, %v420_v42  ;;  %v540_v35 = vsub.s32 1, %v539_v32  ;;  %v532_v42 = vld [vmem:[%s1952_s3] sm:$0x1] }
  0x54   : > { %v328_v46 = vrot.slane %v327_v37, 2  ;;  %v424_v50 = vadd.f32 %v423_v43, %v422_v44 }
  0x56   : > { %v426_v52 = vadd.f32 %v425_v45, %v424_v50  ;;  %v329_v54 = vadd.f32 %v328_v46, %v327_v37  ;;  %v577_v45 = vsub.s32 0, %v539_v32 }
  0x58   : > { %v427_v56 = vrot.slane %v426_v52, 4  ;;  %v330_v59 = vrot.slane %v329_v54, 1 }
  0x5a   : > { %v428_v57 = vadd.f32 %v427_v56, %v426_v52  ;;  %v331_v0 = vadd.f32 %v330_v59, %v329_v54 }
  0x5c   : > { %v429_v60 = vrot.slane %v428_v57, 2 }
  0x5e   : > { %v430_v62 = vadd.f32 %v429_v60, %v428_v57 }
  0x60   : > { %v431_v1 = vrot.slane %v430_v62, 1 }
  0x62   : > { %v432_v4 = vadd.f32 %v431_v1, %v430_v62 }
  0x64   : > { %v434_v5 = vsel %vm433_vm2, %v331_v0, %v432_v4 }
  0x65   : > { %1172 = vmatmul.mubr.msk.f32.vlgmr.msra.gmra.mxu0 %vm262_vm1, %v434_v5 }
 0x125   : > { %v512_v7 = vpop.f32.mrf.mxu0 }
 0x126   : > { %v516_v8 = vmul.f32 0.001953125, %v512_v7 }
 0x127   : > { %v1173_v9 = vpop.f32.mrf.mxu0 }
 0x128   : > { %v517_v16 = vmul.f32 %v516_v8, %v516_v8 }
 0x12a   : > { %v519_v17 = vrot.slane %v517_v16, 7 }
 0x12c   : > { %v521_v19 = vsub.f32 %v516_v8, %v519_v17 }
 0x12e   : > { %v522_v22 = vadd.f32 1e-06, %v521_v19 }
 0x130   : > { %1184 = vrsqrt.f32 %v522_v22 }
 0x13d   : > { %v1185_v23 = vpop.eup %1184 }
 0x13e   : > { %v531_v29 = vmul.f32 %v1185_v23, %v998_v25 }
 0x140   : > { %v534_v33 = vrot.slane %v531_v29, 1  ;;  %v541_v43 = vrot.slane %v531_v29, %v540_v35 }
 0x142   : > { %v536_v37 = vmul.f32 %v534_v33, %v516_v8  ;;  %v542_v46 = vmul.f32 %v1329_v11, %v541_v43  ;;  %v543_v50 = vmul.f32 %v1331_v12, %v541_v43  ;;  %v544_v52 = vmul.f32 %v1333_v13, %v541_v43 }
 0x143   : > { %v545_v54 = vmul.f32 %v1336_v15, %v541_v43  ;;  %v546_v57 = vmul.f32 %v1344_v20, %v541_v43  ;;  %v547_v59 = vmul.f32 %v1349_v24, %v541_v43  ;;  %v548_v60 = vmul.f32 %v1353_v27, %v541_v43 }
 0x144   : > { %v537_v44 = vsub.f32 %v532_v42, %v536_v37  ;;  %v549_v62 = vmul.f32 %v1358_v31, %v541_v43  ;;  %v550_v0 = vmul.f32 %v1362_v34, %v541_v43  ;;  %v551_v11 = vmul.f32 %v1367_v38, %v541_v43 }
 0x145   : > { %v552_v12 = vmul.f32 %v1371_v40, %v541_v43  ;;  %v553_v13 = vmul.f32 %v1382_v47, %v541_v43  ;;  %v554_v15 = vmul.f32 %v1388_v51, %v541_v43  ;;  %v555_v1 = vmul.f32 %v1398_v61, %v541_v43 }
 0x146   : > { %v1578_v56 = vrot.slane %v537_v44, %v577_v45  ;;  %v556_v20 = vmul.f32 %v1405_v3, %v541_v43  ;;  %v557_v24 = vmul.f32 %v1413_v10, %v541_v43  ;;  %v558_v27 = vmul.f32 %v1420_v21, %v541_v43 }
 0x147   : > { %v559_v31 = vmul.f32 %v1428_v30, %v541_v43  ;;  %v560_v34 = vmul.f32 %v1435_v39, %v541_v43  ;;  %v561_v40 = vmul.f32 %v1443_v48, %v541_v43  ;;  %v562_v47 = vmul.f32 %v1450_v55, %v541_v43 }
 0x148   : > { %v1596_v38 = vadd.f32 %v1578_v56, %v542_v46  ;;  %v563_v51 = vmul.f32 %v1458_v63, %v541_v43  ;;  %v1602_v61 = vadd.f32 %v1578_v56, %v543_v50  ;;  %v564_v3 = vmul.f32 %v1465_v6, %v541_v43 }
 0x149   : > { %v565_v10 = vmul.f32 %v1473_v18, %v541_v43  ;;  %v566_v21 = vmul.f32 %v1480_v28, %v541_v43  ;;  %v1608_v30 = vadd.f32 %v1578_v56, %v544_v52  ;;  %v567_v39 = vmul.f32 %v1488_v41, %v541_v43 }
 0x14a   : > { %v568_v48 = vmul.f32 %v1495_v49, %v541_v43  ;;  %v569_v55 = vmul.f32 %v1503_v58, %v541_v43  ;;  %v1614_v63 = vadd.f32 %v1578_v56, %v545_v54  ;;  %v570_v4 = vmul.f32 %v1510_v2, %v541_v43 }
 0x14b   : > { %v571_v6 = vmul.f32 %v1517_v14, %v541_v43  ;;  %v1619_v18 = vadd.f32 %v1578_v56, %v546_v57  ;;  %v612_v28 = vmul.f32 0.5, %v1596_v38  ;;  %v572_v5 = vmul.f32 %v1530_v36, %v541_v43 }
 0x14c   : > { %v573_v41 = vmul.f32 %v1540_v53, %v541_v43  ;;  %v1625_v49 = vadd.f32 %v1578_v56, %v547_v59  ;;  %v613_v58 = vmul.f32 0.5, %v1602_v61  ;;  %v1629_v7 = vadd.f32 %v1578_v56, %v548_v60 }
 0x14d   : > { %v1632_v2 = vadd.f32 %v1578_v56, %v549_v62  ;;  %v1635_v14 = vadd.f32 %v1578_v56, %v550_v0  ;;  %v614_v8 = vmul.f32 0.5, %v1608_v30  ;;  %v1639_v36 = vadd.f32 %v1578_v56, %v551_v11 }
 0x14e   : > { %v1642_v53 = vadd.f32 %v1578_v56, %v552_v12  ;;  %v1645_v9 = vadd.f32 %v1578_v56, %v553_v13  ;;  %v615_v16 = vmul.f32 0.5, %v1614_v63  ;;  %v1649_v17 = vadd.f32 %v1578_v56, %v554_v15 }
 0x14f   : > { %v1652_v19 = vadd.f32 %v1578_v56, %v555_v1  ;;  %v616_v22 = vmul.f32 0.5, %v1619_v18  ;;  %1186 = vtanh.f32 %v612_v28  ;;  %v1656_v23 = vadd.f32 %v1578_v56, %v556_v20 }
 0x150   : > { %v1659_v25 = vadd.f32 %v1578_v56, %v557_v24  ;;  %v617_v26 = vmul.f32 0.5, %v1625_v49  ;;  %1188 = vtanh.f32 %v613_v58  ;;  %v1663_v29 = vadd.f32 %v1578_v56, %v558_v27 }
 0x151   : > { %v1666_v32 = vadd.f32 %v1578_v56, %v559_v31  ;;  %v618_v33 = vmul.f32 0.5, %v1629_v7  ;;  %1190 = vtanh.f32 %v614_v8  ;;  %v1670_v35 = vadd.f32 %v1578_v56, %v560_v34 }
 0x152   : > { %v1673_v37 = vadd.f32 %v1578_v56, %v561_v40  ;;  %v619_v42 = vmul.f32 0.5, %v1632_v2  ;;  %1192 = vtanh.f32 %v615_v16  ;;  %v1677_v43 = vadd.f32 %v1578_v56, %v562_v47 }
 0x153   : > { %v1680_v44 = vadd.f32 %v1578_v56, %v563_v51  ;;  %v620_v45 = vmul.f32 0.5, %v1635_v14  ;;  %1194 = vtanh.f32 %v616_v22  ;;  %v1684_v46 = vadd.f32 %v1578_v56, %v564_v3 }
 0x154   : > { %v1687_v50 = vadd.f32 %v1578_v56, %v565_v10  ;;  %v621_v52 = vmul.f32 0.5, %v1639_v36  ;;  %1196 = vtanh.f32 %v617_v26  ;;  %v1691_v54 = vadd.f32 %v1578_v56, %v566_v21 }
 0x155   : > { %v1694_v57 = vadd.f32 %v1578_v56, %v567_v39  ;;  %v622_v59 = vmul.f32 0.5, %v1642_v53  ;;  %1198 = vtanh.f32 %v618_v33  ;;  %v1698_v60 = vadd.f32 %v1578_v56, %v568_v48 }
 0x156   : > { %v1701_v62 = vadd.f32 %v1578_v56, %v569_v55  ;;  %v623_v0 = vmul.f32 0.5, %v1645_v9  ;;  %1200 = vtanh.f32 %v619_v42  ;;  %v1705_v11 = vadd.f32 %v1578_v56, %v570_v4 }
 0x157   : > { %v1708_v12 = vadd.f32 %v1578_v56, %v571_v6  ;;  %v624_v13 = vmul.f32 0.5, %v1649_v17  ;;  %1202 = vtanh.f32 %v620_v45  ;;  %v1712_v15 = vadd.f32 %v1578_v56, %v572_v5 }
 0x158   : > { %v1715_v1 = vadd.f32 %v1578_v56, %v573_v41  ;;  %v625_v20 = vmul.f32 0.5, %v1652_v19  ;;  %1204 = vtanh.f32 %v621_v52  ;;  %v626_v24 = vmul.f32 0.5, %v1656_v23 }
 0x159   : > { %v627_v27 = vmul.f32 0.5, %v1659_v25  ;;  %v628_v31 = vmul.f32 0.5, %v1663_v29  ;;  %1206 = vtanh.f32 %v622_v59  ;;  %v629_v34 = vmul.f32 0.5, %v1666_v32 }
 0x15a   : > { %v630_v40 = vmul.f32 0.5, %v1670_v35  ;;  %v631_v47 = vmul.f32 0.5, %v1673_v37  ;;  %1208 = vtanh.f32 %v623_v0  ;;  %v632_v56 = vmul.f32 0.5, %v1677_v43 }
 0x15b   : > { %v633_v51 = vmul.f32 0.5, %v1680_v44  ;;  %v634_v3 = vmul.f32 0.5, %v1684_v46  ;;  %1210 = vtanh.f32 %v624_v13  ;;  %v635_v21 = vmul.f32 0.5, %v1687_v50 }
 0x15c   : > { %v1187_v10 = vpop.eup %1186  ;;  %v636_v39 = vmul.f32 0.5, %v1691_v54  ;;  %v637_v48 = vmul.f32 0.5, %v1694_v57  ;;  %1212 = vtanh.f32 %v625_v20  ;;  %v638_v4 = vmul.f32 0.5, %v1698_v60 }
 0x15d   : > { %v1189_v55 = vpop.eup %1188  ;;  %v1732_v6 = vmul.f32 0.5, %v1701_v62  ;;  %1214 = vtanh.f32 %v626_v24  ;;  %v676_v28 = vadd.f32 1.0, %v1187_v10  ;;  %v1735_v41 = vmul.f32 0.5, %v1705_v11 }
 0x15e   : > { %v1191_v5 = vpop.eup %1190  ;;  %v1738_v58 = vmul.f32 0.5, %v1708_v12  ;;  %1216 = vtanh.f32 %v627_v27  ;;  %v677_v8 = vadd.f32 1.0, %v1189_v55  ;;  %v1741_v22 = vmul.f32 0.5, %v1712_v15 }
 0x15f   : > { %v1193_v16 = vpop.eup %1192  ;;  %1218 = vtanh.f32 %v628_v31  ;;  %v678_v26 = vadd.f32 1.0, %v1191_v5  ;;  %v708_v33 = vmul.f32 0.5, %v676_v28  ;;  %v1744_v45 = vmul.f32 0.5, %v1715_v1 }
 0x160   : > { %v1195_v42 = vpop.eup %1194  ;;  %1220 = vtanh.f32 %v629_v34  ;;  %v679_v52 = vadd.f32 1.0, %v1193_v16  ;;  %v709_v59 = vmul.f32 0.5, %v677_v8 }
 0x161   : > { %v1197_v0 = vpop.eup %1196  ;;  %1222 = vtanh.f32 %v630_v40  ;;  %v680_v13 = vadd.f32 1.0, %v1195_v42  ;;  %v710_v20 = vmul.f32 0.5, %v678_v26  ;;  %v1747_v24 = vmul.f32 %v708_v33, %v1596_v38 }
 0x162   : > { %v1199_v27 = vpop.eup %1198  ;;  %1224 = vtanh.f32 %v631_v47  ;;  %v681_v10 = vadd.f32 1.0, %v1197_v0  ;;  %v711_v31 = vmul.f32 0.5, %v679_v52  ;;  %v1750_v55 = vmul.f32 %v709_v59, %v1602_v61 }
 0x163   : > { %v1201_v28 = vpop.eup %1200  ;;  %1226 = vtanh.f32 %v632_v56  ;;  %v682_v5 = vadd.f32 1.0, %v1199_v27  ;;  %v712_v34 = vmul.f32 0.5, %v680_v13  ;;  %v1753_v8 = vmul.f32 %v710_v20, %v1608_v30 }
 0x164   : > { %v1203_v40 = vpop.eup %1202  ;;  %1228 = vtanh.f32 %v633_v51  ;;  %v683_v16 = vadd.f32 1.0, %v1201_v28  ;;  %v713_v26 = vmul.f32 0.5, %v681_v10  ;;  %v1756_v38 = vmul.f32 %v711_v31, %v1614_v63 }
 0x165   : > { %v1205_v47 = vpop.eup %1204  ;;  %1230 = vtanh.f32 %v634_v3  ;;  %v684_v33 = vadd.f32 1.0, %v1203_v40  ;;  %v714_v42 = vmul.f32 0.5, %v682_v5  ;;  %v1759_v61 = vmul.f32 %v712_v34, %v1619_v18 }
 0x166   : > { %v1207_v56 = vpop.eup %1206  ;;  %1232 = vtanh.f32 %v635_v21  ;;  %v685_v52 = vadd.f32 1.0, %v1205_v47  ;;  %v715_v59 = vmul.f32 0.5, %v683_v16  ;;  %v1762_v30 = vmul.f32 %v713_v26, %v1625_v49 }
 0x167   : > { %v1209_v51 = vpop.eup %1208  ;;  %1234 = vtanh.f32 %v636_v39  ;;  %v686_v0 = vadd.f32 1.0, %v1207_v56  ;;  %v716_v63 = vmul.f32 0.5, %v684_v33  ;;  %v1765_v13 = vmul.f32 %v714_v42, %v1629_v7 }
 0x168   : > { %v1211_v3 = vpop.eup %1210  ;;  %1236 = vtanh.f32 %v637_v48  ;;  %v687_v20 = vadd.f32 1.0, %v1209_v51  ;;  %v717_v18 = vmul.f32 0.5, %v685_v52  ;;  %v1768_v27 = vmul.f32 %v715_v59, %v1632_v2 }
 0x169   : > { %v1213_v21 = vpop.eup %1212  ;;  %1238 = vtanh.f32 %v638_v4  ;;  %v688_v10 = vadd.f32 1.0, %v1211_v3  ;;  %v718_v49 = vmul.f32 0.5, %v686_v0  ;;  %v1771_v31 = vmul.f32 %v716_v63, %v1635_v14 }
 0x16a   : > { %v1215_v39 = vpop.eup %1214  ;;  %1240 = vtanh.f32 %v1732_v6  ;;  %v689_v28 = vadd.f32 1.0, %v1213_v21  ;;  %v719_v7 = vmul.f32 0.5, %v687_v20  ;;  %v1775_v5 = vmul.f32 %v717_v18, %v1639_v36 }
 0x16b   : > { %v1217_v48 = vpop.eup %1216  ;;  %1242 = vtanh.f32 %v1735_v41  ;;  %v690_v2 = vadd.f32 1.0, %v1215_v39  ;;  %v720_v34 = vmul.f32 0.5, %v688_v10  ;;  %v1779_v4 = vmul.f32 %v718_v49, %v1642_v53 }
 0x16c   : > { %v1219_v40 = vpop.eup %1218  ;;  %1244 = vtanh.f32 %v1738_v58  ;;  %v691_v14 = vadd.f32 1.0, %v1217_v48  ;;  %v721_v16 = vmul.f32 0.5, %v689_v28  ;;  %v1783_v6 = vmul.f32 %v719_v7, %v1645_v9 }
 0x16d   : > { %v1221_v26 = vpop.eup %1220  ;;  %1246 = vtanh.f32 %v1741_v22  ;;  %v692_v36 = vadd.f32 1.0, %v1219_v40  ;;  %v722_v47 = vmul.f32 0.5, %v690_v2  ;;  %v1787_v41 = vmul.f32 %v720_v34, %v1649_v17 }
 0x16e   : > { %v1223_v33 = vpop.eup %1222  ;;  %1248 = vtanh.f32 %v1744_v45  ;;  %v693_v53 = vadd.f32 1.0, %v1221_v26  ;;  %v723_v9 = vmul.f32 0.5, %v691_v14  ;;  %v1798_v58 = vmul.f32 %v721_v16, %v1652_v19 }
 0x16f   : > { %v1225_v22 = vpop.eup %1224  ;;  %v694_v42 = vadd.f32 1.0, %v1223_v33  ;;  %v724_v56 = vmul.f32 0.5, %v692_v36  ;;  %v1801_v17 = vmul.f32 %v722_v47, %v1656_v23  ;;  %v1035_v52 = vpack.c.bf16 %v1747_v24, %v1747_v24 }
 0x170   : > { %v1227_v59 = vpop.eup %1226  ;;  %v695_v51 = vadd.f32 1.0, %v1225_v22  ;;  %v725_v0 = vmul.f32 0.5, %v693_v53  ;;  %v1806_v45 = vmul.f32 %v723_v9, %v1659_v25  ;;  %v1036_v19 = vpack.c.bf16 %v1750_v55, %v1750_v55 }
 0x171   : > { %v1229_v63 = vpop.eup %1228  ;;  %v696_v3 = vadd.f32 1.0, %v1227_v59  ;;  %v726_v20 = vmul.f32 0.5, %v694_v42  ;;  %v1811_v23 = vmul.f32 %v724_v56, %v1663_v29  ;;  %v1037_v24 = vpack.c.bf16 %v1753_v8, %v1753_v8  ;;  %901 = vst.msk [vmem:[%s1794_s19] sm:$0xf] %vm900_vm3, %v1035_v52 }
 0x172   : > { %v1231_v18 = vpop.eup %1230  ;;  %v697_v21 = vadd.f32 1.0, %v1229_v63  ;;  %v727_v25 = vmul.f32 0.5, %v695_v51  ;;  %v1818_v10 = vmul.f32 %v725_v0, %v1666_v32  ;;  %v1038_v55 = vpack.c.bf16 %v1756_v38, %v1756_v38  ;;  %902 = vst.msk [vmem:[%s1794_s19 + $0x4] sm:$0xf] %vm900_vm3, %v1036_v19 }
 0x173   : > { %v1233_v49 = vpop.eup %1232  ;;  %v698_v29 = vadd.f32 1.0, %v1231_v18  ;;  %v728_v39 = vmul.f32 0.5, %v696_v3  ;;  %v1825_v8 = vmul.f32 %v726_v20, %v1670_v35  ;;  %v1039_v28 = vpack.c.bf16 %v1759_v61, %v1759_v61  ;;  %903 = vst.msk [vmem:[%s1794_s19 + $0x8] sm:$0xf] %vm900_vm3, %v1037_v24 }
 0x174   : > { %v1235_v7 = vpop.eup %1234  ;;  %v699_v32 = vadd.f32 1.0, %v1233_v49  ;;  %v729_v48 = vmul.f32 0.5, %v697_v21  ;;  %v1832_v38 = vmul.f32 %v727_v25, %v1673_v37  ;;  %v1040_v2 = vpack.c.bf16 %v1762_v30, %v1762_v30  ;;  %904 = vst.msk [vmem:[%s1794_s19 + $0xc] sm:$0xf] %vm900_vm3, %v1038_v55 }
 0x175   : > { %v1237_v34 = vpop.eup %1236  ;;  %v700_v35 = vadd.f32 1.0, %v1235_v7  ;;  %v730_v40 = vmul.f32 0.5, %v698_v29  ;;  %v1839_v61 = vmul.f32 %v728_v39, %v1677_v43  ;;  %v1041_v14 = vpack.c.bf16 %v1765_v13, %v1765_v13  ;;  %905 = vst.msk [vmem:[%s1794_s19 + $0x10] sm:$0xf] %vm900_vm3, %v1039_v28 }
 0x176   : > { %v1239_v16 = vpop.eup %1238  ;;  %v701_v37 = vadd.f32 1.0, %v1237_v34  ;;  %v731_v26 = vmul.f32 0.5, %v699_v32  ;;  %v1846_v30 = vmul.f32 %v729_v48, %v1680_v44  ;;  %v1042_v36 = vpack.c.bf16 %v1768_v27, %v1768_v27  ;;  %906 = vst.msk [vmem:[%s1794_s19 + $0x14] sm:$0xf] %vm900_vm3, %v1040_v2 }
 0x177   : > { %v1241_v47 = vpop.eup %1240  ;;  %v702_v43 = vadd.f32 1.0, %v1239_v16  ;;  %v732_v33 = vmul.f32 0.5, %v700_v35  ;;  %v1853_v13 = vmul.f32 %v730_v40, %v1684_v46  ;;  %v1043_v53 = vpack.c.bf16 %v1771_v31, %v1771_v31  ;;  %907 = vst.msk [vmem:[%s1794_s19 + $0x18] sm:$0xf] %vm900_vm3, %v1041_v14 }
 0x178   : > { %v1243_v9 = vpop.eup %1242  ;;  %v703_v44 = vadd.f32 1.0, %v1241_v47  ;;  %v733_v22 = vmul.f32 0.5, %v701_v37  ;;  %v763_v27 = vmul.f32 %v731_v26, %v1687_v50  ;;  %v1044_v42 = vpack.c.bf16 %v1775_v5, %v1775_v5  ;;  %908 = vst.msk [vmem:[%s1794_s19 + $0x1c] sm:$0xf] %vm900_vm3, %v1042_v36 }
 0x179   : > { %v1245_v56 = vpop.eup %1244  ;;  %v704_v52 = vadd.f32 1.0, %v1243_v9  ;;  %v734_v46 = vmul.f32 0.5, %v702_v43  ;;  %v764_v59 = vmul.f32 %v732_v33, %v1691_v54  ;;  %v1045_v31 = vpack.c.bf16 %v1779_v4, %v1779_v4  ;;  %909 = vst.msk [vmem:[%s1794_s19 + $0x20] sm:$0xf] %vm900_vm3, %v1043_v53 }
 0x17a   : > { %v1247_v51 = vpop.eup %1246  ;;  %v705_v0 = vadd.f32 1.0, %v1245_v56  ;;  %v735_v50 = vmul.f32 0.5, %v703_v44  ;;  %v765_v19 = vmul.f32 %v733_v22, %v1694_v57  ;;  %v1046_v5 = vpack.c.bf16 %v1783_v6, %v1783_v6  ;;  %910 = vst.msk [vmem:[%s1794_s19 + $0x24] sm:$0xf] %vm900_vm3, %v1044_v42 }
 0x17b   : > { %v1249_v63 = vpop.eup %1248  ;;  %v706_v3 = vadd.f32 1.0, %v1247_v51  ;;  %v736_v54 = vmul.f32 0.5, %v704_v52  ;;  %v766_v20 = vmul.f32 %v734_v46, %v1698_v60  ;;  %v1047_v4 = vpack.c.bf16 %v1787_v41, %v1787_v41  ;;  %911 = vst.msk [vmem:[%s1794_s19 + $0x28] sm:$0xf] %vm900_vm3, %v1045_v31 }
 0x17c   : > { %v707_v24 = vadd.f32 1.0, %v1249_v63  ;;  %v737_v18 = vmul.f32 0.5, %v705_v0  ;;  %v767_v57 = vmul.f32 %v735_v50, %v1701_v62  ;;  %v1048_v6 = vpack.c.bf16 %v1798_v58, %v1798_v58  ;;  %912 = vst.msk [vmem:[%s1794_s19 + $0x2c] sm:$0xf] %vm900_vm3, %v1046_v5 }
 0x17d   : > { %v738_v21 = vmul.f32 0.5, %v706_v3  ;;  %v768_v60 = vmul.f32 %v736_v54, %v1705_v11  ;;  %v1049_v41 = vpack.c.bf16 %v1801_v17, %v1801_v17  ;;  %v1050_v25 = vpack.c.bf16 %v1806_v45, %v1806_v45  ;;  %913 = vst.msk [vmem:[%s1794_s19 + $0x30] sm:$0xf] %vm900_vm3, %v1047_v4 }
 0x17e   : > { %v739_v62 = vmul.f32 0.5, %v707_v24  ;;  %v769_v58 = vmul.f32 %v737_v18, %v1708_v12  ;;  %v1051_v55 = vpack.c.bf16 %v1811_v23, %v1811_v23  ;;  %v1052_v49 = vpack.c.bf16 %v1818_v10, %v1818_v10  ;;  %914 = vst.msk [vmem:[%s1794_s19 + $0x34] sm:$0xf] %vm900_vm3, %v1048_v6 }
 0x17f   : > { %v770_v11 = vmul.f32 %v738_v21, %v1712_v15  ;;  %v1053_v17 = vpack.c.bf16 %v1825_v8, %v1825_v8  ;;  %v1054_v45 = vpack.c.bf16 %v1832_v38, %v1832_v38  ;;  %v1055_v12 = vpack.c.bf16 %v1839_v61, %v1839_v61  ;;  %915 = vst.msk [vmem:[%s1794_s19 + $0x38] sm:$0xf] %vm900_vm3, %v1049_v41 }
 0x180   : > { %916 = vst.msk [vmem:[%s1794_s19 + $0x3c] sm:$0xf] %vm900_vm3, %v1050_v25  ;;  %v771_v23 = vmul.f32 %v739_v62, %v1715_v1  ;;  %v1056_v15 = vpack.c.bf16 %v1846_v30, %v1846_v30  ;;  %v1057_v10 = vpack.c.bf16 %v1853_v13, %v1853_v13  ;;  %v1058_v29 = vpack.c.bf16 %v763_v27, %v763_v27 }
 0x181   : > { %917 = vst.msk [vmem:[%s1794_s19 + $0x40] sm:$0xf] %vm900_vm3, %v1051_v55  ;;  %918 = vst.msk [vmem:[%s1794_s19 + $0x44] sm:$0xf] %vm900_vm3, %v1052_v49  ;;  %v1059_v39 = vpack.c.bf16 %v764_v59, %v764_v59  ;;  %v1060_v8 = vpack.c.bf16 %v765_v19, %v765_v19  ;;  %v1061_v1 = vpack.c.bf16 %v766_v20, %v766_v20 }
 0x182   : > { %v1062_v28 = vpack.c.bf16 %v767_v57, %v767_v57  ;;  %919 = vst.msk [vmem:[%s1794_s19 + $0x48] sm:$0xf] %vm900_vm3, %v1053_v17  ;;  %920 = vst.msk [vmem:[%s1794_s19 + $0x4c] sm:$0xf] %vm900_vm3, %v1054_v45  ;;  %v1063_v7 = vpack.c.bf16 %v768_v60, %v768_v60  ;;  %v1064_v32 = vpack.c.bf16 %v769_v58, %v769_v58 }
 0x183   : > { %921 = vst.msk [vmem:[%s1794_s19 + $0x50] sm:$0xf] %vm900_vm3, %v1055_v12  ;;  %v1065_v48 = vpack.c.bf16 %v770_v11, %v770_v11  ;;  %v1066_v38 = vpack.c.bf16 %v771_v23, %v771_v23  ;;  %922 = vst.msk [vmem:[%s1794_s19 + $0x54] sm:$0xf] %vm900_vm3, %v1056_v15 }
 0x184   : > { %923 = vst.msk [vmem:[%s1794_s19 + $0x58] sm:$0xf] %vm900_vm3, %v1057_v10  ;;  %924 = vst.msk [vmem:[%s1794_s19 + $0x5c] sm:$0xf] %vm900_vm3, %v1058_v29 }
 0x185   : > { %925 = vst.msk [vmem:[%s1794_s19 + $0x60] sm:$0xf] %vm900_vm3, %v1059_v39  ;;  %926 = vst.msk [vmem:[%s1794_s19 + $0x64] sm:$0xf] %vm900_vm3, %v1060_v8 }
 0x186   : > { %927 = vst.msk [vmem:[%s1794_s19 + $0x68] sm:$0xf] %vm900_vm3, %v1061_v1  ;;  %928 = vst.msk [vmem:[%s1794_s19 + $0x6c] sm:$0xf] %vm900_vm3, %v1062_v28 }
 0x187   : > { %929 = vst.msk [vmem:[%s1794_s19 + $0x70] sm:$0xf] %vm900_vm3, %v1063_v7  ;;  %930 = vst.msk [vmem:[%s1794_s19 + $0x74] sm:$0xf] %vm900_vm3, %v1064_v32 }
 0x188   : > { %931 = vst.msk [vmem:[%s1794_s19 + $0x78] sm:$0xf] %vm900_vm3, %v1065_v48  ;;  %932 = vst.msk [vmem:[%s1794_s19 + $0x7c] sm:$0xf] %vm900_vm3, %v1066_v38 }
 0x189 PF: > { %s14_s15 = sadd.s32 1, %s1256_s15  }
 0x18a   : > { %p11_p4 = scmp.ge.s32.totalorder %s14_s15, 4  }
 0x18c   :  { %13 = sbr.rel (!%p11_p4) target bundleno = 1 (0x1), region = 66 }

// kernel: autoencoder_kl_forward.38
= control target key start
LH: loop header
LB: loop body
LE: loop exit
PB: predicated region body
PF: predicated region fallthrough
CT: control target
= control target key end

     0   :  { %s1703_s12 = smov 0   ;;  %s1998_s0 = inlined_call_operand.vmem [shape: bf16[2,288,9], index: 0, kind: input, shape index: {}]   ;;  %s1999_s1 = inlined_call_operand.vmem [shape: bf16[3,9,64], index: 1, kind: input, shape index: {}]   ;;  %s2000_s2 = inlined_call_operand.vmem [shape: f32[1,64], index: 2, kind: input, shape index: {}]   ;;  %s2001_s3 = inlined_call_operand.vmem [shape: bf16[2,256,64], index: 3, kind: output, shape index: {}]  }
   0x1 LB: > { %s1309_s13 = sadd.s32 4294967295, %s1680_s12   ;;  %p1313_p0 = scmp.ge.s32.totalorder %s1680_s12, 1  ;;  %s1680_s12 = sphi %s1703_s12, %s13_s12  }
   0x2   : > { %p137_p1 = scmp.lt.s32.totalorder %s1680_s12, 3 }
   0x4   : > { %p138_p2 = pnand %p1313_p0, %p137_p1 }
   0x5   : > { %p161_p3 = scmp.lt.s32.totalorder (!%p138_p2), %s1309_s13, 1 }
   0x6   : > { %141 = sbr.rel (%p138_p2) target bundleno = 316 (0x13c), region = 32 }
   0xb   : > { %v1638_v0 = vld [vmem:[%s1999_s1 + $0x8] sm:$0x1f]   ;;  %vm345_vm0 = vcmask 1043456   ;;  %vm346_vm1 = vcmask 1044480   ;;  %v1682_v1 = vmov 65535   ;;  %s2003_s13 = smov (!%p161_p3, %s1309_s13), 1 }
   0xc   : > { %v347_v2 = vsel %vm345_vm0, 4294967295, %v1682_v1  ;;  %v1641_v4 = vld [vmem:[%s1999_s1] sm:$0x1f]   ;;  %v1644_v6 = vld [vmem:[%s1999_s1 + $0x10] sm:$0x1f]   ;;  %s1628_s20 = smul.u32 144, %s2003_s13 }
   0xd   : > { %v348_v3 = vsel %vm346_vm1, %v347_v2, 0  ;;  %vm296_vm2 = vcmask 72704   ;;  %s1440_s26 = sshll.u32 %s2003_s13, 7  ;;  %vm1221_vm3 = vcmask 519168  }
   0xe   : > { %v350_v5 = vand.u32 %v1638_v0, %v348_v3  ;;  %v527_v7 = vand.u32 %v1641_v4, %v348_v3  ;;  %v859_v8 = vand.u32 %v1644_v6, %v348_v3  ;;  %s1726_s23 = scalar_lea.vmem %s1998_s0, %s1628_s20  ;;  %s1873_s29 = scalar_lea.vmem %s2001_s3, %s1440_s26 }
   0xf   : > { %v1639_v9 = vld [vmem:[%s1726_s23 + $0x8] sm:$0xff]   ;;  %v1642_v11 = vld [vmem:[%s1726_s23 + $0x10] sm:$0xff]   ;;  %v1645_v13 = vld [vmem:[%s1726_s23 + $0x18] sm:$0xff]  }
  0x10   : > { %1626 = vmatprep.subr.bf16.mxu1 %v350_v5  ;;  %1524 = vmatprep.subr.bf16.mxu0 %v350_v5  ;;  %v1730_v10 = vld [vmem:[%s1726_s23 + $0x48] sm:$0xff]   ;;  %v1643_v12 = vld [vmem:[%s1726_s23 + $0x50] sm:$0xff]   ;;  %v1646_v14 = vld [vmem:[%s1726_s23 + $0x58] sm:$0xff]  }
  0x11   : > { %1627 = vmatpush3.bf16.msra.mxu1 %v350_v5  ;;  %1525 = vmatpush3.bf16.msra.mxu0 %v350_v5  ;;  %v1647_v15 = vld [vmem:[%s1726_s23 + $0x20] sm:$0xff]   ;;  %v1649_v17 = vld [vmem:[%s1726_s23 + $0x28] sm:$0xff]   ;;  %v1651_v19 = vld [vmem:[%s1726_s23 + $0x30] sm:$0xff]  }
  0x12   : > { %1558 = vmatprep.subr.bf16.mxu1 %v527_v7  ;;  %1592 = vmatprep.subr.bf16.mxu0 %v859_v8  ;;  %v1648_v16 = vld [vmem:[%s1726_s23 + $0x60] sm:$0xff]   ;;  %v1650_v18 = vld [vmem:[%s1726_s23 + $0x68] sm:$0xff]   ;;  %v1652_v20 = vld [vmem:[%s1726_s23 + $0x70] sm:$0xff]  }
  0x13   : > { %1526 = vmatprep.mubr.msk.bf16.mxu0 %vm296_vm2, %v1639_v9  ;;  %1542 = vmatprep.mubr.msk.bf16.mxu1 %vm296_vm2, %v1730_v10  ;;  %v1653_v21 = vld [vmem:[%s1726_s23 + $0x38] sm:$0xff]   ;;  %v1655_v23 = vld [vmem:[%s1726_s23 + $0x40] sm:$0xff]   ;;  %v1658_v25 = vld [vmem:[%s1726_s23 + $0x10] sm:$0xff]  }
  0x14   : > { %1527 = vmatmul.mubr.msk.bf16.vlgmr.msra.gmra.mxu0 %vm296_vm2, %v1642_v11  ;;  %1543 = vmatmul.mubr.msk.bf16.vlgmr.msra.gmra.mxu1 %vm296_vm2, %v1643_v12  ;;  %v1654_v22 = vld [vmem:[%s1726_s23 + $0x78] sm:$0xff]   ;;  %v1656_v24 = vld [vmem:[%s1726_s23 + $0x80] sm:$0xff]   ;;  %v1661_v29 = vld [vmem:[%s1726_s23 + $0x28] sm:$0xff]  }
  0x15   : > { %1593 = vmatpush3.bf16.msra.mxu0 %v859_v8  ;;  %1559 = vmatpush3.bf16.msra.mxu1 %v527_v7  ;;  %v1657_v26 = vld [vmem:[%s1726_s23] sm:$0xff]   ;;  %v1659_v27 = vld [vmem:[%s1726_s23 + $0x18] sm:$0xff]   ;;  %v1662_v30 = vld [vmem:[%s1726_s23 + $0x30] sm:$0xff]  }
  0x16   : > { %1530 = vmatprep.mubr.msk.bf16.mxu0 %vm296_vm2, %v1645_v13  ;;  %1546 = vmatprep.mubr.msk.bf16.mxu1 %vm296_vm2, %v1646_v14  ;;  %v1660_v28 = vld [vmem:[%s1726_s23 + $0x20] sm:$0xff]   ;;  %v1663_v31 = vld [vmem:[%s1726_s23 + $0x38] sm:$0xff]   ;;  %v1665_v33 = vld [vmem:[%s1726_s23 + $0x48] sm:$0xff]  }
  0x17   : > { %v1664_v32 = vld [vmem:[%s1726_s23 + $0x40] sm:$0xff]   ;;  %v1666_v34 = vld [vmem:[%s1726_s23 + $0x50] sm:$0xff]   ;;  %v1667_v35 = vld [vmem:[%s1726_s23 + $0x58] sm:$0xff]  }
  0x18   : > { %v1668_v36 = vld [vmem:[%s1726_s23 + $0x60] sm:$0xff]   ;;  %v1669_v37 = vld [vmem:[%s1726_s23 + $0x68] sm:$0xff]   ;;  %v1670_v38 = vld [vmem:[%s1726_s23 + $0x70] sm:$0xff]  }
  0x19   : > { %v1671_v39 = vld [vmem:[%s1726_s23 + $0x78] sm:$0xff]   ;;  %v1672_v40 = vld [vmem:[%s1726_s23 + $0x80] sm:$0xff]   ;;  %v1673_v41 = vld [vmem:[%s1726_s23 + $0x88] sm:$0xff]  }
  0x1c   : > { %1531 = vmatmul.mubr.msk.bf16.gmra.mxu0 %vm296_vm2, %v1647_v15  ;;  %1547 = vmatmul.mubr.msk.bf16.gmra.mxu1 %vm296_vm2, %v1648_v16 }
  0x1d   : > { %1534 = vmatprep.mubr.msk.bf16.mxu0 %vm296_vm2, %v1649_v17  ;;  %1550 = vmatprep.mubr.msk.bf16.mxu1 %vm296_vm2, %v1650_v18 }
  0x24   : > { %1535 = vmatmul.mubr.msk.bf16.gmra.mxu0 %vm296_vm2, %v1651_v19  ;;  %1551 = vmatmul.mubr.msk.bf16.gmra.mxu1 %vm296_vm2, %v1652_v20 }
  0x25   : > { %1538 = vmatprep.mubr.msk.bf16.mxu0 %vm296_vm2, %v1653_v21  ;;  %1554 = vmatprep.mubr.msk.bf16.mxu1 %vm296_vm2, %v1654_v22 }
  0x2c   : > { %1539 = vmatmul.mubr.msk.bf16.gmra.mxu0 %vm296_vm2, %v1655_v23  ;;  %1555 = vmatmul.mubr.msk.bf16.gmra.mxu1 %vm296_vm2, %v1656_v24 }
  0x2d   : > { %1594 = vmatprep.mubr.msk.bf16.mxu0 %vm296_vm2, %v1658_v25  ;;  %1560 = vmatprep.mubr.msk.bf16.mxu1 %vm296_vm2, %v1657_v26 }
  0x34   : > { %1595 = vmatmul.mubr.msk.bf16.vlgmr.msra.gmra.mxu0 %vm296_vm2, %v1659_v27  ;;  %1561 = vmatmul.mubr.msk.bf16.vlgmr.msra.gmra.mxu1 %vm296_vm2, %v1639_v9 }
  0x35   : > { %1598 = vmatprep.mubr.msk.bf16.mxu0 %vm296_vm2, %v1660_v28  ;;  %1564 = vmatprep.mubr.msk.bf16.mxu1 %vm296_vm2, %v1642_v11 }
  0x3c   : > { %1599 = vmatmul.mubr.msk.bf16.gmra.mxu0 %vm296_vm2, %v1661_v29  ;;  %1565 = vmatmul.mubr.msk.bf16.gmra.mxu1 %vm296_vm2, %v1645_v13 }
  0x3d   : > { %1602 = vmatprep.mubr.msk.bf16.mxu0 %vm296_vm2, %v1662_v30  ;;  %1568 = vmatprep.mubr.msk.bf16.mxu1 %vm296_vm2, %v1647_v15 }
  0x44   : > { %1603 = vmatmul.mubr.msk.bf16.gmra.mxu0 %vm296_vm2, %v1663_v31  ;;  %1569 = vmatmul.mubr.msk.bf16.gmra.mxu1 %vm296_vm2, %v1649_v17 }
  0x45   : > { %1606 = vmatprep.mubr.msk.bf16.mxu0 %vm296_vm2, %v1664_v32  ;;  %1572 = vmatprep.mubr.msk.bf16.mxu1 %vm296_vm2, %v1651_v19 }
  0x4c   : > { %1607 = vmatmul.mubr.msk.bf16.gmra.mxu0 %vm296_vm2, %v1665_v33  ;;  %1573 = vmatmul.mubr.msk.bf16.gmra.mxu1 %vm296_vm2, %v1653_v21 }
  0x4d   : > { %1610 = vmatprep.mubr.msk.bf16.mxu0 %vm296_vm2, %v1666_v34  ;;  %1576 = vmatprep.mubr.msk.bf16.mxu1 %vm296_vm2, %v1655_v23 }
  0x54   : > { %1611 = vmatmul.mubr.msk.bf16.gmra.mxu0 %vm296_vm2, %v1667_v35  ;;  %1577 = vmatmul.mubr.msk.bf16.gmra.mxu1 %vm296_vm2, %v1730_v10 }
  0x55   : > { %1614 = vmatprep.mubr.msk.bf16.mxu0 %vm296_vm2, %v1668_v36  ;;  %1580 = vmatprep.mubr.msk.bf16.mxu1 %vm296_vm2, %v1643_v12 }
  0x5c   : > { %1615 = vmatmul.mubr.msk.bf16.gmra.mxu0 %vm296_vm2, %v1669_v37  ;;  %1581 = vmatmul.mubr.msk.bf16.gmra.mxu1 %vm296_vm2, %v1646_v14  ;;  %v1866_v14 = vld [vmem:[%s2000_s2] ss:$0 sm:$0xff] }
  0x5d   : > { %1618 = vmatprep.mubr.msk.bf16.mxu0 %vm296_vm2, %v1670_v38  ;;  %1584 = vmatprep.mubr.msk.bf16.mxu1 %vm296_vm2, %v1648_v16 }
  0x64   : > { %1619 = vmatmul.mubr.msk.bf16.gmra.mxu0 %vm296_vm2, %v1671_v39  ;;  %1585 = vmatmul.mubr.msk.bf16.gmra.mxu1 %vm296_vm2, %v1650_v18 }
  0x65   : > { %1622 = vmatprep.mubr.msk.bf16.mxu0 %vm296_vm2, %v1672_v40  ;;  %1588 = vmatprep.mubr.msk.bf16.mxu1 %vm296_vm2, %v1652_v20 }
  0x6c   : > { %1623 = vmatmul.mubr.msk.bf16.gmra.mxu0 %vm296_vm2, %v1673_v41  ;;  %1589 = vmatmul.mubr.msk.bf16.gmra.mxu1 %vm296_vm2, %v1654_v22 }
  0xd4   : > { %v1528_v42 = vpop.f32.mrf.mxu0  ;;  %v1813_v43 = vpop.f32.mrf.mxu1 }
  0xd6   : > { %v386_v44 = vpop.f32.mrf.mxu0  ;;  %v1815_v45 = vpop.f32.mrf.mxu1 }
  0xd8   : > { %v1529_v46 = vpop.f32.mrf.mxu0  ;;  %v1817_v47 = vpop.f32.mrf.mxu1 }
  0xda   : > { %v389_v48 = vpop.f32.mrf.mxu0  ;;  %v1819_v49 = vpop.f32.mrf.mxu1 }
  0xdc   : > { %v1532_v50 = vpop.f32.mrf.mxu0  ;;  %v1821_v51 = vpop.f32.mrf.mxu1 }
  0xde   : > { %v402_v52 = vpop.f32.mrf.mxu0  ;;  %v1823_v53 = vpop.f32.mrf.mxu1 }
  0xe0   : > { %v1533_v54 = vpop.f32.mrf.mxu0  ;;  %v1825_v55 = vpop.f32.mrf.mxu1 }
  0xe2   : > { %v1827_v56 = vpop.f32.mrf.mxu0  ;;  %v1829_v57 = vpop.f32.mrf.mxu1 }
  0xe4   : > { %v1831_v58 = vpop.f32.mrf.mxu0  ;;  %v1833_v59 = vpop.f32.mrf.mxu1 }
  0xe6   : > { %v1835_v60 = vpop.f32.mrf.mxu0  ;;  %v1837_v61 = vpop.f32.mrf.mxu1 }
  0xe8   : > { %v1839_v62 = vpop.f32.mrf.mxu0  ;;  %v1841_v63 = vpop.f32.mrf.mxu1 }
  0xea   : > { %v1843_v0 = vpop.f32.mrf.mxu0  ;;  %v1845_v1 = vpop.f32.mrf.mxu1 }
  0xec   : > { %v1847_v2 = vpop.f32.mrf.mxu0  ;;  %v1849_v3 = vpop.f32.mrf.mxu1 }
  0xee   : > { %v1851_v4 = vpop.f32.mrf.mxu0  ;;  %v1853_v5 = vpop.f32.mrf.mxu1 }
  0xf0   : > { %v1855_v6 = vpop.f32.mrf.mxu0  ;;  %v1857_v7 = vpop.f32.mrf.mxu1 }
  0xf2   : > { %v1859_v8 = vpop.f32.mrf.mxu0  ;;  %v1861_v9 = vpop.f32.mrf.mxu1 }
  0xf4   : > { %v1596_v10 = vpop.f32.mrf.mxu0  ;;  %v1562_v11 = vpop.f32.mrf.mxu1 }
  0xf5   : > { %v572_v12 = vadd.f32 %v1562_v11, %v1528_v42 }
  0xf6   : > { %v895_v13 = vpop.f32.mrf.mxu0  ;;  %v563_v15 = vpop.f32.mrf.mxu1 }
  0xf7   : > { %v1024_v16 = vadd.f32 %v1596_v10, %v572_v12  ;;  %v564_v17 = vadd.f32 %v563_v15, %v386_v44 }
  0xf8   : > { %v1597_v18 = vpop.f32.mrf.mxu0  ;;  %v1563_v19 = vpop.f32.mrf.mxu1 }
  0xf9   : > { %v1063_v20 = vadd.f32 %v1866_v14, %v1024_v16  ;;  %v1022_v21 = vadd.f32 %v895_v13, %v564_v17  ;;  %v575_v22 = vadd.f32 %v1563_v19, %v1529_v46 }
  0xfa   : > { %v898_v23 = vpop.f32.mrf.mxu0  ;;  %v566_v24 = vpop.f32.mrf.mxu1 }
  0xfb   : > { %v1443_v25 = vpack.c.bf16 %v1063_v20, %v1063_v20  ;;  %v1061_v26 = vadd.f32 %v1866_v14, %v1022_v21  ;;  %v1025_v27 = vadd.f32 %v1597_v18, %v575_v22  ;;  %v567_v28 = vadd.f32 %v566_v24, %v389_v48 }
  0xfc   : > { %v1600_v29 = vpop.f32.mrf.mxu0  ;;  %v1566_v30 = vpop.f32.mrf.mxu1 }
  0xfd   : > { %1224 = vst.msk [vmem:[%s1873_s29 + $0x8] sm:$0xf] %vm1221_vm3, %v1443_v25  ;;  %v1441_v31 = vpack.c.bf16 %v1061_v26, %v1061_v26  ;;  %v1064_v32 = vadd.f32 %v1866_v14, %v1025_v27  ;;  %v1023_v33 = vadd.f32 %v898_v23, %v567_v28  ;;  %v588_v34 = vadd.f32 %v1566_v30, %v1532_v50 }
  0xfe   : > { %v911_v35 = vpop.f32.mrf.mxu0  ;;  %v579_v36 = vpop.f32.mrf.mxu1 }
  0xff   : > { %1222 = vst.msk [vmem:[%s1873_s29] sm:$0xf] %vm1221_vm3, %v1441_v31  ;;  %v1444_v37 = vpack.c.bf16 %v1064_v32, %v1064_v32  ;;  %v1062_v38 = vadd.f32 %v1866_v14, %v1023_v33  ;;  %v1028_v39 = vadd.f32 %v1600_v29, %v588_v34  ;;  %v580_v40 = vadd.f32 %v579_v36, %v402_v52 }
 0x100   : > { %v1601_v41 = vpop.f32.mrf.mxu0  ;;  %v1567_v42 = vpop.f32.mrf.mxu1 }
 0x101   : > { %1225 = vst.msk [vmem:[%s1873_s29 + $0xc] sm:$0xf] %vm1221_vm3, %v1444_v37  ;;  %v1442_v44 = vpack.c.bf16 %v1062_v38, %v1062_v38  ;;  %v1067_v46 = vadd.f32 %v1866_v14, %v1028_v39  ;;  %v1026_v48 = vadd.f32 %v911_v35, %v580_v40  ;;  %v591_v50 = vadd.f32 %v1567_v42, %v1533_v54 }
 0x102   : > { %v914_v10 = vpop.f32.mrf.mxu0  ;;  %v582_v11 = vpop.f32.mrf.mxu1 }
 0x103   : > { %1223 = vst.msk [vmem:[%s1873_s29 + $0x4] sm:$0xf] %vm1221_vm3, %v1442_v44  ;;  %v1447_v12 = vpack.c.bf16 %v1067_v46, %v1067_v46  ;;  %v1065_v13 = vadd.f32 %v1866_v14, %v1026_v48  ;;  %v1029_v15 = vadd.f32 %v1601_v41, %v591_v50  ;;  %v583_v52 = vadd.f32 %v582_v11, %v1827_v56 }
 0x104   : > { %v1604_v16 = vpop.f32.mrf.mxu0  ;;  %v1570_v17 = vpop.f32.mrf.mxu1 }
 0x105   : > { %1228 = vst.msk [vmem:[%s1873_s29 + $0x18] sm:$0xf] %vm1221_vm3, %v1447_v12  ;;  %v1445_v18 = vpack.c.bf16 %v1065_v13, %v1065_v13  ;;  %v1068_v19 = vadd.f32 %v1866_v14, %v1029_v15  ;;  %v1027_v54 = vadd.f32 %v914_v10, %v583_v52  ;;  %v604_v20 = vadd.f32 %v1570_v17, %v1831_v58 }
 0x106   : > { %v927_v21 = vpop.f32.mrf.mxu0  ;;  %v595_v22 = vpop.f32.mrf.mxu1 }
 0x107   : > { %1226 = vst.msk [vmem:[%s1873_s29 + $0x10] sm:$0xf] %vm1221_vm3, %v1445_v18  ;;  %v1448_v23 = vpack.c.bf16 %v1068_v19, %v1068_v19  ;;  %v1066_v24 = vadd.f32 %v1866_v14, %v1027_v54  ;;  %v1032_v56 = vadd.f32 %v1604_v16, %v604_v20  ;;  %v596_v25 = vadd.f32 %v595_v22, %v1835_v60 }
 0x108   : > { %v1605_v26 = vpop.f32.mrf.mxu0  ;;  %v1571_v27 = vpop.f32.mrf.mxu1 }
 0x109   : > { %1229 = vst.msk [vmem:[%s1873_s29 + $0x1c] sm:$0xf] %vm1221_vm3, %v1448_v23  ;;  %v1446_v28 = vpack.c.bf16 %v1066_v24, %v1066_v24  ;;  %v1071_v29 = vadd.f32 %v1866_v14, %v1032_v56  ;;  %v1030_v58 = vadd.f32 %v927_v21, %v596_v25  ;;  %v607_v30 = vadd.f32 %v1571_v27, %v1839_v62 }
 0x10a   : > { %v930_v31 = vpop.f32.mrf.mxu0  ;;  %v598_v32 = vpop.f32.mrf.mxu1 }
 0x10b   : > { %1227 = vst.msk [vmem:[%s1873_s29 + $0x14] sm:$0xf] %vm1221_vm3, %v1446_v28  ;;  %v1451_v33 = vpack.c.bf16 %v1071_v29, %v1071_v29  ;;  %v1069_v34 = vadd.f32 %v1866_v14, %v1030_v58  ;;  %v1033_v60 = vadd.f32 %v1605_v26, %v607_v30  ;;  %v599_v35 = vadd.f32 %v598_v32, %v1843_v0 }
 0x10c   : > { %v1608_v36 = vpop.f32.mrf.mxu0  ;;  %v1574_v37 = vpop.f32.mrf.mxu1 }
 0x10d   : > { %1232 = vst.msk [vmem:[%s1873_s29 + $0x28] sm:$0xf] %vm1221_vm3, %v1451_v33  ;;  %v1449_v38 = vpack.c.bf16 %v1069_v34, %v1069_v34  ;;  %v1072_v39 = vadd.f32 %v1866_v14, %v1033_v60  ;;  %v1031_v62 = vadd.f32 %v930_v31, %v599_v35  ;;  %v620_v40 = vadd.f32 %v1574_v37, %v1847_v2 }
 0x10e   : > { %v943_v41 = vpop.f32.mrf.mxu0  ;;  %v611_v42 = vpop.f32.mrf.mxu1 }
 0x10f   : > { %1230 = vst.msk [vmem:[%s1873_s29 + $0x20] sm:$0xf] %vm1221_vm3, %v1449_v38  ;;  %v1452_v44 = vpack.c.bf16 %v1072_v39, %v1072_v39  ;;  %v1070_v46 = vadd.f32 %v1866_v14, %v1031_v62  ;;  %v1036_v0 = vadd.f32 %v1608_v36, %v620_v40  ;;  %v612_v48 = vadd.f32 %v611_v42, %v1851_v4 }
 0x110   : > { %v1609_v50 = vpop.f32.mrf.mxu0  ;;  %v1575_v10 = vpop.f32.mrf.mxu1 }
 0x111   : > { %1233 = vst.msk [vmem:[%s1873_s29 + $0x2c] sm:$0xf] %vm1221_vm3, %v1452_v44  ;;  %v1450_v11 = vpack.c.bf16 %v1070_v46, %v1070_v46  ;;  %v1075_v12 = vadd.f32 %v1866_v14, %v1036_v0  ;;  %v1034_v2 = vadd.f32 %v943_v41, %v612_v48  ;;  %v623_v13 = vadd.f32 %v1575_v10, %v1855_v6 }
 0x112   : > { %v946_v15 = vpop.f32.mrf.mxu0  ;;  %v614_v52 = vpop.f32.mrf.mxu1 }
 0x113   : > { %1231 = vst.msk [vmem:[%s1873_s29 + $0x24] sm:$0xf] %vm1221_vm3, %v1450_v11  ;;  %v1455_v16 = vpack.c.bf16 %v1075_v12, %v1075_v12  ;;  %v1073_v17 = vadd.f32 %v1866_v14, %v1034_v2  ;;  %v1037_v4 = vadd.f32 %v1609_v50, %v623_v13  ;;  %v615_v18 = vadd.f32 %v614_v52, %v1859_v8 }
 0x114   : > { %v1612_v19 = vpop.f32.mrf.mxu0  ;;  %v1578_v54 = vpop.f32.mrf.mxu1 }
 0x115   : > { %1236 = vst.msk [vmem:[%s1873_s29 + $0x38] sm:$0xf] %vm1221_vm3, %v1455_v16  ;;  %v1453_v20 = vpack.c.bf16 %v1073_v17, %v1073_v17  ;;  %v1076_v21 = vadd.f32 %v1866_v14, %v1037_v4  ;;  %v1035_v6 = vadd.f32 %v946_v15, %v615_v18  ;;  %v636_v22 = vadd.f32 %v1578_v54, %v1813_v43 }
 0x116   : > { %v959_v23 = vpop.f32.mrf.mxu0  ;;  %v627_v24 = vpop.f32.mrf.mxu1 }
 0x117   : > { %1234 = vst.msk [vmem:[%s1873_s29 + $0x30] sm:$0xf] %vm1221_vm3, %v1453_v20  ;;  %v1456_v56 = vpack.c.bf16 %v1076_v21, %v1076_v21  ;;  %v1074_v25 = vadd.f32 %v1866_v14, %v1035_v6  ;;  %v1040_v8 = vadd.f32 %v1612_v19, %v636_v22  ;;  %v628_v26 = vadd.f32 %v627_v24, %v1815_v45 }
 0x118   : > { %v1613_v27 = vpop.f32.mrf.mxu0  ;;  %v1579_v28 = vpop.f32.mrf.mxu1 }
 0x119   : > { %1237 = vst.msk [vmem:[%s1873_s29 + $0x3c] sm:$0xf] %vm1221_vm3, %v1456_v56  ;;  %v1454_v29 = vpack.c.bf16 %v1074_v25, %v1074_v25  ;;  %v1079_v58 = vadd.f32 %v1866_v14, %v1040_v8  ;;  %v1038_v43 = vadd.f32 %v959_v23, %v628_v26  ;;  %v639_v30 = vadd.f32 %v1579_v28, %v1817_v47 }
 0x11a   : > { %v962_v31 = vpop.f32.mrf.mxu0  ;;  %v630_v32 = vpop.f32.mrf.mxu1 }
 0x11b   : > { %1235 = vst.msk [vmem:[%s1873_s29 + $0x34] sm:$0xf] %vm1221_vm3, %v1454_v29  ;;  %v1459_v33 = vpack.c.bf16 %v1079_v58, %v1079_v58  ;;  %v1077_v34 = vadd.f32 %v1866_v14, %v1038_v43  ;;  %v1041_v45 = vadd.f32 %v1613_v27, %v639_v30  ;;  %v631_v60 = vadd.f32 %v630_v32, %v1819_v49 }
 0x11c   : > { %v1616_v35 = vpop.f32.mrf.mxu0  ;;  %v1582_v36 = vpop.f32.mrf.mxu1 }
 0x11d   : > { %1240 = vst.msk [vmem:[%s1873_s29 + $0x48] sm:$0xf] %vm1221_vm3, %v1459_v33  ;;  %v1457_v37 = vpack.c.bf16 %v1077_v34, %v1077_v34  ;;  %v1080_v38 = vadd.f32 %v1866_v14, %v1041_v45  ;;  %v1039_v47 = vadd.f32 %v962_v31, %v631_v60  ;;  %v652_v39 = vadd.f32 %v1582_v36, %v1821_v51 }
 0x11e   : > { %v975_v62 = vpop.f32.mrf.mxu0  ;;  %v643_v40 = vpop.f32.mrf.mxu1 }
 0x11f   : > { %1238 = vst.msk [vmem:[%s1873_s29 + $0x40] sm:$0xf] %vm1221_vm3, %v1457_v37  ;;  %v1460_v41 = vpack.c.bf16 %v1080_v38, %v1080_v38  ;;  %v1078_v42 = vadd.f32 %v1866_v14, %v1039_v47  ;;  %v1044_v49 = vadd.f32 %v1616_v35, %v652_v39  ;;  %v644_v44 = vadd.f32 %v643_v40, %v1823_v53 }
 0x120   : > { %v1617_v46 = vpop.f32.mrf.mxu0  ;;  %v1583_v0 = vpop.f32.mrf.mxu1 }
 0x121   : > { %1241 = vst.msk [vmem:[%s1873_s29 + $0x4c] sm:$0xf] %vm1221_vm3, %v1460_v41  ;;  %v1458_v48 = vpack.c.bf16 %v1078_v42, %v1078_v42  ;;  %v1083_v50 = vadd.f32 %v1866_v14, %v1044_v49  ;;  %v1042_v51 = vadd.f32 %v975_v62, %v644_v44  ;;  %v655_v10 = vadd.f32 %v1583_v0, %v1825_v55 }
 0x122   : > { %v978_v11 = vpop.f32.mrf.mxu0  ;;  %v646_v12 = vpop.f32.mrf.mxu1 }
 0x123   : > { %1239 = vst.msk [vmem:[%s1873_s29 + $0x44] sm:$0xf] %vm1221_vm3, %v1458_v48  ;;  %v1463_v2 = vpack.c.bf16 %v1083_v50, %v1083_v50  ;;  %v1081_v13 = vadd.f32 %v1866_v14, %v1042_v51  ;;  %v1045_v53 = vadd.f32 %v1617_v46, %v655_v10  ;;  %v647_v15 = vadd.f32 %v646_v12, %v1829_v57 }
 0x124   : > { %v1620_v52 = vpop.f32.mrf.mxu0  ;;  %v1586_v16 = vpop.f32.mrf.mxu1 }
 0x125   : > { %1244 = vst.msk [vmem:[%s1873_s29 + $0x58] sm:$0xf] %vm1221_vm3, %v1463_v2  ;;  %v1461_v17 = vpack.c.bf16 %v1081_v13, %v1081_v13  ;;  %v1084_v4 = vadd.f32 %v1866_v14, %v1045_v53  ;;  %v1043_v55 = vadd.f32 %v978_v11, %v647_v15  ;;  %v668_v18 = vadd.f32 %v1586_v16, %v1833_v59 }
 0x126   : > { %v991_v19 = vpop.f32.mrf.mxu0  ;;  %v659_v54 = vpop.f32.mrf.mxu1 }
 0x127   : > { %1242 = vst.msk [vmem:[%s1873_s29 + $0x50] sm:$0xf] %vm1221_vm3, %v1461_v17  ;;  %v1464_v20 = vpack.c.bf16 %v1084_v4, %v1084_v4  ;;  %v1082_v21 = vadd.f32 %v1866_v14, %v1043_v55  ;;  %v1048_v57 = vadd.f32 %v1620_v52, %v668_v18  ;;  %v660_v6 = vadd.f32 %v659_v54, %v1837_v61 }
 0x128   : > { %v1621_v22 = vpop.f32.mrf.mxu0  ;;  %v1587_v23 = vpop.f32.mrf.mxu1 }
 0x129   : > { %1245 = vst.msk [vmem:[%s1873_s29 + $0x5c] sm:$0xf] %vm1221_vm3, %v1464_v20  ;;  %v1462_v24 = vpack.c.bf16 %v1082_v21, %v1082_v21  ;;  %v1087_v56 = vadd.f32 %v1866_v14, %v1048_v57  ;;  %v1046_v59 = vadd.f32 %v991_v19, %v660_v6  ;;  %v671_v25 = vadd.f32 %v1587_v23, %v1841_v63 }
 0x12a   : > { %v994_v8 = vpop.f32.mrf.mxu0  ;;  %v662_v26 = vpop.f32.mrf.mxu1 }
 0x12b   : > { %1243 = vst.msk [vmem:[%s1873_s29 + $0x54] sm:$0xf] %vm1221_vm3, %v1462_v24  ;;  %v1467_v27 = vpack.c.bf16 %v1087_v56, %v1087_v56  ;;  %v1085_v28 = vadd.f32 %v1866_v14, %v1046_v59  ;;  %v1049_v61 = vadd.f32 %v1621_v22, %v671_v25  ;;  %v663_v29 = vadd.f32 %v662_v26, %v1845_v1 }
 0x12c   : > { %v1624_v58 = vpop.f32.mrf.mxu0  ;;  %v1590_v43 = vpop.f32.mrf.mxu1 }
 0x12d   : > { %1248 = vst.msk [vmem:[%s1873_s29 + $0x68] sm:$0xf] %vm1221_vm3, %v1467_v27  ;;  %v1465_v30 = vpack.c.bf16 %v1085_v28, %v1085_v28  ;;  %v1088_v31 = vadd.f32 %v1866_v14, %v1049_v61  ;;  %v1047_v63 = vadd.f32 %v994_v8, %v663_v29  ;;  %v684_v32 = vadd.f32 %v1590_v43, %v1849_v3 }
 0x12e   : > { %v1007_v33 = vpop.f32.mrf.mxu0  ;;  %v675_v34 = vpop.f32.mrf.mxu1 }
 0x12f   : > { %1246 = vst.msk [vmem:[%s1873_s29 + $0x60] sm:$0xf] %vm1221_vm3, %v1465_v30  ;;  %v1468_v45 = vpack.c.bf16 %v1088_v31, %v1088_v31  ;;  %v1086_v60 = vadd.f32 %v1866_v14, %v1047_v63  ;;  %v1052_v1 = vadd.f32 %v1624_v58, %v684_v32  ;;  %v676_v35 = vadd.f32 %v675_v34, %v1853_v5 }
 0x130   : > { %v1591_v36 = vpop.f32.mrf.mxu1  ;;  %v1625_v37 = vpop.f32.mrf.mxu0 }
 0x131   : > { %1249 = vst.msk [vmem:[%s1873_s29 + $0x6c] sm:$0xf] %vm1221_vm3, %v1468_v45  ;;  %v1466_v38 = vpack.c.bf16 %v1086_v60, %v1086_v60  ;;  %v1091_v3 = vadd.f32 %v1866_v14, %v1052_v1  ;;  %v1050_v47 = vadd.f32 %v1007_v33, %v676_v35  ;;  %v687_v39 = vadd.f32 %v1591_v36, %v1857_v7 }
 0x132   : > { %v678_v62 = vpop.f32.mrf.mxu1  ;;  %v1010_v49 = vpop.f32.mrf.mxu0 }
 0x133   : > { %1247 = vst.msk [vmem:[%s1873_s29 + $0x64] sm:$0xf] %vm1221_vm3, %v1466_v38  ;;  %v1471_v40 = vpack.c.bf16 %v1091_v3, %v1091_v3  ;;  %v1089_v41 = vadd.f32 %v1866_v14, %v1050_v47  ;;  %v1053_v5 = vadd.f32 %v1625_v37, %v687_v39  ;;  %v679_v42 = vadd.f32 %v678_v62, %v1861_v9 }
 0x135   : > { %1252 = vst.msk [vmem:[%s1873_s29 + $0x78] sm:$0xf] %vm1221_vm3, %v1471_v40  ;;  %v1469_v44 = vpack.c.bf16 %v1089_v41, %v1089_v41  ;;  %v1092_v46 = vadd.f32 %v1866_v14, %v1053_v5  ;;  %v1051_v0 = vadd.f32 %v1010_v49, %v679_v42 }
 0x137   : > { %1250 = vst.msk [vmem:[%s1873_s29 + $0x70] sm:$0xf] %vm1221_vm3, %v1469_v44  ;;  %v1472_v7 = vpack.c.bf16 %v1092_v46, %v1092_v46  ;;  %v1090_v48 = vadd.f32 %v1866_v14, %v1051_v0 }
 0x139   : > { %1253 = vst.msk [vmem:[%s1873_s29 + $0x7c] sm:$0xf] %vm1221_vm3, %v1472_v7  ;;  %v1470_v50 = vpack.c.bf16 %v1090_v48, %v1090_v48 }
 0x13b   : > { %1251 = vst.msk [vmem:[%s1873_s29 + $0x74] sm:$0xf] %vm1221_vm3, %v1470_v50 }
 0x13c PF: > { %s13_s12 = sadd.s32 1, %s1680_s12  }
 0x13d   : > { %p10_p4 = scmp.ge.s32.totalorder %s13_s12, 4  }
 0x13f   :  { %12 = sbr.rel (!%p10_p4) target bundleno = 1 (0x1), region = 64 }

// kernel: autoencoder_kl_forward.40
= control target key start
LH: loop header
LB: loop body
LE: loop exit
PB: predicated region body
PF: predicated region fallthrough
CT: control target
= control target key end

     0   :  { %s2122_s12 = smov 0   ;;  %s2715_s0 = inlined_call_operand.vmem [shape: bf16[2,288,192], index: 0, kind: input, shape index: {}]   ;;  %s2716_s1 = inlined_call_operand.vmem [shape: bf16[3,192,64], index: 1, kind: input, shape index: {}]   ;;  %s2717_s2 = inlined_call_operand.vmem [shape: f32[1,64], index: 2, kind: input, shape index: {}]   ;;  %s2718_s3 = inlined_call_operand.vmem [shape: bf16[2,256,64], index: 3, kind: output, shape index: {}]  }
   0x1 LB: > { %s1695_s13 = sadd.s32 4294967295, %s2099_s12   ;;  %p1699_p0 = scmp.ge.s32.totalorder %s2099_s12, 1  ;;  %s2099_s12 = sphi %s2122_s12, %s13_s12  }
   0x2   : > { %p137_p1 = scmp.lt.s32.totalorder %s2099_s12, 3 }
   0x4   : > { %p138_p2 = pnand %p1699_p0, %p137_p1 }
   0x5   : > { %p161_p3 = scmp.lt.s32.totalorder (!%p138_p2), %s1695_s13, 1 }
   0x6   : > { %141 = sbr.rel (%p138_p2) target bundleno = 450 (0x1c2), region = 32 }
   0xb   : > { %v2003_v0 = vld [vmem:[%s2716_s1 + $0x98] sm:$0xff]   ;;  %v2101_v1 = vmov 0   ;;  %v2004_v2 = vld [vmem:[%s2716_s1 + $0x90] sm:$0xff]   ;;  %s2720_s13 = smov (!%p161_p3, %s1695_s13), 1  ;;  %v2005_v3 = vld [vmem:[%s2716_s1 + $0x88] sm:$0xff]   ;;  %vm471_vm0 = vcmask 523264  }
   0xc   : > { %520 = vmatprep.subr.bf16.mxu0 %v2101_v1  ;;  %1969 = vmatprep.subr.bf16.mxu1 %v2101_v1  ;;  %s1993_s20 = smul.u32 288, %s2720_s13  ;;  %v2006_v4 = vld [vmem:[%s2716_s1 + $0x80] sm:$0xff]   ;;  %v2007_v6 = vld [vmem:[%s2716_s1 + $0x78] sm:$0xff]   ;;  %v2008_v8 = vld [vmem:[%s2716_s1 + $0x70] sm:$0xff]   ;;  %s1936_s18 = sshll.u32 %s2720_s13, 7  ;;  %vm1607_vm1 = vcmask 519168  }
   0xd   : > { %521 = vmatpush1.bf16.msra.mxu0 %v2003_v0  ;;  %1981 = vmatpush1.bf16.msra.mxu1 %v2003_v0  ;;  %v2009_v9 = vld [vmem:[%s2716_s1 + $0x68] sm:$0xff]   ;;  %v2010_v10 = vld [vmem:[%s2716_s1 + $0x60] sm:$0xff]   ;;  %v2011_v11 = vld [vmem:[%s2716_s1 + $0xb8] sm:$0xff]   ;;  %s2585_s21 = scalar_lea.vmem %s2718_s3, %s1936_s18 }
   0xe   : > { %522 = vmatprep.subr.bf16.mxu0 %v2101_v1  ;;  %1970 = vmatprep.subr.bf16.mxu1 %v2101_v1  ;;  %s2154_s25 = scalar_lea.vmem %s2715_s0, %s1993_s20  ;;  %v2012_v12 = vld [vmem:[%s2716_s1 + $0xb0] sm:$0xff]   ;;  %v2013_v13 = vld [vmem:[%s2716_s1 + $0xa8] sm:$0xff]   ;;  %v2014_v14 = vld [vmem:[%s2716_s1 + $0xa0] sm:$0xff]  }
   0xf   : > { %v2159_v5 = vld [vmem:[%s2154_s25 + $0x14] ss:$8 sps:$4 sm:$0xff]   ;;  %v2209_v15 = vld [vmem:[%s2154_s25 + $0x10] ss:$8 sps:$4 sm:$0xff]   ;;  %v2223_v19 = vld [vmem:[%s2154_s25 + $0x24] ss:$8 sps:$4 sm:$0xff]  }
  0x10   : > { %v2165_v7 = vld [vmem:[%s2154_s25 + $0x94] ss:$8 sps:$4 sm:$0xff]   ;;  %1771 = vmatprep.mubr.msk.bf16.mxu0 %vm471_vm0, %v2159_v5  ;;  %v2212_v16 = vld [vmem:[%s2154_s25 + $0x90] ss:$8 sps:$4 sm:$0xff]   ;;  %v2226_v20 = vld [vmem:[%s2154_s25 + $0xa4] ss:$8 sps:$4 sm:$0xff]  }
  0x11   : > { %523 = vmatpush1.bf16.msra.mxu0 %v2004_v2  ;;  %1982 = vmatpush1.bf16.msra.mxu1 %v2004_v2  ;;  %v2021_v17 = vld [vmem:[%s2716_s1 + $0x38] sm:$0xff]   ;;  %v2027_v21 = vld [vmem:[%s2716_s1 + $0x30] sm:$0xff]   ;;  %v2240_v23 = vld [vmem:[%s2154_s25 + $0x20] ss:$8 sps:$4 sm:$0xff]  }
  0x12   : > { %524 = vmatprep.subr.bf16.mxu0 %v2101_v1  ;;  %1971 = vmatprep.subr.bf16.mxu1 %v2101_v1  ;;  %v2022_v18 = vld [vmem:[%s2716_s1 + $0xf8] sm:$0xff]   ;;  %v2030_v22 = vld [vmem:[%s2716_s1 + $0xf0] sm:$0xff]   ;;  %v2245_v24 = vld [vmem:[%s2154_s25 + $0xa0] ss:$8 sps:$4 sm:$0xff]  }
  0x13   : > { %1779 = vmatprep.mubr.msk.bf16.mxu1 %vm471_vm0, %v2165_v7  ;;  %v2031_v25 = vld [vmem:[%s2716_s1 + $0x28] sm:$0xff]   ;;  %v2255_v27 = vld [vmem:[%s2154_s25 + $0x34] ss:$8 sps:$4 sm:$0xff]   ;;  %v2039_v29 = vld [vmem:[%s2716_s1 + $0x20] sm:$0xff]  }
  0x14   : > { %v2032_v26 = vld [vmem:[%s2716_s1 + $0xe8] sm:$0xff]   ;;  %v2260_v28 = vld [vmem:[%s2154_s25 + $0xb4] ss:$8 sps:$4 sm:$0xff]   ;;  %v2040_v30 = vld [vmem:[%s2716_s1 + $0xe0] sm:$0xff]  }
  0x15   : > { %525 = vmatpush1.bf16.msra.mxu0 %v2005_v3  ;;  %1983 = vmatpush1.bf16.msra.mxu1 %v2005_v3  ;;  %v2277_v31 = vld [vmem:[%s2154_s25 + $0x30] ss:$8 sps:$4 sm:$0xff]   ;;  %v2283_v33 = vld [vmem:[%s2154_s25 + $0x44] ss:$8 sps:$4 sm:$0xff]   ;;  %v2311_v39 = vld [vmem:[%s2154_s25 + $0x40] ss:$8 sps:$4 sm:$0xff]  }
  0x16   : > { %526 = vmatprep.subr.bf16.mxu0 %v2101_v1  ;;  %1972 = vmatprep.subr.bf16.mxu1 %v2101_v1  ;;  %v2280_v32 = vld [vmem:[%s2154_s25 + $0xb0] ss:$8 sps:$4 sm:$0xff]   ;;  %v2286_v34 = vld [vmem:[%s2154_s25 + $0xc4] ss:$8 sps:$4 sm:$0xff]   ;;  %v2314_v40 = vld [vmem:[%s2154_s25 + $0xc0] ss:$8 sps:$4 sm:$0xff]  }
  0x17   : > { %v2045_v35 = vld [vmem:[%s2716_s1 + $0x18] sm:$0xff]   ;;  %v2049_v37 = vld [vmem:[%s2716_s1 + $0x10] sm:$0xff]   ;;  %v2057_v43 = vld [vmem:[%s2716_s1 + $0x8] sm:$0xff]  }
  0x18   : > { %v2048_v36 = vld [vmem:[%s2716_s1 + $0xd8] sm:$0xff]   ;;  %v2050_v38 = vld [vmem:[%s2716_s1 + $0xd0] sm:$0xff]   ;;  %v2058_v44 = vld [vmem:[%s2716_s1 + $0xc8] sm:$0xff]  }
  0x19   : > { %527 = vmatpush1.bf16.msra.mxu0 %v2006_v4  ;;  %1984 = vmatpush1.bf16.msra.mxu1 %v2006_v4  ;;  %v2317_v41 = vld [vmem:[%s2154_s25 + $0x54] ss:$8 sps:$4 sm:$0xff]   ;;  %v2063_v45 = vld [vmem:[%s2716_s1] sm:$0xff]   ;;  %v2345_v47 = vld [vmem:[%s2154_s25 + $0x50] ss:$8 sps:$4 sm:$0xff]  }
  0x1a   : > { %528 = vmatprep.subr.bf16.mxu0 %v2101_v1  ;;  %1973 = vmatprep.subr.bf16.mxu1 %v2101_v1  ;;  %v2320_v42 = vld [vmem:[%s2154_s25 + $0xd4] ss:$8 sps:$4 sm:$0xff]   ;;  %v2066_v46 = vld [vmem:[%s2716_s1 + $0xc0] sm:$0xff]   ;;  %v2348_v48 = vld [vmem:[%s2154_s25 + $0xd0] ss:$8 sps:$4 sm:$0xff]  }
  0x1b   : > { %v2351_v49 = vld [vmem:[%s2154_s25 + $0x64] ss:$8 sps:$4 sm:$0xff]   ;;  %v2067_v51 = vld [vmem:[%s2716_s1 + $0x58] sm:$0xff]   ;;  %v2075_v53 = vld [vmem:[%s2716_s1 + $0x50] sm:$0xff]  }
  0x1c   : > { %v2354_v50 = vld [vmem:[%s2154_s25 + $0xe4] ss:$8 sps:$4 sm:$0xff]   ;;  %v2068_v52 = vld [vmem:[%s2716_s1 + $0x118] sm:$0xff]   ;;  %v2076_v54 = vld [vmem:[%s2716_s1 + $0x110] sm:$0xff]  }
  0x1d   : > { %529 = vmatpush1.bf16.msra.mxu0 %v2007_v6  ;;  %1985 = vmatpush1.bf16.msra.mxu1 %v2007_v6  ;;  %v2064_v55 = vld [vmem:[%s2154_s25 + $0x60] ss:$8 sps:$4 sm:$0xff]   ;;  %v2069_v57 = vld [vmem:[%s2154_s25 + $0x74] ss:$8 sps:$4 sm:$0xff]   ;;  %v2073_v63 = vld [vmem:[%s2154_s25 + $0x70] ss:$8 sps:$4 sm:$0xff]  }
  0x1e   : > { %530 = vmatprep.subr.bf16.mxu0 %v2101_v1  ;;  %1974 = vmatprep.subr.bf16.mxu1 %v2101_v1  ;;  %v2380_v56 = vld [vmem:[%s2154_s25 + $0xe0] ss:$8 sps:$4 sm:$0xff]   ;;  %v2384_v58 = vld [vmem:[%s2154_s25 + $0xf4] ss:$8 sps:$4 sm:$0xff]   ;;  %v2408_v0 = vld [vmem:[%s2154_s25 + $0xf0] ss:$8 sps:$4 sm:$0xff]  }
  0x1f   : > { %v2081_v59 = vld [vmem:[%s2716_s1 + $0x48] sm:$0xff]   ;;  %v2085_v61 = vld [vmem:[%s2716_s1 + $0x40] sm:$0xff]  }
  0x20   : > { %v2084_v60 = vld [vmem:[%s2716_s1 + $0x108] sm:$0xff]   ;;  %v2086_v62 = vld [vmem:[%s2716_s1 + $0x100] sm:$0xff]  }
  0x21   : > { %531 = vmatpush1.bf16.msra.mxu0 %v2008_v8  ;;  %1986 = vmatpush1.bf16.msra.mxu1 %v2008_v8  ;;  %v2077_v2 = vld [vmem:[%s2154_s25 + $0x84] ss:$8 sps:$4 sm:$0xff]   ;;  %v2082_v4 = vld [vmem:[%s2154_s25 + $0x80] ss:$8 sps:$4 sm:$0xff]  }
  0x22   : > { %532 = vmatprep.subr.bf16.mxu0 %v2101_v1  ;;  %1975 = vmatprep.subr.bf16.mxu1 %v2101_v1  ;;  %v2412_v3 = vld [vmem:[%s2154_s25 + $0x104] ss:$8 sps:$4 sm:$0xff]   ;;  %v2420_v6 = vld [vmem:[%s2154_s25 + $0x100] ss:$8 sps:$4 sm:$0xff]  }
  0x23   : > { %v2087_v8 = vld [vmem:[%s2154_s25] ss:$8 sps:$4 sm:$0xff]  }
  0x25   : > { %533 = vmatpush1.bf16.msra.mxu0 %v2009_v9  ;;  %1987 = vmatpush1.bf16.msra.mxu1 %v2009_v9 }
  0x26   : > { %534 = vmatprep.subr.bf16.mxu0 %v2101_v1  ;;  %1976 = vmatprep.subr.bf16.mxu1 %v2101_v1 }
  0x29   : > { %535 = vmatpush1.bf16.msra.mxu0 %v2010_v10  ;;  %1988 = vmatpush1.bf16.msra.mxu1 %v2010_v10 }
  0x2a   : > { %544 = vmatprep.subr.bf16.mxu0 %v2101_v1  ;;  %1977 = vmatprep.subr.bf16.mxu1 %v2101_v1 }
  0x2d   : > { %545 = vmatpush2.bf16.msra.mxu0 %v2011_v11  ;;  %1989 = vmatpush2.bf16.msra.mxu1 %v2011_v11 }
  0x2e   : > { %546 = vmatprep.subr.bf16.mxu0 %v2101_v1  ;;  %1978 = vmatprep.subr.bf16.mxu1 %v2101_v1 }
  0x31   : > { %547 = vmatpush2.bf16.msra.mxu0 %v2012_v12  ;;  %1990 = vmatpush2.bf16.msra.mxu1 %v2012_v12 }
  0x32   : > { %548 = vmatprep.subr.bf16.mxu0 %v2101_v1  ;;  %1979 = vmatprep.subr.bf16.mxu1 %v2101_v1 }
  0x35   : > { %549 = vmatpush2.bf16.msra.mxu0 %v2013_v13  ;;  %1991 = vmatpush2.bf16.msra.mxu1 %v2013_v13 }
  0x36   : > { %550 = vmatprep.subr.bf16.mxu0 %v2101_v1  ;;  %1980 = vmatprep.subr.bf16.mxu1 %v2101_v1 }
  0x39   : > { %551 = vmatpush2.bf16.msra.mxu0 %v2014_v14  ;;  %1992 = vmatpush2.bf16.msra.mxu1 %v2014_v14 }
  0x3a   : > { %765 = vmatprep.subr.bf16.mxu1 %v2101_v1  ;;  %1247 = vmatprep.subr.bf16.mxu0 %v2101_v1 }
  0x3c   : > { %553 = vmatmul.mubr.bf16.vlgmr.msra.gmra.mxu0 %v2209_v15  ;;  %617 = vmatmul.mubr.bf16.vlgmr.msra.gmra.mxu1 %v2212_v16 }
  0x3d   : > { %766 = vmatpush1.bf16.msra.mxu1 %v2021_v17  ;;  %1248 = vmatpush1.bf16.msra.mxu0 %v2022_v18 }
  0x3e   : > { %767 = vmatprep.subr.bf16.mxu1 %v2101_v1  ;;  %1772 = vmatprep.mubr.msk.bf16.mxu0 %vm471_vm0, %v2223_v19 }
  0x3f   : > { %1780 = vmatprep.mubr.msk.bf16.mxu1 %vm471_vm0, %v2226_v20  ;;  %1249 = vmatprep.subr.bf16.mxu0 %v2101_v1 }
  0x41   : > { %768 = vmatpush1.bf16.msra.mxu1 %v2027_v21  ;;  %1250 = vmatpush1.bf16.msra.mxu0 %v2030_v22 }
  0x42   : > { %769 = vmatprep.subr.bf16.mxu1 %v2101_v1  ;;  %1251 = vmatprep.subr.bf16.mxu0 %v2101_v1 }
  0x44   : > { %561 = vmatmul.mubr.bf16.gmra.mxu0 %v2240_v23  ;;  %625 = vmatmul.mubr.bf16.gmra.mxu1 %v2245_v24 }
  0x45   : > { %770 = vmatpush1.bf16.msra.mxu1 %v2031_v25  ;;  %1252 = vmatpush1.bf16.msra.mxu0 %v2032_v26 }
  0x46   : > { %1773 = vmatprep.mubr.msk.bf16.mxu0 %vm471_vm0, %v2255_v27  ;;  %1781 = vmatprep.mubr.msk.bf16.mxu1 %vm471_vm0, %v2260_v28 }
  0x47   : > { %771 = vmatprep.subr.bf16.mxu1 %v2101_v1  ;;  %1253 = vmatprep.subr.bf16.mxu0 %v2101_v1 }
  0x49   : > { %772 = vmatpush1.bf16.msra.mxu1 %v2039_v29  ;;  %1254 = vmatpush1.bf16.msra.mxu0 %v2040_v30 }
  0x4a   : > { %773 = vmatprep.subr.bf16.mxu1 %v2101_v1  ;;  %1255 = vmatprep.subr.bf16.mxu0 %v2101_v1 }
  0x4c   : > { %569 = vmatmul.mubr.bf16.gmra.mxu0 %v2277_v31  ;;  %633 = vmatmul.mubr.bf16.gmra.mxu1 %v2280_v32 }
  0x4d   : > { %1774 = vmatprep.mubr.msk.bf16.mxu0 %vm471_vm0, %v2283_v33  ;;  %1782 = vmatprep.mubr.msk.bf16.mxu1 %vm471_vm0, %v2286_v34 }
  0x4e   : > { %774 = vmatpush1.bf16.msra.mxu1 %v2045_v35  ;;  %1256 = vmatpush1.bf16.msra.mxu0 %v2048_v36 }
  0x4f   : > { %775 = vmatprep.subr.bf16.mxu1 %v2101_v1  ;;  %1257 = vmatprep.subr.bf16.mxu0 %v2101_v1 }
  0x52   : > { %776 = vmatpush1.bf16.msra.mxu1 %v2049_v37  ;;  %1258 = vmatpush1.bf16.msra.mxu0 %v2050_v38 }
  0x53   : > { %777 = vmatprep.subr.bf16.mxu1 %v2101_v1  ;;  %1259 = vmatprep.subr.bf16.mxu0 %v2101_v1 }
  0x54   : > { %577 = vmatmul.mubr.bf16.gmra.mxu0 %v2311_v39  ;;  %641 = vmatmul.mubr.bf16.gmra.mxu1 %v2314_v40 }
  0x55   : > { %1775 = vmatprep.mubr.msk.bf16.mxu0 %vm471_vm0, %v2317_v41  ;;  %1783 = vmatprep.mubr.msk.bf16.mxu1 %vm471_vm0, %v2320_v42 }
  0x56   : > { %778 = vmatpush1.bf16.msra.mxu1 %v2057_v43  ;;  %1260 = vmatpush1.bf16.msra.mxu0 %v2058_v44 }
  0x57   : > { %779 = vmatprep.subr.bf16.mxu1 %v2101_v1  ;;  %1261 = vmatprep.subr.bf16.mxu0 %v2101_v1 }
  0x5a   : > { %780 = vmatpush1.bf16.msra.mxu1 %v2063_v45  ;;  %1262 = vmatpush1.bf16.msra.mxu0 %v2066_v46 }
  0x5b   : > { %789 = vmatprep.subr.bf16.mxu1 %v2101_v1  ;;  %1271 = vmatprep.subr.bf16.mxu0 %v2101_v1 }
  0x5c   : > { %585 = vmatmul.mubr.bf16.gmra.mxu0 %v2345_v47  ;;  %649 = vmatmul.mubr.bf16.gmra.mxu1 %v2348_v48 }
  0x5d   : > { %1776 = vmatprep.mubr.msk.bf16.mxu0 %vm471_vm0, %v2351_v49  ;;  %1784 = vmatprep.mubr.msk.bf16.mxu1 %vm471_vm0, %v2354_v50 }
  0x5e   : > { %790 = vmatpush2.bf16.msra.mxu1 %v2067_v51  ;;  %1272 = vmatpush2.bf16.msra.mxu0 %v2068_v52 }
  0x5f   : > { %791 = vmatprep.subr.bf16.mxu1 %v2101_v1  ;;  %1273 = vmatprep.subr.bf16.mxu0 %v2101_v1 }
  0x62   : > { %792 = vmatpush2.bf16.msra.mxu1 %v2075_v53  ;;  %1274 = vmatpush2.bf16.msra.mxu0 %v2076_v54 }
  0x63   : > { %793 = vmatprep.subr.bf16.mxu1 %v2101_v1  ;;  %1275 = vmatprep.subr.bf16.mxu0 %v2101_v1 }
  0x64   : > { %593 = vmatmul.mubr.bf16.gmra.mxu0 %v2064_v55  ;;  %657 = vmatmul.mubr.bf16.gmra.mxu1 %v2380_v56 }
  0x65   : > { %1777 = vmatprep.mubr.msk.bf16.mxu0 %vm471_vm0, %v2069_v57  ;;  %1785 = vmatprep.mubr.msk.bf16.mxu1 %vm471_vm0, %v2384_v58 }
  0x66   : > { %794 = vmatpush2.bf16.msra.mxu1 %v2081_v59  ;;  %1276 = vmatpush2.bf16.msra.mxu0 %v2084_v60 }
  0x67   : > { %795 = vmatprep.subr.bf16.mxu1 %v2101_v1  ;;  %1277 = vmatprep.subr.bf16.mxu0 %v2101_v1  ;;  %v2089_v1 = vld [vmem:[%s2154_s25 + $0x4] ss:$8 sps:$4 sm:$0xff]  }
  0x6a   : > { %796 = vmatpush2.bf16.msra.mxu1 %v2085_v61  ;;  %1278 = vmatpush2.bf16.msra.mxu0 %v2086_v62 }
  0x6c   : > { %601 = vmatmul.mubr.bf16.gmra.mxu0 %v2073_v63  ;;  %665 = vmatmul.mubr.bf16.gmra.mxu1 %v2408_v0 }
  0x6d   : > { %1778 = vmatprep.mubr.msk.bf16.mxu0 %vm471_vm0, %v2077_v2  ;;  %1786 = vmatprep.mubr.msk.bf16.mxu1 %vm471_vm0, %v2412_v3 }
  0x74   : > { %609 = vmatmul.mubr.bf16.gmra.mxu0 %v2082_v4  ;;  %673 = vmatmul.mubr.bf16.gmra.mxu1 %v2420_v6 }
  0x75   : > { %1801 = vmatprep.mubr.msk.bf16.mxu1 %vm471_vm0, %v2089_v1  ;;  %1885 = vmatprep.mubr.msk.bf16.mxu0 %vm471_vm0, %v2223_v19 }
  0x7c   : > { %798 = vmatmul.mubr.bf16.vlgmr.msra.gmra.mxu1 %v2087_v8  ;;  %1280 = vmatmul.mubr.bf16.vlgmr.msra.gmra.mxu0 %v2240_v23 }
  0x7d   : > { %1802 = vmatprep.mubr.msk.bf16.mxu1 %vm471_vm0, %v2159_v5  ;;  %1886 = vmatprep.mubr.msk.bf16.mxu0 %vm471_vm0, %v2255_v27  ;;  %v2090_v5 = vld [vmem:[%s2154_s25 + $0x114] ss:$8 sps:$4 sm:$0xff]  }
  0x84   : > { %806 = vmatmul.mubr.bf16.gmra.mxu1 %v2209_v15  ;;  %1288 = vmatmul.mubr.bf16.gmra.mxu0 %v2277_v31 }
  0x85   : > { %1803 = vmatprep.mubr.msk.bf16.mxu1 %vm471_vm0, %v2223_v19  ;;  %1887 = vmatprep.mubr.msk.bf16.mxu0 %vm471_vm0, %v2283_v33 }
  0x8c   : > { %814 = vmatmul.mubr.bf16.gmra.mxu1 %v2240_v23  ;;  %1296 = vmatmul.mubr.bf16.gmra.mxu0 %v2311_v39 }
  0x8d   : > { %1804 = vmatprep.mubr.msk.bf16.mxu1 %vm471_vm0, %v2255_v27  ;;  %1888 = vmatprep.mubr.msk.bf16.mxu0 %vm471_vm0, %v2317_v41 }
  0x94   : > { %822 = vmatmul.mubr.bf16.gmra.mxu1 %v2277_v31  ;;  %1304 = vmatmul.mubr.bf16.gmra.mxu0 %v2345_v47 }
  0x95   : > { %1805 = vmatprep.mubr.msk.bf16.mxu1 %vm471_vm0, %v2283_v33  ;;  %1889 = vmatprep.mubr.msk.bf16.mxu0 %vm471_vm0, %v2351_v49 }
  0x9c   : > { %830 = vmatmul.mubr.bf16.gmra.mxu1 %v2311_v39  ;;  %1312 = vmatmul.mubr.bf16.gmra.mxu0 %v2064_v55 }
  0x9d   : > { %1806 = vmatprep.mubr.msk.bf16.mxu1 %vm471_vm0, %v2317_v41  ;;  %1890 = vmatprep.mubr.msk.bf16.mxu0 %vm471_vm0, %v2069_v57 }
  0xa4   : > { %838 = vmatmul.mubr.bf16.gmra.mxu1 %v2345_v47  ;;  %1320 = vmatmul.mubr.bf16.gmra.mxu0 %v2073_v63 }
  0xa5   : > { %1807 = vmatprep.mubr.msk.bf16.mxu1 %vm471_vm0, %v2351_v49  ;;  %1891 = vmatprep.mubr.msk.bf16.mxu0 %vm471_vm0, %v2077_v2 }
  0xac   : > { %846 = vmatmul.mubr.bf16.gmra.mxu1 %v2064_v55  ;;  %1328 = vmatmul.mubr.bf16.gmra.mxu0 %v2082_v4 }
  0xad   : > { %1808 = vmatprep.mubr.msk.bf16.mxu1 %vm471_vm0, %v2069_v57  ;;  %1892 = vmatprep.mubr.msk.bf16.mxu0 %vm471_vm0, %v2165_v7 }
  0xb4   : > { %854 = vmatmul.mubr.bf16.gmra.mxu1 %v2073_v63  ;;  %1336 = vmatmul.mubr.bf16.gmra.mxu0 %v2212_v16 }
  0xb5   : > { %1809 = vmatprep.mubr.msk.bf16.mxu1 %vm471_vm0, %v2077_v2  ;;  %1893 = vmatprep.mubr.msk.bf16.mxu0 %vm471_vm0, %v2226_v20 }
  0xbc   : > { %862 = vmatmul.mubr.bf16.gmra.mxu1 %v2082_v4  ;;  %1344 = vmatmul.mubr.bf16.gmra.mxu0 %v2245_v24 }
  0xbd   : > { %1810 = vmatprep.mubr.msk.bf16.mxu1 %vm471_vm0, %v2165_v7  ;;  %1894 = vmatprep.mubr.msk.bf16.mxu0 %vm471_vm0, %v2260_v28  ;;  %v2092_v7 = vld [vmem:[%s2154_s25 + $0x110] ss:$8 sps:$4 sm:$0xff]  }
  0xc4   : > { %870 = vmatmul.mubr.bf16.gmra.mxu1 %v2212_v16  ;;  %1352 = vmatmul.mubr.bf16.gmra.mxu0 %v2280_v32 }
  0xc5   : > { %1811 = vmatprep.mubr.msk.bf16.mxu1 %vm471_vm0, %v2226_v20  ;;  %1895 = vmatprep.mubr.msk.bf16.mxu0 %vm471_vm0, %v2286_v34 }
  0xcc   : > { %878 = vmatmul.mubr.bf16.gmra.mxu1 %v2245_v24  ;;  %1360 = vmatmul.mubr.bf16.gmra.mxu0 %v2314_v40 }
  0xcd   : > { %1812 = vmatprep.mubr.msk.bf16.mxu1 %vm471_vm0, %v2260_v28  ;;  %1896 = vmatprep.mubr.msk.bf16.mxu0 %vm471_vm0, %v2320_v42 }
  0xd4   : > { %886 = vmatmul.mubr.bf16.gmra.mxu1 %v2280_v32  ;;  %1368 = vmatmul.mubr.bf16.gmra.mxu0 %v2348_v48 }
  0xd5   : > { %1813 = vmatprep.mubr.msk.bf16.mxu1 %vm471_vm0, %v2286_v34  ;;  %1897 = vmatprep.mubr.msk.bf16.mxu0 %vm471_vm0, %v2354_v50 }
  0xdc   : > { %894 = vmatmul.mubr.bf16.gmra.mxu1 %v2314_v40  ;;  %1376 = vmatmul.mubr.bf16.gmra.mxu0 %v2380_v56 }
  0xdd   : > { %1814 = vmatprep.mubr.msk.bf16.mxu1 %vm471_vm0, %v2320_v42  ;;  %1898 = vmatprep.mubr.msk.bf16.mxu0 %vm471_vm0, %v2384_v58 }
  0xe4   : > { %902 = vmatmul.mubr.bf16.gmra.mxu1 %v2348_v48  ;;  %1384 = vmatmul.mubr.bf16.gmra.mxu0 %v2408_v0 }
  0xe5   : > { %1815 = vmatprep.mubr.msk.bf16.mxu1 %vm471_vm0, %v2354_v50  ;;  %1899 = vmatprep.mubr.msk.bf16.mxu0 %vm471_vm0, %v2412_v3 }
  0xec   : > { %910 = vmatmul.mubr.bf16.gmra.mxu1 %v2380_v56  ;;  %1392 = vmatmul.mubr.bf16.gmra.mxu0 %v2420_v6 }
  0xed   : > { %1816 = vmatprep.mubr.msk.bf16.mxu1 %vm471_vm0, %v2384_v58  ;;  %1900 = vmatprep.mubr.msk.bf16.mxu0 %vm471_vm0, %v2090_v5 }
  0xf4   : > { %918 = vmatmul.mubr.bf16.gmra.mxu1 %v2408_v0  ;;  %1400 = vmatmul.mubr.bf16.gmra.mxu0 %v2092_v7 }
  0xfc   : > { %v2509_v9 = vpop.f32.mrf.mxu0  ;;  %v2511_v10 = vpop.f32.mrf.mxu1 }
  0xfe   : > { %v556_v11 = vpop.f32.mrf.mxu0  ;;  %v620_v12 = vpop.f32.mrf.mxu1 }
 0x100   : > { %v2513_v13 = vpop.f32.mrf.mxu0  ;;  %v2515_v14 = vpop.f32.mrf.mxu1 }
 0x102   : > { %v559_v15 = vpop.f32.mrf.mxu0  ;;  %v623_v16 = vpop.f32.mrf.mxu1 }
 0x103   : > { %v2577_v16 = vld [vmem:[%s2717_s2] ss:$0 sm:$0xff] }
 0x104   : > { %v2517_v17 = vpop.f32.mrf.mxu0  ;;  %v2519_v18 = vpop.f32.mrf.mxu1 }
 0x106   : > { %v564_v19 = vpop.f32.mrf.mxu0  ;;  %v628_v20 = vpop.f32.mrf.mxu1 }
 0x108   : > { %v2521_v21 = vpop.f32.mrf.mxu0  ;;  %v2523_v22 = vpop.f32.mrf.mxu1 }
 0x10a   : > { %v567_v23 = vpop.f32.mrf.mxu0  ;;  %v631_v24 = vpop.f32.mrf.mxu1 }
 0x10c   : > { %v2525_v25 = vpop.f32.mrf.mxu0  ;;  %v2527_v26 = vpop.f32.mrf.mxu1 }
 0x10e   : > { %v572_v27 = vpop.f32.mrf.mxu0  ;;  %v636_v28 = vpop.f32.mrf.mxu1 }
 0x110   : > { %v2529_v29 = vpop.f32.mrf.mxu0  ;;  %v2531_v30 = vpop.f32.mrf.mxu1 }
 0x112   : > { %v575_v31 = vpop.f32.mrf.mxu0  ;;  %v639_v32 = vpop.f32.mrf.mxu1 }
 0x114   : > { %v2533_v33 = vpop.f32.mrf.mxu0  ;;  %v2535_v34 = vpop.f32.mrf.mxu1 }
 0x116   : > { %v580_v35 = vpop.f32.mrf.mxu0  ;;  %v644_v36 = vpop.f32.mrf.mxu1 }
 0x118   : > { %v2537_v37 = vpop.f32.mrf.mxu0  ;;  %v2539_v38 = vpop.f32.mrf.mxu1 }
 0x11a   : > { %v583_v39 = vpop.f32.mrf.mxu0  ;;  %v647_v40 = vpop.f32.mrf.mxu1 }
 0x11c   : > { %v2541_v41 = vpop.f32.mrf.mxu0  ;;  %v2543_v42 = vpop.f32.mrf.mxu1 }
 0x11e   : > { %v588_v43 = vpop.f32.mrf.mxu0  ;;  %v652_v44 = vpop.f32.mrf.mxu1 }
 0x120   : > { %v2545_v45 = vpop.f32.mrf.mxu0  ;;  %v2547_v46 = vpop.f32.mrf.mxu1 }
 0x122   : > { %v591_v47 = vpop.f32.mrf.mxu0  ;;  %v655_v48 = vpop.f32.mrf.mxu1 }
 0x124   : > { %v2549_v49 = vpop.f32.mrf.mxu0  ;;  %v2551_v50 = vpop.f32.mrf.mxu1 }
 0x126   : > { %v596_v51 = vpop.f32.mrf.mxu0  ;;  %v660_v52 = vpop.f32.mrf.mxu1 }
 0x128   : > { %v2553_v53 = vpop.f32.mrf.mxu0  ;;  %v2555_v54 = vpop.f32.mrf.mxu1 }
 0x12a   : > { %v599_v55 = vpop.f32.mrf.mxu0  ;;  %v663_v56 = vpop.f32.mrf.mxu1 }
 0x12c   : > { %v2557_v57 = vpop.f32.mrf.mxu0  ;;  %v2559_v58 = vpop.f32.mrf.mxu1 }
 0x12e   : > { %v604_v59 = vpop.f32.mrf.mxu0  ;;  %v668_v60 = vpop.f32.mrf.mxu1 }
 0x130   : > { %v2561_v61 = vpop.f32.mrf.mxu0  ;;  %v2563_v62 = vpop.f32.mrf.mxu1 }
 0x132   : > { %v607_v63 = vpop.f32.mrf.mxu0  ;;  %v671_v0 = vpop.f32.mrf.mxu1 }
 0x134   : > { %v2565_v2 = vpop.f32.mrf.mxu0  ;;  %v2567_v3 = vpop.f32.mrf.mxu1 }
 0x136   : > { %v612_v4 = vpop.f32.mrf.mxu0  ;;  %v676_v6 = vpop.f32.mrf.mxu1 }
 0x138   : > { %v2569_v1 = vpop.f32.mrf.mxu0  ;;  %v2571_v8 = vpop.f32.mrf.mxu1 }
 0x13a   : > { %v615_v5 = vpop.f32.mrf.mxu0  ;;  %v679_v7 = vpop.f32.mrf.mxu1 }
 0x13c   : > { %v799_v11 = vpop.f32.mrf.mxu1  ;;  %v1281_v12 = vpop.f32.mrf.mxu0 }
 0x13d   : > { %v800_v15 = vadd.f32 %v799_v11, %v2509_v9 }
 0x13e   : > { %v801_v19 = vpop.f32.mrf.mxu1  ;;  %v1283_v20 = vpop.f32.mrf.mxu0 }
 0x13f   : > { %v1408_v23 = vadd.f32 %v1281_v12, %v800_v15 }
 0x140   : > { %v802_v24 = vpop.f32.mrf.mxu1  ;;  %v1284_v27 = vpop.f32.mrf.mxu0 }
 0x141   : > { %v1447_v28 = vadd.f32 %v2577_v16, %v1408_v23  ;;  %v803_v31 = vadd.f32 %v802_v24, %v2513_v13 }
 0x142   : > { %v804_v9 = vpop.f32.mrf.mxu1  ;;  %v1286_v32 = vpop.f32.mrf.mxu0 }
 0x143   : > { %v1937_v35 = vpack.c.bf16 %v1447_v28, %v1447_v28  ;;  %v1409_v36 = vadd.f32 %v1284_v27, %v803_v31 }
 0x144   : > { %v807_v39 = vpop.f32.mrf.mxu1  ;;  %v1289_v40 = vpop.f32.mrf.mxu0 }
 0x145   : > { %1608 = vst.msk [vmem:[%s2585_s21] sm:$0xf] %vm1607_vm1, %v1937_v35  ;;  %v1448_v43 = vadd.f32 %v2577_v16, %v1409_v36  ;;  %v808_v13 = vadd.f32 %v807_v39, %v2517_v17 }
 0x146   : > { %v809_v44 = vpop.f32.mrf.mxu1  ;;  %v1291_v47 = vpop.f32.mrf.mxu0 }
 0x147   : > { %v1938_v48 = vpack.c.bf16 %v1448_v43, %v1448_v43  ;;  %v1410_v51 = vadd.f32 %v1289_v40, %v808_v13 }
 0x148   : > { %v810_v52 = vpop.f32.mrf.mxu1  ;;  %v1292_v55 = vpop.f32.mrf.mxu0 }
 0x149   : > { %1609 = vst.msk [vmem:[%s2585_s21 + $0x4] sm:$0xf] %vm1607_vm1, %v1938_v48  ;;  %v1449_v56 = vadd.f32 %v2577_v16, %v1410_v51  ;;  %v811_v59 = vadd.f32 %v810_v52, %v2521_v21 }
 0x14a   : > { %v812_v60 = vpop.f32.mrf.mxu1  ;;  %v1294_v63 = vpop.f32.mrf.mxu0 }
 0x14b   : > { %v1939_v0 = vpack.c.bf16 %v1449_v56, %v1449_v56  ;;  %v1411_v4 = vadd.f32 %v1292_v55, %v811_v59 }
 0x14c   : > { %v815_v6 = vpop.f32.mrf.mxu1  ;;  %v1297_v17 = vpop.f32.mrf.mxu0 }
 0x14d   : > { %1610 = vst.msk [vmem:[%s2585_s21 + $0x8] sm:$0xf] %vm1607_vm1, %v1939_v0  ;;  %v1450_v5 = vadd.f32 %v2577_v16, %v1411_v4  ;;  %v816_v7 = vadd.f32 %v815_v6, %v2525_v25 }
 0x14e   : > { %v817_v11 = vpop.f32.mrf.mxu1  ;;  %v1299_v12 = vpop.f32.mrf.mxu0 }
 0x14f   : > { %v1940_v15 = vpack.c.bf16 %v1450_v5, %v1450_v5  ;;  %v1412_v19 = vadd.f32 %v1297_v17, %v816_v7 }
 0x150   : > { %v818_v20 = vpop.f32.mrf.mxu1  ;;  %v1300_v21 = vpop.f32.mrf.mxu0 }
 0x151   : > { %1611 = vst.msk [vmem:[%s2585_s21 + $0xc] sm:$0xf] %vm1607_vm1, %v1940_v15  ;;  %v1451_v23 = vadd.f32 %v2577_v16, %v1412_v19  ;;  %v819_v24 = vadd.f32 %v818_v20, %v2529_v29 }
 0x152   : > { %v820_v27 = vpop.f32.mrf.mxu1  ;;  %v1302_v28 = vpop.f32.mrf.mxu0 }
 0x153   : > { %v1941_v31 = vpack.c.bf16 %v1451_v23, %v1451_v23  ;;  %v1413_v9 = vadd.f32 %v1300_v21, %v819_v24 }
 0x154   : > { %v823_v32 = vpop.f32.mrf.mxu1  ;;  %v1305_v25 = vpop.f32.mrf.mxu0 }
 0x155   : > { %1612 = vst.msk [vmem:[%s2585_s21 + $0x10] sm:$0xf] %vm1607_vm1, %v1941_v31  ;;  %v1452_v35 = vadd.f32 %v2577_v16, %v1413_v9  ;;  %v824_v36 = vadd.f32 %v823_v32, %v2533_v33 }
 0x156   : > { %v825_v39 = vpop.f32.mrf.mxu1  ;;  %v1307_v40 = vpop.f32.mrf.mxu0 }
 0x157   : > { %v1942_v43 = vpack.c.bf16 %v1452_v35, %v1452_v35  ;;  %v1414_v13 = vadd.f32 %v1305_v25, %v824_v36 }
 0x158   : > { %v826_v44 = vpop.f32.mrf.mxu1  ;;  %v1308_v29 = vpop.f32.mrf.mxu0 }
 0x159   : > { %1613 = vst.msk [vmem:[%s2585_s21 + $0x14] sm:$0xf] %vm1607_vm1, %v1942_v43  ;;  %v1453_v47 = vadd.f32 %v2577_v16, %v1414_v13  ;;  %v827_v48 = vadd.f32 %v826_v44, %v2537_v37 }
 0x15a   : > { %v828_v51 = vpop.f32.mrf.mxu1  ;;  %v1310_v52 = vpop.f32.mrf.mxu0 }
 0x15b   : > { %v1943_v55 = vpack.c.bf16 %v1453_v47, %v1453_v47  ;;  %v1415_v56 = vadd.f32 %v1308_v29, %v827_v48 }
 0x15c   : > { %v831_v59 = vpop.f32.mrf.mxu1  ;;  %v1313_v33 = vpop.f32.mrf.mxu0 }
 0x15d   : > { %1614 = vst.msk [vmem:[%s2585_s21 + $0x18] sm:$0xf] %vm1607_vm1, %v1943_v55  ;;  %v1454_v60 = vadd.f32 %v2577_v16, %v1415_v56  ;;  %v832_v63 = vadd.f32 %v831_v59, %v2541_v41 }
 0x15e   : > { %v833_v0 = vpop.f32.mrf.mxu1  ;;  %v1315_v4 = vpop.f32.mrf.mxu0 }
 0x15f   : > { %v1944_v6 = vpack.c.bf16 %v1454_v60, %v1454_v60  ;;  %v1416_v17 = vadd.f32 %v1313_v33, %v832_v63 }
 0x160   : > { %v834_v5 = vpop.f32.mrf.mxu1  ;;  %v1316_v37 = vpop.f32.mrf.mxu0 }
 0x161   : > { %1615 = vst.msk [vmem:[%s2585_s21 + $0x1c] sm:$0xf] %vm1607_vm1, %v1944_v6  ;;  %v1455_v7 = vadd.f32 %v2577_v16, %v1416_v17  ;;  %v835_v11 = vadd.f32 %v834_v5, %v2545_v45 }
 0x162   : > { %v836_v12 = vpop.f32.mrf.mxu1  ;;  %v1318_v15 = vpop.f32.mrf.mxu0 }
 0x163   : > { %v1945_v19 = vpack.c.bf16 %v1455_v7, %v1455_v7  ;;  %v1417_v20 = vadd.f32 %v1316_v37, %v835_v11 }
 0x164   : > { %v839_v21 = vpop.f32.mrf.mxu1  ;;  %v1321_v41 = vpop.f32.mrf.mxu0 }
 0x165   : > { %1616 = vst.msk [vmem:[%s2585_s21 + $0x20] sm:$0xf] %vm1607_vm1, %v1945_v19  ;;  %v1456_v23 = vadd.f32 %v2577_v16, %v1417_v20  ;;  %v840_v24 = vadd.f32 %v839_v21, %v2549_v49 }
 0x166   : > { %v841_v27 = vpop.f32.mrf.mxu1  ;;  %v1323_v28 = vpop.f32.mrf.mxu0 }
 0x167   : > { %v1946_v31 = vpack.c.bf16 %v1456_v23, %v1456_v23  ;;  %v1418_v9 = vadd.f32 %v1321_v41, %v840_v24 }
 0x168   : > { %v842_v32 = vpop.f32.mrf.mxu1  ;;  %v1324_v45 = vpop.f32.mrf.mxu0 }
 0x169   : > { %1617 = vst.msk [vmem:[%s2585_s21 + $0x24] sm:$0xf] %vm1607_vm1, %v1946_v31  ;;  %v1457_v25 = vadd.f32 %v2577_v16, %v1418_v9  ;;  %v843_v35 = vadd.f32 %v842_v32, %v2553_v53 }
 0x16a   : > { %v844_v36 = vpop.f32.mrf.mxu1  ;;  %v1326_v39 = vpop.f32.mrf.mxu0 }
 0x16b   : > { %v1947_v40 = vpack.c.bf16 %v1457_v25, %v1457_v25  ;;  %v1419_v43 = vadd.f32 %v1324_v45, %v843_v35 }
 0x16c   : > { %v847_v13 = vpop.f32.mrf.mxu1  ;;  %v1329_v49 = vpop.f32.mrf.mxu0 }
 0x16d   : > { %1618 = vst.msk [vmem:[%s2585_s21 + $0x28] sm:$0xf] %vm1607_vm1, %v1947_v40  ;;  %v1458_v44 = vadd.f32 %v2577_v16, %v1419_v43  ;;  %v848_v29 = vadd.f32 %v847_v13, %v2557_v57 }
 0x16e   : > { %v849_v47 = vpop.f32.mrf.mxu1  ;;  %v1331_v48 = vpop.f32.mrf.mxu0 }
 0x16f   : > { %v1948_v51 = vpack.c.bf16 %v1458_v44, %v1458_v44  ;;  %v1420_v52 = vadd.f32 %v1329_v49, %v848_v29 }
 0x170   : > { %v850_v55 = vpop.f32.mrf.mxu1  ;;  %v1332_v53 = vpop.f32.mrf.mxu0 }
 0x171   : > { %1619 = vst.msk [vmem:[%s2585_s21 + $0x2c] sm:$0xf] %vm1607_vm1, %v1948_v51  ;;  %v1459_v56 = vadd.f32 %v2577_v16, %v1420_v52  ;;  %v851_v59 = vadd.f32 %v850_v55, %v2561_v61 }
 0x172   : > { %v852_v33 = vpop.f32.mrf.mxu1  ;;  %v1334_v60 = vpop.f32.mrf.mxu0 }
 0x173   : > { %v1949_v63 = vpack.c.bf16 %v1459_v56, %v1459_v56  ;;  %v1421_v0 = vadd.f32 %v1332_v53, %v851_v59 }
 0x174   : > { %v855_v4 = vpop.f32.mrf.mxu1  ;;  %v1337_v57 = vpop.f32.mrf.mxu0 }
 0x175   : > { %1620 = vst.msk [vmem:[%s2585_s21 + $0x30] sm:$0xf] %vm1607_vm1, %v1949_v63  ;;  %v1460_v6 = vadd.f32 %v2577_v16, %v1421_v0  ;;  %v856_v17 = vadd.f32 %v855_v4, %v2565_v2 }
 0x176   : > { %v857_v5 = vpop.f32.mrf.mxu1  ;;  %v1339_v37 = vpop.f32.mrf.mxu0 }
 0x177   : > { %v1950_v7 = vpack.c.bf16 %v1460_v6, %v1460_v6  ;;  %v1422_v11 = vadd.f32 %v1337_v57, %v856_v17 }
 0x178   : > { %v858_v12 = vpop.f32.mrf.mxu1  ;;  %v1340_v61 = vpop.f32.mrf.mxu0 }
 0x179   : > { %1621 = vst.msk [vmem:[%s2585_s21 + $0x34] sm:$0xf] %vm1607_vm1, %v1950_v7  ;;  %v1461_v15 = vadd.f32 %v2577_v16, %v1422_v11  ;;  %v859_v19 = vadd.f32 %v858_v12, %v2569_v1 }
 0x17a   : > { %v860_v20 = vpop.f32.mrf.mxu1  ;;  %v1342_v21 = vpop.f32.mrf.mxu0 }
 0x17b   : > { %v1951_v41 = vpack.c.bf16 %v1461_v15, %v1461_v15  ;;  %v1423_v23 = vadd.f32 %v1340_v61, %v859_v19 }
 0x17c   : > { %v863_v24 = vpop.f32.mrf.mxu1  ;;  %v1345_v2 = vpop.f32.mrf.mxu0 }
 0x17d   : > { %1622 = vst.msk [vmem:[%s2585_s21 + $0x38] sm:$0xf] %vm1607_vm1, %v1951_v41  ;;  %v1462_v27 = vadd.f32 %v2577_v16, %v1423_v23  ;;  %v864_v28 = vadd.f32 %v863_v24, %v2511_v10 }
 0x17e   : > { %v865_v31 = vpop.f32.mrf.mxu1  ;;  %v1347_v9 = vpop.f32.mrf.mxu0 }
 0x17f   : > { %v1952_v32 = vpack.c.bf16 %v1462_v27, %v1462_v27  ;;  %v1424_v45 = vadd.f32 %v1345_v2, %v864_v28 }
 0x180   : > { %v866_v25 = vpop.f32.mrf.mxu1  ;;  %v1348_v1 = vpop.f32.mrf.mxu0 }
 0x181   : > { %1623 = vst.msk [vmem:[%s2585_s21 + $0x3c] sm:$0xf] %vm1607_vm1, %v1952_v32  ;;  %v1463_v35 = vadd.f32 %v2577_v16, %v1424_v45  ;;  %v867_v36 = vadd.f32 %v866_v25, %v2515_v14 }
 0x182   : > { %v868_v39 = vpop.f32.mrf.mxu1  ;;  %v1350_v40 = vpop.f32.mrf.mxu0 }
 0x183   : > { %v1953_v43 = vpack.c.bf16 %v1463_v35, %v1463_v35  ;;  %v1425_v13 = vadd.f32 %v1348_v1, %v867_v36 }
 0x184   : > { %v871_v49 = vpop.f32.mrf.mxu1  ;;  %v1353_v10 = vpop.f32.mrf.mxu0 }
 0x185   : > { %1624 = vst.msk [vmem:[%s2585_s21 + $0x40] sm:$0xf] %vm1607_vm1, %v1953_v43  ;;  %v1464_v44 = vadd.f32 %v2577_v16, %v1425_v13  ;;  %v872_v29 = vadd.f32 %v871_v49, %v2519_v18 }
 0x186   : > { %v873_v47 = vpop.f32.mrf.mxu1  ;;  %v1355_v48 = vpop.f32.mrf.mxu0 }
 0x187   : > { %v1954_v51 = vpack.c.bf16 %v1464_v44, %v1464_v44  ;;  %v1426_v52 = vadd.f32 %v1353_v10, %v872_v29 }
 0x188   : > { %v874_v55 = vpop.f32.mrf.mxu1  ;;  %v1356_v14 = vpop.f32.mrf.mxu0 }
 0x189   : > { %1625 = vst.msk [vmem:[%s2585_s21 + $0x44] sm:$0xf] %vm1607_vm1, %v1954_v51  ;;  %v1465_v53 = vadd.f32 %v2577_v16, %v1426_v52  ;;  %v875_v56 = vadd.f32 %v874_v55, %v2523_v22 }
 0x18a   : > { %v876_v59 = vpop.f32.mrf.mxu1  ;;  %v1358_v33 = vpop.f32.mrf.mxu0 }
 0x18b   : > { %v1955_v60 = vpack.c.bf16 %v1465_v53, %v1465_v53  ;;  %v1427_v63 = vadd.f32 %v1356_v14, %v875_v56 }
 0x18c   : > { %v879_v0 = vpop.f32.mrf.mxu1  ;;  %v1361_v18 = vpop.f32.mrf.mxu0 }
 0x18d   : > { %1626 = vst.msk [vmem:[%s2585_s21 + $0x48] sm:$0xf] %vm1607_vm1, %v1955_v60  ;;  %v1466_v4 = vadd.f32 %v2577_v16, %v1427_v63  ;;  %v880_v57 = vadd.f32 %v879_v0, %v2527_v26 }
 0x18e   : > { %v881_v6 = vpop.f32.mrf.mxu1  ;;  %v1363_v17 = vpop.f32.mrf.mxu0 }
 0x18f   : > { %v1956_v5 = vpack.c.bf16 %v1466_v4, %v1466_v4  ;;  %v1428_v37 = vadd.f32 %v1361_v18, %v880_v57 }
 0x190   : > { %v882_v7 = vpop.f32.mrf.mxu1  ;;  %v1364_v22 = vpop.f32.mrf.mxu0 }
 0x191   : > { %1627 = vst.msk [vmem:[%s2585_s21 + $0x4c] sm:$0xf] %vm1607_vm1, %v1956_v5  ;;  %v1467_v11 = vadd.f32 %v2577_v16, %v1428_v37  ;;  %v883_v12 = vadd.f32 %v882_v7, %v2531_v30 }
 0x192   : > { %v884_v61 = vpop.f32.mrf.mxu1  ;;  %v1366_v15 = vpop.f32.mrf.mxu0 }
 0x193   : > { %v1957_v19 = vpack.c.bf16 %v1467_v11, %v1467_v11  ;;  %v1429_v20 = vadd.f32 %v1364_v22, %v883_v12 }
 0x194   : > { %v887_v21 = vpop.f32.mrf.mxu1  ;;  %v1369_v26 = vpop.f32.mrf.mxu0 }
 0x195   : > { %1628 = vst.msk [vmem:[%s2585_s21 + $0x50] sm:$0xf] %vm1607_vm1, %v1957_v19  ;;  %v1468_v41 = vadd.f32 %v2577_v16, %v1429_v20  ;;  %v888_v23 = vadd.f32 %v887_v21, %v2535_v34 }
 0x196   : > { %v889_v24 = vpop.f32.mrf.mxu1  ;;  %v1371_v2 = vpop.f32.mrf.mxu0 }
 0x197   : > { %v1958_v27 = vpack.c.bf16 %v1468_v41, %v1468_v41  ;;  %v1430_v28 = vadd.f32 %v1369_v26, %v888_v23 }
 0x198   : > { %v890_v31 = vpop.f32.mrf.mxu1  ;;  %v1372_v30 = vpop.f32.mrf.mxu0 }
 0x199   : > { %1629 = vst.msk [vmem:[%s2585_s21 + $0x54] sm:$0xf] %vm1607_vm1, %v1958_v27  ;;  %v1469_v9 = vadd.f32 %v2577_v16, %v1430_v28  ;;  %v891_v32 = vadd.f32 %v890_v31, %v2539_v38 }
 0x19a   : > { %v892_v45 = vpop.f32.mrf.mxu1  ;;  %v1374_v25 = vpop.f32.mrf.mxu0 }
 0x19b   : > { %v1959_v1 = vpack.c.bf16 %v1469_v9, %v1469_v9  ;;  %v1431_v35 = vadd.f32 %v1372_v30, %v891_v32 }
 0x19c   : > { %v895_v36 = vpop.f32.mrf.mxu1  ;;  %v1377_v34 = vpop.f32.mrf.mxu0 }
 0x19d   : > { %1630 = vst.msk [vmem:[%s2585_s21 + $0x58] sm:$0xf] %vm1607_vm1, %v1959_v1  ;;  %v1470_v39 = vadd.f32 %v2577_v16, %v1431_v35  ;;  %v896_v40 = vadd.f32 %v895_v36, %v2543_v42 }
 0x19e   : > { %v897_v43 = vpop.f32.mrf.mxu1  ;;  %v1379_v13 = vpop.f32.mrf.mxu0 }
 0x19f   : > { %v1960_v49 = vpack.c.bf16 %v1470_v39, %v1470_v39  ;;  %v1432_v10 = vadd.f32 %v1377_v34, %v896_v40 }
 0x1a0   : > { %v898_v44 = vpop.f32.mrf.mxu1  ;;  %v1380_v38 = vpop.f32.mrf.mxu0 }
 0x1a1   : > { %1631 = vst.msk [vmem:[%s2585_s21 + $0x5c] sm:$0xf] %vm1607_vm1, %v1960_v49  ;;  %v1471_v29 = vadd.f32 %v2577_v16, %v1432_v10  ;;  %v899_v47 = vadd.f32 %v898_v44, %v2547_v46 }
 0x1a2   : > { %v900_v48 = vpop.f32.mrf.mxu1  ;;  %v1382_v51 = vpop.f32.mrf.mxu0 }
 0x1a3   : > { %v1961_v52 = vpack.c.bf16 %v1471_v29, %v1471_v29  ;;  %v1433_v55 = vadd.f32 %v1380_v38, %v899_v47 }
 0x1a4   : > { %v903_v14 = vpop.f32.mrf.mxu1  ;;  %v1385_v42 = vpop.f32.mrf.mxu0 }
 0x1a5   : > { %1632 = vst.msk [vmem:[%s2585_s21 + $0x60] sm:$0xf] %vm1607_vm1, %v1961_v52  ;;  %v1472_v53 = vadd.f32 %v2577_v16, %v1433_v55  ;;  %v904_v56 = vadd.f32 %v903_v14, %v2551_v50 }
 0x1a6   : > { %v905_v59 = vpop.f32.mrf.mxu1  ;;  %v1387_v33 = vpop.f32.mrf.mxu0 }
 0x1a7   : > { %v1962_v60 = vpack.c.bf16 %v1472_v53, %v1472_v53  ;;  %v1434_v63 = vadd.f32 %v1385_v42, %v904_v56 }
 0x1a8   : > { %v906_v0 = vpop.f32.mrf.mxu1  ;;  %v1388_v46 = vpop.f32.mrf.mxu0 }
 0x1a9   : > { %1633 = vst.msk [vmem:[%s2585_s21 + $0x64] sm:$0xf] %vm1607_vm1, %v1962_v60  ;;  %v1473_v18 = vadd.f32 %v2577_v16, %v1434_v63  ;;  %v907_v4 = vadd.f32 %v906_v0, %v2555_v54 }
 0x1aa   : > { %v908_v57 = vpop.f32.mrf.mxu1  ;;  %v1390_v6 = vpop.f32.mrf.mxu0 }
 0x1ab   : > { %v1963_v17 = vpack.c.bf16 %v1473_v18, %v1473_v18  ;;  %v1435_v5 = vadd.f32 %v1388_v46, %v907_v4 }
 0x1ac   : > { %v911_v37 = vpop.f32.mrf.mxu1  ;;  %v1393_v50 = vpop.f32.mrf.mxu0 }
 0x1ad   : > { %1634 = vst.msk [vmem:[%s2585_s21 + $0x68] sm:$0xf] %vm1607_vm1, %v1963_v17  ;;  %v1474_v7 = vadd.f32 %v2577_v16, %v1435_v5  ;;  %v912_v22 = vadd.f32 %v911_v37, %v2559_v58 }
 0x1ae   : > { %v913_v11 = vpop.f32.mrf.mxu1  ;;  %v1395_v12 = vpop.f32.mrf.mxu0 }
 0x1af   : > { %v1964_v61 = vpack.c.bf16 %v1474_v7, %v1474_v7  ;;  %v1436_v15 = vadd.f32 %v1393_v50, %v912_v22 }
 0x1b0   : > { %v914_v19 = vpop.f32.mrf.mxu1  ;;  %v1396_v54 = vpop.f32.mrf.mxu0 }
 0x1b1   : > { %1635 = vst.msk [vmem:[%s2585_s21 + $0x6c] sm:$0xf] %vm1607_vm1, %v1964_v61  ;;  %v1475_v20 = vadd.f32 %v2577_v16, %v1436_v15  ;;  %v915_v21 = vadd.f32 %v914_v19, %v2563_v62 }
 0x1b2   : > { %v916_v26 = vpop.f32.mrf.mxu1  ;;  %v1398_v41 = vpop.f32.mrf.mxu0 }
 0x1b3   : > { %v1965_v23 = vpack.c.bf16 %v1475_v20, %v1475_v20  ;;  %v1437_v24 = vadd.f32 %v1396_v54, %v915_v21 }
 0x1b4   : > { %v919_v2 = vpop.f32.mrf.mxu1  ;;  %v1401_v58 = vpop.f32.mrf.mxu0 }
 0x1b5   : > { %1636 = vst.msk [vmem:[%s2585_s21 + $0x70] sm:$0xf] %vm1607_vm1, %v1965_v23  ;;  %v1476_v27 = vadd.f32 %v2577_v16, %v1437_v24  ;;  %v920_v28 = vadd.f32 %v919_v2, %v2567_v3 }
 0x1b6   : > { %v921_v31 = vpop.f32.mrf.mxu1  ;;  %v1403_v30 = vpop.f32.mrf.mxu0 }
 0x1b7   : > { %v1966_v9 = vpack.c.bf16 %v1476_v27, %v1476_v27  ;;  %v1438_v32 = vadd.f32 %v1401_v58, %v920_v28 }
 0x1b8   : > { %v922_v62 = vpop.f32.mrf.mxu1  ;;  %v1404_v45 = vpop.f32.mrf.mxu0 }
 0x1b9   : > { %1637 = vst.msk [vmem:[%s2585_s21 + $0x74] sm:$0xf] %vm1607_vm1, %v1966_v9  ;;  %v1477_v25 = vadd.f32 %v2577_v16, %v1438_v32  ;;  %v923_v1 = vadd.f32 %v922_v62, %v2571_v8 }
 0x1ba   : > { %v924_v35 = vpop.f32.mrf.mxu1  ;;  %v1406_v36 = vpop.f32.mrf.mxu0 }
 0x1bb   : > { %v1967_v34 = vpack.c.bf16 %v1477_v25, %v1477_v25  ;;  %v1439_v39 = vadd.f32 %v1404_v45, %v923_v1 }
 0x1bd   : > { %1638 = vst.msk [vmem:[%s2585_s21 + $0x78] sm:$0xf] %vm1607_vm1, %v1967_v34  ;;  %v1478_v3 = vadd.f32 %v2577_v16, %v1439_v39 }
 0x1bf   : > { %v1968_v40 = vpack.c.bf16 %v1478_v3, %v1478_v3 }
 0x1c1   : > { %1639 = vst.msk [vmem:[%s2585_s21 + $0x7c] sm:$0xf] %vm1607_vm1, %v1968_v40 }
 0x1c2 PF: > { %s13_s12 = sadd.s32 1, %s2099_s12  }
 0x1c3   : > { %p10_p4 = scmp.ge.s32.totalorder %s13_s12, 4  }
 0x1c5   :  { %12 = sbr.rel (!%p10_p4) target bundleno = 1 (0x1), region = 64 }

// kernel: autoencoder_kl_forward.47
= control target key start
LH: loop header
LB: loop body
LE: loop exit
PB: predicated region body
PF: predicated region fallthrough
CT: control target
= control target key end

     0   :  { %s1555_s21 = smov 0   ;;  %s2199_s0 = inlined_call_operand.vmem [shape: bf16[2,256,64], index: 0, kind: input, shape index: {}]   ;;  %s2200_s1 = inlined_call_operand.vmem [shape: f32[64,64], index: 1, kind: input, shape index: {}]   ;;  %s2201_s2 = inlined_call_operand.vmem [shape: f32[1,64], index: 2, kind: input, shape index: {}]   ;;  %s2202_s3 = inlined_call_operand.vmem [shape: f32[1,64], index: 3, kind: input, shape index: {}]   ;;  %s2203_s4 = inlined_call_operand.vmem [shape: bf16[64,192], index: 4, kind: input, shape index: {}]   ;;  %s2204_s5 = inlined_call_operand.vmem [shape: f32[1,192], index: 5, kind: input, shape index: {}]   ;;  %s2205_s6 = inlined_call_operand.vmem [shape: bf16[2,256,192], index: 6, kind: output, shape index: {}]  }
   0x1 LB: > { %s1266_s22 = sadd.s32 4294967295, %s1515_s21   ;;  %p1270_p0 = scmp.ge.s32.totalorder %s1515_s21, 1  ;;  %s1515_s21 = sphi %s1555_s21, %s16_s21  }
   0x2   : > { %p212_p1 = scmp.lt.s32.totalorder %s1515_s21, 3 }
   0x4   : > { %p213_p2 = pnand %p1270_p0, %p212_p1 }
   0x5   : > { %p242_p3 = scmp.lt.s32.totalorder (!%p213_p2), %s1266_s22, 1 }
   0x6   : > { %216 = sbr.rel (%p213_p2) target bundleno = 600 (0x258), region = 44 }
   0xb   : > { %v497_v0 = vld [vmem:[%s2200_s1 + $0x38] sm:$0xff]  ;;  %v1517_v1 = vmov 0.0   ;;  %v496_v2 = vld [vmem:[%s2200_s1 + $0x30] sm:$0xff]  ;;  %vm1518_vm0 = vmmov 0   ;;  %v495_v3 = vld [vmem:[%s2200_s1 + $0x28] sm:$0xff]  ;;  %s2209_s22 = smov (!%p242_p3, %s1266_s22), 1 }
   0xc   : > { %1457 = vmatprep.subr.mxu0 %v1517_v1  ;;  %1473 = vmatprep.mubr.msk.f32.mxu0 %vm1518_vm0, %v1517_v1  ;;  %s1335_s29 = sshll.u32 %s2209_s22, 7  ;;  %v494_v4 = vld [vmem:[%s2200_s1 + $0x20] sm:$0xff]  ;;  %v493_v5 = vld [vmem:[%s2200_s1 + $0x18] sm:$0xff]  ;;  %v492_v6 = vld [vmem:[%s2200_s1 + $0x10] sm:$0xff]  ;;  %vm317_vm1 = vcmask 523264   ;;  %vm488_vm2 = vcmask 1040384  }
   0xd   : > { %1458 = vmatpush3.msra.mxu0 %v497_v0  ;;  %s1584_s12 = scalar_lea.vmem %s2199_s0, %s1335_s29  ;;  %v491_v9 = vld [vmem:[%s2200_s1 + $0x8] sm:$0xff]  ;;  %v490_v10 = vld [vmem:[%s2200_s1] sm:$0xff]  ;;  %s1336_s19 = sshll.u32 %s2209_s22, 8  ;;  %vm1176_vm3 = vcmask 1043456   ;;  %vm1177_vm4 = vcmask 523268  }
   0xe   : > { %1459 = vmatprep.subr.mxu0 %v1517_v1  ;;  %v1370_v7 = vld [vmem:[%s1584_s12] sm:$0xff]   ;;  %v1433_v8 = vld [vmem:[%s1584_s12 + $0x8] sm:$0xff]   ;;  %v1434_v14 = vld [vmem:[%s1584_s12 + $0x10] sm:$0xff]   ;;  %s2034_s24 = scalar_lea.vmem %s2205_s6, %s1336_s19 }
   0xf   : > { %1460 = vmatpush3.msra.mxu0 %v496_v2  ;;  %v1597_v11 = vunpack.c.l.bf16 %v1370_v7  ;;  %v1599_v12 = vunpack.c.h.bf16 %v1370_v7  ;;  %v1601_v13 = vunpack.c.l.bf16 %v1433_v8  ;;  %v1604_v15 = vunpack.c.h.bf16 %v1433_v8  ;;  %v1435_v22 = vld [vmem:[%s1584_s12 + $0x18] sm:$0xff]   ;;  %v1436_v29 = vld [vmem:[%s1584_s12 + $0x20] sm:$0xff]   ;;  %v1437_v35 = vld [vmem:[%s1584_s12 + $0x28] sm:$0xff]  }
  0x10   : > { %1461 = vmatprep.subr.mxu0 %v1517_v1  ;;  %v1612_v20 = vunpack.c.l.bf16 %v1434_v14  ;;  %v1617_v24 = vunpack.c.h.bf16 %v1434_v14  ;;  %v1621_v27 = vunpack.c.l.bf16 %v1435_v22  ;;  %v1626_v31 = vunpack.c.h.bf16 %v1435_v22  ;;  %v1438_v42 = vld [vmem:[%s1584_s12 + $0x30] sm:$0xff]   ;;  %v1439_v58 = vld [vmem:[%s1584_s12 + $0x38] sm:$0xff]   ;;  %v1440_v7 = vld [vmem:[%s1584_s12 + $0x40] sm:$0xff]  }
  0x11   : > { %1462 = vmatpush3.msra.mxu0 %v495_v3  ;;  %v318_v16 = vsel %vm317_vm1, %v1597_v11, 0.0  ;;  %v319_v17 = vsel %vm317_vm1, %v1599_v12, 0.0  ;;  %v321_v18 = vsel %vm317_vm1, %v1601_v13, 0.0  ;;  %v323_v21 = vsel %vm317_vm1, %v1604_v15, 0.0  ;;  %vm2036_vm5 = vmor %vm1177_vm4, %vm1176_vm3 }
  0x12   : > { %1463 = vmatprep.subr.mxu0 %v1517_v1  ;;  %v320_v19 = vadd.f32 %v319_v17, %v318_v16  ;;  %v325_v25 = vsel %vm317_vm1, %v1612_v20, 0.0  ;;  %v327_v28 = vsel %vm317_vm1, %v1617_v24, 0.0  ;;  %v329_v32 = vsel %vm317_vm1, %v1621_v27, 0.0 }
  0x13   : > { %1464 = vmatpush3.msra.mxu0 %v494_v4  ;;  %v1630_v34 = vunpack.c.l.bf16 %v1436_v29  ;;  %v331_v36 = vsel %vm317_vm1, %v1626_v31, 0.0  ;;  %v1635_v38 = vunpack.c.h.bf16 %v1436_v29  ;;  %v1639_v40 = vunpack.c.l.bf16 %v1437_v35 }
  0x14   : > { %1465 = vmatprep.subr.mxu0 %v1517_v1  ;;  %v322_v23 = vadd.f32 %v321_v18, %v320_v19  ;;  %v387_v44 = vmul.f32 %v1597_v11, %v1597_v11  ;;  %v388_v45 = vmul.f32 %v1599_v12, %v1599_v12  ;;  %v389_v46 = vmul.f32 %v1601_v13, %v1601_v13 }
  0x15   : > { %1466 = vmatpush3.msra.mxu0 %v493_v5  ;;  %v333_v39 = vsel %vm317_vm1, %v1630_v34, 0.0  ;;  %v335_v43 = vsel %vm317_vm1, %v1635_v38, 0.0  ;;  %v1650_v47 = vunpack.c.h.bf16 %v1437_v35  ;;  %v337_v49 = vsel %vm317_vm1, %v1639_v40, 0.0 }
  0x16   : > { %1467 = vmatprep.subr.mxu0 %v1517_v1  ;;  %v324_v26 = vadd.f32 %v323_v21, %v322_v23  ;;  %v390_v50 = vmul.f32 %v1604_v15, %v1604_v15  ;;  %v1656_v51 = vunpack.c.l.bf16 %v1438_v42  ;;  %v391_v54 = vmul.f32 %v1612_v20, %v1612_v20 }
  0x17   : > { %1468 = vmatpush3.msra.mxu0 %v492_v6  ;;  %v339_v53 = vsel %vm317_vm1, %v1650_v47, 0.0  ;;  %v419_v55 = vsel %vm317_vm1, %v387_v44, 0.0  ;;  %v420_v56 = vsel %vm317_vm1, %v388_v45, 0.0  ;;  %v422_v57 = vsel %vm317_vm1, %v389_v46, 0.0  ;;  %v1442_v44 = vld [vmem:[%s1584_s12 + $0x50] sm:$0xff]  }
  0x18   : > { %1469 = vmatprep.subr.mxu0 %v1517_v1  ;;  %v326_v30 = vadd.f32 %v325_v25, %v324_v26  ;;  %v421_v60 = vadd.f32 %v420_v56, %v419_v55  ;;  %v1666_v61 = vunpack.c.h.bf16 %v1438_v42  ;;  %v341_v62 = vsel %vm317_vm1, %v1656_v51, 0.0  ;;  %v1441_v26 = vld [vmem:[%s1584_s12 + $0x48] sm:$0xff]  }
  0x19   : > { %1470 = vmatpush3.msra.mxu0 %v491_v9  ;;  %v392_v63 = vmul.f32 %v1617_v24, %v1617_v24  ;;  %v424_v0 = vsel %vm317_vm1, %v390_v50, 0.0  ;;  %v1673_v3 = vunpack.c.l.bf16 %v1439_v58  ;;  %v393_v5 = vmul.f32 %v1621_v27, %v1621_v27 }
  0x1a   : > { %1471 = vmatprep.subr.mxu0 %v1517_v1  ;;  %v328_v33 = vadd.f32 %v327_v28, %v326_v30  ;;  %v423_v2 = vadd.f32 %v422_v57, %v421_v60  ;;  %v343_v4 = vsel %vm317_vm1, %v1666_v61, 0.0  ;;  %v426_v6 = vsel %vm317_vm1, %v391_v54, 0.0 }
  0x1b   : > { %1472 = vmatpush3.msra.mxu0 %v490_v10  ;;  %v1681_v10 = vunpack.c.h.bf16 %v1439_v58  ;;  %v345_v14 = vsel %vm317_vm1, %v1673_v3, 0.0  ;;  %v394_v16 = vmul.f32 %v1626_v31, %v1626_v31  ;;  %v428_v17 = vsel %vm317_vm1, %v392_v63, 0.0 }
  0x1c   : > { %v330_v37 = vadd.f32 %v329_v32, %v328_v33  ;;  %v425_v9 = vadd.f32 %v424_v0, %v423_v2  ;;  %v1688_v21 = vunpack.c.l.bf16 %v1440_v7  ;;  %v395_v23 = vmul.f32 %v1630_v34, %v1630_v34 }
  0x1d   : > { %v347_v22 = vsel %vm317_vm1, %v1681_v10, 0.0  ;;  %v430_v25 = vsel %vm317_vm1, %v393_v5, 0.0  ;;  %v1696_v30 = vunpack.c.h.bf16 %v1440_v7  ;;  %v396_v33 = vmul.f32 %v1635_v38, %v1635_v38 }
  0x1e   : > { %v332_v41 = vadd.f32 %v331_v36, %v330_v37  ;;  %v427_v19 = vadd.f32 %v426_v6, %v425_v9  ;;  %v349_v32 = vsel %vm317_vm1, %v1688_v21, 0.0  ;;  %v432_v35 = vsel %vm317_vm1, %v394_v16, 0.0 }
  0x1f   : > { %v397_v42 = vmul.f32 %v1639_v40, %v1639_v40  ;;  %v398_v50 = vmul.f32 %v1650_v47, %v1650_v47  ;;  %v1718_v55 = vunpack.c.l.bf16 %v1442_v44  ;;  %v399_v57 = vmul.f32 %v1656_v51, %v1656_v51 }
  0x20   : > { %v334_v48 = vadd.f32 %v333_v39, %v332_v41  ;;  %v429_v29 = vadd.f32 %v428_v17, %v427_v19  ;;  %v1703_v39 = vunpack.c.l.bf16 %v1441_v26  ;;  %v351_v41 = vsel %vm317_vm1, %v1696_v30, 0.0 }
  0x21   : > { %v438_v58 = vsel %vm317_vm1, %v397_v42, 0.0  ;;  %v1726_v63 = vunpack.c.h.bf16 %v1442_v44  ;;  %v357_v0 = vsel %vm317_vm1, %v1718_v55, 0.0  ;;  %v440_v2 = vsel %vm317_vm1, %v398_v50, 0.0 }
  0x22   : > { %v336_v52 = vadd.f32 %v335_v43, %v334_v48  ;;  %v431_v37 = vadd.f32 %v430_v25, %v429_v29  ;;  %v434_v43 = vsel %vm317_vm1, %v395_v23, 0.0  ;;  %v1711_v48 = vunpack.c.h.bf16 %v1441_v26 }
  0x23   : > { %v359_v7 = vsel %vm317_vm1, %v1726_v63, 0.0  ;;  %v442_v9 = vsel %vm317_vm1, %v399_v57, 0.0 }
  0x24   : > { %v338_v59 = vadd.f32 %v337_v49, %v336_v52  ;;  %v433_v46 = vadd.f32 %v432_v35, %v431_v37  ;;  %v353_v49 = vsel %vm317_vm1, %v1703_v39, 0.0  ;;  %v436_v52 = vsel %vm317_vm1, %v396_v33, 0.0  ;;  %v1445_v35 = vld [vmem:[%s1584_s12 + $0x68] sm:$0xff]  }
  0x25   : > { %v355_v56 = vsel %vm317_vm1, %v1711_v48, 0.0 }
  0x26   : > { %v340_v1 = vadd.f32 %v339_v53, %v338_v59  ;;  %v435_v54 = vadd.f32 %v434_v43, %v433_v46  ;;  %v1443_v59 = vld [vmem:[%s1584_s12 + $0x58] sm:$0xff]   ;;  %v404_v43 = vmul.f32 %v1696_v30, %v1696_v30 }
  0x27   : > { %v1733_v6 = vunpack.c.l.bf16 %v1443_v59 }
  0x28   : > { %v342_v8 = vadd.f32 %v341_v62, %v340_v1  ;;  %v437_v62 = vadd.f32 %v436_v52, %v435_v54  ;;  %v400_v1 = vmul.f32 %v1666_v61, %v1666_v61  ;;  %v405_v52 = vmul.f32 %v1703_v39, %v1703_v39  ;;  %v1446_v54 = vld [vmem:[%s1584_s12 + $0x70] sm:$0xff]  }
  0x29   : > { %v361_v19 = vsel %vm317_vm1, %v1733_v6, 0.0 }
  0x2a   : > { %v344_v18 = vadd.f32 %v343_v4, %v342_v8  ;;  %v439_v5 = vadd.f32 %v438_v58, %v437_v62  ;;  %v401_v8 = vmul.f32 %v1673_v3, %v1673_v3  ;;  %v444_v23 = vsel %vm317_vm1, %v400_v1, 0.0 }
  0x2b   : > { %v1771_v58 = vunpack.c.h.bf16 %v1445_v35  ;;  %v452_v62 = vsel %vm317_vm1, %v404_v43, 0.0 }
  0x2c   : > { %v346_v28 = vadd.f32 %v345_v14, %v344_v18  ;;  %v1444_v14 = vld [vmem:[%s1584_s12 + $0x60] sm:$0xff]   ;;  %v441_v17 = vadd.f32 %v440_v2, %v439_v5  ;;  %v1741_v18 = vunpack.c.h.bf16 %v1443_v59  ;;  %v446_v33 = vsel %vm317_vm1, %v401_v8, 0.0 }
  0x2d   : > { %v1778_v2 = vunpack.c.l.bf16 %v1446_v54  ;;  %v407_v5 = vmul.f32 %v1718_v55, %v1718_v55 }
  0x2e   : > { %v348_v36 = vadd.f32 %v347_v22, %v346_v28  ;;  %v402_v22 = vmul.f32 %v1681_v10, %v1681_v10  ;;  %v443_v26 = vadd.f32 %v442_v9, %v441_v17  ;;  %v1748_v28 = vunpack.c.l.bf16 %v1444_v14 }
  0x2f   : > { %v363_v29 = vsel %vm317_vm1, %v1741_v18, 0.0  ;;  %v408_v17 = vmul.f32 %v1726_v63, %v1726_v63 }
  0x30   : > { %v350_v45 = vadd.f32 %v349_v32, %v348_v36  ;;  %v403_v32 = vmul.f32 %v1688_v21, %v1688_v21  ;;  %v445_v37 = vadd.f32 %v444_v23, %v443_v26  ;;  %v365_v42 = vsel %vm317_vm1, %v1748_v28, 0.0 }
  0x31   : > { %v448_v44 = vsel %vm317_vm1, %v402_v22, 0.0  ;;  %v1447_v22 = vld [vmem:[%s1584_s12 + $0x78] sm:$0xff]  }
  0x32   : > { %v352_v53 = vadd.f32 %v351_v41, %v350_v45  ;;  %v1756_v41 = vunpack.c.h.bf16 %v1444_v14  ;;  %v447_v46 = vadd.f32 %v446_v33, %v445_v37  ;;  %v1785_v14 = vunpack.c.h.bf16 %v1446_v54 }
  0x33   : > { %v410_v37 = vmul.f32 %v1741_v18, %v1741_v18 }
  0x34   : > { %v354_v60 = vadd.f32 %v353_v49, %v352_v53  ;;  %v1763_v49 = vunpack.c.l.bf16 %v1445_v35  ;;  %v367_v50 = vsel %vm317_vm1, %v1756_v41, 0.0  ;;  %v450_v53 = vsel %vm317_vm1, %v403_v32, 0.0 }
  0x35   : > { %v449_v57 = vadd.f32 %v448_v44, %v447_v46  ;;  %v375_v26 = vsel %vm317_vm1, %v1785_v14, 0.0  ;;  %v458_v32 = vsel %vm317_vm1, %v407_v5, 0.0  ;;  %v411_v46 = vmul.f32 %v1748_v28, %v1748_v28 }
  0x36   : > { %v356_v4 = vadd.f32 %v355_v56, %v354_v60  ;;  %v369_v59 = vsel %vm317_vm1, %v1763_v49, 0.0  ;;  %v406_v60 = vmul.f32 %v1711_v48, %v1711_v48  ;;  %v412_v54 = vmul.f32 %v1756_v41, %v1756_v41 }
  0x37   : > { %v451_v1 = vadd.f32 %v450_v53, %v449_v57  ;;  %v1808_v53 = vunpack.c.h.bf16 %v1447_v22 }
  0x38   : > { %v358_v16 = vadd.f32 %v357_v0, %v356_v4  ;;  %v371_v4 = vsel %vm317_vm1, %v1771_v58, 0.0  ;;  %v468_v5 = vsel %vm317_vm1, %v412_v54, 0.0 }
  0x39   : > { %v453_v9 = vadd.f32 %v452_v62, %v451_v1  ;;  %v413_v62 = vmul.f32 %v1763_v49, %v1763_v49 }
  0x3a   : > { %v360_v25 = vadd.f32 %v359_v7, %v358_v16  ;;  %v454_v7 = vsel %vm317_vm1, %v405_v52, 0.0  ;;  %v373_v16 = vsel %vm317_vm1, %v1778_v2, 0.0 }
  0x3c   : > { %v362_v36 = vadd.f32 %v361_v19, %v360_v25  ;;  %v456_v19 = vsel %vm317_vm1, %v406_v60, 0.0  ;;  %v455_v25 = vadd.f32 %v454_v7, %v453_v9  ;;  %v379_v60 = vsel %vm317_vm1, %v1808_v53, 0.0 }
  0x3d   : > { %v415_v9 = vmul.f32 %v1778_v2, %v1778_v2 }
  0x3e   : > { %v364_v45 = vadd.f32 %v363_v29, %v362_v36  ;;  %v409_v29 = vmul.f32 %v1733_v6, %v1733_v6  ;;  %v457_v35 = vadd.f32 %v456_v19, %v455_v25  ;;  %v1798_v36 = vunpack.c.l.bf16 %v1447_v22 }
  0x3f   : > { %v416_v19 = vmul.f32 %v1785_v14, %v1785_v14 }
  0x40   : > { %v366_v56 = vadd.f32 %v365_v42, %v364_v45  ;;  %v460_v42 = vsel %vm317_vm1, %v408_v17, 0.0  ;;  %v459_v44 = vadd.f32 %v458_v32, %v457_v35  ;;  %v377_v45 = vsel %vm317_vm1, %v1798_v36, 0.0 }
  0x41   : > { %v476_v35 = vsel %vm317_vm1, %v416_v19, 0.0  ;;  %v1501_v19 = vld [vmem:[%s2203_s4 + $0x10] ss:$8 sps:$4 sm:$0xff]  }
  0x42   : > { %v368_v0 = vadd.f32 %v367_v50, %v366_v56  ;;  %v462_v50 = vsel %vm317_vm1, %v409_v29, 0.0  ;;  %v461_v52 = vadd.f32 %v460_v42, %v459_v44  ;;  %v464_v56 = vsel %vm317_vm1, %v410_v37, 0.0 }
  0x43   : > { %v474_v29 = vsel %vm317_vm1, %v415_v9, 0.0  ;;  %v1500_v9 = vld [vmem:[%s2203_s4 + $0x24] ss:$8 sps:$4 sm:$0xff]  }
  0x44   : > { %v370_v8 = vadd.f32 %v369_v59, %v368_v0  ;;  %v463_v59 = vadd.f32 %v462_v50, %v461_v52  ;;  %v466_v0 = vsel %vm317_vm1, %v411_v46, 0.0 }
  0x46   : > { %v372_v23 = vadd.f32 %v371_v4, %v370_v8  ;;  %v465_v1 = vadd.f32 %v464_v56, %v463_v59  ;;  %v414_v4 = vmul.f32 %v1771_v58, %v1771_v58 }
  0x48   : > { %v374_v33 = vadd.f32 %v373_v16, %v372_v23  ;;  %v467_v8 = vadd.f32 %v466_v0, %v465_v1  ;;  %v470_v16 = vsel %vm317_vm1, %v413_v62, 0.0  ;;  %v472_v22 = vsel %vm317_vm1, %v414_v4, 0.0 }
  0x4a   : > { %v376_v43 = vadd.f32 %v375_v26, %v374_v33  ;;  %v469_v17 = vadd.f32 %v468_v5, %v467_v8  ;;  %v417_v26 = vmul.f32 %v1798_v36, %v1798_v36  ;;  %v418_v33 = vmul.f32 %v1808_v53, %v1808_v53  ;;  %v1495_v8 = vld [vmem:[%s2203_s4 + $0x30] ss:$8 sps:$4 sm:$0xff]  }
  0x4c   : > { %v378_v57 = vadd.f32 %v377_v45, %v376_v43  ;;  %v471_v25 = vadd.f32 %v470_v16, %v469_v17  ;;  %v478_v43 = vsel %vm317_vm1, %v417_v26, 0.0  ;;  %v480_v45 = vsel %vm317_vm1, %v418_v33, 0.0  ;;  %v1498_v16 = vld [vmem:[%s2203_s4 + $0x20] ss:$8 sps:$4 sm:$0xff]   ;;  %v1503_v17 = vld [vmem:[%s2203_s4 + $0x14] ss:$8 sps:$4 sm:$0xff]  }
  0x4e   : > { %v380_v7 = vadd.f32 %v379_v60, %v378_v57  ;;  %v473_v32 = vadd.f32 %v472_v22, %v471_v25  ;;  %v1504_v22 = vld [vmem:[%s2203_s4] ss:$8 sps:$4 sm:$0xff]   ;;  %v1519_v25 = vmov 0  }
  0x4f   : > { %893 = vmatprep.mubr.bf16.mxu1 %v1519_v25 }
  0x50   : > { %v381_v23 = vrot.slane %v380_v7, 4  ;;  %v475_v42 = vadd.f32 %v474_v29, %v473_v32 }
  0x52   : > { %v382_v37 = vadd.f32 %v381_v23, %v380_v7  ;;  %v477_v44 = vadd.f32 %v476_v35, %v475_v42  ;;  %v1497_v7 = vld [vmem:[%s2203_s4 + $0x34] ss:$8 sps:$4 sm:$0xff]   ;;  %v1506_v23 = vld [vmem:[%s2203_s4 + $0x4] ss:$8 sps:$4 sm:$0xff]  }
  0x53   : > { %799 = vmatprep.subr.bf16.mxu0 %v1497_v7  ;;  %1476 = vmatprep.subr.bf16.mxu1 %v1497_v7 }
  0x54   : > { %v383_v46 = vrot.slane %v382_v37, 2  ;;  %v479_v50 = vadd.f32 %v478_v43, %v477_v44  ;;  %1480 = vmatpush1.bf16.msra.mxu1 %v1495_v8  ;;  %v593_v43 = vlaneseq }
  0x55   : > { %1477 = vmatprep.subr.bf16.mxu1 %v1500_v9 }
  0x56   : > { %v481_v52 = vadd.f32 %v480_v45, %v479_v50  ;;  %v384_v54 = vadd.f32 %v383_v46, %v382_v37  ;;  %v1862_v44 = vshrl.u32 %v593_v43, 7  ;;  %v1276_v45 = vld [vmem:[%s2201_s2] ss:$0 sm:$0xff] }
  0x58   : > { %v482_v56 = vrot.slane %v481_v52, 4  ;;  %v385_v59 = vrot.slane %v384_v54, 1  ;;  %1481 = vmatpush1.bf16.msra.mxu1 %v1498_v16  ;;  %v595_v50 = vsub.s32 1, %v1862_v44 }
  0x59   : > { %1478 = vmatprep.subr.bf16.mxu1 %v1503_v17 }
  0x5a   : > { %v483_v57 = vadd.f32 %v482_v56, %v481_v52  ;;  %v386_v0 = vadd.f32 %v385_v59, %v384_v54  ;;  %v587_v56 = vld [vmem:[%s2202_s3] sm:$0x1] }
  0x5c   : > { %v484_v60 = vrot.slane %v483_v57, 2  ;;  %1482 = vmatpush1.bf16.msra.mxu1 %v1501_v19 }
  0x5d   : > { %1479 = vmatprep.subr.bf16.mxu1 %v1506_v23 }
  0x5e   : > { %v485_v62 = vadd.f32 %v484_v60, %v483_v57  ;;  %v632_v60 = vsub.s32 0, %v1862_v44 }
  0x60   : > { %v486_v1 = vrot.slane %v485_v62, 1  ;;  %1483 = vmatpush1.bf16.msra.mxu1 %v1504_v22 }
  0x62   : > { %v487_v4 = vadd.f32 %v486_v1, %v485_v62 }
  0x64   : > { %v489_v5 = vsel %vm488_vm2, %v386_v0, %v487_v4 }
  0x65   : > { %1474 = vmatmul.mubr.msk.f32.vlgmr.msra.gmra.mxu0 %vm317_vm1, %v489_v5 }
  0x66   : > { %800 = vmatpush1.bf16.msra.mxu0 %v1495_v8  ;;  %823 = vmatprep.mubr.bf16.mxu0 %v1519_v25 }
  0x67   : > { %801 = vmatprep.subr.bf16.mxu0 %v1500_v9 }
  0x6a   : > { %802 = vmatpush1.bf16.msra.mxu0 %v1498_v16 }
  0x6b   : > { %803 = vmatprep.subr.bf16.mxu0 %v1503_v17 }
  0x6e   : > { %804 = vmatpush1.bf16.msra.mxu0 %v1501_v19 }
  0x6f   : > { %805 = vmatprep.subr.bf16.mxu0 %v1506_v23 }
  0x72   : > { %806 = vmatpush1.bf16.msra.mxu0 %v1504_v22 }
 0x125   : > { %v567_v26 = vpop.f32.mrf.mxu0 }
 0x126   : > { %v571_v29 = vmul.f32 0.001953125, %v567_v26 }
 0x127   : > { %v1475_v32 = vpop.f32.mrf.mxu0 }
 0x128   : > { %v572_v33 = vmul.f32 %v571_v29, %v571_v29 }
 0x12a   : > { %v574_v35 = vrot.slane %v572_v33, 7 }
 0x12c   : > { %v576_v37 = vsub.f32 %v571_v29, %v574_v35 }
 0x12e   : > { %v577_v42 = vadd.f32 1e-06, %v576_v37 }
 0x130   : > { %1507 = vrsqrt.f32 %v577_v42 }
 0x13d   : > { %v1508_v46 = vpop.eup %1507 }
 0x13e   : > { %v586_v52 = vmul.f32 %v1508_v46, %v1276_v45 }
 0x140   : > { %v589_v54 = vrot.slane %v586_v52, 1  ;;  %v1873_v57 = vrot.slane %v586_v52, %v595_v50 }
 0x142   : > { %v591_v59 = vmul.f32 %v589_v54, %v571_v29  ;;  %v597_v0 = vmul.f32 %v1597_v11, %v1873_v57  ;;  %v598_v4 = vmul.f32 %v1599_v12, %v1873_v57  ;;  %v611_v5 = vmul.f32 %v1673_v3, %v1873_v57 }
 0x143   : > { %v612_v7 = vmul.f32 %v1681_v10, %v1873_v57  ;;  %v599_v22 = vmul.f32 %v1601_v13, %v1873_v57  ;;  %v600_v12 = vmul.f32 %v1604_v15, %v1873_v57  ;;  %v613_v3 = vmul.f32 %v1688_v21, %v1873_v57 }
 0x144   : > { %v592_v62 = vsub.f32 %v587_v56, %v591_v59  ;;  %v614_v10 = vmul.f32 %v1696_v30, %v1873_v57  ;;  %v601_v21 = vmul.f32 %v1612_v20, %v1873_v57  ;;  %v602_v30 = vmul.f32 %v1617_v24, %v1873_v57 }
 0x145   : > { %v615_v33 = vmul.f32 %v1703_v39, %v1873_v57  ;;  %v616_v35 = vmul.f32 %v1711_v48, %v1873_v57  ;;  %v627_v20 = vmul.f32 %v1798_v36, %v1873_v57  ;;  %v628_v39 = vmul.f32 %v1808_v53, %v1873_v57 }
 0x146   : > { %v1880_v1 = vrot.slane %v592_v62, %v632_v60  ;;  %v603_v54 = vmul.f32 %v1621_v27, %v1873_v57  ;;  %v604_v53 = vmul.f32 %v1626_v31, %v1873_v57  ;;  %v617_v56 = vmul.f32 %v1718_v55, %v1873_v57 }
 0x147   : > { %v618_v59 = vmul.f32 %v1726_v63, %v1873_v57  ;;  %v605_v55 = vmul.f32 %v1630_v34, %v1873_v57  ;;  %v606_v63 = vmul.f32 %v1635_v38, %v1873_v57 }
 0x148   : > { %v635_v8 = vadd.f32 %v1880_v1, %v597_v0  ;;  %v636_v9 = vadd.f32 %v1880_v1, %v598_v4  ;;  %v649_v16 = vadd.f32 %v1880_v1, %v611_v5  ;;  %v650_v11 = vadd.f32 %v1880_v1, %v612_v7 }
 0x149   : > { %v637_v23 = vadd.f32 %v1880_v1, %v599_v22  ;;  %v638_v13 = vadd.f32 %v1880_v1, %v600_v12  ;;  %v651_v26 = vadd.f32 %v1880_v1, %v613_v3  ;;  %v652_v29 = vadd.f32 %v1880_v1, %v614_v10 }
 0x14a   : > { %v667_v17 = vpack.c.bf16 %v636_v9, %v635_v8  ;;  %v674_v19 = vpack.c.bf16 %v650_v11, %v649_v16  ;;  %v639_v37 = vadd.f32 %v1880_v1, %v601_v21  ;;  %v640_v42 = vadd.f32 %v1880_v1, %v602_v30 }
 0x14b   : > { %v668_v32 = vpack.c.bf16 %v638_v13, %v637_v23  ;;  %v675_v15 = vpack.c.bf16 %v652_v29, %v651_v26  ;;  %v653_v43 = vadd.f32 %v1880_v1, %v615_v33  ;;  %v654_v24 = vadd.f32 %v1880_v1, %v616_v35 }
 0x14c   : > { %1285 = vmatmul.mubr.msk.bf16.vlgmr.msra.gmra.mxu0 %vm317_vm1, %v667_v17  ;;  %1292 = vmatmul.mubr.msk.bf16.vlgmr.msra.gmra.mxu1 %vm317_vm1, %v674_v19  ;;  %v1929_v48 = vadd.f32 %v1880_v1, %v627_v20  ;;  %v1932_v45 = vadd.f32 %v1880_v1, %v628_v39  ;;  %v669_v46 = vpack.c.bf16 %v640_v42, %v639_v37 }
 0x14d   : > { %833 = vmatprep.mubr.bf16.mxu0 %v1519_v25  ;;  %903 = vmatprep.mubr.bf16.mxu1 %v1519_v25  ;;  %v676_v52 = vpack.c.bf16 %v654_v24, %v653_v43  ;;  %v641_v62 = vadd.f32 %v1880_v1, %v603_v54  ;;  %v642_v27 = vadd.f32 %v1880_v1, %v604_v53 }
 0x14e   : > { %v682_v36 = vpack.c.bf16 %v1932_v45, %v1929_v48  ;;  %v655_v0 = vadd.f32 %v1880_v1, %v617_v56  ;;  %v656_v4 = vadd.f32 %v1880_v1, %v618_v59  ;;  %v619_v7 = vmul.f32 %v1733_v6, %v1873_v57 }
 0x14f   : > { %v670_v5 = vpack.c.bf16 %v642_v27, %v641_v62  ;;  %v620_v8 = vmul.f32 %v1741_v18, %v1873_v57  ;;  %v643_v9 = vadd.f32 %v1880_v1, %v605_v55  ;;  %v644_v34 = vadd.f32 %v1880_v1, %v606_v63 }
 0x150   : > { %v677_v31 = vpack.c.bf16 %v656_v4, %v655_v0  ;;  %v657_v16 = vadd.f32 %v1880_v1, %v619_v7  ;;  %v607_v6 = vmul.f32 %v1639_v40, %v1873_v57  ;;  %v608_v18 = vmul.f32 %v1650_v47, %v1873_v57 }
 0x151   : > { %v658_v11 = vadd.f32 %v1880_v1, %v620_v8  ;;  %v671_v17 = vpack.c.bf16 %v644_v34, %v643_v9  ;;  %v621_v19 = vmul.f32 %v1748_v28, %v1873_v57  ;;  %v622_v22 = vmul.f32 %v1756_v41, %v1873_v57 }
 0x152   : > { %v645_v12 = vadd.f32 %v1880_v1, %v607_v6  ;;  %v646_v40 = vadd.f32 %v1880_v1, %v608_v18  ;;  %v609_v28 = vmul.f32 %v1656_v51, %v1873_v57  ;;  %v610_v41 = vmul.f32 %v1666_v61, %v1873_v57 }
 0x153   : > { %v678_v38 = vpack.c.bf16 %v658_v11, %v657_v16  ;;  %v659_v3 = vadd.f32 %v1880_v1, %v621_v19  ;;  %v660_v10 = vadd.f32 %v1880_v1, %v622_v22  ;;  %v623_v13 = vmul.f32 %v1763_v49, %v1873_v57 }
 0x154   : > { %1286 = vmatmul.mubr.msk.bf16.gmra.mxu0 %vm317_vm1, %v668_v32  ;;  %1293 = vmatmul.mubr.msk.bf16.gmra.mxu1 %vm317_vm1, %v675_v15  ;;  %v672_v23 = vpack.c.bf16 %v646_v40, %v645_v12  ;;  %v624_v26 = vmul.f32 %v1771_v58, %v1873_v57  ;;  %v647_v29 = vadd.f32 %v1880_v1, %v609_v28 }
 0x155   : > { %843 = vmatprep.mubr.bf16.mxu0 %v1519_v25  ;;  %913 = vmatprep.mubr.bf16.mxu1 %v1519_v25  ;;  %v679_v47 = vpack.c.bf16 %v660_v10, %v659_v3  ;;  %v648_v51 = vadd.f32 %v1880_v1, %v610_v41  ;;  %v661_v32 = vadd.f32 %v1880_v1, %v623_v13 }
 0x156   : > { %v662_v15 = vadd.f32 %v1880_v1, %v624_v26  ;;  %v625_v49 = vmul.f32 %v1778_v2, %v1873_v57  ;;  %v626_v58 = vmul.f32 %v1785_v14, %v1873_v57  ;;  %v691_v2 = vld [vmem:[%s2204_s5] sm:$0x3] }
 0x157   : > { %v673_v21 = vpack.c.bf16 %v648_v51, %v647_v29  ;;  %v2020_v14 = vrot.slane %v691_v2, %v632_v60  ;;  %v2024_v57 = vrot.slane %v691_v2, %v595_v50 }
 0x158   : > { %v680_v61 = vpack.c.bf16 %v662_v15, %v661_v32  ;;  %v663_v30 = vadd.f32 %v1880_v1, %v625_v49  ;;  %v664_v33 = vadd.f32 %v1880_v1, %v626_v58 }
 0x15a   : > { %v681_v35 = vpack.c.bf16 %v664_v33, %v663_v30 }
 0x15c   : > { %1287 = vmatmul.mubr.msk.bf16.gmra.mxu0 %vm317_vm1, %v669_v46  ;;  %1294 = vmatmul.mubr.msk.bf16.gmra.mxu1 %vm317_vm1, %v676_v52 }
 0x15d   : > { %853 = vmatprep.mubr.bf16.mxu0 %v1519_v25  ;;  %923 = vmatprep.mubr.bf16.mxu1 %v1519_v25 }
 0x164   : > { %1288 = vmatmul.mubr.msk.bf16.gmra.mxu0 %vm317_vm1, %v670_v5  ;;  %1295 = vmatmul.mubr.msk.bf16.gmra.mxu1 %vm317_vm1, %v677_v31 }
 0x165   : > { %863 = vmatprep.mubr.bf16.mxu0 %v1519_v25  ;;  %933 = vmatprep.mubr.bf16.mxu1 %v1519_v25 }
 0x16c   : > { %1289 = vmatmul.mubr.msk.bf16.gmra.mxu0 %vm317_vm1, %v671_v17  ;;  %1296 = vmatmul.mubr.msk.bf16.gmra.mxu1 %vm317_vm1, %v678_v38 }
 0x16d   : > { %873 = vmatprep.mubr.bf16.mxu0 %v1519_v25  ;;  %943 = vmatprep.mubr.bf16.mxu1 %v1519_v25 }
 0x174   : > { %1290 = vmatmul.mubr.msk.bf16.gmra.mxu0 %vm317_vm1, %v672_v23  ;;  %1297 = vmatmul.mubr.msk.bf16.gmra.mxu1 %vm317_vm1, %v679_v47 }
 0x175   : > { %883 = vmatprep.mubr.bf16.mxu0 %v1519_v25  ;;  %953 = vmatprep.mubr.bf16.mxu1 %v1519_v25 }
 0x17c   : > { %1291 = vmatmul.mubr.msk.bf16.gmra.mxu0 %vm317_vm1, %v673_v21  ;;  %1298 = vmatmul.mubr.msk.bf16.gmra.mxu1 %vm317_vm1, %v680_v61 }
 0x17d   : > { %963 = vmatprep.mubr.bf16.mxu1 %v1519_v25 }
 0x184   : > { %1299 = vmatmul.mubr.msk.bf16.gmra.mxu1 %vm317_vm1, %v681_v35 }
 0x185   : > { %973 = vmatprep.mubr.bf16.mxu1 %v1519_v25 }
 0x18c   : > { %1300 = vmatmul.mubr.msk.bf16.gmra.mxu1 %vm317_vm1, %v682_v36 }
 0x20c   : > { %v825_v1 = vpop.f32.mrf.mxu0  ;;  %v895_v37 = vpop.f32.mrf.mxu1 }
 0x20d   : > { %v826_v42 = vadd.f32 %v825_v1, %v2020_v14  ;;  %v896_v43 = vadd.f32 %v895_v37, %v2020_v14 }
 0x20e   : > { %v827_v25 = vpop.f32.mrf.mxu0  ;;  %v897_v20 = vpop.f32.mrf.mxu1 }
 0x20f   : > { %v828_v24 = vadd.f32 %v827_v25, %v2024_v57  ;;  %v898_v60 = vadd.f32 %v897_v20, %v2024_v57 }
 0x210   : > { %v829_v50 = vpop.f32.mrf.mxu0  ;;  %v899_v39 = vpop.f32.mrf.mxu1 }
 0x211   : > { %v1337_v48 = vpack.c.bf16 %v828_v24, %v826_v42  ;;  %v1351_v45 = vpack.c.bf16 %v898_v60, %v896_v43  ;;  %v830_v36 = vadd.f32 %v829_v50, %v2020_v14  ;;  %v900_v54 = vadd.f32 %v899_v39, %v2020_v14 }
 0x212   : > { %v831_v46 = vpop.f32.mrf.mxu0  ;;  %v901_v52 = vpop.f32.mrf.mxu1 }
 0x213   : > { %1179 = vst.msk [vmem:[%s2034_s24] sm:$0xff] %vm2036_vm5, %v1337_v48  ;;  %1193 = vst.msk [vmem:[%s2034_s24 + $0x70] sm:$0xff] %vm2036_vm5, %v1351_v45  ;;  %v832_v53 = vadd.f32 %v831_v46, %v2024_v57  ;;  %v902_v56 = vadd.f32 %v901_v52, %v2024_v57 }
 0x214   : > { %v835_v59 = vpop.f32.mrf.mxu0  ;;  %v905_v62 = vpop.f32.mrf.mxu1 }
 0x215   : > { %v1338_v27 = vpack.c.bf16 %v832_v53, %v830_v36  ;;  %v1352_v0 = vpack.c.bf16 %v902_v56, %v900_v54  ;;  %v836_v31 = vadd.f32 %v835_v59, %v2020_v14  ;;  %v906_v55 = vadd.f32 %v905_v62, %v2020_v14 }
 0x216   : > { %v837_v4 = vpop.f32.mrf.mxu0  ;;  %v907_v5 = vpop.f32.mrf.mxu1 }
 0x217   : > { %1180 = vst.msk [vmem:[%s2034_s24 + $0x8] sm:$0xff] %vm2036_vm5, %v1338_v27  ;;  %1194 = vst.msk [vmem:[%s2034_s24 + $0x78] sm:$0xff] %vm2036_vm5, %v1352_v0  ;;  %v838_v63 = vadd.f32 %v837_v4, %v2024_v57  ;;  %v908_v7 = vadd.f32 %v907_v5, %v2024_v57 }
 0x218   : > { %v839_v8 = vpop.f32.mrf.mxu0  ;;  %v909_v9 = vpop.f32.mrf.mxu1 }
 0x219   : > { %v1339_v34 = vpack.c.bf16 %v838_v63, %v836_v31  ;;  %v1353_v16 = vpack.c.bf16 %v908_v7, %v906_v55  ;;  %v840_v38 = vadd.f32 %v839_v8, %v2020_v14  ;;  %v910_v6 = vadd.f32 %v909_v9, %v2020_v14 }
 0x21a   : > { %v841_v11 = vpop.f32.mrf.mxu0  ;;  %v911_v17 = vpop.f32.mrf.mxu1 }
 0x21b   : > { %1181 = vst.msk [vmem:[%s2034_s24 + $0x10] sm:$0xff] %vm2036_vm5, %v1339_v34  ;;  %1195 = vst.msk [vmem:[%s2034_s24 + $0x80] sm:$0xff] %vm2036_vm5, %v1353_v16  ;;  %v842_v18 = vadd.f32 %v841_v11, %v2024_v57  ;;  %v912_v19 = vadd.f32 %v911_v17, %v2024_v57 }
 0x21c   : > { %v845_v22 = vpop.f32.mrf.mxu0  ;;  %v915_v12 = vpop.f32.mrf.mxu1 }
 0x21d   : > { %v1340_v40 = vpack.c.bf16 %v842_v18, %v840_v38  ;;  %v1354_v3 = vpack.c.bf16 %v912_v19, %v910_v6  ;;  %v846_v47 = vadd.f32 %v845_v22, %v2020_v14  ;;  %v916_v28 = vadd.f32 %v915_v12, %v2020_v14 }
 0x21e   : > { %v847_v10 = vpop.f32.mrf.mxu0  ;;  %v917_v23 = vpop.f32.mrf.mxu1 }
 0x21f   : > { %1182 = vst.msk [vmem:[%s2034_s24 + $0x18] sm:$0xff] %vm2036_vm5, %v1340_v40  ;;  %1196 = vst.msk [vmem:[%s2034_s24 + $0x88] sm:$0xff] %vm2036_vm5, %v1354_v3  ;;  %v848_v41 = vadd.f32 %v847_v10, %v2024_v57  ;;  %v918_v13 = vadd.f32 %v917_v23, %v2024_v57 }
 0x220   : > { %v849_v26 = vpop.f32.mrf.mxu0  ;;  %v919_v29 = vpop.f32.mrf.mxu1 }
 0x221   : > { %v1341_v51 = vpack.c.bf16 %v848_v41, %v846_v47  ;;  %v1355_v32 = vpack.c.bf16 %v918_v13, %v916_v28  ;;  %v850_v61 = vadd.f32 %v849_v26, %v2020_v14  ;;  %v920_v49 = vadd.f32 %v919_v29, %v2020_v14 }
 0x222   : > { %v851_v15 = vpop.f32.mrf.mxu0  ;;  %v921_v21 = vpop.f32.mrf.mxu1 }
 0x223   : > { %1183 = vst.msk [vmem:[%s2034_s24 + $0x20] sm:$0xff] %vm2036_vm5, %v1341_v51  ;;  %1197 = vst.msk [vmem:[%s2034_s24 + $0x90] sm:$0xff] %vm2036_vm5, %v1355_v32  ;;  %v852_v58 = vadd.f32 %v851_v15, %v2024_v57  ;;  %v922_v30 = vadd.f32 %v921_v21, %v2024_v57 }
 0x224   : > { %v855_v33 = vpop.f32.mrf.mxu0  ;;  %v925_v35 = vpop.f32.mrf.mxu1 }
 0x225   : > { %v1342_v2 = vpack.c.bf16 %v852_v58, %v850_v61  ;;  %v1356_v1 = vpack.c.bf16 %v922_v30, %v920_v49  ;;  %v856_v20 = vadd.f32 %v855_v33, %v2020_v14  ;;  %v926_v42 = vadd.f32 %v925_v35, %v2020_v14 }
 0x226   : > { %v857_v37 = vpop.f32.mrf.mxu0  ;;  %v927_v25 = vpop.f32.mrf.mxu1 }
 0x227   : > { %1184 = vst.msk [vmem:[%s2034_s24 + $0x28] sm:$0xff] %vm2036_vm5, %v1342_v2  ;;  %1198 = vst.msk [vmem:[%s2034_s24 + $0x98] sm:$0xff] %vm2036_vm5, %v1356_v1  ;;  %v858_v43 = vadd.f32 %v857_v37, %v2024_v57  ;;  %v928_v24 = vadd.f32 %v927_v25, %v2024_v57 }
 0x228   : > { %v859_v60 = vpop.f32.mrf.mxu0  ;;  %v929_v50 = vpop.f32.mrf.mxu1 }
 0x229   : > { %v1343_v39 = vpack.c.bf16 %v858_v43, %v856_v20  ;;  %v1357_v48 = vpack.c.bf16 %v928_v24, %v926_v42  ;;  %v860_v52 = vadd.f32 %v859_v60, %v2020_v14  ;;  %v930_v36 = vadd.f32 %v929_v50, %v2020_v14 }
 0x22a   : > { %v861_v45 = vpop.f32.mrf.mxu0  ;;  %v931_v46 = vpop.f32.mrf.mxu1 }
 0x22b   : > { %1185 = vst.msk [vmem:[%s2034_s24 + $0x30] sm:$0xff] %vm2036_vm5, %v1343_v39  ;;  %1199 = vst.msk [vmem:[%s2034_s24 + $0xa0] sm:$0xff] %vm2036_vm5, %v1357_v48  ;;  %v862_v54 = vadd.f32 %v861_v45, %v2024_v57  ;;  %v932_v53 = vadd.f32 %v931_v46, %v2024_v57 }
 0x22c   : > { %v865_v56 = vpop.f32.mrf.mxu0  ;;  %v935_v59 = vpop.f32.mrf.mxu1 }
 0x22d   : > { %v1344_v62 = vpack.c.bf16 %v862_v54, %v860_v52  ;;  %v1358_v27 = vpack.c.bf16 %v932_v53, %v930_v36  ;;  %v866_v5 = vadd.f32 %v865_v56, %v2020_v14  ;;  %v936_v31 = vadd.f32 %v935_v59, %v2020_v14 }
 0x22e   : > { %v867_v0 = vpop.f32.mrf.mxu0  ;;  %v937_v4 = vpop.f32.mrf.mxu1 }
 0x22f   : > { %1186 = vst.msk [vmem:[%s2034_s24 + $0x38] sm:$0xff] %vm2036_vm5, %v1344_v62  ;;  %1200 = vst.msk [vmem:[%s2034_s24 + $0xa8] sm:$0xff] %vm2036_vm5, %v1358_v27  ;;  %v868_v55 = vadd.f32 %v867_v0, %v2024_v57  ;;  %v938_v63 = vadd.f32 %v937_v4, %v2024_v57 }
 0x230   : > { %v869_v7 = vpop.f32.mrf.mxu0  ;;  %v939_v8 = vpop.f32.mrf.mxu1 }
 0x231   : > { %v1345_v9 = vpack.c.bf16 %v868_v55, %v866_v5  ;;  %v1359_v34 = vpack.c.bf16 %v938_v63, %v936_v31  ;;  %v870_v17 = vadd.f32 %v869_v7, %v2020_v14  ;;  %v940_v38 = vadd.f32 %v939_v8, %v2020_v14 }
 0x232   : > { %v871_v16 = vpop.f32.mrf.mxu0  ;;  %v941_v11 = vpop.f32.mrf.mxu1 }
 0x233   : > { %1187 = vst.msk [vmem:[%s2034_s24 + $0x40] sm:$0xff] %vm2036_vm5, %v1345_v9  ;;  %1201 = vst.msk [vmem:[%s2034_s24 + $0xb0] sm:$0xff] %vm2036_vm5, %v1359_v34  ;;  %v872_v6 = vadd.f32 %v871_v16, %v2024_v57  ;;  %v942_v18 = vadd.f32 %v941_v11, %v2024_v57 }
 0x234   : > { %v875_v19 = vpop.f32.mrf.mxu0  ;;  %v945_v22 = vpop.f32.mrf.mxu1 }
 0x235   : > { %v1346_v12 = vpack.c.bf16 %v872_v6, %v870_v17  ;;  %v1360_v40 = vpack.c.bf16 %v942_v18, %v940_v38  ;;  %v876_v23 = vadd.f32 %v875_v19, %v2020_v14  ;;  %v946_v47 = vadd.f32 %v945_v22, %v2020_v14 }
 0x236   : > { %v877_v3 = vpop.f32.mrf.mxu0  ;;  %v947_v10 = vpop.f32.mrf.mxu1 }
 0x237   : > { %1188 = vst.msk [vmem:[%s2034_s24 + $0x48] sm:$0xff] %vm2036_vm5, %v1346_v12  ;;  %1202 = vst.msk [vmem:[%s2034_s24 + $0xb8] sm:$0xff] %vm2036_vm5, %v1360_v40  ;;  %v878_v28 = vadd.f32 %v877_v3, %v2024_v57  ;;  %v948_v41 = vadd.f32 %v947_v10, %v2024_v57 }
 0x238   : > { %v879_v13 = vpop.f32.mrf.mxu0  ;;  %v949_v26 = vpop.f32.mrf.mxu1 }
 0x239   : > { %v1347_v29 = vpack.c.bf16 %v878_v28, %v876_v23  ;;  %v1361_v51 = vpack.c.bf16 %v948_v41, %v946_v47  ;;  %v880_v21 = vadd.f32 %v879_v13, %v2020_v14  ;;  %v950_v61 = vadd.f32 %v949_v26, %v2020_v14 }
 0x23a   : > { %v881_v32 = vpop.f32.mrf.mxu0  ;;  %v951_v15 = vpop.f32.mrf.mxu1 }
 0x23b   : > { %1189 = vst.msk [vmem:[%s2034_s24 + $0x50] sm:$0xff] %vm2036_vm5, %v1347_v29  ;;  %1203 = vst.msk [vmem:[%s2034_s24 + $0xc0] sm:$0xff] %vm2036_vm5, %v1361_v51  ;;  %v882_v49 = vadd.f32 %v881_v32, %v2024_v57  ;;  %v952_v58 = vadd.f32 %v951_v15, %v2024_v57 }
 0x23c   : > { %v885_v30 = vpop.f32.mrf.mxu0  ;;  %v955_v33 = vpop.f32.mrf.mxu1 }
 0x23d   : > { %v1348_v35 = vpack.c.bf16 %v882_v49, %v880_v21  ;;  %v1362_v2 = vpack.c.bf16 %v952_v58, %v950_v61  ;;  %v886_v25 = vadd.f32 %v885_v30, %v2020_v14  ;;  %v956_v20 = vadd.f32 %v955_v33, %v2020_v14 }
 0x23e   : > { %v887_v1 = vpop.f32.mrf.mxu0  ;;  %v957_v37 = vpop.f32.mrf.mxu1 }
 0x23f   : > { %1190 = vst.msk [vmem:[%s2034_s24 + $0x58] sm:$0xff] %vm2036_vm5, %v1348_v35  ;;  %1204 = vst.msk [vmem:[%s2034_s24 + $0xc8] sm:$0xff] %vm2036_vm5, %v1362_v2  ;;  %v888_v42 = vadd.f32 %v887_v1, %v2024_v57  ;;  %v958_v43 = vadd.f32 %v957_v37, %v2024_v57 }
 0x240   : > { %v889_v24 = vpop.f32.mrf.mxu0  ;;  %v959_v60 = vpop.f32.mrf.mxu1 }
 0x241   : > { %v1349_v50 = vpack.c.bf16 %v888_v42, %v886_v25  ;;  %v1363_v39 = vpack.c.bf16 %v958_v43, %v956_v20  ;;  %v890_v46 = vadd.f32 %v889_v24, %v2020_v14  ;;  %v960_v52 = vadd.f32 %v959_v60, %v2020_v14 }
 0x242   : > { %v891_v48 = vpop.f32.mrf.mxu0  ;;  %v961_v45 = vpop.f32.mrf.mxu1 }
 0x243   : > { %1191 = vst.msk [vmem:[%s2034_s24 + $0x60] sm:$0xff] %vm2036_vm5, %v1349_v50  ;;  %1205 = vst.msk [vmem:[%s2034_s24 + $0xd0] sm:$0xff] %vm2036_vm5, %v1363_v39  ;;  %v892_v36 = vadd.f32 %v891_v48, %v2024_v57  ;;  %v962_v54 = vadd.f32 %v961_v45, %v2024_v57 }
 0x244   : > { %v965_v53 = vpop.f32.mrf.mxu1 }
 0x245   : > { %v1350_v56 = vpack.c.bf16 %v892_v36, %v890_v46  ;;  %v1364_v59 = vpack.c.bf16 %v962_v54, %v960_v52  ;;  %v966_v27 = vadd.f32 %v965_v53, %v2020_v14 }
 0x246   : > { %v967_v62 = vpop.f32.mrf.mxu1 }
 0x247   : > { %1192 = vst.msk [vmem:[%s2034_s24 + $0x68] sm:$0xff] %vm2036_vm5, %v1350_v56  ;;  %1206 = vst.msk [vmem:[%s2034_s24 + $0xd8] sm:$0xff] %vm2036_vm5, %v1364_v59  ;;  %v968_v0 = vadd.f32 %v967_v62, %v2024_v57 }
 0x248   : > { %v969_v4 = vpop.f32.mrf.mxu1 }
 0x249   : > { %v1365_v5 = vpack.c.bf16 %v968_v0, %v966_v27  ;;  %v970_v55 = vadd.f32 %v969_v4, %v2020_v14 }
 0x24a   : > { %v971_v31 = vpop.f32.mrf.mxu1 }
 0x24b   : > { %1207 = vst.msk [vmem:[%s2034_s24 + $0xe0] sm:$0xff] %vm2036_vm5, %v1365_v5  ;;  %v972_v63 = vadd.f32 %v971_v31, %v2024_v57 }
 0x24c   : > { %v975_v7 = vpop.f32.mrf.mxu1 }
 0x24d   : > { %v1366_v8 = vpack.c.bf16 %v972_v63, %v970_v55  ;;  %v976_v34 = vadd.f32 %v975_v7, %v2020_v14 }
 0x24e   : > { %v977_v9 = vpop.f32.mrf.mxu1 }
 0x24f   : > { %1208 = vst.msk [vmem:[%s2034_s24 + $0xe8] sm:$0xff] %vm2036_vm5, %v1366_v8  ;;  %v978_v16 = vadd.f32 %v977_v9, %v2024_v57 }
 0x250   : > { %v979_v11 = vpop.f32.mrf.mxu1 }
 0x251   : > { %v1367_v17 = vpack.c.bf16 %v978_v16, %v976_v34  ;;  %v980_v6 = vadd.f32 %v979_v11, %v2020_v14 }
 0x252   : > { %v981_v38 = vpop.f32.mrf.mxu1 }
 0x253   : > { %1209 = vst.msk [vmem:[%s2034_s24 + $0xf0] sm:$0xff] %vm2036_vm5, %v1367_v17  ;;  %v982_v18 = vadd.f32 %v981_v38, %v2024_v57 }
 0x255   : > { %v1368_v19 = vpack.c.bf16 %v982_v18, %v980_v6 }
 0x257   : > { %1210 = vst.msk [vmem:[%s2034_s24 + $0xf8] sm:$0xff] %vm2036_vm5, %v1368_v19 }
 0x258 PF: > { %s16_s21 = sadd.s32 1, %s1515_s21  }
 0x259   : > { %p13_p4 = scmp.ge.s32.totalorder %s16_s21, 4  }
 0x25b   :  { %15 = sbr.rel (!%p13_p4) target bundleno = 1 (0x1), region = 74 }

// kernel: autoencoder_kl_forward.42
= control target key start
LH: loop header
LB: loop body
LE: loop exit
PB: predicated region body
PF: predicated region fallthrough
CT: control target
= control target key end

     0   :  { %s2364_s15 = smov 0   ;;  %s2978_s0 = inlined_call_operand.vmem [shape: bf16[2,288,192], index: 0, kind: input, shape index: {}]   ;;  %s2979_s1 = inlined_call_operand.vmem [shape: bf16[3,192,64], index: 1, kind: input, shape index: {}]   ;;  %s2980_s2 = inlined_call_operand.vmem [shape: f32[1,64], index: 2, kind: input, shape index: {}]   ;;  %s2981_s3 = inlined_call_operand.vmem [shape: bf16[2,256,64], index: 3, kind: input, shape index: {}]   ;;  %s2982_s4 = inlined_call_operand.vmem [shape: bf16[2,256,64], index: 4, kind: output, shape index: {}]  }
   0x1 LB: > { %s1850_s16 = sadd.s32 4294967295, %s2336_s15   ;;  %p1854_p0 = scmp.ge.s32.totalorder %s2336_s15, 1  ;;  %s2336_s15 = sphi %s2364_s15, %s14_s15  }
   0x2   : > { %p172_p1 = scmp.lt.s32.totalorder %s2336_s15, 3 }
   0x4   : > { %p173_p2 = pnand %p1854_p0, %p172_p1 }
   0x5   : > { %p203_p3 = scmp.lt.s32.totalorder (!%p173_p2), %s1850_s16, 1 }
   0x6   : > { %176 = sbr.rel (%p173_p2) target bundleno = 452 (0x1c4), region = 36 }
   0xb   : > { %v2240_v0 = vld [vmem:[%s2979_s1 + $0x98] sm:$0xff]   ;;  %v2338_v1 = vmov 0   ;;  %v2241_v2 = vld [vmem:[%s2979_s1 + $0x90] sm:$0xff]   ;;  %s2984_s16 = smov (!%p203_p3, %s1850_s16), 1  ;;  %v2242_v3 = vld [vmem:[%s2979_s1 + $0x88] sm:$0xff]   ;;  %vm518_vm0 = vcmask 523264  }
   0xc   : > { %567 = vmatprep.subr.bf16.mxu0 %v2338_v1  ;;  %2206 = vmatprep.subr.bf16.mxu1 %v2338_v1  ;;  %s2230_s23 = smul.u32 288, %s2984_s16  ;;  %v2243_v4 = vld [vmem:[%s2979_s1 + $0x80] sm:$0xff]   ;;  %v2244_v6 = vld [vmem:[%s2979_s1 + $0x78] sm:$0xff]   ;;  %v2245_v8 = vld [vmem:[%s2979_s1 + $0x70] sm:$0xff]   ;;  %vm1750_vm1 = vcmask 519168  }
   0xd   : > { %568 = vmatpush1.bf16.msra.mxu0 %v2240_v0  ;;  %2218 = vmatpush1.bf16.msra.mxu1 %v2240_v0  ;;  %v2246_v9 = vld [vmem:[%s2979_s1 + $0x68] sm:$0xff]   ;;  %v2247_v10 = vld [vmem:[%s2979_s1 + $0x60] sm:$0xff]   ;;  %v2248_v11 = vld [vmem:[%s2979_s1 + $0xb8] sm:$0xff]  }
   0xe   : > { %569 = vmatprep.subr.bf16.mxu0 %v2338_v1  ;;  %2207 = vmatprep.subr.bf16.mxu1 %v2338_v1  ;;  %s2396_s28 = scalar_lea.vmem %s2978_s0, %s2230_s23  ;;  %v2249_v12 = vld [vmem:[%s2979_s1 + $0xb0] sm:$0xff]   ;;  %v2250_v13 = vld [vmem:[%s2979_s1 + $0xa8] sm:$0xff]   ;;  %v2251_v14 = vld [vmem:[%s2979_s1 + $0xa0] sm:$0xff]  }
   0xf   : > { %v2401_v5 = vld [vmem:[%s2396_s28 + $0x14] ss:$8 sps:$4 sm:$0xff]   ;;  %v2451_v15 = vld [vmem:[%s2396_s28 + $0x10] ss:$8 sps:$4 sm:$0xff]   ;;  %v2465_v19 = vld [vmem:[%s2396_s28 + $0x24] ss:$8 sps:$4 sm:$0xff]  }
  0x10   : > { %v2407_v7 = vld [vmem:[%s2396_s28 + $0x94] ss:$8 sps:$4 sm:$0xff]   ;;  %1928 = vmatprep.mubr.msk.bf16.mxu0 %vm518_vm0, %v2401_v5  ;;  %v2454_v16 = vld [vmem:[%s2396_s28 + $0x90] ss:$8 sps:$4 sm:$0xff]   ;;  %v2468_v20 = vld [vmem:[%s2396_s28 + $0xa4] ss:$8 sps:$4 sm:$0xff]  }
  0x11   : > { %570 = vmatpush1.bf16.msra.mxu0 %v2241_v2  ;;  %2219 = vmatpush1.bf16.msra.mxu1 %v2241_v2  ;;  %v2258_v17 = vld [vmem:[%s2979_s1 + $0x38] sm:$0xff]   ;;  %v2264_v21 = vld [vmem:[%s2979_s1 + $0x30] sm:$0xff]   ;;  %v2482_v23 = vld [vmem:[%s2396_s28 + $0x20] ss:$8 sps:$4 sm:$0xff]  }
  0x12   : > { %571 = vmatprep.subr.bf16.mxu0 %v2338_v1  ;;  %2208 = vmatprep.subr.bf16.mxu1 %v2338_v1  ;;  %v2259_v18 = vld [vmem:[%s2979_s1 + $0xf8] sm:$0xff]   ;;  %v2267_v22 = vld [vmem:[%s2979_s1 + $0xf0] sm:$0xff]   ;;  %v2487_v24 = vld [vmem:[%s2396_s28 + $0xa0] ss:$8 sps:$4 sm:$0xff]  }
  0x13   : > { %1936 = vmatprep.mubr.msk.bf16.mxu1 %vm518_vm0, %v2407_v7  ;;  %v2268_v25 = vld [vmem:[%s2979_s1 + $0x28] sm:$0xff]   ;;  %v2497_v27 = vld [vmem:[%s2396_s28 + $0x34] ss:$8 sps:$4 sm:$0xff]   ;;  %v2276_v29 = vld [vmem:[%s2979_s1 + $0x20] sm:$0xff]  }
  0x14   : > { %v2269_v26 = vld [vmem:[%s2979_s1 + $0xe8] sm:$0xff]   ;;  %v2502_v28 = vld [vmem:[%s2396_s28 + $0xb4] ss:$8 sps:$4 sm:$0xff]   ;;  %v2277_v30 = vld [vmem:[%s2979_s1 + $0xe0] sm:$0xff]  }
  0x15   : > { %572 = vmatpush1.bf16.msra.mxu0 %v2242_v3  ;;  %2220 = vmatpush1.bf16.msra.mxu1 %v2242_v3  ;;  %v2519_v31 = vld [vmem:[%s2396_s28 + $0x30] ss:$8 sps:$4 sm:$0xff]   ;;  %v2525_v33 = vld [vmem:[%s2396_s28 + $0x44] ss:$8 sps:$4 sm:$0xff]   ;;  %v2553_v39 = vld [vmem:[%s2396_s28 + $0x40] ss:$8 sps:$4 sm:$0xff]  }
  0x16   : > { %573 = vmatprep.subr.bf16.mxu0 %v2338_v1  ;;  %2209 = vmatprep.subr.bf16.mxu1 %v2338_v1  ;;  %v2522_v32 = vld [vmem:[%s2396_s28 + $0xb0] ss:$8 sps:$4 sm:$0xff]   ;;  %v2528_v34 = vld [vmem:[%s2396_s28 + $0xc4] ss:$8 sps:$4 sm:$0xff]   ;;  %v2556_v40 = vld [vmem:[%s2396_s28 + $0xc0] ss:$8 sps:$4 sm:$0xff]  }
  0x17   : > { %v2282_v35 = vld [vmem:[%s2979_s1 + $0x18] sm:$0xff]   ;;  %v2286_v37 = vld [vmem:[%s2979_s1 + $0x10] sm:$0xff]   ;;  %v2294_v43 = vld [vmem:[%s2979_s1 + $0x8] sm:$0xff]  }
  0x18   : > { %v2285_v36 = vld [vmem:[%s2979_s1 + $0xd8] sm:$0xff]   ;;  %v2287_v38 = vld [vmem:[%s2979_s1 + $0xd0] sm:$0xff]   ;;  %v2295_v44 = vld [vmem:[%s2979_s1 + $0xc8] sm:$0xff]  }
  0x19   : > { %574 = vmatpush1.bf16.msra.mxu0 %v2243_v4  ;;  %2221 = vmatpush1.bf16.msra.mxu1 %v2243_v4  ;;  %v2559_v41 = vld [vmem:[%s2396_s28 + $0x54] ss:$8 sps:$4 sm:$0xff]   ;;  %v2300_v45 = vld [vmem:[%s2979_s1] sm:$0xff]   ;;  %v2587_v47 = vld [vmem:[%s2396_s28 + $0x50] ss:$8 sps:$4 sm:$0xff]  }
  0x1a   : > { %575 = vmatprep.subr.bf16.mxu0 %v2338_v1  ;;  %2210 = vmatprep.subr.bf16.mxu1 %v2338_v1  ;;  %v2562_v42 = vld [vmem:[%s2396_s28 + $0xd4] ss:$8 sps:$4 sm:$0xff]   ;;  %v2303_v46 = vld [vmem:[%s2979_s1 + $0xc0] sm:$0xff]   ;;  %v2590_v48 = vld [vmem:[%s2396_s28 + $0xd0] ss:$8 sps:$4 sm:$0xff]  }
  0x1b   : > { %v2593_v49 = vld [vmem:[%s2396_s28 + $0x64] ss:$8 sps:$4 sm:$0xff]   ;;  %v2304_v51 = vld [vmem:[%s2979_s1 + $0x58] sm:$0xff]   ;;  %v2312_v53 = vld [vmem:[%s2979_s1 + $0x50] sm:$0xff]  }
  0x1c   : > { %v2596_v50 = vld [vmem:[%s2396_s28 + $0xe4] ss:$8 sps:$4 sm:$0xff]   ;;  %v2305_v52 = vld [vmem:[%s2979_s1 + $0x118] sm:$0xff]   ;;  %v2313_v54 = vld [vmem:[%s2979_s1 + $0x110] sm:$0xff]  }
  0x1d   : > { %576 = vmatpush1.bf16.msra.mxu0 %v2244_v6  ;;  %2222 = vmatpush1.bf16.msra.mxu1 %v2244_v6  ;;  %v2301_v55 = vld [vmem:[%s2396_s28 + $0x60] ss:$8 sps:$4 sm:$0xff]   ;;  %v2306_v57 = vld [vmem:[%s2396_s28 + $0x74] ss:$8 sps:$4 sm:$0xff]   ;;  %v2310_v63 = vld [vmem:[%s2396_s28 + $0x70] ss:$8 sps:$4 sm:$0xff]  }
  0x1e   : > { %577 = vmatprep.subr.bf16.mxu0 %v2338_v1  ;;  %2211 = vmatprep.subr.bf16.mxu1 %v2338_v1  ;;  %v2622_v56 = vld [vmem:[%s2396_s28 + $0xe0] ss:$8 sps:$4 sm:$0xff]   ;;  %v2626_v58 = vld [vmem:[%s2396_s28 + $0xf4] ss:$8 sps:$4 sm:$0xff]   ;;  %v2650_v0 = vld [vmem:[%s2396_s28 + $0xf0] ss:$8 sps:$4 sm:$0xff]  }
  0x1f   : > { %v2318_v59 = vld [vmem:[%s2979_s1 + $0x48] sm:$0xff]   ;;  %v2322_v61 = vld [vmem:[%s2979_s1 + $0x40] sm:$0xff]  }
  0x20   : > { %v2321_v60 = vld [vmem:[%s2979_s1 + $0x108] sm:$0xff]   ;;  %v2323_v62 = vld [vmem:[%s2979_s1 + $0x100] sm:$0xff]  }
  0x21   : > { %578 = vmatpush1.bf16.msra.mxu0 %v2245_v8  ;;  %2223 = vmatpush1.bf16.msra.mxu1 %v2245_v8  ;;  %v2314_v2 = vld [vmem:[%s2396_s28 + $0x84] ss:$8 sps:$4 sm:$0xff]   ;;  %v2319_v4 = vld [vmem:[%s2396_s28 + $0x80] ss:$8 sps:$4 sm:$0xff]  }
  0x22   : > { %579 = vmatprep.subr.bf16.mxu0 %v2338_v1  ;;  %2212 = vmatprep.subr.bf16.mxu1 %v2338_v1  ;;  %v2654_v3 = vld [vmem:[%s2396_s28 + $0x104] ss:$8 sps:$4 sm:$0xff]   ;;  %v2662_v6 = vld [vmem:[%s2396_s28 + $0x100] ss:$8 sps:$4 sm:$0xff]  }
  0x23   : > { %v2324_v8 = vld [vmem:[%s2396_s28] ss:$8 sps:$4 sm:$0xff]  }
  0x25   : > { %580 = vmatpush1.bf16.msra.mxu0 %v2246_v9  ;;  %2224 = vmatpush1.bf16.msra.mxu1 %v2246_v9 }
  0x26   : > { %581 = vmatprep.subr.bf16.mxu0 %v2338_v1  ;;  %2213 = vmatprep.subr.bf16.mxu1 %v2338_v1 }
  0x29   : > { %582 = vmatpush1.bf16.msra.mxu0 %v2247_v10  ;;  %2225 = vmatpush1.bf16.msra.mxu1 %v2247_v10 }
  0x2a   : > { %591 = vmatprep.subr.bf16.mxu0 %v2338_v1  ;;  %2214 = vmatprep.subr.bf16.mxu1 %v2338_v1 }
  0x2d   : > { %592 = vmatpush2.bf16.msra.mxu0 %v2248_v11  ;;  %2226 = vmatpush2.bf16.msra.mxu1 %v2248_v11 }
  0x2e   : > { %593 = vmatprep.subr.bf16.mxu0 %v2338_v1  ;;  %2215 = vmatprep.subr.bf16.mxu1 %v2338_v1 }
  0x31   : > { %594 = vmatpush2.bf16.msra.mxu0 %v2249_v12  ;;  %2227 = vmatpush2.bf16.msra.mxu1 %v2249_v12 }
  0x32   : > { %595 = vmatprep.subr.bf16.mxu0 %v2338_v1  ;;  %2216 = vmatprep.subr.bf16.mxu1 %v2338_v1 }
  0x35   : > { %596 = vmatpush2.bf16.msra.mxu0 %v2250_v13  ;;  %2228 = vmatpush2.bf16.msra.mxu1 %v2250_v13 }
  0x36   : > { %597 = vmatprep.subr.bf16.mxu0 %v2338_v1  ;;  %2217 = vmatprep.subr.bf16.mxu1 %v2338_v1 }
  0x39   : > { %598 = vmatpush2.bf16.msra.mxu0 %v2251_v14  ;;  %2229 = vmatpush2.bf16.msra.mxu1 %v2251_v14 }
  0x3a   : > { %812 = vmatprep.subr.bf16.mxu1 %v2338_v1  ;;  %1294 = vmatprep.subr.bf16.mxu0 %v2338_v1 }
  0x3c   : > { %600 = vmatmul.mubr.bf16.vlgmr.msra.gmra.mxu0 %v2451_v15  ;;  %664 = vmatmul.mubr.bf16.vlgmr.msra.gmra.mxu1 %v2454_v16 }
  0x3d   : > { %813 = vmatpush1.bf16.msra.mxu1 %v2258_v17  ;;  %1295 = vmatpush1.bf16.msra.mxu0 %v2259_v18 }
  0x3e   : > { %814 = vmatprep.subr.bf16.mxu1 %v2338_v1  ;;  %1929 = vmatprep.mubr.msk.bf16.mxu0 %vm518_vm0, %v2465_v19 }
  0x3f   : > { %1937 = vmatprep.mubr.msk.bf16.mxu1 %vm518_vm0, %v2468_v20  ;;  %1296 = vmatprep.subr.bf16.mxu0 %v2338_v1 }
  0x41   : > { %815 = vmatpush1.bf16.msra.mxu1 %v2264_v21  ;;  %1297 = vmatpush1.bf16.msra.mxu0 %v2267_v22 }
  0x42   : > { %816 = vmatprep.subr.bf16.mxu1 %v2338_v1  ;;  %1298 = vmatprep.subr.bf16.mxu0 %v2338_v1 }
  0x44   : > { %608 = vmatmul.mubr.bf16.gmra.mxu0 %v2482_v23  ;;  %672 = vmatmul.mubr.bf16.gmra.mxu1 %v2487_v24 }
  0x45   : > { %817 = vmatpush1.bf16.msra.mxu1 %v2268_v25  ;;  %1299 = vmatpush1.bf16.msra.mxu0 %v2269_v26 }
  0x46   : > { %1930 = vmatprep.mubr.msk.bf16.mxu0 %vm518_vm0, %v2497_v27  ;;  %1938 = vmatprep.mubr.msk.bf16.mxu1 %vm518_vm0, %v2502_v28 }
  0x47   : > { %818 = vmatprep.subr.bf16.mxu1 %v2338_v1  ;;  %1300 = vmatprep.subr.bf16.mxu0 %v2338_v1 }
  0x49   : > { %819 = vmatpush1.bf16.msra.mxu1 %v2276_v29  ;;  %1301 = vmatpush1.bf16.msra.mxu0 %v2277_v30 }
  0x4a   : > { %820 = vmatprep.subr.bf16.mxu1 %v2338_v1  ;;  %1302 = vmatprep.subr.bf16.mxu0 %v2338_v1 }
  0x4c   : > { %616 = vmatmul.mubr.bf16.gmra.mxu0 %v2519_v31  ;;  %680 = vmatmul.mubr.bf16.gmra.mxu1 %v2522_v32 }
  0x4d   : > { %1931 = vmatprep.mubr.msk.bf16.mxu0 %vm518_vm0, %v2525_v33  ;;  %1939 = vmatprep.mubr.msk.bf16.mxu1 %vm518_vm0, %v2528_v34 }
  0x4e   : > { %821 = vmatpush1.bf16.msra.mxu1 %v2282_v35  ;;  %1303 = vmatpush1.bf16.msra.mxu0 %v2285_v36 }
  0x4f   : > { %822 = vmatprep.subr.bf16.mxu1 %v2338_v1  ;;  %1304 = vmatprep.subr.bf16.mxu0 %v2338_v1 }
  0x52   : > { %823 = vmatpush1.bf16.msra.mxu1 %v2286_v37  ;;  %1305 = vmatpush1.bf16.msra.mxu0 %v2287_v38 }
  0x53   : > { %824 = vmatprep.subr.bf16.mxu1 %v2338_v1  ;;  %1306 = vmatprep.subr.bf16.mxu0 %v2338_v1 }
  0x54   : > { %624 = vmatmul.mubr.bf16.gmra.mxu0 %v2553_v39  ;;  %688 = vmatmul.mubr.bf16.gmra.mxu1 %v2556_v40 }
  0x55   : > { %1932 = vmatprep.mubr.msk.bf16.mxu0 %vm518_vm0, %v2559_v41  ;;  %1940 = vmatprep.mubr.msk.bf16.mxu1 %vm518_vm0, %v2562_v42 }
  0x56   : > { %825 = vmatpush1.bf16.msra.mxu1 %v2294_v43  ;;  %1307 = vmatpush1.bf16.msra.mxu0 %v2295_v44 }
  0x57   : > { %826 = vmatprep.subr.bf16.mxu1 %v2338_v1  ;;  %1308 = vmatprep.subr.bf16.mxu0 %v2338_v1 }
  0x5a   : > { %827 = vmatpush1.bf16.msra.mxu1 %v2300_v45  ;;  %1309 = vmatpush1.bf16.msra.mxu0 %v2303_v46 }
  0x5b   : > { %836 = vmatprep.subr.bf16.mxu1 %v2338_v1  ;;  %1318 = vmatprep.subr.bf16.mxu0 %v2338_v1 }
  0x5c   : > { %632 = vmatmul.mubr.bf16.gmra.mxu0 %v2587_v47  ;;  %696 = vmatmul.mubr.bf16.gmra.mxu1 %v2590_v48 }
  0x5d   : > { %1933 = vmatprep.mubr.msk.bf16.mxu0 %vm518_vm0, %v2593_v49  ;;  %1941 = vmatprep.mubr.msk.bf16.mxu1 %vm518_vm0, %v2596_v50 }
  0x5e   : > { %837 = vmatpush2.bf16.msra.mxu1 %v2304_v51  ;;  %1319 = vmatpush2.bf16.msra.mxu0 %v2305_v52 }
  0x5f   : > { %838 = vmatprep.subr.bf16.mxu1 %v2338_v1  ;;  %1320 = vmatprep.subr.bf16.mxu0 %v2338_v1 }
  0x62   : > { %839 = vmatpush2.bf16.msra.mxu1 %v2312_v53  ;;  %1321 = vmatpush2.bf16.msra.mxu0 %v2313_v54 }
  0x63   : > { %840 = vmatprep.subr.bf16.mxu1 %v2338_v1  ;;  %1322 = vmatprep.subr.bf16.mxu0 %v2338_v1 }
  0x64   : > { %640 = vmatmul.mubr.bf16.gmra.mxu0 %v2301_v55  ;;  %704 = vmatmul.mubr.bf16.gmra.mxu1 %v2622_v56 }
  0x65   : > { %1934 = vmatprep.mubr.msk.bf16.mxu0 %vm518_vm0, %v2306_v57  ;;  %1942 = vmatprep.mubr.msk.bf16.mxu1 %vm518_vm0, %v2626_v58 }
  0x66   : > { %841 = vmatpush2.bf16.msra.mxu1 %v2318_v59  ;;  %1323 = vmatpush2.bf16.msra.mxu0 %v2321_v60 }
  0x67   : > { %842 = vmatprep.subr.bf16.mxu1 %v2338_v1  ;;  %1324 = vmatprep.subr.bf16.mxu0 %v2338_v1  ;;  %v2326_v1 = vld [vmem:[%s2396_s28 + $0x4] ss:$8 sps:$4 sm:$0xff]  }
  0x6a   : > { %843 = vmatpush2.bf16.msra.mxu1 %v2322_v61  ;;  %1325 = vmatpush2.bf16.msra.mxu0 %v2323_v62 }
  0x6c   : > { %648 = vmatmul.mubr.bf16.gmra.mxu0 %v2310_v63  ;;  %712 = vmatmul.mubr.bf16.gmra.mxu1 %v2650_v0 }
  0x6d   : > { %1935 = vmatprep.mubr.msk.bf16.mxu0 %vm518_vm0, %v2314_v2  ;;  %1943 = vmatprep.mubr.msk.bf16.mxu1 %vm518_vm0, %v2654_v3 }
  0x74   : > { %656 = vmatmul.mubr.bf16.gmra.mxu0 %v2319_v4  ;;  %720 = vmatmul.mubr.bf16.gmra.mxu1 %v2662_v6 }
  0x75   : > { %1958 = vmatprep.mubr.msk.bf16.mxu1 %vm518_vm0, %v2326_v1  ;;  %2042 = vmatprep.mubr.msk.bf16.mxu0 %vm518_vm0, %v2465_v19 }
  0x7c   : > { %845 = vmatmul.mubr.bf16.vlgmr.msra.gmra.mxu1 %v2324_v8  ;;  %1327 = vmatmul.mubr.bf16.vlgmr.msra.gmra.mxu0 %v2482_v23 }
  0x7d   : > { %1959 = vmatprep.mubr.msk.bf16.mxu1 %vm518_vm0, %v2401_v5  ;;  %2043 = vmatprep.mubr.msk.bf16.mxu0 %vm518_vm0, %v2497_v27  ;;  %v2327_v5 = vld [vmem:[%s2396_s28 + $0x114] ss:$8 sps:$4 sm:$0xff]  }
  0x84   : > { %853 = vmatmul.mubr.bf16.gmra.mxu1 %v2451_v15  ;;  %1335 = vmatmul.mubr.bf16.gmra.mxu0 %v2519_v31 }
  0x85   : > { %1960 = vmatprep.mubr.msk.bf16.mxu1 %vm518_vm0, %v2465_v19  ;;  %2044 = vmatprep.mubr.msk.bf16.mxu0 %vm518_vm0, %v2525_v33 }
  0x8c   : > { %861 = vmatmul.mubr.bf16.gmra.mxu1 %v2482_v23  ;;  %1343 = vmatmul.mubr.bf16.gmra.mxu0 %v2553_v39 }
  0x8d   : > { %1961 = vmatprep.mubr.msk.bf16.mxu1 %vm518_vm0, %v2497_v27  ;;  %2045 = vmatprep.mubr.msk.bf16.mxu0 %vm518_vm0, %v2559_v41 }
  0x94   : > { %869 = vmatmul.mubr.bf16.gmra.mxu1 %v2519_v31  ;;  %1351 = vmatmul.mubr.bf16.gmra.mxu0 %v2587_v47 }
  0x95   : > { %1962 = vmatprep.mubr.msk.bf16.mxu1 %vm518_vm0, %v2525_v33  ;;  %2046 = vmatprep.mubr.msk.bf16.mxu0 %vm518_vm0, %v2593_v49 }
  0x9c   : > { %877 = vmatmul.mubr.bf16.gmra.mxu1 %v2553_v39  ;;  %1359 = vmatmul.mubr.bf16.gmra.mxu0 %v2301_v55 }
  0x9d   : > { %1963 = vmatprep.mubr.msk.bf16.mxu1 %vm518_vm0, %v2559_v41  ;;  %2047 = vmatprep.mubr.msk.bf16.mxu0 %vm518_vm0, %v2306_v57 }
  0xa4   : > { %885 = vmatmul.mubr.bf16.gmra.mxu1 %v2587_v47  ;;  %1367 = vmatmul.mubr.bf16.gmra.mxu0 %v2310_v63 }
  0xa5   : > { %1964 = vmatprep.mubr.msk.bf16.mxu1 %vm518_vm0, %v2593_v49  ;;  %2048 = vmatprep.mubr.msk.bf16.mxu0 %vm518_vm0, %v2314_v2 }
  0xac   : > { %893 = vmatmul.mubr.bf16.gmra.mxu1 %v2301_v55  ;;  %1375 = vmatmul.mubr.bf16.gmra.mxu0 %v2319_v4 }
  0xad   : > { %1965 = vmatprep.mubr.msk.bf16.mxu1 %vm518_vm0, %v2306_v57  ;;  %2049 = vmatprep.mubr.msk.bf16.mxu0 %vm518_vm0, %v2407_v7 }
  0xb4   : > { %901 = vmatmul.mubr.bf16.gmra.mxu1 %v2310_v63  ;;  %1383 = vmatmul.mubr.bf16.gmra.mxu0 %v2454_v16 }
  0xb5   : > { %1966 = vmatprep.mubr.msk.bf16.mxu1 %vm518_vm0, %v2314_v2  ;;  %2050 = vmatprep.mubr.msk.bf16.mxu0 %vm518_vm0, %v2468_v20 }
  0xbc   : > { %909 = vmatmul.mubr.bf16.gmra.mxu1 %v2319_v4  ;;  %1391 = vmatmul.mubr.bf16.gmra.mxu0 %v2487_v24 }
  0xbd   : > { %1967 = vmatprep.mubr.msk.bf16.mxu1 %vm518_vm0, %v2407_v7  ;;  %2051 = vmatprep.mubr.msk.bf16.mxu0 %vm518_vm0, %v2502_v28  ;;  %v2329_v7 = vld [vmem:[%s2396_s28 + $0x110] ss:$8 sps:$4 sm:$0xff]   ;;  %s2093_s28 = sshll.u32 %s2984_s16, 7 }
  0xbe   : > { %s2819_s25 = scalar_lea.vmem %s2981_s3, %s2093_s28  ;;  %s2833_s30 = scalar_lea.vmem %s2982_s4, %s2093_s28 }
  0xc4   : > { %917 = vmatmul.mubr.bf16.gmra.mxu1 %v2454_v16  ;;  %1399 = vmatmul.mubr.bf16.gmra.mxu0 %v2522_v32 }
  0xc5   : > { %1968 = vmatprep.mubr.msk.bf16.mxu1 %vm518_vm0, %v2468_v20  ;;  %2052 = vmatprep.mubr.msk.bf16.mxu0 %vm518_vm0, %v2528_v34 }
  0xcc   : > { %925 = vmatmul.mubr.bf16.gmra.mxu1 %v2487_v24  ;;  %1407 = vmatmul.mubr.bf16.gmra.mxu0 %v2556_v40 }
  0xcd   : > { %1969 = vmatprep.mubr.msk.bf16.mxu1 %vm518_vm0, %v2502_v28  ;;  %2053 = vmatprep.mubr.msk.bf16.mxu0 %vm518_vm0, %v2562_v42 }
  0xd4   : > { %933 = vmatmul.mubr.bf16.gmra.mxu1 %v2522_v32  ;;  %1415 = vmatmul.mubr.bf16.gmra.mxu0 %v2590_v48 }
  0xd5   : > { %1970 = vmatprep.mubr.msk.bf16.mxu1 %vm518_vm0, %v2528_v34  ;;  %2054 = vmatprep.mubr.msk.bf16.mxu0 %vm518_vm0, %v2596_v50 }
  0xdc   : > { %941 = vmatmul.mubr.bf16.gmra.mxu1 %v2556_v40  ;;  %1423 = vmatmul.mubr.bf16.gmra.mxu0 %v2622_v56 }
  0xdd   : > { %1971 = vmatprep.mubr.msk.bf16.mxu1 %vm518_vm0, %v2562_v42  ;;  %2055 = vmatprep.mubr.msk.bf16.mxu0 %vm518_vm0, %v2626_v58 }
  0xe4   : > { %949 = vmatmul.mubr.bf16.gmra.mxu1 %v2590_v48  ;;  %1431 = vmatmul.mubr.bf16.gmra.mxu0 %v2650_v0 }
  0xe5   : > { %1972 = vmatprep.mubr.msk.bf16.mxu1 %vm518_vm0, %v2596_v50  ;;  %2056 = vmatprep.mubr.msk.bf16.mxu0 %vm518_vm0, %v2654_v3 }
  0xec   : > { %957 = vmatmul.mubr.bf16.gmra.mxu1 %v2622_v56  ;;  %1439 = vmatmul.mubr.bf16.gmra.mxu0 %v2662_v6 }
  0xed   : > { %1973 = vmatprep.mubr.msk.bf16.mxu1 %vm518_vm0, %v2626_v58  ;;  %2057 = vmatprep.mubr.msk.bf16.mxu0 %vm518_vm0, %v2327_v5 }
  0xf4   : > { %965 = vmatmul.mubr.bf16.gmra.mxu1 %v2650_v0  ;;  %1447 = vmatmul.mubr.bf16.gmra.mxu0 %v2329_v7 }
  0xfc   : > { %v2751_v9 = vpop.f32.mrf.mxu0  ;;  %v2753_v10 = vpop.f32.mrf.mxu1 }
  0xfe   : > { %v603_v11 = vpop.f32.mrf.mxu0  ;;  %v667_v12 = vpop.f32.mrf.mxu1 }
 0x100   : > { %v2755_v13 = vpop.f32.mrf.mxu0  ;;  %v2757_v14 = vpop.f32.mrf.mxu1 }
 0x102   : > { %v606_v15 = vpop.f32.mrf.mxu0  ;;  %v670_v16 = vpop.f32.mrf.mxu1 }
 0x103   : > { %v2128_v15 = vld [vmem:[%s2819_s25] sm:$0xff]  }
 0x104   : > { %v2759_v17 = vpop.f32.mrf.mxu0  ;;  %v2761_v18 = vpop.f32.mrf.mxu1 }
 0x106   : > { %v611_v19 = vpop.f32.mrf.mxu0  ;;  %v675_v20 = vpop.f32.mrf.mxu1 }
 0x107   : > { %v2826_v19 = vld [vmem:[%s2980_s2] ss:$0 sm:$0xff] }
 0x108   : > { %v2763_v21 = vpop.f32.mrf.mxu0  ;;  %v2765_v22 = vpop.f32.mrf.mxu1 }
 0x10a   : > { %v614_v23 = vpop.f32.mrf.mxu0  ;;  %v678_v24 = vpop.f32.mrf.mxu1 }
 0x10c   : > { %v2767_v25 = vpop.f32.mrf.mxu0  ;;  %v2769_v26 = vpop.f32.mrf.mxu1 }
 0x10e   : > { %v619_v27 = vpop.f32.mrf.mxu0  ;;  %v683_v28 = vpop.f32.mrf.mxu1 }
 0x10f   : > { %v2129_v27 = vunpack.c.l.bf16 %v2128_v15 }
 0x110   : > { %v2771_v29 = vpop.f32.mrf.mxu0  ;;  %v2773_v30 = vpop.f32.mrf.mxu1 }
 0x112   : > { %v622_v31 = vpop.f32.mrf.mxu0  ;;  %v686_v32 = vpop.f32.mrf.mxu1 }
 0x114   : > { %v2775_v33 = vpop.f32.mrf.mxu0  ;;  %v2777_v34 = vpop.f32.mrf.mxu1 }
 0x116   : > { %v627_v35 = vpop.f32.mrf.mxu0  ;;  %v691_v36 = vpop.f32.mrf.mxu1 }
 0x118   : > { %v2779_v37 = vpop.f32.mrf.mxu0  ;;  %v2781_v38 = vpop.f32.mrf.mxu1 }
 0x11a   : > { %v630_v39 = vpop.f32.mrf.mxu0  ;;  %v694_v40 = vpop.f32.mrf.mxu1 }
 0x11c   : > { %v2783_v41 = vpop.f32.mrf.mxu0  ;;  %v2785_v42 = vpop.f32.mrf.mxu1 }
 0x11e   : > { %v635_v43 = vpop.f32.mrf.mxu0  ;;  %v699_v44 = vpop.f32.mrf.mxu1 }
 0x11f   : > { %v2130_v43 = vunpack.c.h.bf16 %v2128_v15 }
 0x120   : > { %v2787_v45 = vpop.f32.mrf.mxu0  ;;  %v2789_v46 = vpop.f32.mrf.mxu1 }
 0x122   : > { %v638_v47 = vpop.f32.mrf.mxu0  ;;  %v702_v48 = vpop.f32.mrf.mxu1 }
 0x123   : > { %v2191_v48 = vld [vmem:[%s2819_s25 + $0x8] sm:$0xff]  }
 0x124   : > { %v2791_v49 = vpop.f32.mrf.mxu0  ;;  %v2793_v50 = vpop.f32.mrf.mxu1 }
 0x126   : > { %v643_v51 = vpop.f32.mrf.mxu0  ;;  %v707_v52 = vpop.f32.mrf.mxu1 }
 0x128   : > { %v2795_v53 = vpop.f32.mrf.mxu0  ;;  %v2797_v54 = vpop.f32.mrf.mxu1 }
 0x12a   : > { %v646_v55 = vpop.f32.mrf.mxu0  ;;  %v710_v56 = vpop.f32.mrf.mxu1 }
 0x12c   : > { %v2799_v57 = vpop.f32.mrf.mxu0  ;;  %v2801_v58 = vpop.f32.mrf.mxu1 }
 0x12e   : > { %v651_v59 = vpop.f32.mrf.mxu0  ;;  %v715_v60 = vpop.f32.mrf.mxu1 }
 0x130   : > { %v2803_v61 = vpop.f32.mrf.mxu0  ;;  %v2805_v62 = vpop.f32.mrf.mxu1 }
 0x132   : > { %v654_v63 = vpop.f32.mrf.mxu0  ;;  %v718_v0 = vpop.f32.mrf.mxu1 }
 0x133   : > { %v2133_v63 = vunpack.c.l.bf16 %v2191_v48 }
 0x134   : > { %v2807_v2 = vpop.f32.mrf.mxu0  ;;  %v2809_v3 = vpop.f32.mrf.mxu1 }
 0x136   : > { %v659_v4 = vpop.f32.mrf.mxu0  ;;  %v723_v6 = vpop.f32.mrf.mxu1 }
 0x138   : > { %v2812_v1 = vpop.f32.mrf.mxu0  ;;  %v2814_v8 = vpop.f32.mrf.mxu1 }
 0x13a   : > { %v662_v5 = vpop.f32.mrf.mxu0  ;;  %v726_v7 = vpop.f32.mrf.mxu1 }
 0x13c   : > { %v846_v11 = vpop.f32.mrf.mxu1  ;;  %v1328_v12 = vpop.f32.mrf.mxu0 }
 0x13d   : > { %v847_v16 = vadd.f32 %v846_v11, %v2751_v9 }
 0x13e   : > { %v848_v20 = vpop.f32.mrf.mxu1  ;;  %v1330_v23 = vpop.f32.mrf.mxu0 }
 0x13f   : > { %v1455_v24 = vadd.f32 %v1328_v12, %v847_v16  ;;  %v2134_v16 = vunpack.c.h.bf16 %v2191_v48 }
 0x140   : > { %v849_v28 = vpop.f32.mrf.mxu1  ;;  %v1331_v31 = vpop.f32.mrf.mxu0 }
 0x141   : > { %v1494_v32 = vadd.f32 %v2826_v19, %v1455_v24  ;;  %v850_v35 = vadd.f32 %v849_v28, %v2755_v13  ;;  %v2192_v24 = vld [vmem:[%s2819_s25 + $0x10] sm:$0xff]  }
 0x142   : > { %v851_v36 = vpop.f32.mrf.mxu1  ;;  %v1333_v39 = vpop.f32.mrf.mxu0 }
 0x143   : > { %v1590_v40 = vadd.f32 %v2129_v27, %v1494_v32  ;;  %v1456_v9 = vadd.f32 %v1331_v31, %v850_v35  ;;  %v2137_v39 = vunpack.c.l.bf16 %v2192_v24 }
 0x144   : > { %v854_v44 = vpop.f32.mrf.mxu1  ;;  %v1336_v47 = vpop.f32.mrf.mxu0 }
 0x145   : > { %v2095_v51 = vpack.c.bf16 %v1590_v40, %v1590_v40  ;;  %v1495_v52 = vadd.f32 %v2826_v19, %v1456_v9  ;;  %v855_v13 = vadd.f32 %v854_v44, %v2759_v17 }
 0x146   : > { %v856_v55 = vpop.f32.mrf.mxu1  ;;  %v1338_v56 = vpop.f32.mrf.mxu0 }
 0x147   : > { %1751 = vst.msk [vmem:[%s2833_s30] sm:$0xf] %vm1750_vm1, %v2095_v51  ;;  %v1591_v59 = vadd.f32 %v2130_v43, %v1495_v52  ;;  %v1457_v60 = vadd.f32 %v1336_v47, %v855_v13  ;;  %v2138_v13 = vunpack.c.h.bf16 %v2192_v24 }
 0x148   : > { %v857_v0 = vpop.f32.mrf.mxu1  ;;  %v1339_v4 = vpop.f32.mrf.mxu0 }
 0x149   : > { %v2096_v6 = vpack.c.bf16 %v1591_v59, %v1591_v59  ;;  %v1496_v5 = vadd.f32 %v2826_v19, %v1457_v60  ;;  %v858_v7 = vadd.f32 %v857_v0, %v2763_v21  ;;  %v2193_v59 = vld [vmem:[%s2819_s25 + $0x18] sm:$0xff]  }
 0x14a   : > { %v859_v11 = vpop.f32.mrf.mxu1  ;;  %v1341_v12 = vpop.f32.mrf.mxu0 }
 0x14b   : > { %1752 = vst.msk [vmem:[%s2833_s30 + $0x4] sm:$0xf] %vm1750_vm1, %v2096_v6  ;;  %v1592_v17 = vadd.f32 %v2133_v63, %v1496_v5  ;;  %v1458_v15 = vadd.f32 %v1339_v4, %v858_v7  ;;  %v2141_v7 = vunpack.c.l.bf16 %v2193_v59 }
 0x14c   : > { %v862_v20 = vpop.f32.mrf.mxu1  ;;  %v1344_v23 = vpop.f32.mrf.mxu0 }
 0x14d   : > { %v2097_v27 = vpack.c.bf16 %v1592_v17, %v1592_v17  ;;  %v1497_v28 = vadd.f32 %v2826_v19, %v1458_v15  ;;  %v863_v31 = vadd.f32 %v862_v20, %v2767_v25 }
 0x14e   : > { %v864_v32 = vpop.f32.mrf.mxu1  ;;  %v1346_v35 = vpop.f32.mrf.mxu0 }
 0x14f   : > { %1753 = vst.msk [vmem:[%s2833_s30 + $0x8] sm:$0xf] %vm1750_vm1, %v2097_v27  ;;  %v1593_v21 = vadd.f32 %v2134_v16, %v1497_v28  ;;  %v1459_v36 = vadd.f32 %v1344_v23, %v863_v31  ;;  %v2142_v27 = vunpack.c.h.bf16 %v2193_v59  ;;  %v2194_v32 = vld [vmem:[%s2819_s25 + $0x20] sm:$0xff]  }
 0x150   : > { %v865_v40 = vpop.f32.mrf.mxu1  ;;  %v1347_v9 = vpop.f32.mrf.mxu0 }
 0x151   : > { %v2098_v43 = vpack.c.bf16 %v1593_v21, %v1593_v21  ;;  %v1498_v44 = vadd.f32 %v2826_v19, %v1459_v36  ;;  %v866_v47 = vadd.f32 %v865_v40, %v2771_v29 }
 0x152   : > { %v867_v48 = vpop.f32.mrf.mxu1  ;;  %v1349_v51 = vpop.f32.mrf.mxu0 }
 0x153   : > { %1754 = vst.msk [vmem:[%s2833_s30 + $0xc] sm:$0xf] %vm1750_vm1, %v2098_v43  ;;  %v1594_v25 = vadd.f32 %v2137_v39, %v1498_v44  ;;  %v1460_v52 = vadd.f32 %v1347_v9, %v866_v47  ;;  %v2145_v43 = vunpack.c.l.bf16 %v2194_v32 }
 0x154   : > { %v870_v55 = vpop.f32.mrf.mxu1  ;;  %v1352_v56 = vpop.f32.mrf.mxu0 }
 0x155   : > { %v2099_v60 = vpack.c.bf16 %v1594_v25, %v1594_v25  ;;  %v1499_v63 = vadd.f32 %v2826_v19, %v1460_v52  ;;  %v871_v0 = vadd.f32 %v870_v55, %v2775_v33 }
 0x156   : > { %v872_v4 = vpop.f32.mrf.mxu1  ;;  %v1354_v6 = vpop.f32.mrf.mxu0 }
 0x157   : > { %1755 = vst.msk [vmem:[%s2833_s30 + $0x10] sm:$0xf] %vm1750_vm1, %v2099_v60  ;;  %v1595_v29 = vadd.f32 %v2138_v13, %v1499_v63  ;;  %v1461_v5 = vadd.f32 %v1352_v56, %v871_v0  ;;  %v2146_v56 = vunpack.c.h.bf16 %v2194_v32  ;;  %v2195_v63 = vld [vmem:[%s2819_s25 + $0x28] sm:$0xff]   ;;  %v2196_v32 = vld [vmem:[%s2819_s25 + $0x30] sm:$0xff]  }
 0x158   : > { %v873_v11 = vpop.f32.mrf.mxu1  ;;  %v1355_v12 = vpop.f32.mrf.mxu0 }
 0x159   : > { %v2100_v17 = vpack.c.bf16 %v1595_v29, %v1595_v29  ;;  %v1500_v15 = vadd.f32 %v2826_v19, %v1461_v5  ;;  %v874_v16 = vadd.f32 %v873_v11, %v2779_v37  ;;  %v2149_v11 = vunpack.c.l.bf16 %v2195_v63 }
 0x15a   : > { %v875_v20 = vpop.f32.mrf.mxu1  ;;  %v1357_v23 = vpop.f32.mrf.mxu0 }
 0x15b   : > { %1756 = vst.msk [vmem:[%s2833_s30 + $0x14] sm:$0xf] %vm1750_vm1, %v2100_v17  ;;  %v1596_v33 = vadd.f32 %v2141_v7, %v1500_v15  ;;  %v1462_v24 = vadd.f32 %v1355_v12, %v874_v16 }
 0x15c   : > { %v878_v28 = vpop.f32.mrf.mxu1  ;;  %v1360_v31 = vpop.f32.mrf.mxu0 }
 0x15d   : > { %v2101_v35 = vpack.c.bf16 %v1596_v33, %v1596_v33  ;;  %v1501_v21 = vadd.f32 %v2826_v19, %v1462_v24  ;;  %v879_v36 = vadd.f32 %v878_v28, %v2783_v41 }
 0x15e   : > { %v880_v39 = vpop.f32.mrf.mxu1  ;;  %v1362_v40 = vpop.f32.mrf.mxu0 }
 0x15f   : > { %1757 = vst.msk [vmem:[%s2833_s30 + $0x18] sm:$0xf] %vm1750_vm1, %v2101_v35  ;;  %v1597_v37 = vadd.f32 %v2142_v27, %v1501_v21  ;;  %v1463_v9 = vadd.f32 %v1360_v31, %v879_v36  ;;  %v2150_v27 = vunpack.c.h.bf16 %v2195_v63 }
 0x160   : > { %v881_v44 = vpop.f32.mrf.mxu1  ;;  %v1363_v47 = vpop.f32.mrf.mxu0 }
 0x161   : > { %v2102_v48 = vpack.c.bf16 %v1597_v37, %v1597_v37  ;;  %v1502_v51 = vadd.f32 %v2826_v19, %v1463_v9  ;;  %v882_v25 = vadd.f32 %v881_v44, %v2787_v45  ;;  %v2153_v9 = vunpack.c.l.bf16 %v2196_v32 }
 0x162   : > { %v883_v52 = vpop.f32.mrf.mxu1  ;;  %v1365_v13 = vpop.f32.mrf.mxu0 }
 0x163   : > { %1758 = vst.msk [vmem:[%s2833_s30 + $0x1c] sm:$0xf] %vm1750_vm1, %v2102_v48  ;;  %v1598_v41 = vadd.f32 %v2145_v43, %v1502_v51  ;;  %v1464_v55 = vadd.f32 %v1363_v47, %v882_v25 }
 0x164   : > { %v886_v59 = vpop.f32.mrf.mxu1  ;;  %v1368_v60 = vpop.f32.mrf.mxu0 }
 0x165   : > { %v2103_v0 = vpack.c.bf16 %v1598_v41, %v1598_v41  ;;  %v1503_v4 = vadd.f32 %v2826_v19, %v1464_v55  ;;  %v887_v6 = vadd.f32 %v886_v59, %v2791_v49  ;;  %v2154_v41 = vunpack.c.h.bf16 %v2196_v32  ;;  %v2197_v59 = vld [vmem:[%s2819_s25 + $0x38] sm:$0xff]  }
 0x166   : > { %v888_v29 = vpop.f32.mrf.mxu1  ;;  %v1370_v5 = vpop.f32.mrf.mxu0 }
 0x167   : > { %1759 = vst.msk [vmem:[%s2833_s30 + $0x20] sm:$0xf] %vm1750_vm1, %v2103_v0  ;;  %v1599_v45 = vadd.f32 %v2146_v56, %v1503_v4  ;;  %v1465_v7 = vadd.f32 %v1368_v60, %v887_v6  ;;  %v2157_v5 = vunpack.c.l.bf16 %v2197_v59 }
 0x168   : > { %v889_v12 = vpop.f32.mrf.mxu1  ;;  %v1371_v17 = vpop.f32.mrf.mxu0 }
 0x169   : > { %v2104_v15 = vpack.c.bf16 %v1599_v45, %v1599_v45  ;;  %v1504_v16 = vadd.f32 %v2826_v19, %v1465_v7  ;;  %v890_v20 = vadd.f32 %v889_v12, %v2795_v53 }
 0x16a   : > { %v891_v23 = vpop.f32.mrf.mxu1  ;;  %v1373_v33 = vpop.f32.mrf.mxu0 }
 0x16b   : > { %1760 = vst.msk [vmem:[%s2833_s30 + $0x24] sm:$0xf] %vm1750_vm1, %v2104_v15  ;;  %v1600_v49 = vadd.f32 %v2149_v11, %v1504_v16  ;;  %v1466_v24 = vadd.f32 %v1371_v17, %v890_v20  ;;  %v2158_v23 = vunpack.c.h.bf16 %v2197_v59 }
 0x16c   : > { %v894_v28 = vpop.f32.mrf.mxu1  ;;  %v1376_v31 = vpop.f32.mrf.mxu0 }
 0x16d   : > { %v2105_v35 = vpack.c.bf16 %v1600_v49, %v1600_v49  ;;  %v1505_v21 = vadd.f32 %v2826_v19, %v1466_v24  ;;  %v895_v36 = vadd.f32 %v894_v28, %v2799_v57  ;;  %v2198_v24 = vld [vmem:[%s2819_s25 + $0x40] sm:$0xff]  }
 0x16e   : > { %v896_v39 = vpop.f32.mrf.mxu1  ;;  %v1378_v40 = vpop.f32.mrf.mxu0 }
 0x16f   : > { %1761 = vst.msk [vmem:[%s2833_s30 + $0x28] sm:$0xf] %vm1750_vm1, %v2105_v35  ;;  %v1601_v53 = vadd.f32 %v2150_v27, %v1505_v21  ;;  %v1467_v37 = vadd.f32 %v1376_v31, %v895_v36  ;;  %v2161_v36 = vunpack.c.l.bf16 %v2198_v24 }
 0x170   : > { %v897_v43 = vpop.f32.mrf.mxu1  ;;  %v1379_v44 = vpop.f32.mrf.mxu0 }
 0x171   : > { %v2106_v47 = vpack.c.bf16 %v1601_v53, %v1601_v53  ;;  %v1506_v48 = vadd.f32 %v2826_v19, %v1467_v37  ;;  %v898_v51 = vadd.f32 %v897_v43, %v2803_v61 }
 0x172   : > { %v899_v25 = vpop.f32.mrf.mxu1  ;;  %v1381_v52 = vpop.f32.mrf.mxu0 }
 0x173   : > { %1762 = vst.msk [vmem:[%s2833_s30 + $0x2c] sm:$0xf] %vm1750_vm1, %v2106_v47  ;;  %v1602_v57 = vadd.f32 %v2153_v9, %v1506_v48  ;;  %v1468_v13 = vadd.f32 %v1379_v44, %v898_v51  ;;  %v2162_v48 = vunpack.c.h.bf16 %v2198_v24  ;;  %v2199_v52 = vld [vmem:[%s2819_s25 + $0x48] sm:$0xff]  }
 0x174   : > { %v902_v55 = vpop.f32.mrf.mxu1  ;;  %v1384_v56 = vpop.f32.mrf.mxu0 }
 0x175   : > { %v2107_v60 = vpack.c.bf16 %v1602_v57, %v1602_v57  ;;  %v1507_v63 = vadd.f32 %v2826_v19, %v1468_v13  ;;  %v903_v0 = vadd.f32 %v902_v55, %v2807_v2 }
 0x176   : > { %v904_v4 = vpop.f32.mrf.mxu1  ;;  %v1386_v6 = vpop.f32.mrf.mxu0 }
 0x177   : > { %1763 = vst.msk [vmem:[%s2833_s30 + $0x30] sm:$0xf] %vm1750_vm1, %v2107_v60  ;;  %v1603_v61 = vadd.f32 %v2154_v41, %v1507_v63  ;;  %v1469_v29 = vadd.f32 %v1384_v56, %v903_v0  ;;  %v2165_v60 = vunpack.c.l.bf16 %v2199_v52 }
 0x178   : > { %v905_v45 = vpop.f32.mrf.mxu1  ;;  %v1387_v7 = vpop.f32.mrf.mxu0 }
 0x179   : > { %v2108_v11 = vpack.c.bf16 %v1603_v61, %v1603_v61  ;;  %v1508_v12 = vadd.f32 %v2826_v19, %v1469_v29  ;;  %v906_v17 = vadd.f32 %v905_v45, %v2812_v1 }
 0x17a   : > { %v907_v15 = vpop.f32.mrf.mxu1  ;;  %v1389_v16 = vpop.f32.mrf.mxu0 }
 0x17b   : > { %1764 = vst.msk [vmem:[%s2833_s30 + $0x34] sm:$0xf] %vm1750_vm1, %v2108_v11  ;;  %v1604_v2 = vadd.f32 %v2157_v5, %v1508_v12  ;;  %v1470_v20 = vadd.f32 %v1387_v7, %v906_v17  ;;  %v2166_v7 = vunpack.c.h.bf16 %v2199_v52  ;;  %v2200_v17 = vld [vmem:[%s2819_s25 + $0x50] sm:$0xff]  }
 0x17c   : > { %v910_v33 = vpop.f32.mrf.mxu1  ;;  %v1392_v49 = vpop.f32.mrf.mxu0 }
 0x17d   : > { %v2109_v27 = vpack.c.bf16 %v1604_v2, %v1604_v2  ;;  %v1509_v28 = vadd.f32 %v2826_v19, %v1470_v20  ;;  %v911_v31 = vadd.f32 %v910_v33, %v2753_v10 }
 0x17e   : > { %v912_v32 = vpop.f32.mrf.mxu1  ;;  %v1394_v35 = vpop.f32.mrf.mxu0 }
 0x17f   : > { %1765 = vst.msk [vmem:[%s2833_s30 + $0x38] sm:$0xf] %vm1750_vm1, %v2109_v27  ;;  %v1605_v1 = vadd.f32 %v2158_v23, %v1509_v28  ;;  %v1471_v21 = vadd.f32 %v1392_v49, %v911_v31  ;;  %v2169_v49 = vunpack.c.l.bf16 %v2200_v17 }
 0x180   : > { %v913_v39 = vpop.f32.mrf.mxu1  ;;  %v1395_v40 = vpop.f32.mrf.mxu0 }
 0x181   : > { %v2110_v53 = vpack.c.bf16 %v1605_v1, %v1605_v1  ;;  %v1510_v37 = vadd.f32 %v2826_v19, %v1471_v21  ;;  %v914_v9 = vadd.f32 %v913_v39, %v2757_v14 }
 0x182   : > { %v915_v43 = vpop.f32.mrf.mxu1  ;;  %v1397_v44 = vpop.f32.mrf.mxu0 }
 0x183   : > { %1766 = vst.msk [vmem:[%s2833_s30 + $0x3c] sm:$0xf] %vm1750_vm1, %v2110_v53  ;;  %v1606_v10 = vadd.f32 %v2161_v36, %v1510_v37  ;;  %v1472_v47 = vadd.f32 %v1395_v40, %v914_v9  ;;  %v2170_v36 = vunpack.c.h.bf16 %v2200_v17  ;;  %v2201_v53 = vld [vmem:[%s2819_s25 + $0x58] sm:$0xff]  }
 0x184   : > { %v918_v51 = vpop.f32.mrf.mxu1  ;;  %v1400_v25 = vpop.f32.mrf.mxu0 }
 0x185   : > { %v2111_v57 = vpack.c.bf16 %v1606_v10, %v1606_v10  ;;  %v1511_v13 = vadd.f32 %v2826_v19, %v1472_v47  ;;  %v919_v41 = vadd.f32 %v918_v51, %v2761_v18 }
 0x186   : > { %v920_v55 = vpop.f32.mrf.mxu1  ;;  %v1402_v56 = vpop.f32.mrf.mxu0 }
 0x187   : > { %1767 = vst.msk [vmem:[%s2833_s30 + $0x40] sm:$0xf] %vm1750_vm1, %v2111_v57  ;;  %v1607_v14 = vadd.f32 %v2162_v48, %v1511_v13  ;;  %v1473_v59 = vadd.f32 %v1400_v25, %v919_v41  ;;  %v2173_v48 = vunpack.c.l.bf16 %v2201_v53 }
 0x188   : > { %v921_v63 = vpop.f32.mrf.mxu1  ;;  %v1403_v0 = vpop.f32.mrf.mxu0 }
 0x189   : > { %v2112_v4 = vpack.c.bf16 %v1607_v14, %v1607_v14  ;;  %v1512_v6 = vadd.f32 %v2826_v19, %v1473_v59  ;;  %v922_v61 = vadd.f32 %v921_v63, %v2765_v22  ;;  %v2174_v14 = vunpack.c.h.bf16 %v2201_v53  ;;  %v2202_v63 = vld [vmem:[%s2819_s25 + $0x60] sm:$0xff]  }
 0x18a   : > { %v923_v29 = vpop.f32.mrf.mxu1  ;;  %v1405_v5 = vpop.f32.mrf.mxu0 }
 0x18b   : > { %1768 = vst.msk [vmem:[%s2833_s30 + $0x44] sm:$0xf] %vm1750_vm1, %v2112_v4  ;;  %v1608_v18 = vadd.f32 %v2165_v60, %v1512_v6  ;;  %v1474_v45 = vadd.f32 %v1403_v0, %v922_v61 }
 0x18c   : > { %v926_v11 = vpop.f32.mrf.mxu1  ;;  %v1408_v12 = vpop.f32.mrf.mxu0 }
 0x18d   : > { %v2113_v15 = vpack.c.bf16 %v1608_v18, %v1608_v18  ;;  %v1513_v16 = vadd.f32 %v2826_v19, %v1474_v45  ;;  %v927_v2 = vadd.f32 %v926_v11, %v2769_v26  ;;  %v2177_v18 = vunpack.c.l.bf16 %v2202_v63 }
 0x18e   : > { %v928_v20 = vpop.f32.mrf.mxu1  ;;  %v1410_v23 = vpop.f32.mrf.mxu0 }
 0x18f   : > { %1769 = vst.msk [vmem:[%s2833_s30 + $0x48] sm:$0xf] %vm1750_vm1, %v2113_v15  ;;  %v1609_v22 = vadd.f32 %v2166_v7, %v1513_v16  ;;  %v1475_v33 = vadd.f32 %v1408_v12, %v927_v2  ;;  %v2178_v20 = vunpack.c.h.bf16 %v2202_v63 }
 0x190   : > { %v929_v24 = vpop.f32.mrf.mxu1  ;;  %v1411_v27 = vpop.f32.mrf.mxu0 }
 0x191   : > { %v2114_v28 = vpack.c.bf16 %v1609_v22, %v1609_v22  ;;  %v1514_v31 = vadd.f32 %v2826_v19, %v1475_v33  ;;  %v930_v32 = vadd.f32 %v929_v24, %v2773_v30  ;;  %v2203_v33 = vld [vmem:[%s2819_s25 + $0x68] sm:$0xff]  }
 0x192   : > { %v931_v35 = vpop.f32.mrf.mxu1  ;;  %v1413_v1 = vpop.f32.mrf.mxu0 }
 0x193   : > { %1770 = vst.msk [vmem:[%s2833_s30 + $0x4c] sm:$0xf] %vm1750_vm1, %v2114_v28  ;;  %v1610_v26 = vadd.f32 %v2169_v49, %v1514_v31  ;;  %v1476_v21 = vadd.f32 %v1411_v27, %v930_v32  ;;  %v2181_v35 = vunpack.c.l.bf16 %v2203_v33 }
 0x194   : > { %v934_v39 = vpop.f32.mrf.mxu1  ;;  %v1416_v40 = vpop.f32.mrf.mxu0 }
 0x195   : > { %v2115_v37 = vpack.c.bf16 %v1610_v26, %v1610_v26  ;;  %v1515_v9 = vadd.f32 %v2826_v19, %v1476_v21  ;;  %v935_v43 = vadd.f32 %v934_v39, %v2777_v34 }
 0x196   : > { %v936_v44 = vpop.f32.mrf.mxu1  ;;  %v1418_v10 = vpop.f32.mrf.mxu0 }
 0x197   : > { %1771 = vst.msk [vmem:[%s2833_s30 + $0x50] sm:$0xf] %vm1750_vm1, %v2115_v37  ;;  %v1611_v30 = vadd.f32 %v2170_v36, %v1515_v9  ;;  %v1477_v47 = vadd.f32 %v1416_v40, %v935_v43  ;;  %v2182_v9 = vunpack.c.h.bf16 %v2203_v33  ;;  %v2204_v10 = vld [vmem:[%s2819_s25 + $0x70] sm:$0xff]  }
 0x198   : > { %v937_v51 = vpop.f32.mrf.mxu1  ;;  %v1419_v25 = vpop.f32.mrf.mxu0  ;;  %v2186_v63 = vunpack.c.h.bf16 %v2204_v10 }
 0x199   : > { %v2116_v52 = vpack.c.bf16 %v1611_v30, %v1611_v30  ;;  %v1516_v57 = vadd.f32 %v2826_v19, %v1477_v47  ;;  %v938_v13 = vadd.f32 %v937_v51, %v2781_v38 }
 0x19a   : > { %v939_v41 = vpop.f32.mrf.mxu1  ;;  %v1421_v55 = vpop.f32.mrf.mxu0 }
 0x19b   : > { %1772 = vst.msk [vmem:[%s2833_s30 + $0x54] sm:$0xf] %vm1750_vm1, %v2116_v52  ;;  %v1612_v34 = vadd.f32 %v2173_v48, %v1516_v57  ;;  %v1478_v56 = vadd.f32 %v1419_v25, %v938_v13  ;;  %v2185_v57 = vunpack.c.l.bf16 %v2204_v10 }
 0x19c   : > { %v942_v59 = vpop.f32.mrf.mxu1  ;;  %v1424_v60 = vpop.f32.mrf.mxu0 }
 0x19d   : > { %v2117_v0 = vpack.c.bf16 %v1612_v34, %v1612_v34  ;;  %v1517_v4 = vadd.f32 %v2826_v19, %v1478_v56  ;;  %v943_v6 = vadd.f32 %v942_v59, %v2785_v42 }
 0x19e   : > { %v944_v61 = vpop.f32.mrf.mxu1  ;;  %v1426_v29 = vpop.f32.mrf.mxu0 }
 0x19f   : > { %1773 = vst.msk [vmem:[%s2833_s30 + $0x58] sm:$0xf] %vm1750_vm1, %v2117_v0  ;;  %v1613_v38 = vadd.f32 %v2174_v14, %v1517_v4  ;;  %v1479_v5 = vadd.f32 %v1424_v60, %v943_v6  ;;  %v2205_v6 = vld [vmem:[%s2819_s25 + $0x78] sm:$0xff]  }
 0x1a0   : > { %v945_v45 = vpop.f32.mrf.mxu1  ;;  %v1427_v7 = vpop.f32.mrf.mxu0 }
 0x1a1   : > { %v2118_v11 = vpack.c.bf16 %v1613_v38, %v1613_v38  ;;  %v1518_v12 = vadd.f32 %v2826_v19, %v1479_v5  ;;  %v946_v17 = vadd.f32 %v945_v45, %v2789_v46 }
 0x1a2   : > { %v947_v15 = vpop.f32.mrf.mxu1  ;;  %v1429_v16 = vpop.f32.mrf.mxu0 }
 0x1a3   : > { %1774 = vst.msk [vmem:[%s2833_s30 + $0x5c] sm:$0xf] %vm1750_vm1, %v2118_v11  ;;  %v1614_v42 = vadd.f32 %v2177_v18, %v1518_v12  ;;  %v1480_v2 = vadd.f32 %v1427_v7, %v946_v17  ;;  %v2189_v7 = vunpack.c.l.bf16 %v2205_v6 }
 0x1a4   : > { %v950_v23 = vpop.f32.mrf.mxu1  ;;  %v1432_v22 = vpop.f32.mrf.mxu0 }
 0x1a5   : > { %v2119_v49 = vpack.c.bf16 %v1614_v42, %v1614_v42  ;;  %v1519_v24 = vadd.f32 %v2826_v19, %v1480_v2  ;;  %v951_v27 = vadd.f32 %v950_v23, %v2793_v50  ;;  %v2190_v23 = vunpack.c.h.bf16 %v2205_v6 }
 0x1a6   : > { %v952_v28 = vpop.f32.mrf.mxu1  ;;  %v1434_v31 = vpop.f32.mrf.mxu0 }
 0x1a7   : > { %1775 = vst.msk [vmem:[%s2833_s30 + $0x60] sm:$0xf] %vm1750_vm1, %v2119_v49  ;;  %v1615_v46 = vadd.f32 %v2178_v20, %v1519_v24  ;;  %v1481_v32 = vadd.f32 %v1432_v22, %v951_v27 }
 0x1a8   : > { %v953_v1 = vpop.f32.mrf.mxu1  ;;  %v1435_v26 = vpop.f32.mrf.mxu0 }
 0x1a9   : > { %v2120_v21 = vpack.c.bf16 %v1615_v46, %v1615_v46  ;;  %v1520_v36 = vadd.f32 %v2826_v19, %v1481_v32  ;;  %v954_v39 = vadd.f32 %v953_v1, %v2797_v54 }
 0x1aa   : > { %v955_v40 = vpop.f32.mrf.mxu1  ;;  %v1437_v53 = vpop.f32.mrf.mxu0 }
 0x1ab   : > { %1776 = vst.msk [vmem:[%s2833_s30 + $0x64] sm:$0xf] %vm1750_vm1, %v2120_v21  ;;  %v1616_v50 = vadd.f32 %v2181_v35, %v1520_v36  ;;  %v1482_v37 = vadd.f32 %v1435_v26, %v954_v39 }
 0x1ac   : > { %v958_v43 = vpop.f32.mrf.mxu1  ;;  %v1440_v44 = vpop.f32.mrf.mxu0 }
 0x1ad   : > { %v2121_v30 = vpack.c.bf16 %v1616_v50, %v1616_v50  ;;  %v1521_v47 = vadd.f32 %v2826_v19, %v1482_v37  ;;  %v959_v48 = vadd.f32 %v958_v43, %v2801_v58 }
 0x1ae   : > { %v960_v51 = vpop.f32.mrf.mxu1  ;;  %v1442_v25 = vpop.f32.mrf.mxu0 }
 0x1af   : > { %1777 = vst.msk [vmem:[%s2833_s30 + $0x68] sm:$0xf] %vm1750_vm1, %v2121_v30  ;;  %v1617_v54 = vadd.f32 %v2182_v9, %v1521_v47  ;;  %v1483_v52 = vadd.f32 %v1440_v44, %v959_v48 }
 0x1b0   : > { %v961_v13 = vpop.f32.mrf.mxu1  ;;  %v1443_v41 = vpop.f32.mrf.mxu0 }
 0x1b1   : > { %v2122_v55 = vpack.c.bf16 %v1617_v54, %v1617_v54  ;;  %v1522_v34 = vadd.f32 %v2826_v19, %v1483_v52  ;;  %v962_v56 = vadd.f32 %v961_v13, %v2805_v62 }
 0x1b2   : > { %v963_v14 = vpop.f32.mrf.mxu1  ;;  %v1445_v59 = vpop.f32.mrf.mxu0 }
 0x1b3   : > { %1778 = vst.msk [vmem:[%s2833_s30 + $0x6c] sm:$0xf] %vm1750_vm1, %v2122_v55  ;;  %v1618_v58 = vadd.f32 %v2185_v57, %v1522_v34  ;;  %v1484_v60 = vadd.f32 %v1443_v41, %v962_v56 }
 0x1b4   : > { %v966_v0 = vpop.f32.mrf.mxu1  ;;  %v1448_v4 = vpop.f32.mrf.mxu0 }
 0x1b5   : > { %v2123_v61 = vpack.c.bf16 %v1618_v58, %v1618_v58  ;;  %v1523_v29 = vadd.f32 %v2826_v19, %v1484_v60  ;;  %v967_v38 = vadd.f32 %v966_v0, %v2809_v3 }
 0x1b6   : > { %v968_v5 = vpop.f32.mrf.mxu1  ;;  %v1450_v18 = vpop.f32.mrf.mxu0 }
 0x1b7   : > { %1779 = vst.msk [vmem:[%s2833_s30 + $0x70] sm:$0xf] %vm1750_vm1, %v2123_v61  ;;  %v1619_v62 = vadd.f32 %v2186_v63, %v1523_v29  ;;  %v1485_v45 = vadd.f32 %v1448_v4, %v967_v38 }
 0x1b8   : > { %v969_v11 = vpop.f32.mrf.mxu1  ;;  %v1451_v12 = vpop.f32.mrf.mxu0 }
 0x1b9   : > { %v2124_v17 = vpack.c.bf16 %v1619_v62, %v1619_v62  ;;  %v1524_v15 = vadd.f32 %v2826_v19, %v1485_v45  ;;  %v970_v16 = vadd.f32 %v969_v11, %v2814_v8 }
 0x1ba   : > { %v971_v42 = vpop.f32.mrf.mxu1  ;;  %v1453_v2 = vpop.f32.mrf.mxu0 }
 0x1bb   : > { %1780 = vst.msk [vmem:[%s2833_s30 + $0x74] sm:$0xf] %vm1750_vm1, %v2124_v17  ;;  %v1620_v3 = vadd.f32 %v2189_v7, %v1524_v15  ;;  %v1486_v20 = vadd.f32 %v1451_v12, %v970_v16 }
 0x1bd   : > { %v2125_v22 = vpack.c.bf16 %v1620_v3, %v1620_v3  ;;  %v1525_v33 = vadd.f32 %v2826_v19, %v1486_v20 }
 0x1bf   : > { %1781 = vst.msk [vmem:[%s2833_s30 + $0x78] sm:$0xf] %vm1750_vm1, %v2125_v22  ;;  %v1621_v49 = vadd.f32 %v2190_v23, %v1525_v33 }
 0x1c1   : > { %v2126_v24 = vpack.c.bf16 %v1621_v49, %v1621_v49 }
 0x1c3   : > { %1782 = vst.msk [vmem:[%s2833_s30 + $0x7c] sm:$0xf] %vm1750_vm1, %v2126_v24 }
 0x1c4 PF: > { %s14_s15 = sadd.s32 1, %s2336_s15  }
 0x1c5   : > { %p11_p4 = scmp.ge.s32.totalorder %s14_s15, 4  }
 0x1c7   :  { %13 = sbr.rel (!%p11_p4) target bundleno = 1 (0x1), region = 71 }

// kernel: autoencoder_kl_forward.48
= control target key start
LH: loop header
LB: loop body
LE: loop exit
PB: predicated region body
PF: predicated region fallthrough
CT: control target
= control target key end

     0   :  { %s3827_s18 = smov 0   ;;  %s3829_s19 = smov 0   ;;  %s5055_s0 = inlined_call_operand.vmem [shape: bf16[2,256,192], index: 0, kind: input, shape index: {}, may-alias: {0,1}]   ;;  %s5056_s1 = inlined_call_operand.vmem [shape: bf16[2,256,192], index: 1, kind: input, shape index: {}, may-alias: {0,1}]   ;;  %s5057_s2 = inlined_call_operand.vmem [shape: bf16[64,64], index: 2, kind: input, shape index: {}]   ;;  %s5058_s3 = inlined_call_operand.vmem [shape: f32[1,64], index: 3, kind: input, shape index: {}]   ;;  %s5059_s4 = inlined_call_operand.vmem [shape: bf16[2,256,64], index: 4, kind: input, shape index: {}]   ;;  %s5060_s5 = inlined_call_operand.vmem [shape: bf16[2,256,64], index: 5, kind: output, shape index: {}]  }
   0x1   :  { %s3831_s20 = smov 0   ;;  %s3833_s21 = smov 0  }
   0x2   :  { %s3835_s22 = smov 0  }
   0x3 LB: > { %s27_s23 = sadd.s32 1, %s3782_s20  ;;  %s34_s24 = sadd.s32 1, %s3786_s21  ;;  %s3790_s22 = sphi %s3835_s22, %s15_s22   ;;  %s3786_s21 = sphi %s3833_s21, %s5187_s21   ;;  %s3782_s20 = sphi %s3831_s20, %s5186_s20   ;;  %s3778_s19 = sphi %s3829_s19, %s5185_s19   ;;  %s3774_s18 = sphi %s3827_s18, %s5184_s18  }
   0x4   : > { %p28_p0 = scmp.ge.s32.totalorder %s27_s23, 2  ;;  %p3024_p1 = scmp.ge.s32.totalorder %s3790_s22, 1 }
   0x5   : > { %p251_p2 = scmp.lt.s32.totalorder %s3790_s22, 5 }
   0x6   : > { %s5189_s23 = smov (%p28_p0, %s27_s23), 0  ;;  %s5191_s24 = smov (!%p28_p0, %s34_s24), %s3786_s21 }
   0x7   : > { %p252_p3 = pnand %p3024_p1, %p251_p2  ;;  %p36_p4 = scmp.ge.s32.totalorder %s5191_s24, 2 }
   0x9   : > { %s5193_s24 = smov (%p36_p4, %s5191_s24), 0  ;;  %255 = sbr.rel (%p252_p3) target bundleno = 1425 (0x591), region = 40 }
   0xe   : > { %p308_p5 = scmp.lt.s32.totalorder %s3778_s19, 1  ;;  %s3027_s25 = sshll.u32 %s3774_s18, 4 }
   0xf   : > { %p321_p6 = scmp.lt.s32.totalorder %s3027_s25, 31  ;;  %p3035_p7 = scmp.ne.s32.totalorder %s3774_s18, 0 }
  0x10   : > { %s5195_s19 = smov (!%p308_p5, %s3778_s19), 1 }
  0x11   : > { %s5197_s25 = smov (!%p321_p6, %s3027_s25), 31  ;;  %s3140_s26 = sshll.u32 %s5195_s19, 8 }
  0x12   : > { %s3029_s27 = sshll.u32 %s5195_s19, 6  ;;  %s3863_s30 = scalar_lea.vmem %s5055_s0, %s3140_s26 }
  0x13   : > { %s3028_s6 = sshll.u32 %s5197_s25, 1  ;;  %s3141_s8 = sshll.u32 %s5195_s19, 7 }
  0x14   : > { %s325_s7 = sadd.s32 %s3029_s27, %s3028_s6  ;;  %s3868_s12 = scalar_lea.vmem %s5059_s4, %s3141_s8 }
  0x15   : > { %s3030_s9 = sshll.u32 %s325_s7, 2  ;;  %s3878_s28 = scalar_lea.vmem %s5060_s5, %s3141_s8 }
  0x16   : > { %s3873_s15 = scalar_lea.vmem %s5056_s1, %s3030_s9  ;;  %353 = sbr.rel (%p3035_p7) target bundleno = 76 (0x4c), region = 44 }
  0x1b   : > { %vm354_vm0 = vcmask 7168   ;;  %vm419_vm1 = vcmask 523264   ;;  %v3792_v0 = vmov -inf   ;;  %v3793_v1 = vmov 0.0  }
  0x1c   : > { %355 = vst.msk [vmem:[#allocation2] sm:$0xff] %vm354_vm0, %v3792_v0  ;;  %356 = vst.msk [vmem:[#allocation2 + $0x8] sm:$0xff] %vm354_vm0, %v3792_v0 }
  0x1d   : > { %357 = vst.msk [vmem:[#allocation2 + $0x10] sm:$0xff] %vm354_vm0, %v3792_v0  ;;  %358 = vst.msk [vmem:[#allocation2 + $0x18] sm:$0xff] %vm354_vm0, %v3792_v0 }
  0x1e   : > { %359 = vst.msk [vmem:[#allocation2 + $0x20] sm:$0xff] %vm354_vm0, %v3792_v0  ;;  %360 = vst.msk [vmem:[#allocation2 + $0x28] sm:$0xff] %vm354_vm0, %v3792_v0 }
  0x1f   : > { %361 = vst.msk [vmem:[#allocation2 + $0x30] sm:$0xff] %vm354_vm0, %v3792_v0  ;;  %362 = vst.msk [vmem:[#allocation2 + $0x38] sm:$0xff] %vm354_vm0, %v3792_v0 }
  0x20   : > { %363 = vst.msk [vmem:[#allocation2 + $0x40] sm:$0xff] %vm354_vm0, %v3792_v0  ;;  %364 = vst.msk [vmem:[#allocation2 + $0x48] sm:$0xff] %vm354_vm0, %v3792_v0 }
  0x21   : > { %365 = vst.msk [vmem:[#allocation2 + $0x50] sm:$0xff] %vm354_vm0, %v3792_v0  ;;  %366 = vst.msk [vmem:[#allocation2 + $0x58] sm:$0xff] %vm354_vm0, %v3792_v0 }
  0x22   : > { %367 = vst.msk [vmem:[#allocation2 + $0x60] sm:$0xff] %vm354_vm0, %v3792_v0  ;;  %368 = vst.msk [vmem:[#allocation2 + $0x68] sm:$0xff] %vm354_vm0, %v3792_v0 }
  0x23   : > { %369 = vst.msk [vmem:[#allocation2 + $0x70] sm:$0xff] %vm354_vm0, %v3792_v0  ;;  %370 = vst.msk [vmem:[#allocation2 + $0x78] sm:$0xff] %vm354_vm0, %v3792_v0 }
  0x24   : > { %371 = vst.msk [vmem:[#allocation2 + $0x80] sm:$0xff] %vm354_vm0, %v3792_v0  ;;  %372 = vst.msk [vmem:[#allocation2 + $0x88] sm:$0xff] %vm354_vm0, %v3792_v0 }
  0x25   : > { %373 = vst.msk [vmem:[#allocation2 + $0x90] sm:$0xff] %vm354_vm0, %v3792_v0  ;;  %374 = vst.msk [vmem:[#allocation2 + $0x98] sm:$0xff] %vm354_vm0, %v3792_v0 }
  0x26   : > { %375 = vst.msk [vmem:[#allocation2 + $0xa0] sm:$0xff] %vm354_vm0, %v3792_v0  ;;  %376 = vst.msk [vmem:[#allocation2 + $0xa8] sm:$0xff] %vm354_vm0, %v3792_v0 }
  0x27   : > { %377 = vst.msk [vmem:[#allocation2 + $0xb0] sm:$0xff] %vm354_vm0, %v3792_v0  ;;  %378 = vst.msk [vmem:[#allocation2 + $0xb8] sm:$0xff] %vm354_vm0, %v3792_v0 }
  0x28   : > { %379 = vst.msk [vmem:[#allocation2 + $0xc0] sm:$0xff] %vm354_vm0, %v3792_v0  ;;  %380 = vst.msk [vmem:[#allocation2 + $0xc8] sm:$0xff] %vm354_vm0, %v3792_v0 }
  0x29   : > { %381 = vst.msk [vmem:[#allocation2 + $0xd0] sm:$0xff] %vm354_vm0, %v3792_v0  ;;  %382 = vst.msk [vmem:[#allocation2 + $0xd8] sm:$0xff] %vm354_vm0, %v3792_v0 }
  0x2a   : > { %383 = vst.msk [vmem:[#allocation2 + $0xe0] sm:$0xff] %vm354_vm0, %v3792_v0  ;;  %384 = vst.msk [vmem:[#allocation2 + $0xe8] sm:$0xff] %vm354_vm0, %v3792_v0 }
  0x2b   : > { %385 = vst.msk [vmem:[#allocation2 + $0xf0] sm:$0xff] %vm354_vm0, %v3792_v0  ;;  %386 = vst.msk [vmem:[#allocation2 + $0xf8] sm:$0xff] %vm354_vm0, %v3792_v0 }
  0x2c   : > { %387 = vst.msk [vmem:[#allocation3] sm:$0xff] %vm354_vm0, %v3793_v1  ;;  %388 = vst.msk [vmem:[#allocation3 + $0x8] sm:$0xff] %vm354_vm0, %v3793_v1 }
  0x2d   : > { %389 = vst.msk [vmem:[#allocation3 + $0x10] sm:$0xff] %vm354_vm0, %v3793_v1  ;;  %390 = vst.msk [vmem:[#allocation3 + $0x18] sm:$0xff] %vm354_vm0, %v3793_v1 }
  0x2e   : > { %391 = vst.msk [vmem:[#allocation3 + $0x20] sm:$0xff] %vm354_vm0, %v3793_v1  ;;  %392 = vst.msk [vmem:[#allocation3 + $0x28] sm:$0xff] %vm354_vm0, %v3793_v1 }
  0x2f   : > { %393 = vst.msk [vmem:[#allocation3 + $0x30] sm:$0xff] %vm354_vm0, %v3793_v1  ;;  %394 = vst.msk [vmem:[#allocation3 + $0x38] sm:$0xff] %vm354_vm0, %v3793_v1 }
  0x30   : > { %395 = vst.msk [vmem:[#allocation3 + $0x40] sm:$0xff] %vm354_vm0, %v3793_v1  ;;  %396 = vst.msk [vmem:[#allocation3 + $0x48] sm:$0xff] %vm354_vm0, %v3793_v1 }
  0x31   : > { %397 = vst.msk [vmem:[#allocation3 + $0x50] sm:$0xff] %vm354_vm0, %v3793_v1  ;;  %398 = vst.msk [vmem:[#allocation3 + $0x58] sm:$0xff] %vm354_vm0, %v3793_v1 }
  0x32   : > { %399 = vst.msk [vmem:[#allocation3 + $0x60] sm:$0xff] %vm354_vm0, %v3793_v1  ;;  %400 = vst.msk [vmem:[#allocation3 + $0x68] sm:$0xff] %vm354_vm0, %v3793_v1 }
  0x33   : > { %401 = vst.msk [vmem:[#allocation3 + $0x70] sm:$0xff] %vm354_vm0, %v3793_v1  ;;  %402 = vst.msk [vmem:[#allocation3 + $0x78] sm:$0xff] %vm354_vm0, %v3793_v1 }
  0x34   : > { %403 = vst.msk [vmem:[#allocation3 + $0x80] sm:$0xff] %vm354_vm0, %v3793_v1  ;;  %404 = vst.msk [vmem:[#allocation3 + $0x88] sm:$0xff] %vm354_vm0, %v3793_v1 }
  0x35   : > { %405 = vst.msk [vmem:[#allocation3 + $0x90] sm:$0xff] %vm354_vm0, %v3793_v1  ;;  %406 = vst.msk [vmem:[#allocation3 + $0x98] sm:$0xff] %vm354_vm0, %v3793_v1 }
  0x36   : > { %407 = vst.msk [vmem:[#allocation3 + $0xa0] sm:$0xff] %vm354_vm0, %v3793_v1  ;;  %408 = vst.msk [vmem:[#allocation3 + $0xa8] sm:$0xff] %vm354_vm0, %v3793_v1 }
  0x37   : > { %409 = vst.msk [vmem:[#allocation3 + $0xb0] sm:$0xff] %vm354_vm0, %v3793_v1  ;;  %410 = vst.msk [vmem:[#allocation3 + $0xb8] sm:$0xff] %vm354_vm0, %v3793_v1 }
  0x38   : > { %411 = vst.msk [vmem:[#allocation3 + $0xc0] sm:$0xff] %vm354_vm0, %v3793_v1  ;;  %412 = vst.msk [vmem:[#allocation3 + $0xc8] sm:$0xff] %vm354_vm0, %v3793_v1 }
  0x39   : > { %413 = vst.msk [vmem:[#allocation3 + $0xd0] sm:$0xff] %vm354_vm0, %v3793_v1  ;;  %414 = vst.msk [vmem:[#allocation3 + $0xd8] sm:$0xff] %vm354_vm0, %v3793_v1 }
  0x3a   : > { %415 = vst.msk [vmem:[#allocation3 + $0xe0] sm:$0xff] %vm354_vm0, %v3793_v1  ;;  %416 = vst.msk [vmem:[#allocation3 + $0xe8] sm:$0xff] %vm354_vm0, %v3793_v1 }
  0x3b   : > { %417 = vst.msk [vmem:[#allocation3 + $0xf0] sm:$0xff] %vm354_vm0, %v3793_v1  ;;  %418 = vst.msk [vmem:[#allocation3 + $0xf8] sm:$0xff] %vm354_vm0, %v3793_v1 }
  0x3c   : > { %420 = vst.msk [vmem:[#allocation4] sm:$0xff] %vm419_vm1, %v3793_v1  ;;  %421 = vst.msk [vmem:[#allocation4 + $0x8] sm:$0xff] %vm419_vm1, %v3793_v1 }
  0x3d   : > { %422 = vst.msk [vmem:[#allocation4 + $0x10] sm:$0xff] %vm419_vm1, %v3793_v1  ;;  %423 = vst.msk [vmem:[#allocation4 + $0x18] sm:$0xff] %vm419_vm1, %v3793_v1 }
  0x3e   : > { %424 = vst.msk [vmem:[#allocation4 + $0x20] sm:$0xff] %vm419_vm1, %v3793_v1  ;;  %425 = vst.msk [vmem:[#allocation4 + $0x28] sm:$0xff] %vm419_vm1, %v3793_v1 }
  0x3f   : > { %426 = vst.msk [vmem:[#allocation4 + $0x30] sm:$0xff] %vm419_vm1, %v3793_v1  ;;  %427 = vst.msk [vmem:[#allocation4 + $0x38] sm:$0xff] %vm419_vm1, %v3793_v1 }
  0x40   : > { %428 = vst.msk [vmem:[#allocation4 + $0x40] sm:$0xff] %vm419_vm1, %v3793_v1  ;;  %429 = vst.msk [vmem:[#allocation4 + $0x48] sm:$0xff] %vm419_vm1, %v3793_v1 }
  0x41   : > { %430 = vst.msk [vmem:[#allocation4 + $0x50] sm:$0xff] %vm419_vm1, %v3793_v1  ;;  %431 = vst.msk [vmem:[#allocation4 + $0x58] sm:$0xff] %vm419_vm1, %v3793_v1 }
  0x42   : > { %432 = vst.msk [vmem:[#allocation4 + $0x60] sm:$0xff] %vm419_vm1, %v3793_v1  ;;  %433 = vst.msk [vmem:[#allocation4 + $0x68] sm:$0xff] %vm419_vm1, %v3793_v1 }
  0x43   : > { %434 = vst.msk [vmem:[#allocation4 + $0x70] sm:$0xff] %vm419_vm1, %v3793_v1  ;;  %435 = vst.msk [vmem:[#allocation4 + $0x78] sm:$0xff] %vm419_vm1, %v3793_v1 }
  0x44   : > { %436 = vst.msk [vmem:[#allocation4 + $0x80] sm:$0xff] %vm419_vm1, %v3793_v1  ;;  %437 = vst.msk [vmem:[#allocation4 + $0x88] sm:$0xff] %vm419_vm1, %v3793_v1 }
  0x45   : > { %438 = vst.msk [vmem:[#allocation4 + $0x90] sm:$0xff] %vm419_vm1, %v3793_v1  ;;  %439 = vst.msk [vmem:[#allocation4 + $0x98] sm:$0xff] %vm419_vm1, %v3793_v1 }
  0x46   : > { %440 = vst.msk [vmem:[#allocation4 + $0xa0] sm:$0xff] %vm419_vm1, %v3793_v1  ;;  %441 = vst.msk [vmem:[#allocation4 + $0xa8] sm:$0xff] %vm419_vm1, %v3793_v1 }
  0x47   : > { %442 = vst.msk [vmem:[#allocation4 + $0xb0] sm:$0xff] %vm419_vm1, %v3793_v1  ;;  %443 = vst.msk [vmem:[#allocation4 + $0xb8] sm:$0xff] %vm419_vm1, %v3793_v1 }
  0x48   : > { %444 = vst.msk [vmem:[#allocation4 + $0xc0] sm:$0xff] %vm419_vm1, %v3793_v1  ;;  %445 = vst.msk [vmem:[#allocation4 + $0xc8] sm:$0xff] %vm419_vm1, %v3793_v1 }
  0x49   : > { %446 = vst.msk [vmem:[#allocation4 + $0xd0] sm:$0xff] %vm419_vm1, %v3793_v1  ;;  %447 = vst.msk [vmem:[#allocation4 + $0xd8] sm:$0xff] %vm419_vm1, %v3793_v1 }
  0x4a   : > { %448 = vst.msk [vmem:[#allocation4 + $0xe0] sm:$0xff] %vm419_vm1, %v3793_v1  ;;  %449 = vst.msk [vmem:[#allocation4 + $0xe8] sm:$0xff] %vm419_vm1, %v3793_v1 }
  0x4b   : > { %450 = vst.msk [vmem:[#allocation4 + $0xf0] sm:$0xff] %vm419_vm1, %v3793_v1  ;;  %451 = vst.msk [vmem:[#allocation4 + $0xf8] sm:$0xff] %vm419_vm1, %v3793_v1 }
  0x4c PF: > { %v3521_v2 = vld [vmem:[%s3873_s15 + $0x70] ss:$8 sps:$4 sm:$0xff]   ;;  %v3523_v3 = vld [vmem:[%s3873_s15 + $0x60] ss:$8 sps:$4 sm:$0xff]   ;;  %s3794_s19 = smov 64   ;;  %vm636_vm2 = vcmask 523264  }
  0x4d   : > { %634 = vrot.lane.b32.xlu0 %v3521_v2, %s3794_s19  ;;  %v3525_v4 = vld [vmem:[%s3873_s15 + $0x50] ss:$8 sps:$4 sm:$0xff]   ;;  %v3528_v5 = vld [vmem:[%s3873_s15 + $0x40] ss:$8 sps:$4 sm:$0xff]   ;;  %v3795_v51 = vmov 0   ;;  %vm1510_vm3 = vcmask 7168  }
  0x4e   : > { %630 = vrot.lane.b32.xlu1 %v3525_v4, %s3794_s19  ;;  %v3530_v6 = vld [vmem:[%s3873_s15 + $0x30] ss:$8 sps:$4 sm:$0xff]   ;;  %v3532_v7 = vld [vmem:[%s3873_s15 + $0x20] ss:$8 sps:$4 sm:$0xff]   ;;  %3520 = vset.pattern.permute.xlu0 %v3795_v51  ;;  %p3084_p8 = scmp.ne.s32.totalorder %s3774_s18, 1 }
  0x4f   : > { %v3534_v8 = vld [vmem:[%s3873_s15 + $0x10] ss:$8 sps:$4 sm:$0xff]   ;;  %v3536_v9 = vld [vmem:[%s3873_s15] ss:$8 sps:$4 sm:$0xff]   ;;  %3519 = vset.pattern.permute.xlu1 %v3795_v51 }
  0x50   : > { %v3538_v10 = vld [vmem:[%s3863_s30] ss:$8 sps:$4 sm:$0xff]   ;;  %v3539_v27 = vld [vmem:[%s3863_s30 + $0x10] ss:$8 sps:$4 sm:$0xff]  }
  0x51   : > { %632 = vrot.lane.b32.xlu0 %v3523_v3, %s3794_s19  ;;  %3338 = vmatprep.mubr.msk.bf16.mxu0 %vm636_vm2, %v3538_v10  ;;  %v3540_v28 = vld [vmem:[%s3863_s30 + $0x20] ss:$8 sps:$4 sm:$0xff]   ;;  %v3541_v29 = vld [vmem:[%s3863_s30 + $0x30] ss:$8 sps:$4 sm:$0xff]  }
  0x52   : > { %628 = vrot.lane.b32.xlu1 %v3528_v5, %s3794_s19  ;;  %v3542_v30 = vld [vmem:[%s3863_s30 + $0x40] ss:$8 sps:$4 sm:$0xff]   ;;  %v3543_v31 = vld [vmem:[%s3863_s30 + $0x50] ss:$8 sps:$4 sm:$0xff]  }
  0x53   : > { %v3544_v32 = vld [vmem:[%s3863_s30 + $0x60] ss:$8 sps:$4 sm:$0xff]   ;;  %v3545_v33 = vld [vmem:[%s3863_s30 + $0x70] ss:$8 sps:$4 sm:$0xff]  }
  0x54   : > { %v3546_v34 = vld [vmem:[%s3863_s30 + $0x80] ss:$8 sps:$4 sm:$0xff]   ;;  %v3547_v35 = vld [vmem:[%s3863_s30 + $0x90] ss:$8 sps:$4 sm:$0xff]  }
  0x55   : > { %626 = vrot.lane.b32.xlu0 %v3530_v6, %s3794_s19  ;;  %v3548_v36 = vld [vmem:[%s3863_s30 + $0xa0] ss:$8 sps:$4 sm:$0xff]   ;;  %v3549_v37 = vld [vmem:[%s3863_s30 + $0xb0] ss:$8 sps:$4 sm:$0xff]  }
  0x56   : > { %624 = vrot.lane.b32.xlu1 %v3532_v7, %s3794_s19  ;;  %v3550_v38 = vld [vmem:[%s3863_s30 + $0xc0] ss:$8 sps:$4 sm:$0xff]   ;;  %v3551_v39 = vld [vmem:[%s3863_s30 + $0xd0] ss:$8 sps:$4 sm:$0xff]  }
  0x57   : > { %v3552_v40 = vld [vmem:[%s3863_s30 + $0xe0] ss:$8 sps:$4 sm:$0xff]   ;;  %v3553_v41 = vld [vmem:[%s3863_s30 + $0xf0] ss:$8 sps:$4 sm:$0xff]  }
  0x58   : > { %v4244_v51 = vld [vmem:[#allocation2 + $0x20] sm:$0xff] }
  0x59   : > { %622 = vrot.lane.b32.xlu0 %v3534_v8, %s3794_s19 }
  0x5a   : > { %620 = vrot.lane.b32.xlu1 %v3536_v9, %s3794_s19 }
  0xbf   : > { %v635_v11 = vpop.permute.xlu0 %634 }
  0xc0   : > { %3466 = vmatprep.subr.msk.bf16.mxu0 %vm636_vm2, %v635_v11  ;;  %v707_v12 = vsel %vm636_vm2, %v635_v11, 0  ;;  %v631_v15 = vpop.permute.xlu1 %630  ;;  %v498_v11 = vld [vmem:[%s3873_s15 + $0x70] sm:$0xff] }
  0xc1   : > { %3323 = vmatpush3.bf16.xpose.msra.mxu0 %v707_v12  ;;  %v701_v16 = vsel %vm636_vm2, %v631_v15, 0  ;;  %v499_v12 = vld [vmem:[%s3873_s15 + $0x78] sm:$0xff] }
  0xc3   : > { %v633_v13 = vpop.permute.xlu0 %632 }
  0xc4   : > { %3467 = vmatprep.subr.msk.bf16.mxu0 %vm636_vm2, %v633_v13  ;;  %v704_v14 = vsel %vm636_vm2, %v633_v13, 0  ;;  %v629_v17 = vpop.permute.xlu1 %628  ;;  %v3083_v13 = vcombine.high %v498_v11, %v499_v12 }
  0xc5   : > { %v698_v18 = vsel %vm636_vm2, %v629_v17, 0 }
  0xc6   : > { %3370 = vmatprep.subr.bf16.mxu1 %v3083_v13 }
  0xc7   : > { %v627_v19 = vpop.permute.xlu0 %626  ;;  %3371 = vmatpush3.bf16.msra.mxu1 %v3083_v13  ;;  %v4251_v13 = vld [vmem:[#allocation2 + $0x28] sm:$0xff] }
  0xc8   : > { %v695_v20 = vsel %vm636_vm2, %v627_v19, 0  ;;  %v625_v21 = vpop.permute.xlu1 %624 }
  0xc9   : > { %3325 = vmatpush3.bf16.xpose.msra.mxu0 %v704_v14  ;;  %v692_v22 = vsel %vm636_vm2, %v625_v21, 0  ;;  %v496_v14 = vld [vmem:[%s3873_s15 + $0x60] sm:$0xff] }
  0xca   : > { %3468 = vmatprep.subr.msk.bf16.mxu0 %vm636_vm2, %v631_v15  ;;  %v497_v15 = vld [vmem:[%s3873_s15 + $0x68] sm:$0xff] }
  0xcb   : > { %v623_v23 = vpop.permute.xlu0 %622 }
  0xcc   : > { %v689_v24 = vsel %vm636_vm2, %v623_v23, 0  ;;  %v621_v25 = vpop.permute.xlu1 %620 }
  0xcd   : > { %v686_v26 = vsel %vm636_vm2, %v621_v25, 0 }
  0xd1   : > { %3327 = vmatpush3.bf16.xpose.msra.mxu0 %v701_v16  ;;  %v4197_v16 = vld [vmem:[#allocation2 + $0x10] sm:$0xff] }
  0xd2   : > { %3469 = vmatprep.subr.msk.bf16.mxu0 %vm636_vm2, %v629_v17 }
  0xd9   : > { %3329 = vmatpush3.bf16.xpose.msra.mxu0 %v698_v18  ;;  %v3527_v18 = vld [vmem:[%s3873_s15 + $0x54] ss:$8 sps:$4 sm:$0xff]  }
  0xda   : > { %3470 = vmatprep.subr.msk.bf16.mxu0 %vm636_vm2, %v627_v19 }
  0xe1   : > { %3331 = vmatpush3.bf16.xpose.msra.mxu0 %v695_v20  ;;  %v3082_v20 = vcombine.high %v496_v14, %v497_v15  ;;  %v488_v15 = vld [vmem:[%s3873_s15 + $0x20] sm:$0xff] }
  0xe2   : > { %3471 = vmatprep.subr.msk.bf16.mxu0 %vm636_vm2, %v625_v21  ;;  %v4203_v21 = vld [vmem:[#allocation2] sm:$0xff] }
  0xe3   : > { %3372 = vmatprep.subr.bf16.mxu1 %v3082_v20 }
  0xe4   : > { %3373 = vmatpush3.bf16.msra.mxu1 %v3082_v20 }
  0xe5   : > { %3374 = vmatprep.subr.bf16.mxu1 %v3527_v18 }
  0xe8   : > { %3375 = vmatpush3.bf16.msra.mxu1 %v3527_v18  ;;  %v485_v18 = vld [vmem:[%s3873_s15 + $0x8] sm:$0xff] }
  0xe9   : > { %3333 = vmatpush3.bf16.xpose.msra.mxu0 %v692_v22 }
  0xea   : > { %3472 = vmatprep.subr.msk.bf16.mxu0 %vm636_vm2, %v623_v23 }
  0xf1   : > { %3335 = vmatpush3.bf16.xpose.msra.mxu0 %v689_v24  ;;  %v4209_v24 = vld [vmem:[#allocation2 + $0x8] sm:$0xff] }
  0xf2   : > { %3473 = vmatprep.subr.msk.bf16.mxu0 %vm636_vm2, %v621_v25 }
  0xf9   : > { %3337 = vmatpush3.bf16.xpose.msra.mxu0 %v686_v26  ;;  %v492_v26 = vld [vmem:[%s3873_s15 + $0x40] sm:$0xff] }
 0x100   : > { %3339 = vmatmul.mubr.msk.bf16.vlgmr.msra.gmra.mxu0 %vm636_vm2, %v3539_v27  ;;  %v493_v27 = vld [vmem:[%s3873_s15 + $0x48] sm:$0xff] }
 0x101   : > { %3342 = vmatprep.mubr.msk.bf16.mxu0 %vm636_vm2, %v3540_v28 }
 0x108   : > { %3343 = vmatmul.mubr.msk.bf16.gmra.mxu0 %vm636_vm2, %v3541_v29  ;;  %v4216_v29 = vld [vmem:[#allocation2 + $0x18] sm:$0xff] }
 0x109   : > { %3346 = vmatprep.mubr.msk.bf16.mxu0 %vm636_vm2, %v3542_v30 }
 0x110   : > { %3347 = vmatmul.mubr.msk.bf16.gmra.mxu0 %vm636_vm2, %v3543_v31 }
 0x111   : > { %3350 = vmatprep.mubr.msk.bf16.mxu0 %vm636_vm2, %v3544_v32  ;;  %v4224_v32 = vld [vmem:[#allocation2 + $0x30] sm:$0xff] }
 0x118   : > { %3351 = vmatmul.mubr.msk.bf16.gmra.mxu0 %vm636_vm2, %v3545_v33 }
 0x119   : > { %3354 = vmatprep.mubr.msk.bf16.mxu0 %vm636_vm2, %v3546_v34  ;;  %v3080_v34 = vcombine.high %v492_v26, %v493_v27  ;;  %v4263_v26 = vld [vmem:[#allocation2 + $0x50] sm:$0xff] }
 0x11b   : > { %3376 = vmatprep.subr.bf16.mxu1 %v3080_v34 }
 0x11c   : > { %3377 = vmatpush3.bf16.msra.mxu1 %v3080_v34 }
 0x120   : > { %3355 = vmatmul.mubr.msk.bf16.gmra.mxu0 %vm636_vm2, %v3547_v35 }
 0x121   : > { %3358 = vmatprep.mubr.msk.bf16.mxu0 %vm636_vm2, %v3548_v36  ;;  %v4232_v36 = vld [vmem:[#allocation2 + $0x38] sm:$0xff] }
 0x128   : > { %3359 = vmatmul.mubr.msk.bf16.gmra.mxu0 %vm636_vm2, %v3549_v37  ;;  %v490_v37 = vld [vmem:[%s3873_s15 + $0x30] sm:$0xff] }
 0x129   : > { %3362 = vmatprep.mubr.msk.bf16.mxu0 %vm636_vm2, %v3550_v38  ;;  %v491_v38 = vld [vmem:[%s3873_s15 + $0x38] sm:$0xff] }
 0x12a   : > { %v3079_v14 = vcombine.high %v490_v37, %v491_v38  ;;  %v487_v37 = vld [vmem:[%s3873_s15 + $0x18] sm:$0xff] }
 0x12c   : > { %3378 = vmatprep.subr.bf16.mxu1 %v3079_v14 }
 0x12d   : > { %3379 = vmatpush3.bf16.msra.mxu1 %v3079_v14 }
 0x130   : > { %3363 = vmatmul.mubr.msk.bf16.gmra.mxu0 %vm636_vm2, %v3551_v39 }
 0x131   : > { %3366 = vmatprep.mubr.msk.bf16.mxu0 %vm636_vm2, %v3552_v40 }
 0x138   : > { %3367 = vmatmul.mubr.msk.bf16.gmra.mxu0 %vm636_vm2, %v3553_v41 }
 0x1c0   : > { %v4097_v42 = vpop.f32.mrf.mxu0 }
 0x1c1   : > { %5093 = vst [vmem:[#allocation5_spill] sm:$0xff] %v4097_v42  ;;  %906 = vmax.xlane.f32.xlu0 %v4097_v42 }
 0x1c2   : > { %v4100_v43 = vpop.f32.mrf.mxu0 }
 0x1c3   : > { %5094 = vst [vmem:[#allocation6_spill] sm:$0xff] %v4100_v43 }
 0x1c4   : > { %v4102_v44 = vpop.f32.mrf.mxu0 }
 0x1c5   : > { %5095 = vst [vmem:[#allocation7_spill] sm:$0xff] %v4102_v44  ;;  %902 = vmax.xlane.f32.xlu0 %v4100_v43 }
 0x1c6   : > { %v4105_v45 = vpop.f32.mrf.mxu0 }
 0x1c7   : > { %5096 = vst [vmem:[#allocation8_spill] sm:$0xff] %v4105_v45  ;;  %904 = vmax.xlane.f32.xlu1 %v4105_v45 }
 0x1c8   : > { %v4108_v46 = vpop.f32.mrf.mxu0 }
 0x1c9   : > { %5097 = vst [vmem:[#allocation9_spill] sm:$0xff] %v4108_v46  ;;  %908 = vmax.xlane.f32.xlu0 %v4102_v44 }
 0x1ca   : > { %v4111_v47 = vpop.f32.mrf.mxu0 }
 0x1cb   : > { %5098 = vst [vmem:[#allocation10_spill] sm:$0xff] %v4111_v47  ;;  %914 = vmax.xlane.f32.xlu1 %v4108_v46 }
 0x1cc   : > { %v4114_v48 = vpop.f32.mrf.mxu0 }
 0x1cd   : > { %5099 = vst [vmem:[#allocation11_spill] sm:$0xff] %v4114_v48  ;;  %916 = vmax.xlane.f32.xlu0 %v4114_v48 }
 0x1ce   : > { %v4117_v49 = vpop.f32.mrf.mxu0 }
 0x1cf   : > { %5100 = vst [vmem:[#allocation12_spill] sm:$0xff] %v4117_v49  ;;  %910 = vmax.xlane.f32.xlu1 %v4111_v47 }
 0x1d0   : > { %v4120_v50 = vpop.f32.mrf.mxu0 }
 0x1d1   : > { %5101 = vst [vmem:[#allocation13_spill] sm:$0xff] %v4120_v50  ;;  %912 = vmax.xlane.f32.xlu0 %v4117_v49 }
 0x1d2   : > { %v4123_v52 = vpop.f32.mrf.mxu0 }
 0x1d3   : > { %5102 = vst [vmem:[#allocation14_spill] sm:$0xff] %v4123_v52  ;;  %922 = vmax.xlane.f32.xlu1 %v4120_v50 }
 0x1d4   : > { %v4126_v53 = vpop.f32.mrf.mxu0 }
 0x1d5   : > { %5103 = vst [vmem:[#allocation15_spill] sm:$0xff] %v4126_v53  ;;  %924 = vmax.xlane.f32.xlu0 %v4126_v53 }
 0x1d6   : > { %v4129_v54 = vpop.f32.mrf.mxu0 }
 0x1d7   : > { %5104 = vst [vmem:[#allocation16_spill] sm:$0xff] %v4129_v54  ;;  %918 = vmax.xlane.f32.xlu1 %v4123_v52  ;;  %v4420_v52 = vld [vmem:[#allocation2 + $0xc0] sm:$0xff] }
 0x1d8   : > { %v4132_v55 = vpop.f32.mrf.mxu0 }
 0x1d9   : > { %5105 = vst [vmem:[#allocation17_spill] sm:$0xff] %v4132_v55  ;;  %920 = vmax.xlane.f32.xlu0 %v4129_v54 }
 0x1da   : > { %v4135_v56 = vpop.f32.mrf.mxu0 }
 0x1db   : > { %5106 = vst [vmem:[#allocation18_spill] sm:$0xff] %v4135_v56  ;;  %930 = vmax.xlane.f32.xlu1 %v4132_v55  ;;  %v4400_v55 = vld [vmem:[#allocation2 + $0xd0] sm:$0xff] }
 0x1dc   : > { %v4138_v57 = vpop.f32.mrf.mxu0 }
 0x1dd   : > { %5107 = vst [vmem:[#allocation19_spill] sm:$0xff] %v4138_v57  ;;  %932 = vmax.xlane.f32.xlu0 %v4138_v57 }
 0x1de   : > { %v4141_v58 = vpop.f32.mrf.mxu0 }
 0x1df   : > { %5108 = vst [vmem:[#allocation20_spill] sm:$0xff] %v4141_v58  ;;  %926 = vmax.xlane.f32.xlu1 %v4135_v56  ;;  %v4408_v56 = vld [vmem:[#allocation2 + $0xd8] sm:$0xff] }
 0x1e0   : > { %v4144_v59 = vpop.f32.mrf.mxu0 }
 0x1e1   : > { %5109 = vst [vmem:[#allocation21_spill] sm:$0xff] %v4144_v59  ;;  %928 = vmax.xlane.f32.xlu0 %v4141_v58 }
 0x1e2   : > { %v4147_v60 = vpop.f32.mrf.mxu0 }
 0x1e3   : > { %5110 = vst [vmem:[#allocation22_spill] sm:$0xff] %v4147_v60  ;;  %938 = vmax.xlane.f32.xlu1 %v4144_v59 }
 0x1e4   : > { %v4150_v61 = vpop.f32.mrf.mxu0 }
 0x1e5   : > { %5111 = vst [vmem:[#allocation23_spill] sm:$0xff] %v4150_v61  ;;  %940 = vmax.xlane.f32.xlu0 %v4150_v61 }
 0x1e6   : > { %v4153_v62 = vpop.f32.mrf.mxu0 }
 0x1e7   : > { %5112 = vst [vmem:[#allocation24_spill] sm:$0xff] %v4153_v62  ;;  %934 = vmax.xlane.f32.xlu1 %v4147_v60  ;;  %v4390_v60 = vld [vmem:[#allocation2 + $0xa8] sm:$0xff] }
 0x1e8   : > { %v4156_v63 = vpop.f32.mrf.mxu0 }
 0x1e9   : > { %5113 = vst [vmem:[#allocation25_spill] sm:$0xff] %v4156_v63  ;;  %936 = vmax.xlane.f32.xlu0 %v4153_v62 }
 0x1ea   : > { %v4159_v0 = vpop.f32.mrf.mxu0 }
 0x1eb   : > { %5114 = vst [vmem:[#allocation26_spill] sm:$0xff] %v4159_v0  ;;  %946 = vmax.xlane.f32.xlu1 %v4156_v63  ;;  %v4366_v63 = vld [vmem:[#allocation2 + $0xb0] sm:$0xff] }
 0x1ec   : > { %v4162_v1 = vpop.f32.mrf.mxu0 }
 0x1ed   : > { %5115 = vst [vmem:[#allocation27_spill] sm:$0xff] %v4162_v1  ;;  %948 = vmax.xlane.f32.xlu0 %v4162_v1 }
 0x1ee   : > { %v4165_v2 = vpop.f32.mrf.mxu0 }
 0x1ef   : > { %5116 = vst [vmem:[#allocation28_spill] sm:$0xff] %v4165_v2  ;;  %942 = vmax.xlane.f32.xlu1 %v4159_v0  ;;  %v4374_v0 = vld [vmem:[#allocation2 + $0xb8] sm:$0xff] }
 0x1f0   : > { %v4168_v3 = vpop.f32.mrf.mxu0 }
 0x1f1   : > { %5117 = vst [vmem:[#allocation29_spill] sm:$0xff] %v4168_v3  ;;  %944 = vmax.xlane.f32.xlu0 %v4165_v2  ;;  %v4382_v2 = vld [vmem:[#allocation2 + $0xa0] sm:$0xff] }
 0x1f2   : > { %v4171_v4 = vpop.f32.mrf.mxu0 }
 0x1f3   : > { %5118 = vst [vmem:[#allocation30_spill] sm:$0xff] %v4171_v4  ;;  %954 = vmax.xlane.f32.xlu1 %v4168_v3 }
 0x1f4   : > { %v4174_v5 = vpop.f32.mrf.mxu0 }
 0x1f5   : > { %5119 = vst [vmem:[#allocation31_spill] sm:$0xff] %v4174_v5  ;;  %956 = vmax.xlane.f32.xlu0 %v4174_v5  ;;  %v4332_v5 = vld [vmem:[#allocation2 + $0x90] sm:$0xff] }
 0x1f6   : > { %v4177_v6 = vpop.f32.mrf.mxu0 }
 0x1f7   : > { %5120 = vst [vmem:[#allocation32_spill] sm:$0xff] %v4177_v6  ;;  %950 = vmax.xlane.f32.xlu1 %v4171_v4  ;;  %v4356_v4 = vld [vmem:[#allocation2 + $0x88] sm:$0xff] }
 0x1f8   : > { %v4180_v7 = vpop.f32.mrf.mxu0 }
 0x1f9   : > { %5121 = vst [vmem:[#allocation33_spill] sm:$0xff] %v4180_v7  ;;  %952 = vmax.xlane.f32.xlu0 %v4177_v6 }
 0x1fa   : > { %v4183_v8 = vpop.f32.mrf.mxu0 }
 0x1fb   : > { %5122 = vst [vmem:[#allocation34_spill] sm:$0xff] %v4183_v8  ;;  %962 = vmax.xlane.f32.xlu1 %v4180_v7 }
 0x1fc   : > { %v4186_v9 = vpop.f32.mrf.mxu0 }
 0x1fd   : > { %5123 = vst [vmem:[#allocation35_spill] sm:$0xff] %v4186_v9  ;;  %964 = vmax.xlane.f32.xlu0 %v4186_v9 }
 0x1fe   : > { %v4189_v10 = vpop.f32.mrf.mxu0 }
 0x1ff   : > { %5124 = vst [vmem:[#allocation36_spill] sm:$0xff] %v4189_v10  ;;  %958 = vmax.xlane.f32.xlu1 %v4183_v8 }
 0x201   : > { %960 = vmax.xlane.f32.xlu0 %v4189_v10  ;;  %v4315_v10 = vld [vmem:[#allocation2 + $0x60] sm:$0xff] }
 0x24a   : > { %v907_v17 = vpop.xlane.xlu0 %906 }
 0x24b   : > { %v4201_v19 = vmax.f32 %v4197_v16, %v907_v17  ;;  %v489_v17 = vld [vmem:[%s3873_s15 + $0x28] sm:$0xff] }
 0x24c   : > { %v3078_v34 = vcombine.high %v488_v15, %v489_v17  ;;  %v4288_v17 = vld [vmem:[#allocation2 + $0x48] sm:$0xff] }
 0x24d   : > { %2042 = vst.msk [vmem:[#allocation2 + $0x10] sm:$0xff] %vm1510_vm3, %v4201_v19 }
 0x24e   : > { %v903_v23 = vpop.xlane.xlu0 %902  ;;  %3380 = vmatprep.subr.bf16.mxu1 %v3078_v34 }
 0x24f   : > { %v4212_v25 = vmax.f32 %v4203_v21, %v903_v23  ;;  %3381 = vmatpush3.bf16.msra.mxu1 %v3078_v34 }
 0x250   : > { %v905_v28 = vpop.xlane.xlu1 %904 }
 0x251   : > { %2040 = vst.msk [vmem:[#allocation2] sm:$0xff] %vm1510_vm3, %v4212_v25  ;;  %v4221_v30 = vmax.f32 %v4209_v24, %v905_v28  ;;  %1096 = vperm.xlu1 %3519, %v4212_v25  }
 0x252   : > { %v909_v31 = vpop.xlane.xlu0 %908 }
 0x253   : > { %2041 = vst.msk [vmem:[#allocation2 + $0x8] sm:$0xff] %vm1510_vm3, %v4221_v30  ;;  %v4229_v33 = vmax.f32 %v4216_v29, %v909_v31  ;;  %1101 = vperm.xlu0 %3520, %v4221_v30   ;;  %v4270_v31 = vld [vmem:[#allocation2 + $0x58] sm:$0xff]  ;;  %v999_v58 = vsub.f32 %v4209_v24, %v4221_v30 }
 0x254   : > { %v915_v35 = vpop.xlane.xlu1 %914 }
 0x255   : > { %2043 = vst.msk [vmem:[#allocation2 + $0x18] sm:$0xff] %vm1510_vm3, %v4229_v33  ;;  %v4241_v40 = vmax.f32 %v4224_v32, %v915_v35  ;;  %1106 = vperm.xlu1 %3519, %v4201_v19   ;;  %v486_v35 = vld [vmem:[%s3873_s15 + $0x10] sm:$0xff]  ;;  %v1032_v49 = vmul.f32 1.442695, %v999_v58 }
 0x256   : > { %v917_v41 = vpop.xlane.xlu0 %916 }
 0x257   : > { %2046 = vst.msk [vmem:[#allocation2 + $0x30] sm:$0xff] %vm1510_vm3, %v4241_v40  ;;  %v4249_v11 = vmax.f32 %v4232_v36, %v917_v41  ;;  %v4280_v41 = vld [vmem:[#allocation2 + $0x40] sm:$0xff]  ;;  %3554 = vpow2.f32 %v1032_v49 }
 0x258   : > { %v911_v12 = vpop.xlane.xlu1 %910 }
 0x259   : > { %2047 = vst.msk [vmem:[#allocation2 + $0x38] sm:$0xff] %vm1510_vm3, %v4249_v11  ;;  %v4260_v20 = vmax.f32 %v4244_v51, %v911_v12  ;;  %1111 = vperm.xlu1 %3519, %v4229_v33  }
 0x25a   : > { %v913_v23 = vpop.xlane.xlu0 %912 }
 0x25b   : > { %2044 = vst.msk [vmem:[#allocation2 + $0x20] sm:$0xff] %vm1510_vm3, %v4260_v20  ;;  %v4268_v27 = vmax.f32 %v4251_v13, %v913_v23  ;;  %v3077_v23 = vcombine.high %v486_v35, %v487_v37  ;;  %v1002_v50 = vsub.f32 %v4244_v51, %v4260_v20  ;;  %v1004_v51 = vsub.f32 %v4224_v32, %v4241_v40 }
 0x25c   : > { %v923_v28 = vpop.xlane.xlu1 %922 }
 0x25d   : > { %2045 = vst.msk [vmem:[#allocation2 + $0x28] sm:$0xff] %vm1510_vm3, %v4268_v27  ;;  %v4277_v38 = vmax.f32 %v4263_v26, %v923_v28  ;;  %1126 = vperm.xlu1 %3519, %v4241_v40   ;;  %v484_v28 = vld [vmem:[%s3873_s15] sm:$0xff]  ;;  %3382 = vmatprep.subr.bf16.mxu1 %v3077_v23  ;;  %v1038_v48 = vmul.f32 1.442695, %v1002_v50  ;;  %v1042_v50 = vmul.f32 1.442695, %v1004_v51  ;;  %v998_v51 = vsub.f32 %v4203_v21, %v4212_v25 }
 0x25e   : > { %v925_v12 = vpop.xlane.xlu0 %924  ;;  %3383 = vmatpush3.bf16.msra.mxu1 %v3077_v23  ;;  %v3076_v9 = vcombine.high %v484_v28, %v485_v18  ;;  %v4322_v28 = vld [vmem:[#allocation2 + $0x68] sm:$0xff] }
 0x25f   : > { %2050 = vst.msk [vmem:[#allocation2 + $0x50] sm:$0xff] %vm1510_vm3, %v4277_v38  ;;  %1146 = vperm.xlu0 %3520, %v4277_v38   ;;  %v4286_v14 = vmax.f32 %v4270_v31, %v925_v12  ;;  %v4300_v12 = vld [vmem:[#allocation2 + $0x70] sm:$0xff]  ;;  %3556 = vpow2.f32 %v1038_v48 }
 0x260   : > { %v919_v15 = vpop.xlane.xlu1 %918  ;;  %3384 = vmatprep.subr.bf16.mxu1 %v3076_v9  ;;  %3558 = vpow2.f32 %v1042_v50 }
 0x261   : > { %v4293_v39 = vmax.f32 %v4280_v41, %v919_v15  ;;  %1116 = vperm.xlu1 %3519, %v4260_v20   ;;  %2051 = vst.msk [vmem:[#allocation2 + $0x58] sm:$0xff] %vm1510_vm3, %v4286_v14  ;;  %v4307_v15 = vld [vmem:[#allocation2 + $0x78] sm:$0xff] }
 0x262   : > { %v921_v34 = vpop.xlane.xlu0 %920  ;;  %3385 = vmatpush3.bf16.msra.mxu1 %v3076_v9 }
 0x263   : > { %2048 = vst.msk [vmem:[#allocation2 + $0x40] sm:$0xff] %vm1510_vm3, %v4293_v39  ;;  %v4305_v35 = vmax.f32 %v4288_v17, %v921_v34  ;;  %v1006_v42 = vsub.f32 %v4280_v41, %v4293_v39 }
 0x264   : > { %v931_v37 = vpop.xlane.xlu1 %930  ;;  %v4499_v50 = vpop.eup %3554 }
 0x265   : > { %v4310_v22 = vmax.f32 %v4300_v12, %v931_v37  ;;  %1131 = vperm.xlu1 %3519, %v4249_v11   ;;  %2049 = vst.msk [vmem:[#allocation2 + $0x48] sm:$0xff] %vm1510_vm3, %v4305_v35  ;;  %v4348_v37 = vld [vmem:[#allocation2 + $0x80] sm:$0xff]  ;;  %v1046_v41 = vmul.f32 1.442695, %v1006_v42  ;;  %v5125_v42 = vsub.f32 %v4197_v16, %v4201_v19  ;;  %v1003_v16 = vsub.f32 %v4251_v13, %v4268_v27 }
 0x266   : > { %v933_v7 = vpop.xlane.xlu0 %932 }
 0x267   : > { %2054 = vst.msk [vmem:[#allocation2 + $0x70] sm:$0xff] %vm1510_vm3, %v4310_v22  ;;  %v4320_v23 = vmax.f32 %v4307_v15, %v933_v7  ;;  %3560 = vpow2.f32 %v1046_v41 }
 0x268   : > { %v927_v18 = vpop.xlane.xlu1 %926 }
 0x269   : > { %v4325_v34 = vmax.f32 %v4315_v10, %v927_v18  ;;  %1121 = vperm.xlu1 %3519, %v4268_v27   ;;  %2055 = vst.msk [vmem:[#allocation2 + $0x78] sm:$0xff] %vm1510_vm3, %v4320_v23  ;;  %v4340_v18 = vld [vmem:[#allocation2 + $0x98] sm:$0xff]  ;;  %v5127_v27 = vsub.f32 %v4232_v36, %v4249_v11 }
 0x26a   : > { %v929_v8 = vpop.xlane.xlu0 %928 }
 0x26b   : > { %2052 = vst.msk [vmem:[#allocation2 + $0x60] sm:$0xff] %vm1510_vm3, %v4325_v34  ;;  %1156 = vperm.xlu0 %3520, %v4325_v34   ;;  %v4338_v7 = vmax.f32 %v4322_v28, %v929_v8  ;;  %v1010_v25 = vsub.f32 %v4315_v10, %v4325_v34  ;;  %v5126_v10 = vsub.f32 %v4216_v29, %v4229_v33 }
 0x26c   : > { %v939_v9 = vpop.xlane.xlu1 %938 }
 0x26d   : > { %v4343_v6 = vmax.f32 %v4332_v5, %v939_v9  ;;  %1136 = vperm.xlu1 %3519, %v4293_v39   ;;  %2053 = vst.msk [vmem:[#allocation2 + $0x68] sm:$0xff] %vm1510_vm3, %v4338_v7  ;;  %v1008_v39 = vsub.f32 %v4263_v26, %v4277_v38  ;;  %v1034_v26 = vmul.f32 1.442695, %v5125_v42  ;;  %v1012_v38 = vsub.f32 %v4300_v12, %v4310_v22 }
 0x26e   : > { %v941_v3 = vpop.xlane.xlu0 %940  ;;  %v1036_v34 = vmul.f32 1.442695, %v5126_v10 }
 0x26f   : > { %2058 = vst.msk [vmem:[#allocation2 + $0x90] sm:$0xff] %vm1510_vm3, %v4343_v6  ;;  %1166 = vperm.xlu0 %3520, %v4310_v22   ;;  %v4354_v8 = vmax.f32 %v4340_v18, %v941_v3  ;;  %v1050_v21 = vmul.f32 1.442695, %v1008_v39  ;;  %v1058_v19 = vmul.f32 1.442695, %v1012_v38  ;;  %v1016_v29 = vsub.f32 %v4332_v5, %v4343_v6 }
 0x270   : > { %v935_v1 = vpop.xlane.xlu1 %934  ;;  %v1040_v39 = vmul.f32 1.442695, %v1003_v16 }
 0x271   : > { %v4359_v9 = vmax.f32 %v4348_v37, %v935_v1  ;;  %1141 = vperm.xlu1 %3519, %v4305_v35   ;;  %2059 = vst.msk [vmem:[#allocation2 + $0x98] sm:$0xff] %vm1510_vm3, %v4354_v8  ;;  %v5130_v16 = vsub.f32 %v4340_v18, %v4354_v8 }
 0x272   : > { %v937_v61 = vpop.xlane.xlu0 %936 }
 0x273   : > { %2056 = vst.msk [vmem:[#allocation2 + $0x80] sm:$0xff] %vm1510_vm3, %v4359_v9  ;;  %1176 = vperm.xlu0 %3520, %v4359_v9   ;;  %v4372_v3 = vmax.f32 %v4356_v4, %v937_v61  ;;  %v1014_v22 = vsub.f32 %v4348_v37, %v4359_v9  ;;  %v1044_v37 = vmul.f32 1.442695, %v5127_v27  ;;  %v1007_v9 = vsub.f32 %v4288_v17, %v4305_v35 }
 0x274   : > { %v947_v1 = vpop.xlane.xlu1 %946 }
 0x275   : > { %v4377_v62 = vmax.f32 %v4366_v63, %v947_v1  ;;  %1151 = vperm.xlu1 %3519, %v4286_v14   ;;  %2057 = vst.msk [vmem:[#allocation2 + $0x88] sm:$0xff] %vm1510_vm3, %v4372_v3  ;;  %v1062_v33 = vmul.f32 1.442695, %v1014_v22  ;;  %v1048_v36 = vmul.f32 1.442695, %v1007_v9 }
 0x276   : > { %v949_v59 = vpop.xlane.xlu0 %948 }
 0x277   : > { %2062 = vst.msk [vmem:[#allocation2 + $0xb0] sm:$0xff] %vm1510_vm3, %v4377_v62  ;;  %1186 = vperm.xlu0 %3520, %v4343_v6   ;;  %v4388_v61 = vmax.f32 %v4374_v0, %v949_v59  ;;  %v1020_v17 = vsub.f32 %v4366_v63, %v4377_v62 }
 0x278   : > { %v943_v57 = vpop.xlane.xlu1 %942 }
 0x279   : > { %v4393_v1 = vmax.f32 %v4382_v2, %v943_v57  ;;  %1161 = vperm.xlu1 %3519, %v4338_v7   ;;  %2063 = vst.msk [vmem:[#allocation2 + $0xb8] sm:$0xff] %vm1510_vm3, %v4388_v61  ;;  %v5131_v22 = vsub.f32 %v4374_v0, %v4388_v61 }
 0x27a   : > { %v945_v53 = vpop.xlane.xlu0 %944 }
 0x27b   : > { %2060 = vst.msk [vmem:[#allocation2 + $0xa0] sm:$0xff] %vm1510_vm3, %v4393_v1  ;;  %1196 = vperm.xlu0 %3520, %v4393_v1   ;;  %v4406_v59 = vmax.f32 %v4390_v60, %v945_v53  ;;  %v1018_v5 = vsub.f32 %v4382_v2, %v4393_v1  ;;  %v5128_v2 = vsub.f32 %v4270_v31, %v4286_v14 }
 0x27c   : > { %v955_v57 = vpop.xlane.xlu1 %954 }
 0x27d   : > { %v4413_v54 = vmax.f32 %v4400_v55, %v955_v57  ;;  %1171 = vperm.xlu1 %3519, %v4320_v23   ;;  %2061 = vst.msk [vmem:[#allocation2 + $0xa8] sm:$0xff] %vm1510_vm3, %v4406_v59  ;;  %v4428_v57 = vld [vmem:[#allocation2 + $0xc8] sm:$0xff]  ;;  %v1070_v35 = vmul.f32 1.442695, %v1018_v5  ;;  %v1052_v1 = vmul.f32 1.442695, %v5128_v2 }
 0x27e   : > { %v957_v53 = vpop.xlane.xlu0 %956 }
 0x27f   : > { %2066 = vst.msk [vmem:[#allocation2 + $0xd0] sm:$0xff] %vm1510_vm3, %v4413_v54  ;;  %1206 = vperm.xlu0 %3520, %v4377_v62   ;;  %v4426_v24 = vmax.f32 %v4408_v56, %v957_v53  ;;  %v4440_v53 = vld [vmem:[#allocation2 + $0xf0] sm:$0xff]  ;;  %v1024_v62 = vsub.f32 %v4400_v55, %v4413_v54 }
 0x280   : > { %v951_v30 = vpop.xlane.xlu1 %950 }
 0x281   : > { %v4433_v46 = vmax.f32 %v4420_v52, %v951_v30  ;;  %1181 = vperm.xlu1 %3519, %v4372_v3   ;;  %2067 = vst.msk [vmem:[#allocation2 + $0xd8] sm:$0xff] %vm1510_vm3, %v4426_v24  ;;  %v4450_v30 = vld [vmem:[#allocation2 + $0xf8] sm:$0xff] }
 0x282   : > { %v953_v47 = vpop.xlane.xlu0 %952 }
 0x283   : > { %2064 = vst.msk [vmem:[#allocation2 + $0xc0] sm:$0xff] %vm1510_vm3, %v4433_v46  ;;  %1216 = vperm.xlu0 %3520, %v4433_v46   ;;  %v4446_v58 = vmax.f32 %v4428_v57, %v953_v47  ;;  %v4460_v47 = vld [vmem:[#allocation2 + $0xe0] sm:$0xff] }
 0x284   : > { %v963_v20 = vpop.xlane.xlu1 %962 }
 0x285   : > { %v4453_v44 = vmax.f32 %v4440_v53, %v963_v20  ;;  %1191 = vperm.xlu1 %3519, %v4354_v8   ;;  %2065 = vst.msk [vmem:[#allocation2 + $0xc8] sm:$0xff] %vm1510_vm3, %v4446_v58  ;;  %v4470_v20 = vld [vmem:[#allocation2 + $0xe8] sm:$0xff]  ;;  %v5132_v8 = vsub.f32 %v4390_v60, %v4406_v59 }
 0x286   : > { %v965_v45 = vpop.xlane.xlu0 %964 }
 0x287   : > { %2070 = vst.msk [vmem:[#allocation2 + $0xf0] sm:$0xff] %vm1510_vm3, %v4453_v44  ;;  %1226 = vperm.xlu0 %3520, %v4413_v54   ;;  %v4468_v49 = vmax.f32 %v4450_v30, %v965_v45  ;;  %v5129_v54 = vsub.f32 %v4307_v15, %v4320_v23 }
 0x288   : > { %v959_v40 = vpop.xlane.xlu1 %958 }
 0x289   : > { %v4475_v43 = vmax.f32 %v4460_v47, %v959_v40  ;;  %1201 = vperm.xlu1 %3519, %v4406_v59   ;;  %v1029_v32 = vsub.f32 %v4450_v30, %v4468_v49  ;;  %2071 = vst.msk [vmem:[#allocation2 + $0xf8] sm:$0xff] %vm1510_vm3, %v4468_v49  ;;  %v1030_v40 = vmul.f32 1.442695, %v998_v51  ;;  %v4508_v51 = vpop.eup %3556  ;;  %v1060_v55 = vmul.f32 1.442695, %v5129_v54 }
 0x28a   : > { %v961_v45 = vpop.xlane.xlu0 %960  ;;  %v4519_v12 = vpop.eup %3558  ;;  %v5134_v59 = vsub.f32 %v4428_v57, %v4446_v58 }
 0x28b   : > { %2068 = vst.msk [vmem:[#allocation2 + $0xe0] sm:$0xff] %vm1510_vm3, %v4475_v43  ;;  %1236 = vperm.xlu0 %3520, %v4475_v43   ;;  %v4488_v48 = vmax.f32 %v4470_v20, %v961_v45  ;;  %3562 = vpow2.f32 %v1030_v40  ;;  %v1054_v45 = vmul.f32 1.442695, %v1010_v25  ;;  %v4525_v13 = vpop.eup %3560  ;;  %v1066_v40 = vmul.f32 1.442695, %v1016_v29 }
 0x28c   : > { %3564 = vpow2.f32 %v1050_v21  ;;  %v1011_v25 = vsub.f32 %v4322_v28, %v4338_v7  ;;  %v1082_v28 = vmul.f32 1.442695, %v1024_v62  ;;  %v1022_v7 = vsub.f32 %v4420_v52, %v4433_v46  ;;  %v5137_v62 = vld [vmem:[#allocation5_spill] sm:$0xff] }
 0x28d   : > { %1211 = vperm.xlu1 %3519, %v4388_v61   ;;  %2069 = vst.msk [vmem:[#allocation2 + $0xe8] sm:$0xff] %vm1510_vm3, %v4488_v48  ;;  %3566 = vpow2.f32 %v1034_v26  ;;  %v1074_v26 = vmul.f32 1.442695, %v1020_v17  ;;  %v1026_v46 = vsub.f32 %v4460_v47, %v4475_v43  ;;  %v1068_v43 = vmul.f32 1.442695, %v5130_v16 }
 0x28e   : > { %3568 = vpow2.f32 %v1054_v45  ;;  %v1056_v31 = vmul.f32 1.442695, %v1011_v25  ;;  %v1015_v45 = vsub.f32 %v4356_v4, %v4372_v3  ;;  %v5133_v61 = vsub.f32 %v4408_v56, %v4426_v24 }
 0x28f   : > { %1246 = vperm.xlu0 %3520, %v4453_v44   ;;  %3570 = vpow2.f32 %v1036_v34  ;;  %v1078_v34 = vmul.f32 1.442695, %v1022_v7  ;;  %v1086_v4 = vmul.f32 1.442695, %v1026_v46  ;;  %v1027_v5 = vsub.f32 %v4470_v20, %v4488_v48 }
 0x290   : > { %3572 = vpow2.f32 %v1058_v19  ;;  %v1064_v15 = vmul.f32 1.442695, %v1015_v45 }
 0x291   : > { %1221 = vperm.xlu1 %3519, %v4446_v58   ;;  %3574 = vpow2.f32 %v1040_v39  ;;  %v1076_v39 = vmul.f32 1.442695, %v5131_v22 }
 0x292   : > { %3576 = vpow2.f32 %v1062_v33  ;;  %v1072_v33 = vmul.f32 1.442695, %v5132_v8 }
 0x293   : > { %1582 = vperm.xlu0 %3520, %v4499_v50   ;;  %3578 = vpow2.f32 %v1044_v37  ;;  %v1084_v37 = vmul.f32 1.442695, %v5133_v61  ;;  %v5140_v61 = vld [vmem:[#allocation11_spill] sm:$0xff] }
 0x294   : > { %3580 = vpow2.f32 %v1066_v40  ;;  %v1080_v40 = vmul.f32 1.442695, %v5134_v59 }
 0x295   : > { %1231 = vperm.xlu1 %3519, %v4426_v24   ;;  %3582 = vpow2.f32 %v1048_v36  ;;  %v1088_v24 = vmul.f32 1.442695, %v1027_v5 }
 0x296   : > { %3584 = vpow2.f32 %v1070_v35  ;;  %v5135_v35 = vld [vmem:[#allocation6_spill] sm:$0xff] }
 0x297   : > { %1597 = vperm.xlu0 %3520, %v4508_v51   ;;  %3586 = vpow2.f32 %v1052_v1  ;;  %v5136_v1 = vld [vmem:[#allocation8_spill] sm:$0xff] }
 0x298   : > { %v4533_v41 = vpop.eup %3562  ;;  %3588 = vpow2.f32 %v1074_v26 }
 0x299   : > { %1241 = vperm.xlu1 %3519, %v4488_v48   ;;  %v4538_v6 = vpop.eup %3564  ;;  %3590 = vpow2.f32 %v1056_v31 }
 0x29a   : > { %v4541_v11 = vpop.eup %3566  ;;  %3592 = vpow2.f32 %v1082_v28 }
 0x29b   : > { %1607 = vperm.xlu0 %3520, %v4519_v12   ;;  %v4546_v21 = vpop.eup %3568  ;;  %3594 = vpow2.f32 %v1060_v55  ;;  %v5138_v55 = vld [vmem:[#allocation7_spill] sm:$0xff] }
 0x29c   : > { %v4554_v42 = vpop.eup %3570  ;;  %3596 = vpow2.f32 %v1078_v34 }
 0x29d   : > { %1251 = vperm.xlu1 %3519, %v4468_v49   ;;  %v4559_v63 = vpop.eup %3572  ;;  %3598 = vpow2.f32 %v1064_v15 }
 0x29e   : > { %v4562_v14 = vpop.eup %3574  ;;  %3600 = vpow2.f32 %v1086_v4 }
 0x29f   : > { %1617 = vperm.xlu0 %3520, %v4525_v13   ;;  %v4567_v38 = vpop.eup %3576  ;;  %3602 = vpow2.f32 %v1068_v43 }
 0x2a0   : > { %v4575_v10 = vpop.eup %3578  ;;  %3604 = vpow2.f32 %v1076_v39  ;;  %v5139_v39 = vld [vmem:[#allocation10_spill] sm:$0xff] }
 0x2a1   : > { %1577 = vperm.xlu1 %3519, %v4533_v41   ;;  %v4580_v52 = vpop.eup %3580  ;;  %3606 = vpow2.f32 %v1072_v33 }
 0x2a2   : > { %v4583_v23 = vpop.eup %3582  ;;  %3608 = vpow2.f32 %v1084_v37 }
 0x2a3   : > { %1627 = vperm.xlu0 %3520, %v4538_v6   ;;  %v4586_v3 = vpop.eup %3584  ;;  %3610 = vpow2.f32 %v1080_v40  ;;  %v5141_v40 = vld [vmem:[#allocation9_spill] sm:$0xff] }
 0x2a4   : > { %v4592_v47 = vpop.eup %3586  ;;  %3612 = vpow2.f32 %v1088_v24 }
 0x2a5   : > { %1587 = vperm.xlu1 %3519, %v4541_v11   ;;  %v4595_v19 = vpop.eup %3588 }
 0x2a6   : > { %v4601_v29 = vpop.eup %3590 }
 0x2a7   : > { %1637 = vperm.xlu0 %3520, %v4546_v21   ;;  %v4604_v18 = vpop.eup %3592 }
 0x2a8   : > { %v4610_v27 = vpop.eup %3594 }
 0x2a9   : > { %1592 = vperm.xlu1 %3519, %v4554_v42   ;;  %v4613_v0 = vpop.eup %3596 }
 0x2aa   : > { %v4619_v9 = vpop.eup %3598 }
 0x2ab   : > { %1647 = vperm.xlu0 %3520, %v4559_v63   ;;  %v4622_v60 = vpop.eup %3600 }
 0x2ac   : > { %v4630_v56 = vpop.eup %3602 }
 0x2ad   : > { %1602 = vperm.xlu1 %3519, %v4562_v14   ;;  %v4633_v36 = vpop.eup %3604 }
 0x2ae   : > { %v4638_v48 = vpop.eup %3606 }
 0x2af   : > { %1657 = vperm.xlu0 %3520, %v4567_v38   ;;  %v4642_v28 = vpop.eup %3608 }
 0x2b0   : > { %v4646_v46 = vpop.eup %3610 }
 0x2b1   : > { %1612 = vperm.xlu1 %3519, %v4575_v10   ;;  %v4649_v4 = vpop.eup %3612 }
 0x2b3   : > { %1667 = vperm.xlu0 %3520, %v4580_v52  }
 0x2b5   : > { %1622 = vperm.xlu1 %3519, %v4583_v23  }
 0x2b7   : > { %1677 = vperm.xlu0 %3520, %v4586_v3  }
 0x2b9   : > { %1632 = vperm.xlu1 %3519, %v4592_v47  }
 0x2bb   : > { %1687 = vperm.xlu0 %3520, %v4595_v19  }
 0x2bd   : > { %1642 = vperm.xlu1 %3519, %v4601_v29  }
 0x2bf   : > { %1707 = vperm.xlu0 %3520, %v4604_v18  }
 0x2c1   : > { %1652 = vperm.xlu1 %3519, %v4610_v27  }
 0x2c3   : > { %1697 = vperm.xlu0 %3520, %v4613_v0  }
 0x2c5   : > { %1662 = vperm.xlu1 %3519, %v4619_v9  }
 0x2c7   : > { %1717 = vperm.xlu0 %3520, %v4622_v60  }
 0x2c9   : > { %1672 = vperm.xlu1 %3519, %v4630_v56  }
 0x2cc   : > { %v1097_v17 = vpop.permute.xlu1 %1096 }
 0x2cd   : > { %v1254_v2 = vsub.f32 %v5135_v35, %v1097_v17  ;;  %1692 = vperm.xlu1 %3519, %v4633_v36  }
 0x2ce   : > { %v1102_v57 = vpop.permute.xlu0 %1101 }
 0x2cf   : > { %v1286_v58 = vmul.f32 1.442695, %v1254_v2  ;;  %v1255_v20 = vsub.f32 %v5136_v1, %v1102_v57 }
 0x2d0   : > { %v1107_v25 = vpop.permute.xlu1 %1106 }
 0x2d1   : > { %v1288_v26 = vmul.f32 1.442695, %v1255_v20  ;;  %v1256_v31 = vsub.f32 %v5137_v62, %v1107_v25  ;;  %1682 = vperm.xlu1 %3519, %v4638_v48   ;;  %3614 = vpow2.f32 %v1286_v58  ;;  %v5142_v58 = vld [vmem:[#allocation12_spill] sm:$0xff] }
 0x2d3   : > { %3616 = vpow2.f32 %v1288_v26  ;;  %v1290_v7 = vmul.f32 1.442695, %v1256_v31 }
 0x2d4   : > { %v1112_v54 = vpop.permute.xlu1 %1111 }
 0x2d5   : > { %v1257_v45 = vsub.f32 %v5138_v55, %v1112_v54  ;;  %1712 = vperm.xlu1 %3519, %v4642_v28   ;;  %3618 = vpow2.f32 %v1290_v7  ;;  %v5143_v54 = vld [vmem:[#allocation14_spill] sm:$0xff] }
 0x2d7   : > { %v1292_v34 = vmul.f32 1.442695, %v1257_v45 }
 0x2d8   : > { %v1127_v15 = vpop.permute.xlu1 %1126 }
 0x2d9   : > { %3620 = vpow2.f32 %v1292_v34  ;;  %1702 = vperm.xlu1 %3519, %v4646_v46   ;;  %v1260_v5 = vsub.f32 %v5141_v40, %v1127_v15  ;;  %v5144_v34 = vld [vmem:[#allocation13_spill] sm:$0xff]  ;;  %v5146_v40 = vld [vmem:[#allocation18_spill] sm:$0xff] }
 0x2da   : > { %v1147_v24 = vpop.permute.xlu0 %1146 }
 0x2db   : > { %v1298_v25 = vmul.f32 1.442695, %v1260_v5  ;;  %v1264_v15 = vsub.f32 %v5144_v34, %v1147_v24 }
 0x2dc   : > { %v1117_v16 = vpop.permute.xlu1 %1116 }
 0x2dd   : > { %1722 = vperm.xlu1 %3519, %v4649_v4   ;;  %v1258_v8 = vsub.f32 %v5139_v39, %v1117_v16 }
 0x2de   : > { %v3615_v43 = vpop.eup %3614 }
 0x2df   : > { %v1294_v35 = vmul.f32 1.442695, %v1258_v8  ;;  %v5145_v8 = vld [vmem:[#allocation16_spill] sm:$0xff] }
 0x2e0   : > { %v4652_v22 = vpop.eup %3616  ;;  %v1132_v33 = vpop.permute.xlu1 %1131 }
 0x2e1   : > { %v1261_v37 = vsub.f32 %v5140_v61, %v1132_v33  ;;  %v1767_v59 = vpack.c.bf16 %v4652_v22, %v3615_v43 }
 0x2e2   : > { %v3619_v57 = vpop.eup %3618 }
 0x2e3   : > { %v1300_v17 = vmul.f32 1.442695, %v1261_v37  ;;  %3386 = vmatprep.mubr.bf16.mxu1 %v1767_v59  ;;  %v1306_v59 = vmul.f32 1.442695, %v1264_v15 }
 0x2e4   : > { %v1122_v2 = vpop.permute.xlu1 %1121 }
 0x2e5   : > { %3622 = vpow2.f32 %v1300_v17  ;;  %v1259_v1 = vsub.f32 %v5142_v58, %v1122_v2 }
 0x2e6   : > { %v3621_v20 = vpop.eup %3620  ;;  %1418 = vadd.xlane.f32.xlu0 %v3619_v57  ;;  %v1157_v26 = vpop.permute.xlu0 %1156  ;;  %3624 = vpow2.f32 %v1294_v35  ;;  %v5147_v35 = vld [vmem:[#allocation15_spill] sm:$0xff] }
 0x2e7   : > { %v1296_v62 = vmul.f32 1.442695, %v1259_v1  ;;  %v1768_v31 = vpack.c.bf16 %v3621_v20, %v3619_v57  ;;  %v1266_v5 = vsub.f32 %v5146_v40, %v1157_v26  ;;  %v5148_v1 = vld [vmem:[#allocation17_spill] sm:$0xff] }
 0x2e8   : > { %v1137_v7 = vpop.permute.xlu1 %1136 }
 0x2e9   : > { %3626 = vpow2.f32 %v1296_v62  ;;  %v1262_v55 = vsub.f32 %v5143_v54, %v1137_v7  ;;  %3387 = vmatmul.mubr.bf16.vlgmr.msra.gmra.mxu1 %v1768_v31  ;;  %v1310_v24 = vmul.f32 1.442695, %v1266_v5  ;;  %v5149_v31 = vld [vmem:[#allocation20_spill] sm:$0xff] }
 0x2ea   : > { %3628 = vpow2.f32 %v1298_v25  ;;  %1414 = vadd.xlane.f32.xlu0 %v3615_v43  ;;  %v1167_v45 = vpop.permute.xlu0 %1166 }
 0x2eb   : > { %v1302_v16 = vmul.f32 1.442695, %v1262_v55  ;;  %v1268_v25 = vsub.f32 %v5148_v1, %v1167_v45  ;;  %v5151_v45 = vld [vmem:[#allocation19_spill] sm:$0xff] }
 0x2ec   : > { %v1142_v39 = vpop.permute.xlu1 %1141 }
 0x2ed   : > { %v1263_v33 = vsub.f32 %v5145_v8, %v1142_v39  ;;  %3630 = vpow2.f32 %v1302_v16  ;;  %v1314_v16 = vmul.f32 1.442695, %v1268_v25  ;;  %v5150_v39 = vld [vmem:[#allocation22_spill] sm:$0xff] }
 0x2ee   : > { %1420 = vadd.xlane.f32.xlu0 %v3621_v20  ;;  %v1177_v61 = vpop.permute.xlu0 %1176 }
 0x2ef   : > { %v1304_v37 = vmul.f32 1.442695, %v1263_v33  ;;  %v1270_v8 = vsub.f32 %v5150_v39, %v1177_v61  ;;  %v5155_v39 = vld [vmem:[#allocation23_spill] sm:$0xff] }
 0x2f0   : > { %v1152_v17 = vpop.permute.xlu1 %1151 }
 0x2f1   : > { %3632 = vpow2.f32 %v1304_v37  ;;  %v1265_v2 = vsub.f32 %v5147_v35, %v1152_v17  ;;  %v1318_v17 = vmul.f32 1.442695, %v1270_v8  ;;  %v5152_v35 = vld [vmem:[#allocation21_spill] sm:$0xff] }
 0x2f2   : > { %v3623_v57 = vpop.eup %3622  ;;  %v1187_v43 = vpop.permute.xlu0 %1186  ;;  %3634 = vpow2.f32 %v1306_v59 }
 0x2f3   : > { %v1308_v58 = vmul.f32 1.442695, %v1265_v2  ;;  %1428 = vadd.xlane.f32.xlu0 %v3623_v57  ;;  %v4665_v20 = vpop.eup %3624  ;;  %v1272_v2 = vsub.f32 %v5152_v35, %v1187_v43 }
 0x2f4   : > { %v1162_v62 = vpop.permute.xlu1 %1161 }
 0x2f5   : > { %3636 = vpow2.f32 %v1308_v58  ;;  %v1267_v7 = vsub.f32 %v5149_v31, %v1162_v62 }
 0x2f6   : > { %v3627_v26 = vpop.eup %3626  ;;  %v1197_v54 = vpop.permute.xlu0 %1196  ;;  %3638 = vpow2.f32 %v1310_v24  ;;  %v5153_v24 = vld [vmem:[#allocation24_spill] sm:$0xff] }
 0x2f7   : > { %v3629_v55 = vpop.eup %3628  ;;  %v1312_v34 = vmul.f32 1.442695, %v1267_v7  ;;  %1424 = vadd.xlane.f32.xlu0 %v3627_v26  ;;  %v1769_v15 = vpack.c.bf16 %v3627_v26, %v4665_v20  ;;  %v1322_v7 = vmul.f32 1.442695, %v1272_v2  ;;  %v5154_v26 = vld [vmem:[#allocation26_spill] sm:$0xff]  ;;  %v5157_v2 = vld [vmem:[#allocation28_spill] sm:$0xff] }
 0x2f8   : > { %v1172_v33 = vpop.permute.xlu1 %1171  ;;  %v1770_v37 = vpack.c.bf16 %v3623_v57, %v3629_v55 }
 0x2f9   : > { %3640 = vpow2.f32 %v1312_v34  ;;  %v1269_v59 = vsub.f32 %v5151_v45, %v1172_v33  ;;  %3390 = vmatprep.mubr.bf16.mxu1 %v1769_v15  ;;  %v1274_v34 = vsub.f32 %v5154_v26, %v1197_v54 }
 0x2fa   : > { %3391 = vmatmul.mubr.bf16.gmra.mxu1 %v1770_v37  ;;  %v1207_v40 = vpop.permute.xlu0 %1206  ;;  %3642 = vpow2.f32 %v1314_v16  ;;  %v4672_v1 = vpop.eup %3630 }
 0x2fb   : > { %v1316_v5 = vmul.f32 1.442695, %v1269_v59  ;;  %v1326_v45 = vmul.f32 1.442695, %v1274_v34  ;;  %v5156_v59 = vld [vmem:[#allocation25_spill] sm:$0xff]  ;;  %v5159_v34 = vld [vmem:[#allocation27_spill] sm:$0xff] }
 0x2fc   : > { %v1182_v58 = vpop.permute.xlu1 %1181 }
 0x2fd   : > { %3644 = vpow2.f32 %v1316_v5  ;;  %v1271_v25 = vsub.f32 %v5153_v24, %v1182_v58  ;;  %v1276_v5 = vsub.f32 %v5156_v59, %v1207_v40 }
 0x2fe   : > { %v3633_v61 = vpop.eup %3632  ;;  %v1217_v57 = vpop.permute.xlu0 %1216  ;;  %3646 = vpow2.f32 %v1318_v17 }
 0x2ff   : > { %v1320_v62 = vmul.f32 1.442695, %v1271_v25  ;;  %v1771_v31 = vpack.c.bf16 %v3633_v61, %v4672_v1  ;;  %v3635_v16 = vpop.eup %3634 }
 0x300   : > { %v1192_v15 = vpop.permute.xlu1 %1191 }
 0x301   : > { %3648 = vpow2.f32 %v1320_v62  ;;  %v1273_v43 = vsub.f32 %v5155_v39, %v1192_v15  ;;  %1416 = vadd.xlane.f32.xlu1 %v4652_v22  ;;  %3394 = vmatprep.mubr.bf16.mxu1 %v1771_v31  ;;  %v1330_v62 = vmul.f32 1.442695, %v1276_v5  ;;  %v5158_v31 = vld [vmem:[#allocation30_spill] sm:$0xff] }
 0x302   : > { %v3637_v8 = vpop.eup %3636  ;;  %3650 = vpow2.f32 %v1322_v7  ;;  %v1227_v54 = vpop.permute.xlu0 %1226  ;;  %v1278_v7 = vsub.f32 %v5158_v31, %v1217_v57  ;;  %v5161_v57 = vld [vmem:[#allocation32_spill] sm:$0xff] }
 0x303   : > { %v1324_v33 = vmul.f32 1.442695, %v1273_v43  ;;  %1436 = vadd.xlane.f32.xlu0 %v3637_v8  ;;  %v1772_v37 = vpack.c.bf16 %v3637_v8, %v3635_v16  ;;  %v4680_v35 = vpop.eup %3638 }
 0x304   : > { %v1202_v17 = vpop.permute.xlu1 %1201 }
 0x305   : > { %3652 = vpow2.f32 %v1324_v33  ;;  %v1275_v58 = vsub.f32 %v5157_v2, %v1202_v17  ;;  %1426 = vadd.xlane.f32.xlu1 %v3629_v55  ;;  %3395 = vmatmul.mubr.bf16.gmra.mxu1 %v1772_v37  ;;  %v5160_v33 = vld [vmem:[#allocation29_spill] sm:$0xff] }
 0x306   : > { %v3641_v24 = vpop.eup %3640  ;;  %3654 = vpow2.f32 %v1326_v45  ;;  %v1237_v55 = vpop.permute.xlu0 %1236  ;;  %v1280_v37 = vsub.f32 %v5160_v33, %v1227_v54  ;;  %v5163_v54 = vld [vmem:[#allocation31_spill] sm:$0xff] }
 0x307   : > { %v1328_v22 = vmul.f32 1.442695, %v1275_v58  ;;  %1432 = vadd.xlane.f32.xlu0 %v3633_v61  ;;  %v1773_v25 = vpack.c.bf16 %v3641_v24, %v4680_v35  ;;  %v3643_v40 = vpop.eup %3642  ;;  %v1334_v61 = vmul.f32 1.442695, %v1278_v7 }
 0x308   : > { %v1212_v26 = vpop.permute.xlu1 %1211  ;;  %v1338_v58 = vmul.f32 1.442695, %v1280_v37 }
 0x309   : > { %3656 = vpow2.f32 %v1328_v22  ;;  %v1277_v15 = vsub.f32 %v5159_v34, %v1212_v26  ;;  %1422 = vadd.xlane.f32.xlu1 %v4665_v20  ;;  %3398 = vmatprep.mubr.bf16.mxu1 %v1773_v25  ;;  %v5162_v22 = vld [vmem:[#allocation34_spill] sm:$0xff] }
 0x30a   : > { %v3645_v39 = vpop.eup %3644  ;;  %3658 = vpow2.f32 %v1330_v62  ;;  %v1282_v25 = vsub.f32 %v5162_v22, %v1237_v55  ;;  %v1247_v7 = vpop.permute.xlu0 %1246  ;;  %v5165_v55 = vld [vmem:[#allocation36_spill] sm:$0xff] }
 0x30b   : > { %v1332_v43 = vmul.f32 1.442695, %v1277_v15  ;;  %1444 = vadd.xlane.f32.xlu0 %v3645_v39  ;;  %v1774_v8 = vpack.c.bf16 %v3645_v39, %v3643_v40  ;;  %v3647_v59 = vpop.eup %3646  ;;  %v5164_v39 = vld [vmem:[#allocation33_spill] sm:$0xff] }
 0x30c   : > { %v1222_v45 = vpop.permute.xlu1 %1221 }
 0x30d   : > { %3660 = vpow2.f32 %v1332_v43  ;;  %v1279_v5 = vsub.f32 %v5161_v57, %v1222_v45  ;;  %1434 = vadd.xlane.f32.xlu1 %v3635_v16  ;;  %3399 = vmatmul.mubr.bf16.gmra.mxu1 %v1774_v8  ;;  %v1284_v43 = vsub.f32 %v5164_v39, %v1247_v7 }
 0x30e   : > { %v3649_v17 = vpop.eup %3648  ;;  %3662 = vpow2.f32 %v1334_v61  ;;  %v4696_v7 = vpop.permute.xlu0 %1582 }
 0x30f   : > { %v1336_v2 = vmul.f32 1.442695, %v1279_v5  ;;  %1440 = vadd.xlane.f32.xlu0 %v3641_v24  ;;  %v1775_v20 = vpack.c.bf16 %v3649_v17, %v3647_v59  ;;  %v3651_v62 = vpop.eup %3650  ;;  %v1342_v24 = vmul.f32 1.442695, %v1282_v25  ;;  %v1346_v57 = vmul.f32 1.442695, %v1284_v43 }
 0x310   : > { %v1232_v31 = vpop.permute.xlu1 %1231 }
 0x311   : > { %3664 = vpow2.f32 %v1336_v2  ;;  %v1281_v26 = vsub.f32 %v5163_v54, %v1232_v31  ;;  %1430 = vadd.xlane.f32.xlu1 %v4672_v1  ;;  %3402 = vmatprep.mubr.bf16.mxu1 %v1775_v20  ;;  %v5166_v20 = vld [vmem:[#allocation35_spill] sm:$0xff] }
 0x312   : > { %v3653_v34 = vpop.eup %3652  ;;  %3666 = vpow2.f32 %v1338_v58 }
 0x313   : > { %v1340_v16 = vmul.f32 1.442695, %v1281_v26  ;;  %1452 = vadd.xlane.f32.xlu0 %v3653_v34  ;;  %v1776_v15 = vpack.c.bf16 %v3653_v34, %v3651_v62  ;;  %v3655_v61 = vpop.eup %3654 }
 0x314   : > { %v1242_v8 = vpop.permute.xlu1 %1241 }
 0x315   : > { %3668 = vpow2.f32 %v1340_v16  ;;  %v1283_v33 = vsub.f32 %v5165_v55, %v1242_v8  ;;  %1442 = vadd.xlane.f32.xlu1 %v3643_v40  ;;  %3403 = vmatmul.mubr.bf16.gmra.mxu1 %v1776_v15 }
 0x316   : > { %v3657_v37 = vpop.eup %3656  ;;  %3670 = vpow2.f32 %v1342_v24 }
 0x317   : > { %v1344_v45 = vmul.f32 1.442695, %v1283_v33  ;;  %1448 = vadd.xlane.f32.xlu0 %v3649_v17  ;;  %v1777_v1 = vpack.c.bf16 %v3657_v37, %v3655_v61  ;;  %v3659_v2 = vpop.eup %3658 }
 0x318   : > { %v1252_v5 = vpop.permute.xlu1 %1251 }
 0x319   : > { %3672 = vpow2.f32 %v1344_v45  ;;  %v1285_v58 = vsub.f32 %v5166_v20, %v1252_v5  ;;  %1438 = vadd.xlane.f32.xlu1 %v4680_v35  ;;  %3406 = vmatprep.mubr.bf16.mxu1 %v1777_v1  ;;  %v4698_v35 = vpop.permute.xlu0 %1597  ;;  %v5167_v45 = vsub.f32 %v4440_v53, %v4453_v44 }
 0x31a   : > { %v3661_v22 = vpop.eup %3660  ;;  %3674 = vpow2.f32 %v1346_v57 }
 0x31b   : > { %v1348_v25 = vmul.f32 1.442695, %v1285_v58  ;;  %1460 = vadd.xlane.f32.xlu0 %v3661_v22  ;;  %v1778_v31 = vpack.c.bf16 %v3661_v22, %v3659_v2  ;;  %v3663_v40 = vpop.eup %3662  ;;  %v1090_v1 = vmul.f32 1.442695, %v5167_v45  ;;  %v1350_v45 = vld [vmem:[#allocation3] sm:$0xff] }
 0x31c   : > { %v4702_v55 = vpop.permute.xlu1 %1577 }
 0x31d   : > { %3676 = vpow2.f32 %v1348_v25  ;;  %1450 = vadd.xlane.f32.xlu1 %v3651_v62  ;;  %3407 = vmatmul.mubr.bf16.gmra.mxu1 %v1778_v31  ;;  %v4700_v62 = vpop.permute.xlu0 %1607 }
 0x31e   : > { %v3665_v17 = vpop.eup %3664  ;;  %3678 = vpow2.f32 %v1090_v1 }
 0x31f   : > { %1456 = vadd.xlane.f32.xlu0 %v3657_v37  ;;  %v1779_v54 = vpack.c.bf16 %v3665_v17, %v3663_v40  ;;  %v3667_v26 = vpop.eup %3666 }
 0x320   : > { %v4706_v37 = vpop.permute.xlu1 %1587 }
 0x321   : > { %1446 = vadd.xlane.f32.xlu1 %v3647_v59  ;;  %3410 = vmatprep.mubr.bf16.mxu1 %v1779_v54  ;;  %v4704_v33 = vpop.permute.xlu0 %1617 }
 0x322   : > { %v3669_v34 = vpop.eup %3668 }
 0x323   : > { %1468 = vadd.xlane.f32.xlu0 %v3669_v34  ;;  %v1780_v16 = vpack.c.bf16 %v3669_v34, %v3667_v26  ;;  %v3671_v15 = vpop.eup %3670 }
 0x324   : > { %v4716_v5 = vpop.permute.xlu1 %1592 }
 0x325   : > { %1458 = vadd.xlane.f32.xlu1 %v3659_v2  ;;  %3411 = vmatmul.mubr.bf16.gmra.mxu1 %v1780_v16  ;;  %v4711_v57 = vpop.permute.xlu0 %1627 }
 0x326   : > { %v3673_v24 = vpop.eup %3672 }
 0x327   : > { %1464 = vadd.xlane.f32.xlu0 %v3665_v17  ;;  %v1781_v39 = vpack.c.bf16 %v3673_v24, %v3671_v15  ;;  %v3675_v43 = vpop.eup %3674 }
 0x328   : > { %v4720_v20 = vpop.permute.xlu1 %1602 }
 0x329   : > { %1454 = vadd.xlane.f32.xlu1 %v3655_v61  ;;  %3414 = vmatprep.mubr.bf16.mxu1 %v1781_v39  ;;  %v1092_v61 = vmul.f32 1.442695, %v1029_v32  ;;  %v4718_v2 = vpop.permute.xlu0 %1637  ;;  %v1352_v39 = vld [vmem:[#allocation3 + $0x10] sm:$0xff] }
 0x32a   : > { %v3677_v8 = vpop.eup %3676 }
 0x32b   : > { %1476 = vadd.xlane.f32.xlu0 %v3677_v8  ;;  %v1782_v59 = vpack.c.bf16 %v3677_v8, %v3675_v43  ;;  %3680 = vpow2.f32 %v1092_v61  ;;  %v4724_v44 = vpop.eup %3678  ;;  %v1384_v8 = vmul.f32 %v4541_v11, %v1352_v39  ;;  %v1382_v61 = vmul.f32 %v4533_v41, %v1350_v45  ;;  %v1355_v41 = vld [vmem:[#allocation3 + $0x28] sm:$0xff] }
 0x32c   : > { %v4726_v53 = vpop.permute.xlu1 %1612 }
 0x32d   : > { %1466 = vadd.xlane.f32.xlu1 %v3667_v26  ;;  %3415 = vmatmul.mubr.bf16.gmra.mxu1 %v1782_v59  ;;  %v4722_v58 = vpop.permute.xlu0 %1647 }
 0x32f   : > { %1472 = vadd.xlane.f32.xlu0 %v3673_v24 }
 0x330   : > { %v4733_v32 = vpop.permute.xlu1 %1622 }
 0x331   : > { %1462 = vadd.xlane.f32.xlu1 %v3663_v40  ;;  %v4729_v22 = vpop.permute.xlu0 %1657 }
 0x334   : > { %v4738_v25 = vpop.permute.xlu1 %1632 }
 0x335   : > { %1474 = vadd.xlane.f32.xlu1 %v3675_v43  ;;  %v4736_v49 = vpop.permute.xlu0 %1667 }
 0x338   : > { %v4731_v30 = vpop.eup %3680  ;;  %v4742_v40 = vpop.permute.xlu1 %1642 }
 0x339   : > { %1470 = vadd.xlane.f32.xlu1 %v3671_v15  ;;  %v4740_v31 = vpop.permute.xlu0 %1677 }
 0x33a   : > { %5168 = vst [vmem:[#allocation6_spill] sm:$0xff] %v4740_v31  ;;  %v1353_v31 = vld [vmem:[#allocation3 + $0x18] sm:$0xff] }
 0x33c   : > { %v4746_v54 = vpop.permute.xlu1 %1652 }
 0x33d   : > { %v4744_v17 = vpop.permute.xlu0 %1687 }
 0x33e   : > { %5169 = vst [vmem:[#allocation8_spill] sm:$0xff] %v4744_v17 }
 0x340   : > { %v4750_v34 = vpop.permute.xlu1 %1662 }
 0x341   : > { %v4748_v26 = vpop.permute.xlu0 %1707  ;;  %5171 = vst [vmem:[#allocation7_spill] sm:$0xff] %v4750_v34 }
 0x342   : > { %5170 = vst [vmem:[#allocation5_spill] sm:$0xff] %v4748_v26 }
 0x344   : > { %v4754_v15 = vpop.permute.xlu1 %1672 }
 0x345   : > { %1727 = vperm.xlu0 %3520, %v4724_v44   ;;  %v4752_v16 = vpop.permute.xlu0 %1697  ;;  %5173 = vst [vmem:[#allocation11_spill] sm:$0xff] %v4754_v15  ;;  %v1357_v15 = vld [vmem:[#allocation3 + $0x38] sm:$0xff] }
 0x346   : > { %5172 = vst [vmem:[#allocation10_spill] sm:$0xff] %v4752_v16  ;;  %v1389_v39 = vmul.f32 %v4575_v10, %v1357_v15  ;;  %v1356_v15 = vld [vmem:[#allocation3 + $0x30] sm:$0xff] }
 0x348   : > { %v4758_v43 = vpop.permute.xlu1 %1692 }
 0x349   : > { %v4756_v24 = vpop.permute.xlu0 %1717  ;;  %5175 = vst [vmem:[#allocation12_spill] sm:$0xff] %v4758_v43 }
 0x34a   : > { %1732 = vperm.xlu1 %3519, %v4731_v30   ;;  %5174 = vst [vmem:[#allocation9_spill] sm:$0xff] %v4756_v24  ;;  %v1385_v24 = vmul.f32 %v4554_v42, %v1353_v31 }
 0x34c   : > { %v4763_v17 = vpop.permute.xlu1 %1682 }
 0x350   : > { %v4767_v11 = vpop.permute.xlu1 %1712 }
 0x354   : > { %v4773_v45 = vpop.permute.xlu1 %1702 }
 0x358   : > { %v4776_v31 = vpop.permute.xlu1 %1722 }
 0x36f   : > { %v1419_v59 = vpop.xlane.xlu0 %1418 }
 0x370   : > { %v1480_v1 = vadd.f32 %v1419_v59, %v1384_v8 }
 0x372   : > { %1513 = vst.msk [vmem:[#allocation3 + $0x10] sm:$0xff] %vm1510_vm3, %v1480_v1 }
 0x373   : > { %v1415_v26 = vpop.xlane.xlu0 %1414 }
 0x374   : > { %v1478_v16 = vadd.f32 %v1415_v26, %v1382_v61  ;;  %v1387_v26 = vmul.f32 %v4562_v14, %v1355_v41  ;;  %v1388_v41 = vmul.f32 %v4519_v12, %v1356_v15 }
 0x376   : > { %1511 = vst.msk [vmem:[#allocation3] sm:$0xff] %vm1510_vm3, %v1478_v16 }
 0x377   : > { %v1421_v34 = vpop.xlane.xlu0 %1420 }
 0x378   : > { %v1481_v43 = vadd.f32 %v1421_v34, %v1385_v24  ;;  %v1351_v34 = vld [vmem:[#allocation3 + $0x8] sm:$0xff]  ;;  %v1361_v24 = vld [vmem:[#allocation3 + $0x58] sm:$0xff] }
 0x379   : > { %v1393_v61 = vmul.f32 %v4592_v47, %v1361_v24 }
 0x37a   : > { %1514 = vst.msk [vmem:[#allocation3 + $0x18] sm:$0xff] %vm1510_vm3, %v1481_v43  ;;  %v1383_v43 = vmul.f32 %v4499_v50, %v1351_v34  ;;  %v1365_v34 = vld [vmem:[#allocation3 + $0x78] sm:$0xff] }
 0x37b   : > { %v1397_v12 = vmul.f32 %v4610_v27, %v1365_v34 }
 0x37c   : > { %v1429_v8 = vpop.xlane.xlu0 %1428 }
 0x37d   : > { %v1485_v59 = vadd.f32 %v1429_v8, %v1389_v39  ;;  %v1359_v8 = vld [vmem:[#allocation3 + $0x48] sm:$0xff] }
 0x37f   : > { %1518 = vst.msk [vmem:[#allocation3 + $0x38] sm:$0xff] %vm1510_vm3, %v1485_v59 }
 0x380   : > { %v1425_v16 = vpop.xlane.xlu0 %1424 }
 0x381   : > { %v1483_v42 = vadd.f32 %v1425_v16, %v1387_v26  ;;  %v1354_v26 = vld [vmem:[#allocation3 + $0x20] sm:$0xff] }
 0x382   : > { %v1386_v47 = vmul.f32 %v4508_v51, %v1354_v26  ;;  %v1369_v26 = vld [vmem:[#allocation3 + $0x98] sm:$0xff] }
 0x383   : > { %1516 = vst.msk [vmem:[#allocation3 + $0x28] sm:$0xff] %vm1510_vm3, %v1483_v42  ;;  %v1391_v42 = vmul.f32 %v4583_v23, %v1359_v8 }
 0x38a   : > { %v1417_v10 = vpop.xlane.xlu1 %1416 }
 0x38b   : > { %v1479_v1 = vadd.f32 %v1417_v10, %v1383_v43  ;;  %v1360_v10 = vld [vmem:[#allocation3 + $0x50] sm:$0xff] }
 0x38c   : > { %v1437_v39 = vpop.xlane.xlu0 %1436  ;;  %v1392_v23 = vmul.f32 %v4538_v6, %v1360_v10  ;;  %v1401_v6 = vmul.f32 %v4630_v56, %v1369_v26 }
 0x38d   : > { %1512 = vst.msk [vmem:[#allocation3 + $0x8] sm:$0xff] %vm1510_vm3, %v1479_v1  ;;  %v1489_v14 = vadd.f32 %v1437_v39, %v1393_v61  ;;  %v1363_v61 = vld [vmem:[#allocation3 + $0x68] sm:$0xff] }
 0x38e   : > { %v1427_v59 = vpop.xlane.xlu1 %1426  ;;  %v1395_v51 = vmul.f32 %v4601_v29, %v1363_v61  ;;  %v1373_v61 = vld [vmem:[#allocation3 + $0xb8] sm:$0xff] }
 0x38f   : > { %1522 = vst.msk [vmem:[#allocation3 + $0x58] sm:$0xff] %vm1510_vm3, %v1489_v14  ;;  %v1484_v16 = vadd.f32 %v1427_v59, %v1388_v41  ;;  %v1358_v14 = vld [vmem:[#allocation3 + $0x40] sm:$0xff] }
 0x390   : > { %v1433_v50 = vpop.xlane.xlu0 %1432  ;;  %v1390_v27 = vmul.f32 %v4525_v13, %v1358_v14 }
 0x391   : > { %1517 = vst.msk [vmem:[#allocation3 + $0x30] sm:$0xff] %vm1510_vm3, %v1484_v16  ;;  %v1487_v43 = vadd.f32 %v1433_v50, %v1391_v42  ;;  %v1364_v50 = vld [vmem:[#allocation3 + $0x70] sm:$0xff] }
 0x392   : > { %v1423_v24 = vpop.xlane.xlu1 %1422  ;;  %v1396_v29 = vmul.f32 %v4559_v63, %v1364_v50  ;;  %v1405_v63 = vmul.f32 %v4633_v36, %v1373_v61  ;;  %v1377_v36 = vld [vmem:[#allocation3 + $0xd8] sm:$0xff] }
 0x393   : > { %1520 = vst.msk [vmem:[#allocation3 + $0x48] sm:$0xff] %vm1510_vm3, %v1487_v43  ;;  %v1482_v1 = vadd.f32 %v1423_v24, %v1386_v47  ;;  %v1367_v47 = vld [vmem:[#allocation3 + $0x88] sm:$0xff] }
 0x394   : > { %v1445_v15 = vpop.xlane.xlu0 %1444  ;;  %v1399_v13 = vmul.f32 %v4619_v9, %v1367_v47 }
 0x395   : > { %1515 = vst.msk [vmem:[#allocation3 + $0x20] sm:$0xff] %vm1510_vm3, %v1482_v1  ;;  %v1493_v39 = vadd.f32 %v1445_v15, %v1397_v12  ;;  %v1362_v1 = vld [vmem:[#allocation3 + $0x60] sm:$0xff] }
 0x396   : > { %v1435_v8 = vpop.xlane.xlu1 %1434  ;;  %v1394_v56 = vmul.f32 %v4546_v21, %v1362_v1 }
 0x397   : > { %1526 = vst.msk [vmem:[#allocation3 + $0x78] sm:$0xff] %vm1510_vm3, %v1493_v39  ;;  %v1488_v41 = vadd.f32 %v1435_v8, %v1392_v23  ;;  %v1368_v8 = vld [vmem:[#allocation3 + $0x90] sm:$0xff] }
 0x398   : > { %v1441_v59 = vpop.xlane.xlu0 %1440  ;;  %v1400_v26 = vmul.f32 %v4580_v52, %v1368_v8 }
 0x399   : > { %1521 = vst.msk [vmem:[#allocation3 + $0x50] sm:$0xff] %vm1510_vm3, %v1488_v41  ;;  %v1491_v16 = vadd.f32 %v1441_v59, %v1395_v51  ;;  %v1371_v51 = vld [vmem:[#allocation3 + $0xa8] sm:$0xff]  ;;  %v1545_v59 = vld [vmem:[#allocation4 + $0x10] sm:$0xff] }
 0x39a   : > { %v1431_v42 = vpop.xlane.xlu1 %1430  ;;  %v1403_v50 = vmul.f32 %v4638_v48, %v1371_v51 }
 0x39b   : > { %1524 = vst.msk [vmem:[#allocation3 + $0x68] sm:$0xff] %vm1510_vm3, %v1491_v16  ;;  %v1486_v34 = vadd.f32 %v1431_v42, %v1390_v27  ;;  %v1366_v27 = vld [vmem:[#allocation3 + $0x80] sm:$0xff] }
 0x39c   : > { %v1453_v43 = vpop.xlane.xlu0 %1452  ;;  %v1543_v42 = vld [vmem:[#allocation4] sm:$0xff] }
 0x39d   : > { %1519 = vst.msk [vmem:[#allocation3 + $0x40] sm:$0xff] %vm1510_vm3, %v1486_v34  ;;  %v1497_v24 = vadd.f32 %v1453_v43, %v1401_v6  ;;  %v1737_v34 = vmul.f32 %v4706_v37, %v1545_v59  ;;  %v1546_v43 = vld [vmem:[#allocation4 + $0x18] sm:$0xff]  ;;  %v1735_v52 = vmul.f32 %v4702_v55, %v1543_v42  ;;  %v1409_v37 = vmul.f32 %v4642_v28, %v1377_v36  ;;  %v1370_v28 = vld [vmem:[#allocation3 + $0xa0] sm:$0xff]  ;;  %v1376_v42 = vld [vmem:[#allocation3 + $0xd0] sm:$0xff] }
 0x39e   : > { %v1443_v10 = vpop.xlane.xlu1 %1442  ;;  %v1738_v61 = vmul.f32 %v4716_v5, %v1546_v43  ;;  %v1408_v36 = vmul.f32 %v4604_v18, %v1376_v42  ;;  %v1549_v43 = vld [vmem:[#allocation4 + $0x30] sm:$0xff] }
 0x39f   : > { %1530 = vst.msk [vmem:[#allocation3 + $0x98] sm:$0xff] %vm1510_vm3, %v1497_v24  ;;  %v1492_v12 = vadd.f32 %v1443_v10, %v1396_v29  ;;  %v1398_v29 = vmul.f32 %v4567_v38, %v1366_v27 }
 0x3a0   : > { %v1449_v15 = vpop.xlane.xlu0 %1448 }
 0x3a1   : > { %1525 = vst.msk [vmem:[#allocation3 + $0x70] sm:$0xff] %vm1510_vm3, %v1492_v12  ;;  %v1495_v39 = vadd.f32 %v1449_v15, %v1399_v13  ;;  %v1372_v12 = vld [vmem:[#allocation3 + $0xb0] sm:$0xff]  ;;  %v1544_v13 = vld [vmem:[#allocation4 + $0x8] sm:$0xff] }
 0x3a2   : > { %v1439_v23 = vpop.xlane.xlu1 %1438  ;;  %v1404_v8 = vmul.f32 %v4595_v19, %v1372_v12 }
 0x3a3   : > { %1528 = vst.msk [vmem:[#allocation3 + $0x88] sm:$0xff] %vm1510_vm3, %v1495_v39  ;;  %v1490_v14 = vadd.f32 %v1439_v23, %v1394_v56  ;;  %v1375_v23 = vld [vmem:[#allocation3 + $0xc8] sm:$0xff] }
 0x3a4   : > { %v1461_v41 = vpop.xlane.xlu0 %1460  ;;  %v1407_v59 = vmul.f32 %v4646_v46, %v1375_v23 }
 0x3a5   : > { %1523 = vst.msk [vmem:[#allocation3 + $0x60] sm:$0xff] %vm1510_vm3, %v1490_v14  ;;  %v1501_v9 = vadd.f32 %v1461_v41, %v1405_v63  ;;  %v1736_v14 = vmul.f32 %v4696_v7, %v1544_v13  ;;  %v1402_v7 = vmul.f32 %v4586_v3, %v1370_v28  ;;  %v1550_v13 = vld [vmem:[#allocation4 + $0x38] sm:$0xff]  ;;  %v1553_v28 = vld [vmem:[#allocation4 + $0x50] sm:$0xff] }
 0x3a6   : > { %v1451_v16 = vpop.xlane.xlu1 %1450  ;;  %v1742_v23 = vmul.f32 %v4726_v53, %v1550_v13 }
 0x3a7   : > { %1534 = vst.msk [vmem:[#allocation3 + $0xb8] sm:$0xff] %vm1510_vm3, %v1501_v9  ;;  %v1496_v21 = vadd.f32 %v1451_v16, %v1400_v26  ;;  %v1381_v16 = vld [vmem:[#allocation3 + $0xf8] sm:$0xff] }
 0x3a8   : > { %v1457_v6 = vpop.xlane.xlu0 %1456 }
 0x3a9   : > { %1529 = vst.msk [vmem:[#allocation3 + $0x90] sm:$0xff] %vm1510_vm3, %v1496_v21  ;;  %v1499_v47 = vadd.f32 %v1457_v6, %v1403_v50  ;;  %v3388_v24 = vpop.f32.mrf.mxu1  ;;  %v1413_v50 = vmul.f32 %v4731_v30, %v1381_v16 }
 0x3aa   : > { %v1978_v10 = vadd.f32 %v3388_v24, %v1737_v34  ;;  %v1447_v1 = vpop.xlane.xlu1 %1446  ;;  %v1379_v34 = vld [vmem:[#allocation3 + $0xe8] sm:$0xff]  ;;  %v1374_v24 = vld [vmem:[#allocation3 + $0xc0] sm:$0xff] }
 0x3ab   : > { %1532 = vst.msk [vmem:[#allocation3 + $0xa8] sm:$0xff] %vm1510_vm3, %v1499_v47  ;;  %v1494_v48 = vadd.f32 %v1447_v1, %v1398_v29  ;;  %v1849_v15 = vpop.f32.mrf.mxu1  ;;  %v1411_v29 = vmul.f32 %v4649_v4, %v1379_v34  ;;  %v1741_v1 = vmul.f32 %v4700_v62, %v1549_v43  ;;  %v1406_v12 = vmul.f32 %v4613_v0, %v1374_v24  ;;  %v1548_v4 = vld [vmem:[#allocation4 + $0x28] sm:$0xff]  ;;  %v1555_v34 = vld [vmem:[#allocation4 + $0x60] sm:$0xff]  ;;  %v1558_v43 = vld [vmem:[#allocation4 + $0x78] sm:$0xff] }
 0x3ac   : > { %2010 = vst.msk [vmem:[#allocation4 + $0x10] sm:$0xff] %vm636_vm2, %v1978_v10  ;;  %v1976_v39 = vadd.f32 %v1849_v15, %v1735_v52  ;;  %v1469_v56 = vpop.xlane.xlu0 %1468  ;;  %v1547_v52 = vld [vmem:[#allocation4 + $0x20] sm:$0xff]  ;;  %v1380_v15 = vld [vmem:[#allocation3 + $0xf0] sm:$0xff] }
 0x3ad   : > { %1527 = vst.msk [vmem:[#allocation3 + $0x80] sm:$0xff] %vm1510_vm3, %v1494_v48  ;;  %v1505_v38 = vadd.f32 %v1469_v56, %v1409_v37  ;;  %v3389_v55 = vpop.f32.mrf.mxu1  ;;  %v1739_v37 = vmul.f32 %v4698_v35, %v1547_v52  ;;  %v1412_v0 = vmul.f32 %v4724_v44, %v1380_v15  ;;  %v1740_v35 = vmul.f32 %v4720_v20, %v1548_v4  ;;  %v1551_v44 = vld [vmem:[#allocation4 + $0x40] sm:$0xff] }
 0x3ae   : > { %2008 = vst.msk [vmem:[#allocation4] sm:$0xff] %vm636_vm2, %v1976_v39  ;;  %v1979_v63 = vadd.f32 %v3389_v55, %v1738_v61  ;;  %v1459_v41 = vpop.xlane.xlu1 %1458  ;;  %v1745_v20 = vmul.f32 %v4711_v57, %v1553_v28  ;;  %v1743_v16 = vmul.f32 %v4704_v33, %v1551_v44  ;;  %v5179_v28 = vld [vmem:[#allocation6_spill] sm:$0xff] }
 0x3af   : > { %1538 = vst.msk [vmem:[#allocation3 + $0xd8] sm:$0xff] %vm1510_vm3, %v1505_v38  ;;  %v1500_v5 = vadd.f32 %v1459_v41, %v1404_v8  ;;  %v1852_v51 = vpop.f32.mrf.mxu1  ;;  %v1378_v8 = vld [vmem:[#allocation3 + $0xe0] sm:$0xff] }
 0x3b0   : > { %2011 = vst.msk [vmem:[#allocation4 + $0x18] sm:$0xff] %vm636_vm2, %v1979_v63  ;;  %v1977_v9 = vadd.f32 %v1852_v51, %v1736_v14  ;;  %v1465_v26 = vpop.xlane.xlu0 %1464 }
 0x3b1   : > { %1533 = vst.msk [vmem:[#allocation3 + $0xb0] sm:$0xff] %vm1510_vm3, %v1500_v5  ;;  %v1503_v19 = vadd.f32 %v1465_v26, %v1407_v59  ;;  %v1410_v5 = vmul.f32 %v4622_v60, %v1378_v8 }
 0x3b2   : > { %2009 = vst.msk [vmem:[#allocation4 + $0x8] sm:$0xff] %vm636_vm2, %v1977_v9  ;;  %v1455_v27 = vpop.xlane.xlu1 %1454  ;;  %v1554_v9 = vld [vmem:[#allocation4 + $0x58] sm:$0xff] }
 0x3b3   : > { %1536 = vst.msk [vmem:[#allocation3 + $0xc8] sm:$0xff] %vm1510_vm3, %v1503_v19  ;;  %v1498_v21 = vadd.f32 %v1455_v27, %v1402_v7  ;;  %v1552_v7 = vld [vmem:[#allocation4 + $0x48] sm:$0xff]  ;;  %v1746_v42 = vmul.f32 %v4738_v25, %v1554_v9  ;;  %v1747_v25 = vmul.f32 %v4718_v2, %v1555_v34 }
 0x3b4   : > { %v1477_v46 = vpop.xlane.xlu0 %1476  ;;  %v5182_v34 = vld [vmem:[#allocation10_spill] sm:$0xff] }
 0x3b5   : > { %1531 = vst.msk [vmem:[#allocation3 + $0xa0] sm:$0xff] %vm1510_vm3, %v1498_v21  ;;  %v1509_v6 = vadd.f32 %v1477_v46, %v1413_v50  ;;  %v1557_v21 = vld [vmem:[#allocation4 + $0x70] sm:$0xff]  ;;  %v1744_v46 = vmul.f32 %v4733_v32, %v1552_v7  ;;  %v1750_v32 = vmul.f32 %v4746_v54, %v1558_v43 }
 0x3b6   : > { %v1467_v47 = vpop.xlane.xlu1 %1466 }
 0x3b7   : > { %1542 = vst.msk [vmem:[#allocation3 + $0xf8] sm:$0xff] %vm1510_vm3, %v1509_v6  ;;  %v1504_v3 = vadd.f32 %v1467_v47, %v1408_v36  ;;  %v1749_v36 = vmul.f32 %v4722_v58, %v1557_v21 }
 0x3b8   : > { %v1473_v10 = vpop.xlane.xlu0 %1472 }
 0x3b9   : > { %1537 = vst.msk [vmem:[#allocation3 + $0xd0] sm:$0xff] %vm1510_vm3, %v1504_v3  ;;  %v1507_v30 = vadd.f32 %v1473_v10, %v1411_v29  ;;  %v1556_v3 = vld [vmem:[#allocation4 + $0x68] sm:$0xff]  ;;  %v1561_v10 = vld [vmem:[#allocation4 + $0x90] sm:$0xff] }
 0x3ba   : > { %v3392_v48 = vpop.f32.mrf.mxu1  ;;  %v1463_v18 = vpop.xlane.xlu1 %1462  ;;  %v1748_v58 = vmul.f32 %v4742_v40, %v1556_v3  ;;  %v1753_v2 = vmul.f32 %v4736_v49, %v1561_v10  ;;  %v5176_v40 = vld [vmem:[#allocation11_spill] sm:$0xff] }
 0x3bb   : > { %1540 = vst.msk [vmem:[#allocation3 + $0xe8] sm:$0xff] %vm1510_vm3, %v1507_v30  ;;  %v1982_v61 = vadd.f32 %v3392_v48, %v1741_v1  ;;  %v1502_v39 = vadd.f32 %v1463_v18, %v1406_v12  ;;  %v1559_v12 = vld [vmem:[#allocation4 + $0x80] sm:$0xff]  ;;  %v1562_v18 = vld [vmem:[#allocation4 + $0x98] sm:$0xff]  ;;  %v5177_v49 = vld [vmem:[#allocation7_spill] sm:$0xff] }
 0x3bc   : > { %v1865_v56 = vpop.f32.mrf.mxu1  ;;  %v1751_v54 = vmul.f32 %v4729_v22, %v1559_v12  ;;  %v1754_v4 = vmul.f32 %v5176_v40, %v1562_v18  ;;  %v5178_v22 = vld [vmem:[#allocation8_spill] sm:$0xff]  ;;  %v1572_v18 = vld [vmem:[#allocation4 + $0xe8] sm:$0xff] }
 0x3bd   : > { %2014 = vst.msk [vmem:[#allocation4 + $0x30] sm:$0xff] %vm636_vm2, %v1982_v61  ;;  %v1980_v62 = vadd.f32 %v1865_v56, %v1739_v37  ;;  %v1560_v61 = vld [vmem:[#allocation4 + $0x88] sm:$0xff] }
 0x3be   : > { %1535 = vst.msk [vmem:[#allocation3 + $0xc0] sm:$0xff] %vm1510_vm3, %v1502_v39  ;;  %v3393_v38 = vpop.f32.mrf.mxu1  ;;  %v1475_v55 = vpop.xlane.xlu1 %1474 }
 0x3bf   : > { %2012 = vst.msk [vmem:[#allocation4 + $0x20] sm:$0xff] %vm636_vm2, %v1980_v62  ;;  %v1983_v14 = vadd.f32 %v3393_v38, %v1742_v23  ;;  %v1508_v63 = vadd.f32 %v1475_v55, %v1412_v0  ;;  %v1565_v23 = vld [vmem:[#allocation4 + $0xb0] sm:$0xff]  ;;  %v1752_v0 = vmul.f32 %v5177_v49, %v1560_v61  ;;  %v1563_v55 = vld [vmem:[#allocation4 + $0xa0] sm:$0xff]  ;;  %v1764_v61 = vmul.f32 %v4776_v31, %v1572_v18 }
 0x3c0   : > { %v1868_v41 = vpop.f32.mrf.mxu1 }
 0x3c1   : > { %2015 = vst.msk [vmem:[#allocation4 + $0x38] sm:$0xff] %vm636_vm2, %v1983_v14  ;;  %v1981_v53 = vadd.f32 %v1868_v41, %v1740_v35  ;;  %v1757_v35 = vmul.f32 %v5178_v22, %v1565_v23 }
 0x3c2   : > { %1541 = vst.msk [vmem:[#allocation3 + $0xf0] sm:$0xff] %vm1510_vm3, %v1508_v63  ;;  %v1471_v51 = vpop.xlane.xlu1 %1470  ;;  %v1566_v63 = vld [vmem:[#allocation4 + $0xb8] sm:$0xff] }
 0x3c3   : > { %2013 = vst.msk [vmem:[#allocation4 + $0x28] sm:$0xff] %vm636_vm2, %v1981_v53  ;;  %v1506_v59 = vadd.f32 %v1471_v51, %v1410_v5  ;;  %v1755_v53 = vmul.f32 %v5179_v28, %v1563_v55  ;;  %v1564_v51 = vld [vmem:[#allocation4 + $0xa8] sm:$0xff] }
 0x3c5   : > { %1539 = vst.msk [vmem:[#allocation3 + $0xe0] sm:$0xff] %vm1510_vm3, %v1506_v59  ;;  %v3396_v26 = vpop.f32.mrf.mxu1  ;;  %v5180_v59 = vld [vmem:[#allocation12_spill] sm:$0xff] }
 0x3c6   : > { %v1986_v19 = vadd.f32 %v3396_v26, %v1745_v20  ;;  %v1758_v20 = vmul.f32 %v5180_v59, %v1566_v63  ;;  %v1569_v26 = vld [vmem:[#allocation4 + $0xd0] sm:$0xff]  ;;  %v1733_v12 = vpop.permute.xlu1 %1732 }
 0x3c7   : > { %v1881_v27 = vpop.f32.mrf.mxu1 }
 0x3c8   : > { %2018 = vst.msk [vmem:[#allocation4 + $0x50] sm:$0xff] %vm636_vm2, %v1986_v19  ;;  %v1984_v60 = vadd.f32 %v1881_v27, %v1743_v16  ;;  %v1756_v19 = vmul.f32 %v4763_v17, %v1564_v51  ;;  %v1567_v27 = vld [vmem:[#allocation4 + $0xc0] sm:$0xff] }
 0x3c9   : > { %v3397_v50 = vpop.f32.mrf.mxu1 }
 0x3ca   : > { %2016 = vst.msk [vmem:[#allocation4 + $0x40] sm:$0xff] %vm636_vm2, %v1984_v60  ;;  %v1987_v57 = vadd.f32 %v3397_v50, %v1746_v42  ;;  %v5181_v60 = vld [vmem:[#allocation5_spill] sm:$0xff] }
 0x3cb   : > { %v1884_v6 = vpop.f32.mrf.mxu1  ;;  %v1761_v21 = vmul.f32 %v5181_v60, %v1569_v26 }
 0x3cc   : > { %2019 = vst.msk [vmem:[#allocation4 + $0x58] sm:$0xff] %vm636_vm2, %v1987_v57  ;;  %v1985_v33 = vadd.f32 %v1884_v6, %v1744_v46  ;;  %v1570_v46 = vld [vmem:[#allocation4 + $0xd8] sm:$0xff]  ;;  %v1759_v6 = vmul.f32 %v5182_v34, %v1567_v27 }
 0x3cd   : > { %v3400_v47 = vpop.f32.mrf.mxu1  ;;  %v1762_v17 = vmul.f32 %v4767_v11, %v1570_v46 }
 0x3ce   : > { %2017 = vst.msk [vmem:[#allocation4 + $0x48] sm:$0xff] %vm636_vm2, %v1985_v33  ;;  %v1990_v24 = vadd.f32 %v3400_v47, %v1749_v36  ;;  %v1568_v33 = vld [vmem:[#allocation4 + $0xc8] sm:$0xff] }
 0x3cf   : > { %v1897_v29 = vpop.f32.mrf.mxu1 }
 0x3d0   : > { %2022 = vst.msk [vmem:[#allocation4 + $0x70] sm:$0xff] %vm636_vm2, %v1990_v24  ;;  %v1988_v52 = vadd.f32 %v1897_v29, %v1747_v25  ;;  %v1573_v25 = vld [vmem:[#allocation4 + $0xf0] sm:$0xff]  ;;  %v1728_v24 = vpop.permute.xlu0 %1727  ;;  %v1760_v29 = vmul.f32 %v4773_v45, %v1568_v33 }
 0x3d1   : > { %v3401_v1 = vpop.f32.mrf.mxu1 }
 0x3d2   : > { %2020 = vst.msk [vmem:[#allocation4 + $0x60] sm:$0xff] %vm636_vm2, %v1988_v52  ;;  %v1991_v30 = vadd.f32 %v3401_v1, %v1750_v32  ;;  %v1571_v52 = vld [vmem:[#allocation4 + $0xe0] sm:$0xff]  ;;  %v1765_v1 = vmul.f32 %v1728_v24, %v1573_v25 }
 0x3d3   : > { %v1900_v13 = vpop.f32.mrf.mxu1 }
 0x3d4   : > { %2023 = vst.msk [vmem:[#allocation4 + $0x78] sm:$0xff] %vm636_vm2, %v1991_v30  ;;  %v1989_v48 = vadd.f32 %v1900_v13, %v1748_v58  ;;  %v1574_v30 = vld [vmem:[#allocation4 + $0xf8] sm:$0xff]  ;;  %v5183_v13 = vld [vmem:[#allocation9_spill] sm:$0xff] }
 0x3d5   : > { %v3404_v15 = vpop.f32.mrf.mxu1  ;;  %v1766_v45 = vmul.f32 %v1733_v12, %v1574_v30 }
 0x3d6   : > { %2021 = vst.msk [vmem:[#allocation4 + $0x68] sm:$0xff] %vm636_vm2, %v1989_v48  ;;  %v1994_v37 = vadd.f32 %v3404_v15, %v1753_v2  ;;  %v1763_v2 = vmul.f32 %v5183_v13, %v1571_v52 }
 0x3d7   : > { %v1913_v39 = vpop.f32.mrf.mxu1 }
 0x3d8   : > { %2026 = vst.msk [vmem:[#allocation4 + $0x90] sm:$0xff] %vm636_vm2, %v1994_v37  ;;  %v1992_v56 = vadd.f32 %v1913_v39, %v1751_v54 }
 0x3d9   : > { %v3405_v62 = vpop.f32.mrf.mxu1 }
 0x3da   : > { %2024 = vst.msk [vmem:[#allocation4 + $0x80] sm:$0xff] %vm636_vm2, %v1992_v56  ;;  %v1995_v38 = vadd.f32 %v3405_v62, %v1754_v4 }
 0x3db   : > { %v1916_v8 = vpop.f32.mrf.mxu1 }
 0x3dc   : > { %2027 = vst.msk [vmem:[#allocation4 + $0x98] sm:$0xff] %vm636_vm2, %v1995_v38  ;;  %v1993_v14 = vadd.f32 %v1916_v8, %v1752_v0 }
 0x3dd   : > { %v3408_v41 = vpop.f32.mrf.mxu1 }
 0x3de   : > { %2025 = vst.msk [vmem:[#allocation4 + $0x88] sm:$0xff] %vm636_vm2, %v1993_v14  ;;  %v1998_v5 = vadd.f32 %v3408_v41, %v1757_v35 }
 0x3df   : > { %v1929_v44 = vpop.f32.mrf.mxu1 }
 0x3e0   : > { %2030 = vst.msk [vmem:[#allocation4 + $0xb0] sm:$0xff] %vm636_vm2, %v1998_v5  ;;  %v1996_v9 = vadd.f32 %v1929_v44, %v1755_v53 }
 0x3e1   : > { %v3409_v16 = vpop.f32.mrf.mxu1 }
 0x3e2   : > { %2028 = vst.msk [vmem:[#allocation4 + $0xa0] sm:$0xff] %vm636_vm2, %v1996_v9  ;;  %v1999_v7 = vadd.f32 %v3409_v16, %v1758_v20 }
 0x3e3   : > { %v1932_v42 = vpop.f32.mrf.mxu1 }
 0x3e4   : > { %2031 = vst.msk [vmem:[#allocation4 + $0xb8] sm:$0xff] %vm636_vm2, %v1999_v7  ;;  %v1997_v50 = vadd.f32 %v1932_v42, %v1756_v19 }
 0x3e5   : > { %v3412_v57 = vpop.f32.mrf.mxu1 }
 0x3e6   : > { %2029 = vst.msk [vmem:[#allocation4 + $0xa8] sm:$0xff] %vm636_vm2, %v1997_v50  ;;  %v2002_v36 = vadd.f32 %v3412_v57, %v1761_v21 }
 0x3e7   : > { %v1945_v43 = vpop.f32.mrf.mxu1 }
 0x3e8   : > { %2034 = vst.msk [vmem:[#allocation4 + $0xd0] sm:$0xff] %vm636_vm2, %v2002_v36  ;;  %v2000_v47 = vadd.f32 %v1945_v43, %v1759_v6 }
 0x3e9   : > { %v3413_v3 = vpop.f32.mrf.mxu1 }
 0x3ea   : > { %2032 = vst.msk [vmem:[#allocation4 + $0xc0] sm:$0xff] %vm636_vm2, %v2000_v47  ;;  %v2003_v32 = vadd.f32 %v3413_v3, %v1762_v17 }
 0x3eb   : > { %v1948_v10 = vpop.f32.mrf.mxu1 }
 0x3ec   : > { %2035 = vst.msk [vmem:[#allocation4 + $0xd8] sm:$0xff] %vm636_vm2, %v2003_v32  ;;  %v2001_v58 = vadd.f32 %v1948_v10, %v1760_v29 }
 0x3ed   : > { %v3416_v11 = vpop.f32.mrf.mxu1 }
 0x3ee   : > { %2033 = vst.msk [vmem:[#allocation4 + $0xc8] sm:$0xff] %vm636_vm2, %v2001_v58  ;;  %v2006_v48 = vadd.f32 %v3416_v11, %v1765_v1 }
 0x3ef   : > { %v1961_v15 = vpop.f32.mrf.mxu1 }
 0x3f0   : > { %2038 = vst.msk [vmem:[#allocation4 + $0xf0] sm:$0xff] %vm636_vm2, %v2006_v48  ;;  %v2004_v54 = vadd.f32 %v1961_v15, %v1763_v2 }
 0x3f1   : > { %v3417_v37 = vpop.f32.mrf.mxu1 }
 0x3f2   : > { %2036 = vst.msk [vmem:[#allocation4 + $0xe0] sm:$0xff] %vm636_vm2, %v2004_v54  ;;  %v2007_v39 = vadd.f32 %v3417_v37, %v1766_v45  ;;  %2075 = sbr.rel (%p3084_p8) target bundleno = 1425 (0x591), region = 48 }
 0x3f3   : > { %v1964_v40 = vpop.f32.mrf.mxu1 }
 0x3f4   : > { %2039 = vst.msk [vmem:[#allocation4 + $0xf8] sm:$0xff] %vm636_vm2, %v2007_v39  ;;  %v2005_v4 = vadd.f32 %v1964_v40, %v1764_v61 }
 0x3f6   : > { %2037 = vst.msk [vmem:[#allocation4 + $0xe8] sm:$0xff] %vm636_vm2, %v2005_v4 }
 0x3f7   : > { %v2124_v56 = vld [vmem:[#allocation3 + $0x80] sm:$0xff]  ;;  %v2125_v62 = vld [vmem:[#allocation3 + $0x88] sm:$0xff]  ;;  %v3796_v49 = vmov 0   ;;  %v2111_v0 = vld [vmem:[#allocation3 + $0x18] sm:$0xff]  ;;  %vm2852_vm4 = vcmask 519168  }
 0x3f8   : > { %v2108_v23 = vld [vmem:[#allocation3] sm:$0xff]  ;;  %3683 = vset.pattern.permute.xlu1 %v3796_v49  ;;  %3682 = vset.pattern.permute.xlu0 %v3796_v49  ;;  %3688 = vrcp.f32 %v2124_v56  ;;  %v2109_v31 = vld [vmem:[#allocation3 + $0x8] sm:$0xff]  ;;  %v2110_v38 = vld [vmem:[#allocation3 + $0x10] sm:$0xff] }
 0x3f9   : > { %3690 = vrcp.f32 %v2108_v23  ;;  %v2127_v55 = vld [vmem:[#allocation3 + $0x98] sm:$0xff]  ;;  %v2126_v8 = vld [vmem:[#allocation3 + $0x90] sm:$0xff]  ;;  %v2113_v22 = vld [vmem:[#allocation3 + $0x28] sm:$0xff] }
 0x3fa   : > { %3692 = vrcp.f32 %v2125_v62  ;;  %v3684_v35 = vld [vmem:[%s5057_s2 + $0x18] sm:$0xff]   ;;  %v2112_v14 = vld [vmem:[#allocation3 + $0x20] sm:$0xff]  ;;  %v3685_v63 = vld [vmem:[%s5057_s2 + $0x10] sm:$0xff]  }
 0x3fb   : > { %3694 = vrcp.f32 %v2109_v31  ;;  %3418 = vmatprep.subr.bf16.mxu0 %v3684_v35  ;;  %3458 = vmatprep.subr.bf16.mxu1 %v3684_v35  ;;  %v3686_v53 = vld [vmem:[%s5057_s2 + $0x8] sm:$0xff]   ;;  %v2128_v59 = vld [vmem:[#allocation3 + $0xa0] sm:$0xff]  ;;  %v2115_v26 = vld [vmem:[#allocation3 + $0x38] sm:$0xff] }
 0x3fc   : > { %3696 = vrcp.f32 %v2111_v0  ;;  %3419 = vmatpush3.bf16.msra.mxu0 %v3684_v35  ;;  %3462 = vmatpush3.bf16.msra.mxu1 %v3684_v35  ;;  %v2129_v51 = vld [vmem:[#allocation3 + $0xa8] sm:$0xff]  ;;  %v3687_v20 = vld [vmem:[%s5057_s2] sm:$0xff]   ;;  %v2114_v19 = vld [vmem:[#allocation3 + $0x30] sm:$0xff] }
 0x3fd   : > { %3698 = vrcp.f32 %v2110_v38  ;;  %3420 = vmatprep.subr.bf16.mxu0 %v3685_v63  ;;  %3459 = vmatprep.subr.bf16.mxu1 %v3685_v63  ;;  %v2131_v27 = vld [vmem:[#allocation3 + $0xb8] sm:$0xff]  ;;  %v2130_v60 = vld [vmem:[#allocation3 + $0xb0] sm:$0xff]  ;;  %v2117_v50 = vld [vmem:[#allocation3 + $0x48] sm:$0xff] }
 0x3fe   : > { %3700 = vrcp.f32 %v2127_v55  ;;  %v2116_v57 = vld [vmem:[#allocation3 + $0x40] sm:$0xff]  ;;  %v2133_v6 = vld [vmem:[#allocation3 + $0xc8] sm:$0xff]  ;;  %v2119_v17 = vld [vmem:[#allocation3 + $0x58] sm:$0xff] }
 0x3ff   : > { %3702 = vrcp.f32 %v2126_v8  ;;  %v2132_v33 = vld [vmem:[#allocation3 + $0xc0] sm:$0xff]  ;;  %v2118_v25 = vld [vmem:[#allocation3 + $0x50] sm:$0xff]  ;;  %v2135_v3 = vld [vmem:[#allocation3 + $0xd8] sm:$0xff] }
 0x400   : > { %3704 = vrcp.f32 %v2113_v22  ;;  %3421 = vmatpush3.bf16.msra.mxu0 %v3685_v63  ;;  %3463 = vmatpush3.bf16.msra.mxu1 %v3685_v63  ;;  %v2134_v32 = vld [vmem:[#allocation3 + $0xd0] sm:$0xff]  ;;  %v2121_v10 = vld [vmem:[#allocation3 + $0x68] sm:$0xff]  ;;  %v2120_v58 = vld [vmem:[#allocation3 + $0x60] sm:$0xff] }
 0x401   : > { %3706 = vrcp.f32 %v2112_v14  ;;  %3422 = vmatprep.subr.bf16.mxu0 %v3686_v53  ;;  %3460 = vmatprep.subr.bf16.mxu1 %v3686_v53  ;;  %v2137_v12 = vld [vmem:[#allocation3 + $0xe8] sm:$0xff]  ;;  %v2136_v13 = vld [vmem:[#allocation3 + $0xe0] sm:$0xff]  ;;  %v2123_v48 = vld [vmem:[#allocation3 + $0x78] sm:$0xff] }
 0x402   : > { %3708 = vrcp.f32 %v2129_v51  ;;  %v2122_v15 = vld [vmem:[#allocation3 + $0x70] sm:$0xff]  ;;  %v2139_v54 = vld [vmem:[#allocation3 + $0xf8] sm:$0xff]  ;;  %v2092_v55 = vld [vmem:[#allocation4 + $0x80] sm:$0xff] }
 0x403   : > { %3710 = vrcp.f32 %v2128_v59  ;;  %v2138_v61 = vld [vmem:[#allocation3 + $0xf0] sm:$0xff]  ;;  %v2093_v8 = vld [vmem:[#allocation4 + $0x88] sm:$0xff]  ;;  %v2076_v22 = vld [vmem:[#allocation4] sm:$0xff] }
 0x404   : > { %3423 = vmatpush3.bf16.msra.mxu0 %v3686_v53  ;;  %3464 = vmatpush3.bf16.msra.mxu1 %v3686_v53  ;;  %3712 = vrcp.f32 %v2115_v26  ;;  %v2077_v35 = vld [vmem:[#allocation4 + $0x8] sm:$0xff]  ;;  %v2079_v51 = vld [vmem:[#allocation4 + $0x18] sm:$0xff] }
 0x405   : > { %v3689_v41 = vpop.eup %3688  ;;  %3424 = vmatprep.subr.bf16.mxu0 %v3687_v20  ;;  %3714 = vrcp.f32 %v2114_v19  ;;  %3461 = vmatprep.subr.bf16.mxu1 %v3687_v20 }
 0x406   : > { %v3691_v28 = vpop.eup %3690  ;;  %2254 = vperm.xlu1 %3683, %v3689_v41   ;;  %3716 = vrcp.f32 %v2131_v27  ;;  %v2094_v27 = vld [vmem:[#allocation4 + $0x90] sm:$0xff] }
 0x407   : > { %v3693_v5 = vpop.eup %3692  ;;  %2174 = vperm.xlu0 %3682, %v3691_v28   ;;  %3718 = vrcp.f32 %v2130_v60 }
 0x408   : > { %v3695_v44 = vpop.eup %3694  ;;  %3425 = vmatpush3.bf16.msra.mxu0 %v3687_v20  ;;  %3465 = vmatpush3.bf16.msra.mxu1 %v3687_v20  ;;  %3720 = vrcp.f32 %v2117_v50 }
 0x409   : > { %v3697_v9 = vpop.eup %3696  ;;  %3722 = vrcp.f32 %v2116_v57  ;;  %v2081_v57 = vld [vmem:[#allocation4 + $0x28] sm:$0xff] }
 0x40a   : > { %2259 = vperm.xlu1 %3683, %v3693_v5   ;;  %v3699_v16 = vpop.eup %3698  ;;  %3724 = vrcp.f32 %v2133_v6 }
 0x40b   : > { %2179 = vperm.xlu0 %3682, %v3695_v44   ;;  %v3701_v7 = vpop.eup %3700  ;;  %3726 = vrcp.f32 %v2132_v33  ;;  %v2078_v44 = vld [vmem:[#allocation4 + $0x10] sm:$0xff] }
 0x40c   : > { %v3703_v42 = vpop.eup %3702  ;;  %3728 = vrcp.f32 %v2119_v17 }
 0x40d   : > { %v3705_v21 = vpop.eup %3704  ;;  %3730 = vrcp.f32 %v2118_v25  ;;  %v2096_v25 = vld [vmem:[#allocation4 + $0xa0] sm:$0xff] }
 0x40e   : > { %2189 = vperm.xlu1 %3683, %v3697_v9   ;;  %v3707_v46 = vpop.eup %3706  ;;  %3732 = vrcp.f32 %v2135_v3 }
 0x40f   : > { %2184 = vperm.xlu0 %3682, %v3699_v16   ;;  %v3709_v34 = vpop.eup %3708  ;;  %3734 = vrcp.f32 %v2134_v32 }
 0x410   : > { %v3711_v36 = vpop.eup %3710  ;;  %3736 = vrcp.f32 %v2121_v10  ;;  %v2083_v10 = vld [vmem:[#allocation4 + $0x38] sm:$0xff] }
 0x411   : > { %v3713_v43 = vpop.eup %3712  ;;  %3738 = vrcp.f32 %v2120_v58 }
 0x412   : > { %2269 = vperm.xlu1 %3683, %v3701_v7   ;;  %v3715_v47 = vpop.eup %3714  ;;  %3740 = vrcp.f32 %v2137_v12  ;;  %v2095_v7 = vld [vmem:[#allocation4 + $0x98] sm:$0xff] }
 0x413   : > { %2264 = vperm.xlu0 %3682, %v3703_v42   ;;  %v3717_v24 = vpop.eup %3716  ;;  %3742 = vrcp.f32 %v2136_v13 }
 0x414   : > { %v3719_v29 = vpop.eup %3718  ;;  %3744 = vrcp.f32 %v2123_v48  ;;  %v2098_v48 = vld [vmem:[#allocation4 + $0xb0] sm:$0xff] }
 0x415   : > { %v3721_v52 = vpop.eup %3720  ;;  %3746 = vrcp.f32 %v2122_v15 }
 0x416   : > { %2199 = vperm.xlu1 %3683, %v3705_v21   ;;  %v3723_v1 = vpop.eup %3722  ;;  %3748 = vrcp.f32 %v2139_v54 }
 0x417   : > { %2194 = vperm.xlu0 %3682, %v3707_v46   ;;  %v3725_v30 = vpop.eup %3724  ;;  %3750 = vrcp.f32 %v2138_v61  ;;  %v2085_v61 = vld [vmem:[#allocation4 + $0x48] sm:$0xff] }
 0x418   : > { %v3727_v11 = vpop.eup %3726 }
 0x419   : > { %v3729_v2 = vpop.eup %3728 }
 0x41a   : > { %2279 = vperm.xlu1 %3683, %v3709_v34   ;;  %v3731_v18 = vpop.eup %3730  ;;  %v2080_v34 = vld [vmem:[#allocation4 + $0x20] sm:$0xff] }
 0x41b   : > { %2274 = vperm.xlu0 %3682, %v3711_v36   ;;  %v3733_v45 = vpop.eup %3732 }
 0x41c   : > { %v3735_v37 = vpop.eup %3734 }
 0x41d   : > { %v3737_v39 = vpop.eup %3736 }
 0x41e   : > { %2209 = vperm.xlu1 %3683, %v3713_v43   ;;  %v3739_v40 = vpop.eup %3738 }
 0x41f   : > { %2204 = vperm.xlu0 %3682, %v3715_v47   ;;  %v3741_v4 = vpop.eup %3740  ;;  %v2097_v47 = vld [vmem:[#allocation4 + $0xa8] sm:$0xff] }
 0x420   : > { %v3743_v56 = vpop.eup %3742 }
 0x421   : > { %v3745_v23 = vpop.eup %3744 }
 0x422   : > { %2289 = vperm.xlu1 %3683, %v3717_v24   ;;  %v3747_v62 = vpop.eup %3746 }
 0x423   : > { %2284 = vperm.xlu0 %3682, %v3719_v29   ;;  %v3749_v49 = vpop.eup %3748 }
 0x424   : > { %v3751_v31 = vpop.eup %3750 }
 0x426   : > { %2219 = vperm.xlu1 %3683, %v3721_v52  }
 0x427   : > { %2214 = vperm.xlu0 %3682, %v3723_v1   ;;  %v2082_v1 = vld [vmem:[#allocation4 + $0x30] sm:$0xff] }
 0x42a   : > { %2299 = vperm.xlu1 %3683, %v3725_v30  }
 0x42b   : > { %2294 = vperm.xlu0 %3682, %v3727_v11  }
 0x42e   : > { %2229 = vperm.xlu1 %3683, %v3729_v2   ;;  %v2099_v2 = vld [vmem:[#allocation4 + $0xb8] sm:$0xff] }
 0x42f   : > { %2224 = vperm.xlu0 %3682, %v3731_v18  }
 0x432   : > { %2309 = vperm.xlu1 %3683, %v3733_v45  }
 0x433   : > { %2304 = vperm.xlu0 %3682, %v3735_v37  }
 0x436   : > { %2239 = vperm.xlu1 %3683, %v3737_v39   ;;  %v2084_v39 = vld [vmem:[#allocation4 + $0x40] sm:$0xff] }
 0x437   : > { %2234 = vperm.xlu0 %3682, %v3739_v40  }
 0x43a   : > { %2319 = vperm.xlu1 %3683, %v3741_v4  }
 0x43b   : > { %2314 = vperm.xlu0 %3682, %v3743_v56  }
 0x43e   : > { %2249 = vperm.xlu1 %3683, %v3745_v23  }
 0x43f   : > { %2244 = vperm.xlu0 %3682, %v3747_v62  }
 0x442   : > { %2329 = vperm.xlu1 %3683, %v3749_v49   ;;  %v2101_v49 = vld [vmem:[#allocation4 + $0xc8] sm:$0xff] }
 0x443   : > { %2324 = vperm.xlu0 %3682, %v3751_v31   ;;  %v2100_v31 = vld [vmem:[#allocation4 + $0xc0] sm:$0xff] }
 0x481   : > { %v2255_v0 = vpop.permute.xlu1 %2254 }
 0x482   : > { %v2175_v38 = vpop.permute.xlu0 %2174  ;;  %v2348_v63 = vmul.f32 %v2255_v0, %v2092_v55 }
 0x483   : > { %v2332_v53 = vmul.f32 %v2175_v38, %v2076_v22 }
 0x485   : > { %v2260_v14 = vpop.permute.xlu1 %2259 }
 0x486   : > { %v2349_v41 = vmul.f32 %v2260_v14, %v2093_v8  ;;  %v2180_v28 = vpop.permute.xlu0 %2179  ;;  %v2086_v14 = vld [vmem:[#allocation4 + $0x50] sm:$0xff] }
 0x487   : > { %v2333_v5 = vmul.f32 %v2180_v28, %v2077_v35  ;;  %v2087_v35 = vld [vmem:[#allocation4 + $0x58] sm:$0xff] }
 0x488   : > { %v2372_v59 = vpack.c.bf16 %v2349_v41, %v2348_v63 }
 0x489   : > { %v2190_v20 = vpop.permute.xlu1 %2189  ;;  %v2364_v9 = vpack.c.bf16 %v2333_v5, %v2332_v53 }
 0x48a   : > { %v2335_v26 = vmul.f32 %v2190_v20, %v2079_v51  ;;  %v2185_v16 = vpop.permute.xlu0 %2184  ;;  %3442 = vmatprep.mubr.msk.bf16.mxu1 %vm636_vm2, %v2372_v59  ;;  %v2103_v51 = vld [vmem:[#allocation4 + $0xd8] sm:$0xff] }
 0x48b   : > { %v2334_v19 = vmul.f32 %v2185_v16, %v2078_v44  ;;  %3426 = vmatprep.mubr.msk.bf16.mxu0 %vm636_vm2, %v2364_v9  ;;  %v2102_v44 = vld [vmem:[#allocation4 + $0xd0] sm:$0xff] }
 0x48d   : > { %v2365_v42 = vpack.c.bf16 %v2335_v26, %v2334_v19  ;;  %v2270_v60 = vpop.permute.xlu1 %2269  ;;  %v2089_v19 = vld [vmem:[#allocation4 + $0x68] sm:$0xff] }
 0x48e   : > { %v2351_v21 = vmul.f32 %v2270_v60, %v2095_v7  ;;  %v2265_v50 = vpop.permute.xlu0 %2264  ;;  %v2088_v7 = vld [vmem:[#allocation4 + $0x60] sm:$0xff] }
 0x48f   : > { %v2350_v46 = vmul.f32 %v2265_v50, %v2094_v27  ;;  %3427 = vmatmul.mubr.msk.bf16.vlgmr.msra.gmra.mxu0 %vm636_vm2, %v2365_v42 }
 0x491   : > { %v2373_v6 = vpack.c.bf16 %v2351_v21, %v2350_v46  ;;  %v2200_v36 = vpop.permute.xlu1 %2199  ;;  %v2105_v46 = vld [vmem:[#allocation4 + $0xe8] sm:$0xff] }
 0x492   : > { %v2337_v33 = vmul.f32 %v2200_v36, %v2081_v57  ;;  %v2195_v43 = vpop.permute.xlu0 %2194  ;;  %v2104_v57 = vld [vmem:[#allocation4 + $0xe0] sm:$0xff] }
 0x493   : > { %v2336_v17 = vmul.f32 %v2195_v43, %v2080_v34  ;;  %3443 = vmatmul.mubr.msk.bf16.vlgmr.msra.gmra.mxu1 %vm636_vm2, %v2373_v6 }
 0x495   : > { %v2366_v24 = vpack.c.bf16 %v2337_v33, %v2336_v17  ;;  %v2280_v3 = vpop.permute.xlu1 %2279  ;;  %v2091_v17 = vld [vmem:[#allocation4 + $0x78] sm:$0xff] }
 0x496   : > { %v2353_v29 = vmul.f32 %v2280_v3, %v2097_v47  ;;  %v2275_v32 = vpop.permute.xlu0 %2274  ;;  %v2090_v47 = vld [vmem:[#allocation4 + $0x70] sm:$0xff] }
 0x497   : > { %v2352_v52 = vmul.f32 %v2275_v32, %v2096_v25  ;;  %3430 = vmatprep.mubr.msk.bf16.mxu0 %vm636_vm2, %v2366_v24 }
 0x499   : > { %v2374_v58 = vpack.c.bf16 %v2353_v29, %v2352_v52  ;;  %v2210_v30 = vpop.permute.xlu1 %2209  ;;  %v2107_v52 = vld [vmem:[#allocation4 + $0xf8] sm:$0xff] }
 0x49a   : > { %v2339_v12 = vmul.f32 %v2210_v30, %v2083_v10  ;;  %v2205_v11 = vpop.permute.xlu0 %2204  ;;  %v2106_v10 = vld [vmem:[#allocation4 + $0xf0] sm:$0xff] }
 0x49b   : > { %v2338_v13 = vmul.f32 %v2205_v11, %v2082_v1  ;;  %3446 = vmatprep.mubr.msk.bf16.mxu1 %vm636_vm2, %v2374_v58 }
 0x49d   : > { %v2367_v18 = vpack.c.bf16 %v2339_v12, %v2338_v13  ;;  %v2290_v15 = vpop.permute.xlu1 %2289 }
 0x49e   : > { %v2355_v45 = vmul.f32 %v2290_v15, %v2099_v2  ;;  %v2285_v54 = vpop.permute.xlu0 %2284  ;;  %v3239_v2 = vld [vmem:[%s3868_s12 + $0x8] sm:$0xff]  }
 0x49f   : > { %v2354_v37 = vmul.f32 %v2285_v54, %v2098_v48  ;;  %3431 = vmatmul.mubr.msk.bf16.gmra.mxu0 %vm636_vm2, %v2367_v18  ;;  %v4927_v48 = vld [vmem:[%s5058_s3] ss:$0 sm:$0xff]  ;;  %v3181_v15 = vunpack.c.l.bf16 %v3239_v2  ;;  %v3247_v54 = vld [vmem:[%s3868_s12 + $0x48] sm:$0xff]  }
 0x4a0   : > { %v3176_v18 = vld [vmem:[%s3868_s12] sm:$0xff]  }
 0x4a1   : > { %v2375_v40 = vpack.c.bf16 %v2355_v45, %v2354_v37  ;;  %v2220_v4 = vpop.permute.xlu1 %2219 }
 0x4a2   : > { %v2341_v56 = vmul.f32 %v2220_v4, %v2085_v61  ;;  %v2215_v23 = vpop.permute.xlu0 %2214  ;;  %v3177_v61 = vunpack.c.l.bf16 %v3176_v18 }
 0x4a3   : > { %v2340_v62 = vmul.f32 %v2215_v23, %v2084_v39  ;;  %3447 = vmatmul.mubr.msk.bf16.gmra.mxu1 %vm636_vm2, %v2375_v40  ;;  %v3213_v23 = vunpack.c.l.bf16 %v3247_v54 }
 0x4a5   : > { %v2368_v0 = vpack.c.bf16 %v2341_v56, %v2340_v62  ;;  %v2300_v38 = vpop.permute.xlu1 %2299  ;;  %v3182_v56 = vunpack.c.h.bf16 %v3239_v2  ;;  %v3246_v62 = vld [vmem:[%s3868_s12 + $0x40] sm:$0xff]  }
 0x4a6   : > { %v2357_v55 = vmul.f32 %v2300_v38, %v2101_v49  ;;  %v2295_v8 = vpop.permute.xlu0 %2294 }
 0x4a7   : > { %v2356_v22 = vmul.f32 %v2295_v8, %v2100_v31  ;;  %3434 = vmatprep.mubr.msk.bf16.mxu0 %vm636_vm2, %v2368_v0  ;;  %v3178_v0 = vunpack.c.h.bf16 %v3176_v18 }
 0x4a9   : > { %v2376_v63 = vpack.c.bf16 %v2357_v55, %v2356_v22  ;;  %v2230_v41 = vpop.permute.xlu1 %2229 }
 0x4aa   : > { %v2343_v28 = vmul.f32 %v2230_v41, %v2087_v35  ;;  %v2225_v53 = vpop.permute.xlu0 %2224  ;;  %v3214_v41 = vunpack.c.h.bf16 %v3247_v54 }
 0x4ab   : > { %v2342_v5 = vmul.f32 %v2225_v53, %v2086_v14  ;;  %3450 = vmatprep.mubr.msk.bf16.mxu1 %vm636_vm2, %v2376_v63  ;;  %v3209_v63 = vunpack.c.l.bf16 %v3246_v62 }
 0x4ad   : > { %v2369_v59 = vpack.c.bf16 %v2343_v28, %v2342_v5  ;;  %v2310_v20 = vpop.permute.xlu1 %2309 }
 0x4ae   : > { %v2359_v9 = vmul.f32 %v2310_v20, %v2103_v51  ;;  %v2305_v26 = vpop.permute.xlu0 %2304  ;;  %v3210_v20 = vunpack.c.h.bf16 %v3246_v62 }
 0x4af   : > { %v2358_v16 = vmul.f32 %v2305_v26, %v2102_v44  ;;  %3435 = vmatmul.mubr.msk.bf16.gmra.mxu0 %vm636_vm2, %v2369_v59 }
 0x4b1   : > { %v2377_v27 = vpack.c.bf16 %v2359_v9, %v2358_v16  ;;  %v2240_v42 = vpop.permute.xlu1 %2239 }
 0x4b2   : > { %v2345_v60 = vmul.f32 %v2240_v42, %v2089_v19  ;;  %v2235_v21 = vpop.permute.xlu0 %2234 }
 0x4b3   : > { %v2344_v50 = vmul.f32 %v2235_v21, %v2088_v7  ;;  %3451 = vmatmul.mubr.msk.bf16.gmra.mxu1 %vm636_vm2, %v2377_v27 }
 0x4b5   : > { %v2370_v34 = vpack.c.bf16 %v2345_v60, %v2344_v50  ;;  %v2320_v6 = vpop.permute.xlu1 %2319 }
 0x4b6   : > { %v2361_v36 = vmul.f32 %v2320_v6, %v2105_v46  ;;  %v2315_v33 = vpop.permute.xlu0 %2314  ;;  %v3241_v46 = vld [vmem:[%s3868_s12 + $0x18] sm:$0xff]   ;;  %v3240_v6 = vld [vmem:[%s3868_s12 + $0x10] sm:$0xff]  }
 0x4b7   : > { %v2360_v43 = vmul.f32 %v2315_v33, %v2104_v57  ;;  %3438 = vmatprep.mubr.msk.bf16.mxu0 %vm636_vm2, %v2370_v34  ;;  %v3189_v33 = vunpack.c.l.bf16 %v3241_v46 }
 0x4b9   : > { %v2378_v25 = vpack.c.bf16 %v2361_v36, %v2360_v43  ;;  %v2250_v24 = vpop.permute.xlu1 %2249 }
 0x4ba   : > { %v2347_v3 = vmul.f32 %v2250_v24, %v2091_v17  ;;  %v2245_v29 = vpop.permute.xlu0 %2244  ;;  %v3249_v17 = vld [vmem:[%s3868_s12 + $0x58] sm:$0xff]  }
 0x4bb   : > { %v2346_v32 = vmul.f32 %v2245_v29, %v2090_v47  ;;  %3454 = vmatprep.mubr.msk.bf16.mxu1 %vm636_vm2, %v2378_v25  ;;  %v3185_v25 = vunpack.c.l.bf16 %v3240_v6  ;;  %v3222_v54 = vunpack.c.h.bf16 %v3249_v17 }
 0x4bd   : > { %v2371_v1 = vpack.c.bf16 %v2347_v3, %v2346_v32  ;;  %v2330_v58 = vpop.permute.xlu1 %2329  ;;  %v3190_v32 = vunpack.c.h.bf16 %v3241_v46 }
 0x4be   : > { %v2363_v30 = vmul.f32 %v2330_v58, %v2107_v52  ;;  %v2325_v12 = vpop.permute.xlu0 %2324  ;;  %v3221_v52 = vunpack.c.l.bf16 %v3249_v17 }
 0x4bf   : > { %v2362_v11 = vmul.f32 %v2325_v12, %v2106_v10  ;;  %3439 = vmatmul.mubr.msk.bf16.gmra.mxu0 %vm636_vm2, %v2371_v1  ;;  %v3248_v10 = vld [vmem:[%s3868_s12 + $0x50] sm:$0xff]  }
 0x4c1   : > { %v2379_v13 = vpack.c.bf16 %v2363_v30, %v2362_v11  ;;  %v3186_v30 = vunpack.c.h.bf16 %v3240_v6 }
 0x4c3   : > { %3455 = vmatmul.mubr.msk.bf16.gmra.mxu1 %vm636_vm2, %v2379_v13 }
 0x54f   : > { %v3428_v45 = vpop.f32.mrf.mxu0 }
 0x550   : > { %v2510_v37 = vadd.f32 %v3428_v45, %v4927_v48  ;;  %v3217_v45 = vunpack.c.l.bf16 %v3248_v10 }
 0x551   : > { %v2501_v39 = vpop.f32.mrf.mxu0 }
 0x552   : > { %v2694_v40 = vadd.f32 %v3181_v15, %v2510_v37  ;;  %v2502_v4 = vadd.f32 %v4927_v48, %v2501_v39 }
 0x553   : > { %v3429_v49 = vpop.f32.mrf.mxu0  ;;  %v3444_v31 = vpop.f32.mrf.mxu1 }
 0x554   : > { %v3145_v38 = vpack.c.bf16 %v2694_v40, %v2694_v40  ;;  %v2692_v55 = vadd.f32 %v3177_v61, %v2502_v4  ;;  %v2513_v8 = vadd.f32 %v3429_v49, %v4927_v48  ;;  %v2574_v22 = vadd.f32 %v3444_v31, %v4927_v48 }
 0x555   : > { %v2504_v35 = vpop.f32.mrf.mxu0  ;;  %v2565_v14 = vpop.f32.mrf.mxu1 }
 0x556   : > { %2855 = vst.msk [vmem:[%s3878_s28 + $0x8] sm:$0xf] %vm2852_vm4, %v3145_v38  ;;  %v3143_v28 = vpack.c.bf16 %v2692_v55, %v2692_v55  ;;  %v2695_v53 = vadd.f32 %v3182_v56, %v2513_v8  ;;  %v2710_v5 = vadd.f32 %v3213_v23, %v2574_v22  ;;  %v2505_v51 = vadd.f32 %v4927_v48, %v2504_v35 }
 0x557   : > { %v2566_v44 = vadd.f32 %v4927_v48, %v2565_v14  ;;  %v3445_v59 = vpop.f32.mrf.mxu1  ;;  %v3218_v23 = vunpack.c.h.bf16 %v3248_v10 }
 0x558   : > { %2853 = vst.msk [vmem:[%s3878_s28] sm:$0xf] %vm2852_vm4, %v3143_v28  ;;  %v3146_v9 = vpack.c.bf16 %v2695_v53, %v2695_v53  ;;  %v3161_v26 = vpack.c.bf16 %v2710_v5, %v2710_v5  ;;  %v2693_v16 = vadd.f32 %v3178_v0, %v2505_v51  ;;  %v2577_v19 = vadd.f32 %v3445_v59, %v4927_v48  ;;  %v3242_v53 = vld [vmem:[%s3868_s12 + $0x20] sm:$0xff]   ;;  %v3251_v59 = vld [vmem:[%s3868_s12 + $0x68] sm:$0xff]  }
 0x559   : > { %v2708_v7 = vadd.f32 %v3209_v63, %v2566_v44  ;;  %v2568_v27 = vpop.f32.mrf.mxu1  ;;  %v3243_v63 = vld [vmem:[%s3868_s12 + $0x28] sm:$0xff]   ;;  %v3230_v17 = vunpack.c.h.bf16 %v3251_v59 }
 0x55a   : > { %2856 = vst.msk [vmem:[%s3878_s28 + $0xc] sm:$0xf] %vm2852_vm4, %v3146_v9  ;;  %2871 = vst.msk [vmem:[%s3878_s28 + $0x48] sm:$0xf] %vm2852_vm4, %v3161_v26  ;;  %v3144_v42 = vpack.c.bf16 %v2693_v16, %v2693_v16  ;;  %v2711_v60 = vadd.f32 %v3214_v41, %v2577_v19  ;;  %v2569_v21 = vadd.f32 %v4927_v48, %v2568_v27  ;;  %v3197_v51 = vunpack.c.l.bf16 %v3243_v63 }
 0x55b   : > { %v3159_v50 = vpack.c.bf16 %v2708_v7, %v2708_v7  ;;  %v3193_v9 = vunpack.c.l.bf16 %v3242_v53  ;;  %v3198_v7 = vunpack.c.h.bf16 %v3243_v63  ;;  %v3229_v27 = vunpack.c.l.bf16 %v3251_v59 }
 0x55c   : > { %2854 = vst.msk [vmem:[%s3878_s28 + $0x4] sm:$0xf] %vm2852_vm4, %v3144_v42  ;;  %v3162_v57 = vpack.c.bf16 %v2711_v60, %v2711_v60  ;;  %v2709_v34 = vadd.f32 %v3210_v20, %v2569_v21  ;;  %v3250_v42 = vld [vmem:[%s3868_s12 + $0x60] sm:$0xff]  }
 0x55d   : > { %2869 = vst.msk [vmem:[%s3878_s28 + $0x40] sm:$0xf] %vm2852_vm4, %v3159_v50  ;;  %v3194_v50 = vunpack.c.h.bf16 %v3242_v53 }
 0x55e   : > { %2872 = vst.msk [vmem:[%s3878_s28 + $0x4c] sm:$0xf] %vm2852_vm4, %v3162_v57  ;;  %v3160_v36 = vpack.c.bf16 %v2709_v34, %v2709_v34 }
 0x55f   : > { %v3432_v43 = vpop.f32.mrf.mxu0 }
 0x560   : > { %2870 = vst.msk [vmem:[%s3878_s28 + $0x44] sm:$0xf] %vm2852_vm4, %v3160_v36  ;;  %v2526_v47 = vadd.f32 %v3432_v43, %v4927_v48  ;;  %v3225_v43 = vunpack.c.l.bf16 %v3250_v42 }
 0x561   : > { %v2517_v24 = vpop.f32.mrf.mxu0 }
 0x562   : > { %v2698_v3 = vadd.f32 %v3189_v33, %v2526_v47  ;;  %v2518_v29 = vadd.f32 %v4927_v48, %v2517_v24 }
 0x563   : > { %v3433_v1 = vpop.f32.mrf.mxu0  ;;  %v3448_v58 = vpop.f32.mrf.mxu1 }
 0x564   : > { %v3149_v12 = vpack.c.bf16 %v2698_v3, %v2698_v3  ;;  %v2696_v11 = vadd.f32 %v3185_v25, %v2518_v29  ;;  %v2529_v13 = vadd.f32 %v3433_v1, %v4927_v48  ;;  %v2590_v2 = vadd.f32 %v3448_v58, %v4927_v48 }
 0x565   : > { %v2520_v18 = vpop.f32.mrf.mxu0  ;;  %v2581_v15 = vpop.f32.mrf.mxu1 }
 0x566   : > { %2859 = vst.msk [vmem:[%s3878_s28 + $0x18] sm:$0xf] %vm2852_vm4, %v3149_v12  ;;  %v3147_v37 = vpack.c.bf16 %v2696_v11, %v2696_v11  ;;  %v2699_v61 = vadd.f32 %v3190_v32, %v2529_v13  ;;  %v2714_v39 = vadd.f32 %v3221_v52, %v2590_v2  ;;  %v2521_v40 = vadd.f32 %v4927_v48, %v2520_v18 }
 0x567   : > { %v2582_v4 = vadd.f32 %v4927_v48, %v2581_v15  ;;  %v3449_v56 = vpop.f32.mrf.mxu1  ;;  %v3226_v52 = vunpack.c.h.bf16 %v3250_v42 }
 0x568   : > { %2857 = vst.msk [vmem:[%s3878_s28 + $0x10] sm:$0xf] %vm2852_vm4, %v3147_v37  ;;  %v3150_v62 = vpack.c.bf16 %v2699_v61, %v2699_v61  ;;  %v3165_v49 = vpack.c.bf16 %v2714_v39, %v2714_v39  ;;  %v2697_v31 = vadd.f32 %v3186_v30, %v2521_v40  ;;  %v2593_v0 = vadd.f32 %v3449_v56, %v4927_v48  ;;  %v3244_v61 = vld [vmem:[%s3868_s12 + $0x30] sm:$0xff]   ;;  %v3253_v56 = vld [vmem:[%s3868_s12 + $0x78] sm:$0xff]  }
 0x569   : > { %v2712_v38 = vadd.f32 %v3217_v45, %v2582_v4  ;;  %v2584_v55 = vpop.f32.mrf.mxu1  ;;  %v3245_v45 = vld [vmem:[%s3868_s12 + $0x38] sm:$0xff]   ;;  %v3238_v59 = vunpack.c.h.bf16 %v3253_v56 }
 0x56a   : > { %2860 = vst.msk [vmem:[%s3878_s28 + $0x1c] sm:$0xf] %vm2852_vm4, %v3150_v62  ;;  %2875 = vst.msk [vmem:[%s3878_s28 + $0x58] sm:$0xf] %vm2852_vm4, %v3165_v49  ;;  %v3148_v8 = vpack.c.bf16 %v2697_v31, %v2697_v31  ;;  %v2715_v22 = vadd.f32 %v3222_v54, %v2593_v0  ;;  %v2585_v35 = vadd.f32 %v4927_v48, %v2584_v55  ;;  %v3205_v40 = vunpack.c.l.bf16 %v3245_v45 }
 0x56b   : > { %v3163_v14 = vpack.c.bf16 %v2712_v38, %v2712_v38  ;;  %v3201_v62 = vunpack.c.l.bf16 %v3244_v61  ;;  %v3206_v38 = vunpack.c.h.bf16 %v3245_v45  ;;  %v3237_v55 = vunpack.c.l.bf16 %v3253_v56 }
 0x56c   : > { %2858 = vst.msk [vmem:[%s3878_s28 + $0x14] sm:$0xf] %vm2852_vm4, %v3148_v8  ;;  %v3166_v41 = vpack.c.bf16 %v2715_v22, %v2715_v22  ;;  %v2713_v28 = vadd.f32 %v3218_v23, %v2585_v35  ;;  %v3252_v8 = vld [vmem:[%s3868_s12 + $0x70] sm:$0xff]  }
 0x56d   : > { %2873 = vst.msk [vmem:[%s3878_s28 + $0x50] sm:$0xf] %vm2852_vm4, %v3163_v14  ;;  %v3202_v14 = vunpack.c.h.bf16 %v3244_v61 }
 0x56e   : > { %2876 = vst.msk [vmem:[%s3878_s28 + $0x5c] sm:$0xf] %vm2852_vm4, %v3166_v41  ;;  %v3164_v5 = vpack.c.bf16 %v2713_v28, %v2713_v28 }
 0x56f   : > { %v3436_v44 = vpop.f32.mrf.mxu0 }
 0x570   : > { %2874 = vst.msk [vmem:[%s3878_s28 + $0x54] sm:$0xf] %vm2852_vm4, %v3164_v5  ;;  %v2542_v20 = vadd.f32 %v3436_v44, %v4927_v48  ;;  %v3233_v44 = vunpack.c.l.bf16 %v3252_v8 }
 0x571   : > { %v2533_v26 = vpop.f32.mrf.mxu0 }
 0x572   : > { %v2702_v16 = vadd.f32 %v3197_v51, %v2542_v20  ;;  %v2534_v19 = vadd.f32 %v4927_v48, %v2533_v26 }
 0x573   : > { %v3437_v60 = vpop.f32.mrf.mxu0  ;;  %v3452_v21 = vpop.f32.mrf.mxu1 }
 0x574   : > { %v3153_v46 = vpack.c.bf16 %v2702_v16, %v2702_v16  ;;  %v2700_v57 = vadd.f32 %v3193_v9, %v2534_v19  ;;  %v2545_v34 = vadd.f32 %v3437_v60, %v4927_v48  ;;  %v2606_v6 = vadd.f32 %v3452_v21, %v4927_v48 }
 0x575   : > { %v2536_v36 = vpop.f32.mrf.mxu0  ;;  %v2597_v33 = vpop.f32.mrf.mxu1 }
 0x576   : > { %2863 = vst.msk [vmem:[%s3878_s28 + $0x28] sm:$0xf] %vm2852_vm4, %v3153_v46  ;;  %v3151_v47 = vpack.c.bf16 %v2700_v57, %v2700_v57  ;;  %v2703_v25 = vadd.f32 %v3198_v7, %v2545_v34  ;;  %v2718_v24 = vadd.f32 %v3229_v27, %v2606_v6  ;;  %v2537_v3 = vadd.f32 %v4927_v48, %v2536_v36 }
 0x577   : > { %v2598_v29 = vadd.f32 %v4927_v48, %v2597_v33  ;;  %v3453_v32 = vpop.f32.mrf.mxu1  ;;  %v3234_v27 = vunpack.c.h.bf16 %v3252_v8 }
 0x578   : > { %2861 = vst.msk [vmem:[%s3878_s28 + $0x20] sm:$0xf] %vm2852_vm4, %v3151_v47  ;;  %v3154_v10 = vpack.c.bf16 %v2703_v25, %v2703_v25  ;;  %v3169_v1 = vpack.c.bf16 %v2718_v24, %v2718_v24  ;;  %v2701_v58 = vadd.f32 %v3194_v50, %v2537_v3  ;;  %v2609_v30 = vadd.f32 %v3453_v32, %v4927_v48 }
 0x579   : > { %v2716_v12 = vadd.f32 %v3225_v43, %v2598_v29  ;;  %v2600_v11 = vpop.f32.mrf.mxu1 }
 0x57a   : > { %2864 = vst.msk [vmem:[%s3878_s28 + $0x2c] sm:$0xf] %vm2852_vm4, %v3154_v10  ;;  %2879 = vst.msk [vmem:[%s3878_s28 + $0x68] sm:$0xf] %vm2852_vm4, %v3169_v1  ;;  %v3152_v13 = vpack.c.bf16 %v2701_v58, %v2701_v58  ;;  %v2719_v2 = vadd.f32 %v3230_v17, %v2609_v30  ;;  %v2601_v18 = vadd.f32 %v4927_v48, %v2600_v11 }
 0x57b   : > { %v3167_v15 = vpack.c.bf16 %v2716_v12, %v2716_v12 }
 0x57c   : > { %2862 = vst.msk [vmem:[%s3878_s28 + $0x24] sm:$0xf] %vm2852_vm4, %v3152_v13  ;;  %v3170_v54 = vpack.c.bf16 %v2719_v2, %v2719_v2  ;;  %v2717_v37 = vadd.f32 %v3226_v52, %v2601_v18 }
 0x57d   : > { %2877 = vst.msk [vmem:[%s3878_s28 + $0x60] sm:$0xf] %vm2852_vm4, %v3167_v15 }
 0x57e   : > { %2880 = vst.msk [vmem:[%s3878_s28 + $0x6c] sm:$0xf] %vm2852_vm4, %v3170_v54  ;;  %v3168_v39 = vpack.c.bf16 %v2717_v37, %v2717_v37 }
 0x57f   : > { %v3440_v4 = vpop.f32.mrf.mxu0 }
 0x580   : > { %2878 = vst.msk [vmem:[%s3878_s28 + $0x64] sm:$0xf] %vm2852_vm4, %v3168_v39  ;;  %v2558_v23 = vadd.f32 %v3440_v4, %v4927_v48 }
 0x581   : > { %v2549_v49 = vpop.f32.mrf.mxu0 }
 0x582   : > { %v2706_v31 = vadd.f32 %v3205_v40, %v2558_v23  ;;  %v2550_v0 = vadd.f32 %v4927_v48, %v2549_v49 }
 0x583   : > { %v3441_v22 = vpop.f32.mrf.mxu0  ;;  %v3456_v35 = vpop.f32.mrf.mxu1 }
 0x584   : > { %v3157_v63 = vpack.c.bf16 %v2706_v31, %v2706_v31  ;;  %v2704_v41 = vadd.f32 %v3201_v62, %v2550_v0  ;;  %v2561_v28 = vadd.f32 %v3441_v22, %v4927_v48  ;;  %v2622_v53 = vadd.f32 %v3456_v35, %v4927_v48 }
 0x585   : > { %v2552_v5 = vpop.f32.mrf.mxu0  ;;  %v2613_v51 = vpop.f32.mrf.mxu1 }
 0x586   : > { %2867 = vst.msk [vmem:[%s3878_s28 + $0x38] sm:$0xf] %vm2852_vm4, %v3157_v63  ;;  %v3155_v20 = vpack.c.bf16 %v2704_v41, %v2704_v41  ;;  %v2707_v9 = vadd.f32 %v3206_v38, %v2561_v28  ;;  %v2722_v26 = vadd.f32 %v3237_v55, %v2622_v53  ;;  %v2553_v16 = vadd.f32 %v4927_v48, %v2552_v5 }
 0x587   : > { %v2614_v19 = vadd.f32 %v4927_v48, %v2613_v51  ;;  %v3457_v7 = vpop.f32.mrf.mxu1 }
 0x588   : > { %2865 = vst.msk [vmem:[%s3878_s28 + $0x30] sm:$0xf] %vm2852_vm4, %v3155_v20  ;;  %v3158_v42 = vpack.c.bf16 %v2707_v9, %v2707_v9  ;;  %v3173_v60 = vpack.c.bf16 %v2722_v26, %v2722_v26  ;;  %v2705_v21 = vadd.f32 %v3202_v14, %v2553_v16  ;;  %v2625_v50 = vadd.f32 %v3457_v7, %v4927_v48 }
 0x589   : > { %v2720_v46 = vadd.f32 %v3233_v44, %v2614_v19  ;;  %v2616_v57 = vpop.f32.mrf.mxu1 }
 0x58a   : > { %2868 = vst.msk [vmem:[%s3878_s28 + $0x3c] sm:$0xf] %vm2852_vm4, %v3158_v42  ;;  %2883 = vst.msk [vmem:[%s3878_s28 + $0x78] sm:$0xf] %vm2852_vm4, %v3173_v60  ;;  %v3156_v34 = vpack.c.bf16 %v2705_v21, %v2705_v21  ;;  %v2723_v6 = vadd.f32 %v3238_v59, %v2625_v50  ;;  %v2617_v36 = vadd.f32 %v4927_v48, %v2616_v57 }
 0x58b   : > { %v3171_v33 = vpack.c.bf16 %v2720_v46, %v2720_v46 }
 0x58c   : > { %2866 = vst.msk [vmem:[%s3878_s28 + $0x34] sm:$0xf] %vm2852_vm4, %v3156_v34  ;;  %v3174_v43 = vpack.c.bf16 %v2723_v6, %v2723_v6  ;;  %v2721_v17 = vadd.f32 %v3234_v27, %v2617_v36 }
 0x58d   : > { %2881 = vst.msk [vmem:[%s3878_s28 + $0x70] sm:$0xf] %vm2852_vm4, %v3171_v33 }
 0x58e   : > { %2884 = vst.msk [vmem:[%s3878_s28 + $0x7c] sm:$0xf] %vm2852_vm4, %v3174_v43  ;;  %v3172_v47 = vpack.c.bf16 %v2721_v17, %v2721_v17 }
 0x590   : > { %2882 = vst.msk [vmem:[%s3878_s28 + $0x74] sm:$0xf] %vm2852_vm4, %v3172_v47 }
 0x591 PF: > { %s15_s22 = sadd.s32 1, %s3790_s22   ;;  %s5184_s18 = smov %s3782_s20 }
 0x592   : > { %p12_p9 = scmp.ge.s32.totalorder %s15_s22, 6   ;;  %s5185_s19 = smov %s3786_s21 }
 0x593   : > { %s5186_s20 = smov %s5189_s23  ;;  %s5187_s21 = smov %s5193_s24 }
 0x594   :  { %14 = sbr.rel (!%p12_p9) target bundleno = 3 (0x3), region = 84 }

// kernel: autoencoder_kl_forward.54
= control target key start
LH: loop header
LB: loop body
LE: loop exit
PB: predicated region body
PF: predicated region fallthrough
CT: control target
= control target key end

     0   :  { %s2122_s12 = smov 0   ;;  %s2715_s0 = inlined_call_operand.vmem [shape: bf16[2,288,192], index: 0, kind: input, shape index: {}]   ;;  %s2716_s1 = inlined_call_operand.vmem [shape: bf16[3,192,4], index: 1, kind: input, shape index: {}]   ;;  %s2717_s2 = inlined_call_operand.vmem [shape: f32[1,4], index: 2, kind: input, shape index: {}]   ;;  %s2718_s3 = inlined_call_operand.vmem [shape: bf16[2,256,4], index: 3, kind: output, shape index: {}]  }
   0x1 LB: > { %s1695_s13 = sadd.s32 4294967295, %s2099_s12   ;;  %p1699_p0 = scmp.ge.s32.totalorder %s2099_s12, 1  ;;  %s2099_s12 = sphi %s2122_s12, %s13_s12  }
   0x2   : > { %p137_p1 = scmp.lt.s32.totalorder %s2099_s12, 3 }
   0x4   : > { %p138_p2 = pnand %p1699_p0, %p137_p1 }
   0x5   : > { %p161_p3 = scmp.lt.s32.totalorder (!%p138_p2), %s1695_s13, 1 }
   0x6   : > { %141 = sbr.rel (%p138_p2) target bundleno = 450 (0x1c2), region = 32 }
   0xb   : > { %v2003_v0 = vld [vmem:[%s2716_s1 + $0x98] sm:$0xff]   ;;  %v2101_v1 = vmov 0   ;;  %v2004_v2 = vld [vmem:[%s2716_s1 + $0x90] sm:$0xff]   ;;  %s2720_s13 = smov (!%p161_p3, %s1695_s13), 1  ;;  %v2005_v3 = vld [vmem:[%s2716_s1 + $0x88] sm:$0xff]   ;;  %vm471_vm0 = vcmask 523264  }
   0xc   : > { %520 = vmatprep.subr.bf16.mxu0 %v2101_v1  ;;  %1969 = vmatprep.subr.bf16.mxu1 %v2101_v1  ;;  %s1993_s20 = smul.u32 288, %s2720_s13  ;;  %v2006_v4 = vld [vmem:[%s2716_s1 + $0x80] sm:$0xff]   ;;  %v2007_v6 = vld [vmem:[%s2716_s1 + $0x78] sm:$0xff]   ;;  %v2008_v8 = vld [vmem:[%s2716_s1 + $0x70] sm:$0xff]   ;;  %s1936_s18 = sshll.u32 %s2720_s13, 7  ;;  %vm1607_vm1 = vcmask 27648  }
   0xd   : > { %521 = vmatpush1.bf16.msra.mxu0 %v2003_v0  ;;  %1981 = vmatpush1.bf16.msra.mxu1 %v2003_v0  ;;  %v2009_v9 = vld [vmem:[%s2716_s1 + $0x68] sm:$0xff]   ;;  %v2010_v10 = vld [vmem:[%s2716_s1 + $0x60] sm:$0xff]   ;;  %v2011_v11 = vld [vmem:[%s2716_s1 + $0xb8] sm:$0xff]   ;;  %s2585_s21 = scalar_lea.vmem %s2718_s3, %s1936_s18 }
   0xe   : > { %522 = vmatprep.subr.bf16.mxu0 %v2101_v1  ;;  %1970 = vmatprep.subr.bf16.mxu1 %v2101_v1  ;;  %s2154_s25 = scalar_lea.vmem %s2715_s0, %s1993_s20  ;;  %v2012_v12 = vld [vmem:[%s2716_s1 + $0xb0] sm:$0xff]   ;;  %v2013_v13 = vld [vmem:[%s2716_s1 + $0xa8] sm:$0xff]   ;;  %v2014_v14 = vld [vmem:[%s2716_s1 + $0xa0] sm:$0xff]  }
   0xf   : > { %v2159_v5 = vld [vmem:[%s2154_s25 + $0x14] ss:$8 sps:$4 sm:$0xff]   ;;  %v2209_v15 = vld [vmem:[%s2154_s25 + $0x10] ss:$8 sps:$4 sm:$0xff]   ;;  %v2223_v19 = vld [vmem:[%s2154_s25 + $0x24] ss:$8 sps:$4 sm:$0xff]  }
  0x10   : > { %v2165_v7 = vld [vmem:[%s2154_s25 + $0x94] ss:$8 sps:$4 sm:$0xff]   ;;  %1771 = vmatprep.mubr.msk.bf16.mxu0 %vm471_vm0, %v2159_v5  ;;  %v2212_v16 = vld [vmem:[%s2154_s25 + $0x90] ss:$8 sps:$4 sm:$0xff]   ;;  %v2226_v20 = vld [vmem:[%s2154_s25 + $0xa4] ss:$8 sps:$4 sm:$0xff]  }
  0x11   : > { %523 = vmatpush1.bf16.msra.mxu0 %v2004_v2  ;;  %1982 = vmatpush1.bf16.msra.mxu1 %v2004_v2  ;;  %v2021_v17 = vld [vmem:[%s2716_s1 + $0x38] sm:$0xff]   ;;  %v2027_v21 = vld [vmem:[%s2716_s1 + $0x30] sm:$0xff]   ;;  %v2240_v23 = vld [vmem:[%s2154_s25 + $0x20] ss:$8 sps:$4 sm:$0xff]  }
  0x12   : > { %524 = vmatprep.subr.bf16.mxu0 %v2101_v1  ;;  %1971 = vmatprep.subr.bf16.mxu1 %v2101_v1  ;;  %v2022_v18 = vld [vmem:[%s2716_s1 + $0xf8] sm:$0xff]   ;;  %v2030_v22 = vld [vmem:[%s2716_s1 + $0xf0] sm:$0xff]   ;;  %v2245_v24 = vld [vmem:[%s2154_s25 + $0xa0] ss:$8 sps:$4 sm:$0xff]  }
  0x13   : > { %1779 = vmatprep.mubr.msk.bf16.mxu1 %vm471_vm0, %v2165_v7  ;;  %v2031_v25 = vld [vmem:[%s2716_s1 + $0x28] sm:$0xff]   ;;  %v2255_v27 = vld [vmem:[%s2154_s25 + $0x34] ss:$8 sps:$4 sm:$0xff]   ;;  %v2039_v29 = vld [vmem:[%s2716_s1 + $0x20] sm:$0xff]  }
  0x14   : > { %v2032_v26 = vld [vmem:[%s2716_s1 + $0xe8] sm:$0xff]   ;;  %v2260_v28 = vld [vmem:[%s2154_s25 + $0xb4] ss:$8 sps:$4 sm:$0xff]   ;;  %v2040_v30 = vld [vmem:[%s2716_s1 + $0xe0] sm:$0xff]  }
  0x15   : > { %525 = vmatpush1.bf16.msra.mxu0 %v2005_v3  ;;  %1983 = vmatpush1.bf16.msra.mxu1 %v2005_v3  ;;  %v2277_v31 = vld [vmem:[%s2154_s25 + $0x30] ss:$8 sps:$4 sm:$0xff]   ;;  %v2283_v33 = vld [vmem:[%s2154_s25 + $0x44] ss:$8 sps:$4 sm:$0xff]   ;;  %v2311_v39 = vld [vmem:[%s2154_s25 + $0x40] ss:$8 sps:$4 sm:$0xff]  }
  0x16   : > { %526 = vmatprep.subr.bf16.mxu0 %v2101_v1  ;;  %1972 = vmatprep.subr.bf16.mxu1 %v2101_v1  ;;  %v2280_v32 = vld [vmem:[%s2154_s25 + $0xb0] ss:$8 sps:$4 sm:$0xff]   ;;  %v2286_v34 = vld [vmem:[%s2154_s25 + $0xc4] ss:$8 sps:$4 sm:$0xff]   ;;  %v2314_v40 = vld [vmem:[%s2154_s25 + $0xc0] ss:$8 sps:$4 sm:$0xff]  }
  0x17   : > { %v2045_v35 = vld [vmem:[%s2716_s1 + $0x18] sm:$0xff]   ;;  %v2049_v37 = vld [vmem:[%s2716_s1 + $0x10] sm:$0xff]   ;;  %v2057_v43 = vld [vmem:[%s2716_s1 + $0x8] sm:$0xff]  }
  0x18   : > { %v2048_v36 = vld [vmem:[%s2716_s1 + $0xd8] sm:$0xff]   ;;  %v2050_v38 = vld [vmem:[%s2716_s1 + $0xd0] sm:$0xff]   ;;  %v2058_v44 = vld [vmem:[%s2716_s1 + $0xc8] sm:$0xff]  }
  0x19   : > { %527 = vmatpush1.bf16.msra.mxu0 %v2006_v4  ;;  %1984 = vmatpush1.bf16.msra.mxu1 %v2006_v4  ;;  %v2317_v41 = vld [vmem:[%s2154_s25 + $0x54] ss:$8 sps:$4 sm:$0xff]   ;;  %v2063_v45 = vld [vmem:[%s2716_s1] sm:$0xff]   ;;  %v2345_v47 = vld [vmem:[%s2154_s25 + $0x50] ss:$8 sps:$4 sm:$0xff]  }
  0x1a   : > { %528 = vmatprep.subr.bf16.mxu0 %v2101_v1  ;;  %1973 = vmatprep.subr.bf16.mxu1 %v2101_v1  ;;  %v2320_v42 = vld [vmem:[%s2154_s25 + $0xd4] ss:$8 sps:$4 sm:$0xff]   ;;  %v2066_v46 = vld [vmem:[%s2716_s1 + $0xc0] sm:$0xff]   ;;  %v2348_v48 = vld [vmem:[%s2154_s25 + $0xd0] ss:$8 sps:$4 sm:$0xff]  }
  0x1b   : > { %v2351_v49 = vld [vmem:[%s2154_s25 + $0x64] ss:$8 sps:$4 sm:$0xff]   ;;  %v2067_v51 = vld [vmem:[%s2716_s1 + $0x58] sm:$0xff]   ;;  %v2075_v53 = vld [vmem:[%s2716_s1 + $0x50] sm:$0xff]  }
  0x1c   : > { %v2354_v50 = vld [vmem:[%s2154_s25 + $0xe4] ss:$8 sps:$4 sm:$0xff]   ;;  %v2068_v52 = vld [vmem:[%s2716_s1 + $0x118] sm:$0xff]   ;;  %v2076_v54 = vld [vmem:[%s2716_s1 + $0x110] sm:$0xff]  }
  0x1d   : > { %529 = vmatpush1.bf16.msra.mxu0 %v2007_v6  ;;  %1985 = vmatpush1.bf16.msra.mxu1 %v2007_v6  ;;  %v2064_v55 = vld [vmem:[%s2154_s25 + $0x60] ss:$8 sps:$4 sm:$0xff]   ;;  %v2069_v57 = vld [vmem:[%s2154_s25 + $0x74] ss:$8 sps:$4 sm:$0xff]   ;;  %v2073_v63 = vld [vmem:[%s2154_s25 + $0x70] ss:$8 sps:$4 sm:$0xff]  }
  0x1e   : > { %530 = vmatprep.subr.bf16.mxu0 %v2101_v1  ;;  %1974 = vmatprep.subr.bf16.mxu1 %v2101_v1  ;;  %v2380_v56 = vld [vmem:[%s2154_s25 + $0xe0] ss:$8 sps:$4 sm:$0xff]   ;;  %v2384_v58 = vld [vmem:[%s2154_s25 + $0xf4] ss:$8 sps:$4 sm:$0xff]   ;;  %v2408_v0 = vld [vmem:[%s2154_s25 + $0xf0] ss:$8 sps:$4 sm:$0xff]  }
  0x1f   : > { %v2081_v59 = vld [vmem:[%s2716_s1 + $0x48] sm:$0xff]   ;;  %v2085_v61 = vld [vmem:[%s2716_s1 + $0x40] sm:$0xff]  }
  0x20   : > { %v2084_v60 = vld [vmem:[%s2716_s1 + $0x108] sm:$0xff]   ;;  %v2086_v62 = vld [vmem:[%s2716_s1 + $0x100] sm:$0xff]  }
  0x21   : > { %531 = vmatpush1.bf16.msra.mxu0 %v2008_v8  ;;  %1986 = vmatpush1.bf16.msra.mxu1 %v2008_v8  ;;  %v2077_v2 = vld [vmem:[%s2154_s25 + $0x84] ss:$8 sps:$4 sm:$0xff]   ;;  %v2082_v4 = vld [vmem:[%s2154_s25 + $0x80] ss:$8 sps:$4 sm:$0xff]  }
  0x22   : > { %532 = vmatprep.subr.bf16.mxu0 %v2101_v1  ;;  %1975 = vmatprep.subr.bf16.mxu1 %v2101_v1  ;;  %v2412_v3 = vld [vmem:[%s2154_s25 + $0x104] ss:$8 sps:$4 sm:$0xff]   ;;  %v2420_v6 = vld [vmem:[%s2154_s25 + $0x100] ss:$8 sps:$4 sm:$0xff]  }
  0x23   : > { %v2087_v8 = vld [vmem:[%s2154_s25] ss:$8 sps:$4 sm:$0xff]  }
  0x25   : > { %533 = vmatpush1.bf16.msra.mxu0 %v2009_v9  ;;  %1987 = vmatpush1.bf16.msra.mxu1 %v2009_v9 }
  0x26   : > { %534 = vmatprep.subr.bf16.mxu0 %v2101_v1  ;;  %1976 = vmatprep.subr.bf16.mxu1 %v2101_v1 }
  0x29   : > { %535 = vmatpush1.bf16.msra.mxu0 %v2010_v10  ;;  %1988 = vmatpush1.bf16.msra.mxu1 %v2010_v10 }
  0x2a   : > { %544 = vmatprep.subr.bf16.mxu0 %v2101_v1  ;;  %1977 = vmatprep.subr.bf16.mxu1 %v2101_v1 }
  0x2d   : > { %545 = vmatpush2.bf16.msra.mxu0 %v2011_v11  ;;  %1989 = vmatpush2.bf16.msra.mxu1 %v2011_v11 }
  0x2e   : > { %546 = vmatprep.subr.bf16.mxu0 %v2101_v1  ;;  %1978 = vmatprep.subr.bf16.mxu1 %v2101_v1 }
  0x31   : > { %547 = vmatpush2.bf16.msra.mxu0 %v2012_v12  ;;  %1990 = vmatpush2.bf16.msra.mxu1 %v2012_v12 }
  0x32   : > { %548 = vmatprep.subr.bf16.mxu0 %v2101_v1  ;;  %1979 = vmatprep.subr.bf16.mxu1 %v2101_v1 }
  0x35   : > { %549 = vmatpush2.bf16.msra.mxu0 %v2013_v13  ;;  %1991 = vmatpush2.bf16.msra.mxu1 %v2013_v13 }
  0x36   : > { %550 = vmatprep.subr.bf16.mxu0 %v2101_v1  ;;  %1980 = vmatprep.subr.bf16.mxu1 %v2101_v1 }
  0x39   : > { %551 = vmatpush2.bf16.msra.mxu0 %v2014_v14  ;;  %1992 = vmatpush2.bf16.msra.mxu1 %v2014_v14 }
  0x3a   : > { %765 = vmatprep.subr.bf16.mxu1 %v2101_v1  ;;  %1247 = vmatprep.subr.bf16.mxu0 %v2101_v1 }
  0x3c   : > { %553 = vmatmul.mubr.bf16.vlgmr.msra.gmra.mxu0 %v2209_v15  ;;  %617 = vmatmul.mubr.bf16.vlgmr.msra.gmra.mxu1 %v2212_v16 }
  0x3d   : > { %766 = vmatpush1.bf16.msra.mxu1 %v2021_v17  ;;  %1248 = vmatpush1.bf16.msra.mxu0 %v2022_v18 }
  0x3e   : > { %767 = vmatprep.subr.bf16.mxu1 %v2101_v1  ;;  %1772 = vmatprep.mubr.msk.bf16.mxu0 %vm471_vm0, %v2223_v19 }
  0x3f   : > { %1780 = vmatprep.mubr.msk.bf16.mxu1 %vm471_vm0, %v2226_v20  ;;  %1249 = vmatprep.subr.bf16.mxu0 %v2101_v1 }
  0x41   : > { %768 = vmatpush1.bf16.msra.mxu1 %v2027_v21  ;;  %1250 = vmatpush1.bf16.msra.mxu0 %v2030_v22 }
  0x42   : > { %769 = vmatprep.subr.bf16.mxu1 %v2101_v1  ;;  %1251 = vmatprep.subr.bf16.mxu0 %v2101_v1 }
  0x44   : > { %561 = vmatmul.mubr.bf16.gmra.mxu0 %v2240_v23  ;;  %625 = vmatmul.mubr.bf16.gmra.mxu1 %v2245_v24 }
  0x45   : > { %770 = vmatpush1.bf16.msra.mxu1 %v2031_v25  ;;  %1252 = vmatpush1.bf16.msra.mxu0 %v2032_v26 }
  0x46   : > { %1773 = vmatprep.mubr.msk.bf16.mxu0 %vm471_vm0, %v2255_v27  ;;  %1781 = vmatprep.mubr.msk.bf16.mxu1 %vm471_vm0, %v2260_v28 }
  0x47   : > { %771 = vmatprep.subr.bf16.mxu1 %v2101_v1  ;;  %1253 = vmatprep.subr.bf16.mxu0 %v2101_v1 }
  0x49   : > { %772 = vmatpush1.bf16.msra.mxu1 %v2039_v29  ;;  %1254 = vmatpush1.bf16.msra.mxu0 %v2040_v30 }
  0x4a   : > { %773 = vmatprep.subr.bf16.mxu1 %v2101_v1  ;;  %1255 = vmatprep.subr.bf16.mxu0 %v2101_v1 }
  0x4c   : > { %569 = vmatmul.mubr.bf16.gmra.mxu0 %v2277_v31  ;;  %633 = vmatmul.mubr.bf16.gmra.mxu1 %v2280_v32 }
  0x4d   : > { %1774 = vmatprep.mubr.msk.bf16.mxu0 %vm471_vm0, %v2283_v33  ;;  %1782 = vmatprep.mubr.msk.bf16.mxu1 %vm471_vm0, %v2286_v34 }
  0x4e   : > { %774 = vmatpush1.bf16.msra.mxu1 %v2045_v35  ;;  %1256 = vmatpush1.bf16.msra.mxu0 %v2048_v36 }
  0x4f   : > { %775 = vmatprep.subr.bf16.mxu1 %v2101_v1  ;;  %1257 = vmatprep.subr.bf16.mxu0 %v2101_v1 }
  0x52   : > { %776 = vmatpush1.bf16.msra.mxu1 %v2049_v37  ;;  %1258 = vmatpush1.bf16.msra.mxu0 %v2050_v38 }
  0x53   : > { %777 = vmatprep.subr.bf16.mxu1 %v2101_v1  ;;  %1259 = vmatprep.subr.bf16.mxu0 %v2101_v1 }
  0x54   : > { %577 = vmatmul.mubr.bf16.gmra.mxu0 %v2311_v39  ;;  %641 = vmatmul.mubr.bf16.gmra.mxu1 %v2314_v40 }
  0x55   : > { %1775 = vmatprep.mubr.msk.bf16.mxu0 %vm471_vm0, %v2317_v41  ;;  %1783 = vmatprep.mubr.msk.bf16.mxu1 %vm471_vm0, %v2320_v42 }
  0x56   : > { %778 = vmatpush1.bf16.msra.mxu1 %v2057_v43  ;;  %1260 = vmatpush1.bf16.msra.mxu0 %v2058_v44 }
  0x57   : > { %779 = vmatprep.subr.bf16.mxu1 %v2101_v1  ;;  %1261 = vmatprep.subr.bf16.mxu0 %v2101_v1 }
  0x5a   : > { %780 = vmatpush1.bf16.msra.mxu1 %v2063_v45  ;;  %1262 = vmatpush1.bf16.msra.mxu0 %v2066_v46 }
  0x5b   : > { %789 = vmatprep.subr.bf16.mxu1 %v2101_v1  ;;  %1271 = vmatprep.subr.bf16.mxu0 %v2101_v1 }
  0x5c   : > { %585 = vmatmul.mubr.bf16.gmra.mxu0 %v2345_v47  ;;  %649 = vmatmul.mubr.bf16.gmra.mxu1 %v2348_v48 }
  0x5d   : > { %1776 = vmatprep.mubr.msk.bf16.mxu0 %vm471_vm0, %v2351_v49  ;;  %1784 = vmatprep.mubr.msk.bf16.mxu1 %vm471_vm0, %v2354_v50 }
  0x5e   : > { %790 = vmatpush2.bf16.msra.mxu1 %v2067_v51  ;;  %1272 = vmatpush2.bf16.msra.mxu0 %v2068_v52 }
  0x5f   : > { %791 = vmatprep.subr.bf16.mxu1 %v2101_v1  ;;  %1273 = vmatprep.subr.bf16.mxu0 %v2101_v1 }
  0x62   : > { %792 = vmatpush2.bf16.msra.mxu1 %v2075_v53  ;;  %1274 = vmatpush2.bf16.msra.mxu0 %v2076_v54 }
  0x63   : > { %793 = vmatprep.subr.bf16.mxu1 %v2101_v1  ;;  %1275 = vmatprep.subr.bf16.mxu0 %v2101_v1 }
  0x64   : > { %593 = vmatmul.mubr.bf16.gmra.mxu0 %v2064_v55  ;;  %657 = vmatmul.mubr.bf16.gmra.mxu1 %v2380_v56 }
  0x65   : > { %1777 = vmatprep.mubr.msk.bf16.mxu0 %vm471_vm0, %v2069_v57  ;;  %1785 = vmatprep.mubr.msk.bf16.mxu1 %vm471_vm0, %v2384_v58 }
  0x66   : > { %794 = vmatpush2.bf16.msra.mxu1 %v2081_v59  ;;  %1276 = vmatpush2.bf16.msra.mxu0 %v2084_v60 }
  0x67   : > { %795 = vmatprep.subr.bf16.mxu1 %v2101_v1  ;;  %1277 = vmatprep.subr.bf16.mxu0 %v2101_v1  ;;  %v2089_v1 = vld [vmem:[%s2154_s25 + $0x4] ss:$8 sps:$4 sm:$0xff]  }
  0x6a   : > { %796 = vmatpush2.bf16.msra.mxu1 %v2085_v61  ;;  %1278 = vmatpush2.bf16.msra.mxu0 %v2086_v62 }
  0x6c   : > { %601 = vmatmul.mubr.bf16.gmra.mxu0 %v2073_v63  ;;  %665 = vmatmul.mubr.bf16.gmra.mxu1 %v2408_v0 }
  0x6d   : > { %1778 = vmatprep.mubr.msk.bf16.mxu0 %vm471_vm0, %v2077_v2  ;;  %1786 = vmatprep.mubr.msk.bf16.mxu1 %vm471_vm0, %v2412_v3 }
  0x74   : > { %609 = vmatmul.mubr.bf16.gmra.mxu0 %v2082_v4  ;;  %673 = vmatmul.mubr.bf16.gmra.mxu1 %v2420_v6 }
  0x75   : > { %1801 = vmatprep.mubr.msk.bf16.mxu1 %vm471_vm0, %v2089_v1  ;;  %1885 = vmatprep.mubr.msk.bf16.mxu0 %vm471_vm0, %v2223_v19 }
  0x7c   : > { %798 = vmatmul.mubr.bf16.vlgmr.msra.gmra.mxu1 %v2087_v8  ;;  %1280 = vmatmul.mubr.bf16.vlgmr.msra.gmra.mxu0 %v2240_v23 }
  0x7d   : > { %1802 = vmatprep.mubr.msk.bf16.mxu1 %vm471_vm0, %v2159_v5  ;;  %1886 = vmatprep.mubr.msk.bf16.mxu0 %vm471_vm0, %v2255_v27  ;;  %v2090_v5 = vld [vmem:[%s2154_s25 + $0x114] ss:$8 sps:$4 sm:$0xff]  }
  0x84   : > { %806 = vmatmul.mubr.bf16.gmra.mxu1 %v2209_v15  ;;  %1288 = vmatmul.mubr.bf16.gmra.mxu0 %v2277_v31 }
  0x85   : > { %1803 = vmatprep.mubr.msk.bf16.mxu1 %vm471_vm0, %v2223_v19  ;;  %1887 = vmatprep.mubr.msk.bf16.mxu0 %vm471_vm0, %v2283_v33 }
  0x8c   : > { %814 = vmatmul.mubr.bf16.gmra.mxu1 %v2240_v23  ;;  %1296 = vmatmul.mubr.bf16.gmra.mxu0 %v2311_v39 }
  0x8d   : > { %1804 = vmatprep.mubr.msk.bf16.mxu1 %vm471_vm0, %v2255_v27  ;;  %1888 = vmatprep.mubr.msk.bf16.mxu0 %vm471_vm0, %v2317_v41 }
  0x94   : > { %822 = vmatmul.mubr.bf16.gmra.mxu1 %v2277_v31  ;;  %1304 = vmatmul.mubr.bf16.gmra.mxu0 %v2345_v47 }
  0x95   : > { %1805 = vmatprep.mubr.msk.bf16.mxu1 %vm471_vm0, %v2283_v33  ;;  %1889 = vmatprep.mubr.msk.bf16.mxu0 %vm471_vm0, %v2351_v49 }
  0x9c   : > { %830 = vmatmul.mubr.bf16.gmra.mxu1 %v2311_v39  ;;  %1312 = vmatmul.mubr.bf16.gmra.mxu0 %v2064_v55 }
  0x9d   : > { %1806 = vmatprep.mubr.msk.bf16.mxu1 %vm471_vm0, %v2317_v41  ;;  %1890 = vmatprep.mubr.msk.bf16.mxu0 %vm471_vm0, %v2069_v57 }
  0xa4   : > { %838 = vmatmul.mubr.bf16.gmra.mxu1 %v2345_v47  ;;  %1320 = vmatmul.mubr.bf16.gmra.mxu0 %v2073_v63 }
  0xa5   : > { %1807 = vmatprep.mubr.msk.bf16.mxu1 %vm471_vm0, %v2351_v49  ;;  %1891 = vmatprep.mubr.msk.bf16.mxu0 %vm471_vm0, %v2077_v2 }
  0xac   : > { %846 = vmatmul.mubr.bf16.gmra.mxu1 %v2064_v55  ;;  %1328 = vmatmul.mubr.bf16.gmra.mxu0 %v2082_v4 }
  0xad   : > { %1808 = vmatprep.mubr.msk.bf16.mxu1 %vm471_vm0, %v2069_v57  ;;  %1892 = vmatprep.mubr.msk.bf16.mxu0 %vm471_vm0, %v2165_v7 }
  0xb4   : > { %854 = vmatmul.mubr.bf16.gmra.mxu1 %v2073_v63  ;;  %1336 = vmatmul.mubr.bf16.gmra.mxu0 %v2212_v16 }
  0xb5   : > { %1809 = vmatprep.mubr.msk.bf16.mxu1 %vm471_vm0, %v2077_v2  ;;  %1893 = vmatprep.mubr.msk.bf16.mxu0 %vm471_vm0, %v2226_v20 }
  0xbc   : > { %862 = vmatmul.mubr.bf16.gmra.mxu1 %v2082_v4  ;;  %1344 = vmatmul.mubr.bf16.gmra.mxu0 %v2245_v24 }
  0xbd   : > { %1810 = vmatprep.mubr.msk.bf16.mxu1 %vm471_vm0, %v2165_v7  ;;  %1894 = vmatprep.mubr.msk.bf16.mxu0 %vm471_vm0, %v2260_v28  ;;  %v2092_v7 = vld [vmem:[%s2154_s25 + $0x110] ss:$8 sps:$4 sm:$0xff]  }
  0xc4   : > { %870 = vmatmul.mubr.bf16.gmra.mxu1 %v2212_v16  ;;  %1352 = vmatmul.mubr.bf16.gmra.mxu0 %v2280_v32 }
  0xc5   : > { %1811 = vmatprep.mubr.msk.bf16.mxu1 %vm471_vm0, %v2226_v20  ;;  %1895 = vmatprep.mubr.msk.bf16.mxu0 %vm471_vm0, %v2286_v34 }
  0xcc   : > { %878 = vmatmul.mubr.bf16.gmra.mxu1 %v2245_v24  ;;  %1360 = vmatmul.mubr.bf16.gmra.mxu0 %v2314_v40 }
  0xcd   : > { %1812 = vmatprep.mubr.msk.bf16.mxu1 %vm471_vm0, %v2260_v28  ;;  %1896 = vmatprep.mubr.msk.bf16.mxu0 %vm471_vm0, %v2320_v42 }
  0xd4   : > { %886 = vmatmul.mubr.bf16.gmra.mxu1 %v2280_v32  ;;  %1368 = vmatmul.mubr.bf16.gmra.mxu0 %v2348_v48 }
  0xd5   : > { %1813 = vmatprep.mubr.msk.bf16.mxu1 %vm471_vm0, %v2286_v34  ;;  %1897 = vmatprep.mubr.msk.bf16.mxu0 %vm471_vm0, %v2354_v50 }
  0xdc   : > { %894 = vmatmul.mubr.bf16.gmra.mxu1 %v2314_v40  ;;  %1376 = vmatmul.mubr.bf16.gmra.mxu0 %v2380_v56 }
  0xdd   : > { %1814 = vmatprep.mubr.msk.bf16.mxu1 %vm471_vm0, %v2320_v42  ;;  %1898 = vmatprep.mubr.msk.bf16.mxu0 %vm471_vm0, %v2384_v58 }
  0xe4   : > { %902 = vmatmul.mubr.bf16.gmra.mxu1 %v2348_v48  ;;  %1384 = vmatmul.mubr.bf16.gmra.mxu0 %v2408_v0 }
  0xe5   : > { %1815 = vmatprep.mubr.msk.bf16.mxu1 %vm471_vm0, %v2354_v50  ;;  %1899 = vmatprep.mubr.msk.bf16.mxu0 %vm471_vm0, %v2412_v3 }
  0xec   : > { %910 = vmatmul.mubr.bf16.gmra.mxu1 %v2380_v56  ;;  %1392 = vmatmul.mubr.bf16.gmra.mxu0 %v2420_v6 }
  0xed   : > { %1816 = vmatprep.mubr.msk.bf16.mxu1 %vm471_vm0, %v2384_v58  ;;  %1900 = vmatprep.mubr.msk.bf16.mxu0 %vm471_vm0, %v2090_v5 }
  0xf4   : > { %918 = vmatmul.mubr.bf16.gmra.mxu1 %v2408_v0  ;;  %1400 = vmatmul.mubr.bf16.gmra.mxu0 %v2092_v7 }
  0xfc   : > { %v2509_v9 = vpop.f32.mrf.mxu0  ;;  %v2511_v10 = vpop.f32.mrf.mxu1 }
  0xfe   : > { %v556_v11 = vpop.f32.mrf.mxu0  ;;  %v620_v12 = vpop.f32.mrf.mxu1 }
 0x100   : > { %v2513_v13 = vpop.f32.mrf.mxu0  ;;  %v2515_v14 = vpop.f32.mrf.mxu1 }
 0x102   : > { %v559_v15 = vpop.f32.mrf.mxu0  ;;  %v623_v16 = vpop.f32.mrf.mxu1 }
 0x103   : > { %v2577_v16 = vld [vmem:[%s2717_s2] ss:$0 sm:$0xff] }
 0x104   : > { %v2517_v17 = vpop.f32.mrf.mxu0  ;;  %v2519_v18 = vpop.f32.mrf.mxu1 }
 0x106   : > { %v564_v19 = vpop.f32.mrf.mxu0  ;;  %v628_v20 = vpop.f32.mrf.mxu1 }
 0x108   : > { %v2521_v21 = vpop.f32.mrf.mxu0  ;;  %v2523_v22 = vpop.f32.mrf.mxu1 }
 0x10a   : > { %v567_v23 = vpop.f32.mrf.mxu0  ;;  %v631_v24 = vpop.f32.mrf.mxu1 }
 0x10c   : > { %v2525_v25 = vpop.f32.mrf.mxu0  ;;  %v2527_v26 = vpop.f32.mrf.mxu1 }
 0x10e   : > { %v572_v27 = vpop.f32.mrf.mxu0  ;;  %v636_v28 = vpop.f32.mrf.mxu1 }
 0x110   : > { %v2529_v29 = vpop.f32.mrf.mxu0  ;;  %v2531_v30 = vpop.f32.mrf.mxu1 }
 0x112   : > { %v575_v31 = vpop.f32.mrf.mxu0  ;;  %v639_v32 = vpop.f32.mrf.mxu1 }
 0x114   : > { %v2533_v33 = vpop.f32.mrf.mxu0  ;;  %v2535_v34 = vpop.f32.mrf.mxu1 }
 0x116   : > { %v580_v35 = vpop.f32.mrf.mxu0  ;;  %v644_v36 = vpop.f32.mrf.mxu1 }
 0x118   : > { %v2537_v37 = vpop.f32.mrf.mxu0  ;;  %v2539_v38 = vpop.f32.mrf.mxu1 }
 0x11a   : > { %v583_v39 = vpop.f32.mrf.mxu0  ;;  %v647_v40 = vpop.f32.mrf.mxu1 }
 0x11c   : > { %v2541_v41 = vpop.f32.mrf.mxu0  ;;  %v2543_v42 = vpop.f32.mrf.mxu1 }
 0x11e   : > { %v588_v43 = vpop.f32.mrf.mxu0  ;;  %v652_v44 = vpop.f32.mrf.mxu1 }
 0x120   : > { %v2545_v45 = vpop.f32.mrf.mxu0  ;;  %v2547_v46 = vpop.f32.mrf.mxu1 }
 0x122   : > { %v591_v47 = vpop.f32.mrf.mxu0  ;;  %v655_v48 = vpop.f32.mrf.mxu1 }
 0x124   : > { %v2549_v49 = vpop.f32.mrf.mxu0  ;;  %v2551_v50 = vpop.f32.mrf.mxu1 }
 0x126   : > { %v596_v51 = vpop.f32.mrf.mxu0  ;;  %v660_v52 = vpop.f32.mrf.mxu1 }
 0x128   : > { %v2553_v53 = vpop.f32.mrf.mxu0  ;;  %v2555_v54 = vpop.f32.mrf.mxu1 }
 0x12a   : > { %v599_v55 = vpop.f32.mrf.mxu0  ;;  %v663_v56 = vpop.f32.mrf.mxu1 }
 0x12c   : > { %v2557_v57 = vpop.f32.mrf.mxu0  ;;  %v2559_v58 = vpop.f32.mrf.mxu1 }
 0x12e   : > { %v604_v59 = vpop.f32.mrf.mxu0  ;;  %v668_v60 = vpop.f32.mrf.mxu1 }
 0x130   : > { %v2561_v61 = vpop.f32.mrf.mxu0  ;;  %v2563_v62 = vpop.f32.mrf.mxu1 }
 0x132   : > { %v607_v63 = vpop.f32.mrf.mxu0  ;;  %v671_v0 = vpop.f32.mrf.mxu1 }
 0x134   : > { %v2565_v2 = vpop.f32.mrf.mxu0  ;;  %v2567_v3 = vpop.f32.mrf.mxu1 }
 0x136   : > { %v612_v4 = vpop.f32.mrf.mxu0  ;;  %v676_v6 = vpop.f32.mrf.mxu1 }
 0x138   : > { %v2569_v1 = vpop.f32.mrf.mxu0  ;;  %v2571_v8 = vpop.f32.mrf.mxu1 }
 0x13a   : > { %v615_v5 = vpop.f32.mrf.mxu0  ;;  %v679_v7 = vpop.f32.mrf.mxu1 }
 0x13c   : > { %v799_v11 = vpop.f32.mrf.mxu1  ;;  %v1281_v12 = vpop.f32.mrf.mxu0 }
 0x13d   : > { %v800_v15 = vadd.f32 %v799_v11, %v2509_v9 }
 0x13e   : > { %v801_v19 = vpop.f32.mrf.mxu1  ;;  %v1283_v20 = vpop.f32.mrf.mxu0 }
 0x13f   : > { %v1408_v23 = vadd.f32 %v1281_v12, %v800_v15 }
 0x140   : > { %v802_v24 = vpop.f32.mrf.mxu1  ;;  %v1284_v27 = vpop.f32.mrf.mxu0 }
 0x141   : > { %v1447_v28 = vadd.f32 %v2577_v16, %v1408_v23  ;;  %v803_v31 = vadd.f32 %v802_v24, %v2513_v13 }
 0x142   : > { %v804_v9 = vpop.f32.mrf.mxu1  ;;  %v1286_v32 = vpop.f32.mrf.mxu0 }
 0x143   : > { %v1937_v35 = vpack.c.bf16 %v1447_v28, %v1447_v28  ;;  %v1409_v36 = vadd.f32 %v1284_v27, %v803_v31 }
 0x144   : > { %v807_v39 = vpop.f32.mrf.mxu1  ;;  %v1289_v40 = vpop.f32.mrf.mxu0 }
 0x145   : > { %1608 = vst.msk [vmem:[%s2585_s21] sm:$0xf] %vm1607_vm1, %v1937_v35  ;;  %v1448_v43 = vadd.f32 %v2577_v16, %v1409_v36  ;;  %v808_v13 = vadd.f32 %v807_v39, %v2517_v17 }
 0x146   : > { %v809_v44 = vpop.f32.mrf.mxu1  ;;  %v1291_v47 = vpop.f32.mrf.mxu0 }
 0x147   : > { %v1938_v48 = vpack.c.bf16 %v1448_v43, %v1448_v43  ;;  %v1410_v51 = vadd.f32 %v1289_v40, %v808_v13 }
 0x148   : > { %v810_v52 = vpop.f32.mrf.mxu1  ;;  %v1292_v55 = vpop.f32.mrf.mxu0 }
 0x149   : > { %1609 = vst.msk [vmem:[%s2585_s21 + $0x4] sm:$0xf] %vm1607_vm1, %v1938_v48  ;;  %v1449_v56 = vadd.f32 %v2577_v16, %v1410_v51  ;;  %v811_v59 = vadd.f32 %v810_v52, %v2521_v21 }
 0x14a   : > { %v812_v60 = vpop.f32.mrf.mxu1  ;;  %v1294_v63 = vpop.f32.mrf.mxu0 }
 0x14b   : > { %v1939_v0 = vpack.c.bf16 %v1449_v56, %v1449_v56  ;;  %v1411_v4 = vadd.f32 %v1292_v55, %v811_v59 }
 0x14c   : > { %v815_v6 = vpop.f32.mrf.mxu1  ;;  %v1297_v17 = vpop.f32.mrf.mxu0 }
 0x14d   : > { %1610 = vst.msk [vmem:[%s2585_s21 + $0x8] sm:$0xf] %vm1607_vm1, %v1939_v0  ;;  %v1450_v5 = vadd.f32 %v2577_v16, %v1411_v4  ;;  %v816_v7 = vadd.f32 %v815_v6, %v2525_v25 }
 0x14e   : > { %v817_v11 = vpop.f32.mrf.mxu1  ;;  %v1299_v12 = vpop.f32.mrf.mxu0 }
 0x14f   : > { %v1940_v15 = vpack.c.bf16 %v1450_v5, %v1450_v5  ;;  %v1412_v19 = vadd.f32 %v1297_v17, %v816_v7 }
 0x150   : > { %v818_v20 = vpop.f32.mrf.mxu1  ;;  %v1300_v21 = vpop.f32.mrf.mxu0 }
 0x151   : > { %1611 = vst.msk [vmem:[%s2585_s21 + $0xc] sm:$0xf] %vm1607_vm1, %v1940_v15  ;;  %v1451_v23 = vadd.f32 %v2577_v16, %v1412_v19  ;;  %v819_v24 = vadd.f32 %v818_v20, %v2529_v29 }
 0x152   : > { %v820_v27 = vpop.f32.mrf.mxu1  ;;  %v1302_v28 = vpop.f32.mrf.mxu0 }
 0x153   : > { %v1941_v31 = vpack.c.bf16 %v1451_v23, %v1451_v23  ;;  %v1413_v9 = vadd.f32 %v1300_v21, %v819_v24 }
 0x154   : > { %v823_v32 = vpop.f32.mrf.mxu1  ;;  %v1305_v25 = vpop.f32.mrf.mxu0 }
 0x155   : > { %1612 = vst.msk [vmem:[%s2585_s21 + $0x10] sm:$0xf] %vm1607_vm1, %v1941_v31  ;;  %v1452_v35 = vadd.f32 %v2577_v16, %v1413_v9  ;;  %v824_v36 = vadd.f32 %v823_v32, %v2533_v33 }
 0x156   : > { %v825_v39 = vpop.f32.mrf.mxu1  ;;  %v1307_v40 = vpop.f32.mrf.mxu0 }
 0x157   : > { %v1942_v43 = vpack.c.bf16 %v1452_v35, %v1452_v35  ;;  %v1414_v13 = vadd.f32 %v1305_v25, %v824_v36 }
 0x158   : > { %v826_v44 = vpop.f32.mrf.mxu1  ;;  %v1308_v29 = vpop.f32.mrf.mxu0 }
 0x159   : > { %1613 = vst.msk [vmem:[%s2585_s21 + $0x14] sm:$0xf] %vm1607_vm1, %v1942_v43  ;;  %v1453_v47 = vadd.f32 %v2577_v16, %v1414_v13  ;;  %v827_v48 = vadd.f32 %v826_v44, %v2537_v37 }
 0x15a   : > { %v828_v51 = vpop.f32.mrf.mxu1  ;;  %v1310_v52 = vpop.f32.mrf.mxu0 }
 0x15b   : > { %v1943_v55 = vpack.c.bf16 %v1453_v47, %v1453_v47  ;;  %v1415_v56 = vadd.f32 %v1308_v29, %v827_v48 }
 0x15c   : > { %v831_v59 = vpop.f32.mrf.mxu1  ;;  %v1313_v33 = vpop.f32.mrf.mxu0 }
 0x15d   : > { %1614 = vst.msk [vmem:[%s2585_s21 + $0x18] sm:$0xf] %vm1607_vm1, %v1943_v55  ;;  %v1454_v60 = vadd.f32 %v2577_v16, %v1415_v56  ;;  %v832_v63 = vadd.f32 %v831_v59, %v2541_v41 }
 0x15e   : > { %v833_v0 = vpop.f32.mrf.mxu1  ;;  %v1315_v4 = vpop.f32.mrf.mxu0 }
 0x15f   : > { %v1944_v6 = vpack.c.bf16 %v1454_v60, %v1454_v60  ;;  %v1416_v17 = vadd.f32 %v1313_v33, %v832_v63 }
 0x160   : > { %v834_v5 = vpop.f32.mrf.mxu1  ;;  %v1316_v37 = vpop.f32.mrf.mxu0 }
 0x161   : > { %1615 = vst.msk [vmem:[%s2585_s21 + $0x1c] sm:$0xf] %vm1607_vm1, %v1944_v6  ;;  %v1455_v7 = vadd.f32 %v2577_v16, %v1416_v17  ;;  %v835_v11 = vadd.f32 %v834_v5, %v2545_v45 }
 0x162   : > { %v836_v12 = vpop.f32.mrf.mxu1  ;;  %v1318_v15 = vpop.f32.mrf.mxu0 }
 0x163   : > { %v1945_v19 = vpack.c.bf16 %v1455_v7, %v1455_v7  ;;  %v1417_v20 = vadd.f32 %v1316_v37, %v835_v11 }
 0x164   : > { %v839_v21 = vpop.f32.mrf.mxu1  ;;  %v1321_v41 = vpop.f32.mrf.mxu0 }
 0x165   : > { %1616 = vst.msk [vmem:[%s2585_s21 + $0x20] sm:$0xf] %vm1607_vm1, %v1945_v19  ;;  %v1456_v23 = vadd.f32 %v2577_v16, %v1417_v20  ;;  %v840_v24 = vadd.f32 %v839_v21, %v2549_v49 }
 0x166   : > { %v841_v27 = vpop.f32.mrf.mxu1  ;;  %v1323_v28 = vpop.f32.mrf.mxu0 }
 0x167   : > { %v1946_v31 = vpack.c.bf16 %v1456_v23, %v1456_v23  ;;  %v1418_v9 = vadd.f32 %v1321_v41, %v840_v24 }
 0x168   : > { %v842_v32 = vpop.f32.mrf.mxu1  ;;  %v1324_v45 = vpop.f32.mrf.mxu0 }
 0x169   : > { %1617 = vst.msk [vmem:[%s2585_s21 + $0x24] sm:$0xf] %vm1607_vm1, %v1946_v31  ;;  %v1457_v25 = vadd.f32 %v2577_v16, %v1418_v9  ;;  %v843_v35 = vadd.f32 %v842_v32, %v2553_v53 }
 0x16a   : > { %v844_v36 = vpop.f32.mrf.mxu1  ;;  %v1326_v39 = vpop.f32.mrf.mxu0 }
 0x16b   : > { %v1947_v40 = vpack.c.bf16 %v1457_v25, %v1457_v25  ;;  %v1419_v43 = vadd.f32 %v1324_v45, %v843_v35 }
 0x16c   : > { %v847_v13 = vpop.f32.mrf.mxu1  ;;  %v1329_v49 = vpop.f32.mrf.mxu0 }
 0x16d   : > { %1618 = vst.msk [vmem:[%s2585_s21 + $0x28] sm:$0xf] %vm1607_vm1, %v1947_v40  ;;  %v1458_v44 = vadd.f32 %v2577_v16, %v1419_v43  ;;  %v848_v29 = vadd.f32 %v847_v13, %v2557_v57 }
 0x16e   : > { %v849_v47 = vpop.f32.mrf.mxu1  ;;  %v1331_v48 = vpop.f32.mrf.mxu0 }
 0x16f   : > { %v1948_v51 = vpack.c.bf16 %v1458_v44, %v1458_v44  ;;  %v1420_v52 = vadd.f32 %v1329_v49, %v848_v29 }
 0x170   : > { %v850_v55 = vpop.f32.mrf.mxu1  ;;  %v1332_v53 = vpop.f32.mrf.mxu0 }
 0x171   : > { %1619 = vst.msk [vmem:[%s2585_s21 + $0x2c] sm:$0xf] %vm1607_vm1, %v1948_v51  ;;  %v1459_v56 = vadd.f32 %v2577_v16, %v1420_v52  ;;  %v851_v59 = vadd.f32 %v850_v55, %v2561_v61 }
 0x172   : > { %v852_v33 = vpop.f32.mrf.mxu1  ;;  %v1334_v60 = vpop.f32.mrf.mxu0 }
 0x173   : > { %v1949_v63 = vpack.c.bf16 %v1459_v56, %v1459_v56  ;;  %v1421_v0 = vadd.f32 %v1332_v53, %v851_v59 }
 0x174   : > { %v855_v4 = vpop.f32.mrf.mxu1  ;;  %v1337_v57 = vpop.f32.mrf.mxu0 }
 0x175   : > { %1620 = vst.msk [vmem:[%s2585_s21 + $0x30] sm:$0xf] %vm1607_vm1, %v1949_v63  ;;  %v1460_v6 = vadd.f32 %v2577_v16, %v1421_v0  ;;  %v856_v17 = vadd.f32 %v855_v4, %v2565_v2 }
 0x176   : > { %v857_v5 = vpop.f32.mrf.mxu1  ;;  %v1339_v37 = vpop.f32.mrf.mxu0 }
 0x177   : > { %v1950_v7 = vpack.c.bf16 %v1460_v6, %v1460_v6  ;;  %v1422_v11 = vadd.f32 %v1337_v57, %v856_v17 }
 0x178   : > { %v858_v12 = vpop.f32.mrf.mxu1  ;;  %v1340_v61 = vpop.f32.mrf.mxu0 }
 0x179   : > { %1621 = vst.msk [vmem:[%s2585_s21 + $0x34] sm:$0xf] %vm1607_vm1, %v1950_v7  ;;  %v1461_v15 = vadd.f32 %v2577_v16, %v1422_v11  ;;  %v859_v19 = vadd.f32 %v858_v12, %v2569_v1 }
 0x17a   : > { %v860_v20 = vpop.f32.mrf.mxu1  ;;  %v1342_v21 = vpop.f32.mrf.mxu0 }
 0x17b   : > { %v1951_v41 = vpack.c.bf16 %v1461_v15, %v1461_v15  ;;  %v1423_v23 = vadd.f32 %v1340_v61, %v859_v19 }
 0x17c   : > { %v863_v24 = vpop.f32.mrf.mxu1  ;;  %v1345_v2 = vpop.f32.mrf.mxu0 }
 0x17d   : > { %1622 = vst.msk [vmem:[%s2585_s21 + $0x38] sm:$0xf] %vm1607_vm1, %v1951_v41  ;;  %v1462_v27 = vadd.f32 %v2577_v16, %v1423_v23  ;;  %v864_v28 = vadd.f32 %v863_v24, %v2511_v10 }
 0x17e   : > { %v865_v31 = vpop.f32.mrf.mxu1  ;;  %v1347_v9 = vpop.f32.mrf.mxu0 }
 0x17f   : > { %v1952_v32 = vpack.c.bf16 %v1462_v27, %v1462_v27  ;;  %v1424_v45 = vadd.f32 %v1345_v2, %v864_v28 }
 0x180   : > { %v866_v25 = vpop.f32.mrf.mxu1  ;;  %v1348_v1 = vpop.f32.mrf.mxu0 }
 0x181   : > { %1623 = vst.msk [vmem:[%s2585_s21 + $0x3c] sm:$0xf] %vm1607_vm1, %v1952_v32  ;;  %v1463_v35 = vadd.f32 %v2577_v16, %v1424_v45  ;;  %v867_v36 = vadd.f32 %v866_v25, %v2515_v14 }
 0x182   : > { %v868_v39 = vpop.f32.mrf.mxu1  ;;  %v1350_v40 = vpop.f32.mrf.mxu0 }
 0x183   : > { %v1953_v43 = vpack.c.bf16 %v1463_v35, %v1463_v35  ;;  %v1425_v13 = vadd.f32 %v1348_v1, %v867_v36 }
 0x184   : > { %v871_v49 = vpop.f32.mrf.mxu1  ;;  %v1353_v10 = vpop.f32.mrf.mxu0 }
 0x185   : > { %1624 = vst.msk [vmem:[%s2585_s21 + $0x40] sm:$0xf] %vm1607_vm1, %v1953_v43  ;;  %v1464_v44 = vadd.f32 %v2577_v16, %v1425_v13  ;;  %v872_v29 = vadd.f32 %v871_v49, %v2519_v18 }
 0x186   : > { %v873_v47 = vpop.f32.mrf.mxu1  ;;  %v1355_v48 = vpop.f32.mrf.mxu0 }
 0x187   : > { %v1954_v51 = vpack.c.bf16 %v1464_v44, %v1464_v44  ;;  %v1426_v52 = vadd.f32 %v1353_v10, %v872_v29 }
 0x188   : > { %v874_v55 = vpop.f32.mrf.mxu1  ;;  %v1356_v14 = vpop.f32.mrf.mxu0 }
 0x189   : > { %1625 = vst.msk [vmem:[%s2585_s21 + $0x44] sm:$0xf] %vm1607_vm1, %v1954_v51  ;;  %v1465_v53 = vadd.f32 %v2577_v16, %v1426_v52  ;;  %v875_v56 = vadd.f32 %v874_v55, %v2523_v22 }
 0x18a   : > { %v876_v59 = vpop.f32.mrf.mxu1  ;;  %v1358_v33 = vpop.f32.mrf.mxu0 }
 0x18b   : > { %v1955_v60 = vpack.c.bf16 %v1465_v53, %v1465_v53  ;;  %v1427_v63 = vadd.f32 %v1356_v14, %v875_v56 }
 0x18c   : > { %v879_v0 = vpop.f32.mrf.mxu1  ;;  %v1361_v18 = vpop.f32.mrf.mxu0 }
 0x18d   : > { %1626 = vst.msk [vmem:[%s2585_s21 + $0x48] sm:$0xf] %vm1607_vm1, %v1955_v60  ;;  %v1466_v4 = vadd.f32 %v2577_v16, %v1427_v63  ;;  %v880_v57 = vadd.f32 %v879_v0, %v2527_v26 }
 0x18e   : > { %v881_v6 = vpop.f32.mrf.mxu1  ;;  %v1363_v17 = vpop.f32.mrf.mxu0 }
 0x18f   : > { %v1956_v5 = vpack.c.bf16 %v1466_v4, %v1466_v4  ;;  %v1428_v37 = vadd.f32 %v1361_v18, %v880_v57 }
 0x190   : > { %v882_v7 = vpop.f32.mrf.mxu1  ;;  %v1364_v22 = vpop.f32.mrf.mxu0 }
 0x191   : > { %1627 = vst.msk [vmem:[%s2585_s21 + $0x4c] sm:$0xf] %vm1607_vm1, %v1956_v5  ;;  %v1467_v11 = vadd.f32 %v2577_v16, %v1428_v37  ;;  %v883_v12 = vadd.f32 %v882_v7, %v2531_v30 }
 0x192   : > { %v884_v61 = vpop.f32.mrf.mxu1  ;;  %v1366_v15 = vpop.f32.mrf.mxu0 }
 0x193   : > { %v1957_v19 = vpack.c.bf16 %v1467_v11, %v1467_v11  ;;  %v1429_v20 = vadd.f32 %v1364_v22, %v883_v12 }
 0x194   : > { %v887_v21 = vpop.f32.mrf.mxu1  ;;  %v1369_v26 = vpop.f32.mrf.mxu0 }
 0x195   : > { %1628 = vst.msk [vmem:[%s2585_s21 + $0x50] sm:$0xf] %vm1607_vm1, %v1957_v19  ;;  %v1468_v41 = vadd.f32 %v2577_v16, %v1429_v20  ;;  %v888_v23 = vadd.f32 %v887_v21, %v2535_v34 }
 0x196   : > { %v889_v24 = vpop.f32.mrf.mxu1  ;;  %v1371_v2 = vpop.f32.mrf.mxu0 }
 0x197   : > { %v1958_v27 = vpack.c.bf16 %v1468_v41, %v1468_v41  ;;  %v1430_v28 = vadd.f32 %v1369_v26, %v888_v23 }
 0x198   : > { %v890_v31 = vpop.f32.mrf.mxu1  ;;  %v1372_v30 = vpop.f32.mrf.mxu0 }
 0x199   : > { %1629 = vst.msk [vmem:[%s2585_s21 + $0x54] sm:$0xf] %vm1607_vm1, %v1958_v27  ;;  %v1469_v9 = vadd.f32 %v2577_v16, %v1430_v28  ;;  %v891_v32 = vadd.f32 %v890_v31, %v2539_v38 }
 0x19a   : > { %v892_v45 = vpop.f32.mrf.mxu1  ;;  %v1374_v25 = vpop.f32.mrf.mxu0 }
 0x19b   : > { %v1959_v1 = vpack.c.bf16 %v1469_v9, %v1469_v9  ;;  %v1431_v35 = vadd.f32 %v1372_v30, %v891_v32 }
 0x19c   : > { %v895_v36 = vpop.f32.mrf.mxu1  ;;  %v1377_v34 = vpop.f32.mrf.mxu0 }
 0x19d   : > { %1630 = vst.msk [vmem:[%s2585_s21 + $0x58] sm:$0xf] %vm1607_vm1, %v1959_v1  ;;  %v1470_v39 = vadd.f32 %v2577_v16, %v1431_v35  ;;  %v896_v40 = vadd.f32 %v895_v36, %v2543_v42 }
 0x19e   : > { %v897_v43 = vpop.f32.mrf.mxu1  ;;  %v1379_v13 = vpop.f32.mrf.mxu0 }
 0x19f   : > { %v1960_v49 = vpack.c.bf16 %v1470_v39, %v1470_v39  ;;  %v1432_v10 = vadd.f32 %v1377_v34, %v896_v40 }
 0x1a0   : > { %v898_v44 = vpop.f32.mrf.mxu1  ;;  %v1380_v38 = vpop.f32.mrf.mxu0 }
 0x1a1   : > { %1631 = vst.msk [vmem:[%s2585_s21 + $0x5c] sm:$0xf] %vm1607_vm1, %v1960_v49  ;;  %v1471_v29 = vadd.f32 %v2577_v16, %v1432_v10  ;;  %v899_v47 = vadd.f32 %v898_v44, %v2547_v46 }
 0x1a2   : > { %v900_v48 = vpop.f32.mrf.mxu1  ;;  %v1382_v51 = vpop.f32.mrf.mxu0 }
 0x1a3   : > { %v1961_v52 = vpack.c.bf16 %v1471_v29, %v1471_v29  ;;  %v1433_v55 = vadd.f32 %v1380_v38, %v899_v47 }
 0x1a4   : > { %v903_v14 = vpop.f32.mrf.mxu1  ;;  %v1385_v42 = vpop.f32.mrf.mxu0 }
 0x1a5   : > { %1632 = vst.msk [vmem:[%s2585_s21 + $0x60] sm:$0xf] %vm1607_vm1, %v1961_v52  ;;  %v1472_v53 = vadd.f32 %v2577_v16, %v1433_v55  ;;  %v904_v56 = vadd.f32 %v903_v14, %v2551_v50 }
 0x1a6   : > { %v905_v59 = vpop.f32.mrf.mxu1  ;;  %v1387_v33 = vpop.f32.mrf.mxu0 }
 0x1a7   : > { %v1962_v60 = vpack.c.bf16 %v1472_v53, %v1472_v53  ;;  %v1434_v63 = vadd.f32 %v1385_v42, %v904_v56 }
 0x1a8   : > { %v906_v0 = vpop.f32.mrf.mxu1  ;;  %v1388_v46 = vpop.f32.mrf.mxu0 }
 0x1a9   : > { %1633 = vst.msk [vmem:[%s2585_s21 + $0x64] sm:$0xf] %vm1607_vm1, %v1962_v60  ;;  %v1473_v18 = vadd.f32 %v2577_v16, %v1434_v63  ;;  %v907_v4 = vadd.f32 %v906_v0, %v2555_v54 }
 0x1aa   : > { %v908_v57 = vpop.f32.mrf.mxu1  ;;  %v1390_v6 = vpop.f32.mrf.mxu0 }
 0x1ab   : > { %v1963_v17 = vpack.c.bf16 %v1473_v18, %v1473_v18  ;;  %v1435_v5 = vadd.f32 %v1388_v46, %v907_v4 }
 0x1ac   : > { %v911_v37 = vpop.f32.mrf.mxu1  ;;  %v1393_v50 = vpop.f32.mrf.mxu0 }
 0x1ad   : > { %1634 = vst.msk [vmem:[%s2585_s21 + $0x68] sm:$0xf] %vm1607_vm1, %v1963_v17  ;;  %v1474_v7 = vadd.f32 %v2577_v16, %v1435_v5  ;;  %v912_v22 = vadd.f32 %v911_v37, %v2559_v58 }
 0x1ae   : > { %v913_v11 = vpop.f32.mrf.mxu1  ;;  %v1395_v12 = vpop.f32.mrf.mxu0 }
 0x1af   : > { %v1964_v61 = vpack.c.bf16 %v1474_v7, %v1474_v7  ;;  %v1436_v15 = vadd.f32 %v1393_v50, %v912_v22 }
 0x1b0   : > { %v914_v19 = vpop.f32.mrf.mxu1  ;;  %v1396_v54 = vpop.f32.mrf.mxu0 }
 0x1b1   : > { %1635 = vst.msk [vmem:[%s2585_s21 + $0x6c] sm:$0xf] %vm1607_vm1, %v1964_v61  ;;  %v1475_v20 = vadd.f32 %v2577_v16, %v1436_v15  ;;  %v915_v21 = vadd.f32 %v914_v19, %v2563_v62 }
 0x1b2   : > { %v916_v26 = vpop.f32.mrf.mxu1  ;;  %v1398_v41 = vpop.f32.mrf.mxu0 }
 0x1b3   : > { %v1965_v23 = vpack.c.bf16 %v1475_v20, %v1475_v20  ;;  %v1437_v24 = vadd.f32 %v1396_v54, %v915_v21 }
 0x1b4   : > { %v919_v2 = vpop.f32.mrf.mxu1  ;;  %v1401_v58 = vpop.f32.mrf.mxu0 }
 0x1b5   : > { %1636 = vst.msk [vmem:[%s2585_s21 + $0x70] sm:$0xf] %vm1607_vm1, %v1965_v23  ;;  %v1476_v27 = vadd.f32 %v2577_v16, %v1437_v24  ;;  %v920_v28 = vadd.f32 %v919_v2, %v2567_v3 }
 0x1b6   : > { %v921_v31 = vpop.f32.mrf.mxu1  ;;  %v1403_v30 = vpop.f32.mrf.mxu0 }
 0x1b7   : > { %v1966_v9 = vpack.c.bf16 %v1476_v27, %v1476_v27  ;;  %v1438_v32 = vadd.f32 %v1401_v58, %v920_v28 }
 0x1b8   : > { %v922_v62 = vpop.f32.mrf.mxu1  ;;  %v1404_v45 = vpop.f32.mrf.mxu0 }
 0x1b9   : > { %1637 = vst.msk [vmem:[%s2585_s21 + $0x74] sm:$0xf] %vm1607_vm1, %v1966_v9  ;;  %v1477_v25 = vadd.f32 %v2577_v16, %v1438_v32  ;;  %v923_v1 = vadd.f32 %v922_v62, %v2571_v8 }
 0x1ba   : > { %v924_v35 = vpop.f32.mrf.mxu1  ;;  %v1406_v36 = vpop.f32.mrf.mxu0 }
 0x1bb   : > { %v1967_v34 = vpack.c.bf16 %v1477_v25, %v1477_v25  ;;  %v1439_v39 = vadd.f32 %v1404_v45, %v923_v1 }
 0x1bd   : > { %1638 = vst.msk [vmem:[%s2585_s21 + $0x78] sm:$0xf] %vm1607_vm1, %v1967_v34  ;;  %v1478_v3 = vadd.f32 %v2577_v16, %v1439_v39 }
 0x1bf   : > { %v1968_v40 = vpack.c.bf16 %v1478_v3, %v1478_v3 }
 0x1c1   : > { %1639 = vst.msk [vmem:[%s2585_s21 + $0x7c] sm:$0xf] %vm1607_vm1, %v1968_v40 }
 0x1c2 PF: > { %s13_s12 = sadd.s32 1, %s2099_s12  }
 0x1c3   : > { %p10_p4 = scmp.ge.s32.totalorder %s13_s12, 4  }
 0x1c5   :  { %12 = sbr.rel (!%p10_p4) target bundleno = 1 (0x1), region = 64 }

// kernel: autoencoder_kl_forward.55
= control target key start
LH: loop header
LB: loop body
LE: loop exit
PB: predicated region body
PF: predicated region fallthrough
CT: control target
= control target key end

     0   :  { %s1702_s12 = smov 0   ;;  %s2008_s0 = inlined_call_operand.vmem [shape: bf16[2,288,12], index: 0, kind: input, shape index: {}]   ;;  %s2009_s1 = inlined_call_operand.vmem [shape: bf16[3,12,64], index: 1, kind: input, shape index: {}]   ;;  %s2010_s2 = inlined_call_operand.vmem [shape: f32[1,64], index: 2, kind: input, shape index: {}]   ;;  %s2011_s3 = inlined_call_operand.vmem [shape: bf16[2,256,64], index: 3, kind: output, shape index: {}]  }
   0x1 LB: > { %s1306_s13 = sadd.s32 4294967295, %s1680_s12   ;;  %p1310_p0 = scmp.ge.s32.totalorder %s1680_s12, 1  ;;  %s1680_s12 = sphi %s1702_s12, %s13_s12  }
   0x2   : > { %p137_p1 = scmp.lt.s32.totalorder %s1680_s12, 3 }
   0x4   : > { %p138_p2 = pnand %p1310_p0, %p137_p1 }
   0x5   : > { %p161_p3 = scmp.lt.s32.totalorder (!%p138_p2), %s1306_s13, 1 }
   0x6   : > { %141 = sbr.rel (%p138_p2) target bundleno = 314 (0x13a), region = 32 }
   0xb   : > { %v1638_v0 = vld [vmem:[%s2009_s1 + $0x8] sm:$0x3f]   ;;  %vm345_vm0 = vcmask 1045504   ;;  %v1641_v2 = vld [vmem:[%s2009_s1] sm:$0x3f]   ;;  %s2013_s13 = smov (!%p161_p3, %s1306_s13), 1 }
   0xc   : > { %1626 = vmatprep.subr.msk.bf16.mxu1 %vm345_vm0, %v1638_v0  ;;  %1625 = vmatprep.subr.msk.bf16.mxu0 %vm345_vm0, %v1638_v0  ;;  %v347_v1 = vsel %vm345_vm0, %v1638_v0, 0  ;;  %v1644_v3 = vld [vmem:[%s2009_s1 + $0x10] sm:$0x3f]   ;;  %s1629_s20 = smul.u32 144, %s2013_s13  ;;  %vm296_vm1 = vcmask 97280   ;;  %v524_v9 = vsel %vm345_vm0, %v1641_v2, 0 }
   0xd   : > { %1624 = vmatpush3.bf16.msra.mxu1 %v347_v1  ;;  %1522 = vmatpush3.bf16.msra.mxu0 %v347_v1  ;;  %v856_v7 = vsel %vm345_vm0, %v1644_v3, 0  ;;  %s1437_s26 = sshll.u32 %s2013_s13, 7  ;;  %vm1218_vm2 = vcmask 519168  }
   0xe   : > { %1627 = vmatprep.subr.msk.bf16.mxu1 %vm345_vm0, %v1641_v2  ;;  %1628 = vmatprep.subr.msk.bf16.mxu0 %vm345_vm0, %v1644_v3  ;;  %s1730_s23 = scalar_lea.vmem %s2008_s0, %s1629_s20  ;;  %s1883_s29 = scalar_lea.vmem %s2011_s3, %s1437_s26 }
   0xf   : > { %v1639_v4 = vld [vmem:[%s1730_s23 + $0x8] sm:$0xff]   ;;  %v1642_v6 = vld [vmem:[%s1730_s23 + $0x10] sm:$0xff]   ;;  %v1645_v10 = vld [vmem:[%s1730_s23 + $0x18] sm:$0xff]  }
  0x10   : > { %v1734_v5 = vld [vmem:[%s1730_s23 + $0x48] sm:$0xff]   ;;  %1523 = vmatprep.mubr.msk.bf16.mxu0 %vm296_vm1, %v1639_v4  ;;  %v1742_v8 = vld [vmem:[%s1730_s23 + $0x50] sm:$0xff]   ;;  %v1646_v11 = vld [vmem:[%s1730_s23 + $0x58] sm:$0xff]  }
  0x11   : > { %1539 = vmatprep.mubr.msk.bf16.mxu1 %vm296_vm1, %v1734_v5  ;;  %1524 = vmatmul.mubr.msk.bf16.vlgmr.msra.gmra.mxu0 %vm296_vm1, %v1642_v6  ;;  %v1647_v12 = vld [vmem:[%s1730_s23 + $0x20] sm:$0xff]   ;;  %v1649_v14 = vld [vmem:[%s1730_s23 + $0x28] sm:$0xff]   ;;  %v1651_v16 = vld [vmem:[%s1730_s23 + $0x30] sm:$0xff]  }
  0x12   : > { %1540 = vmatmul.mubr.msk.bf16.vlgmr.msra.gmra.mxu1 %vm296_vm1, %v1742_v8  ;;  %1590 = vmatpush3.bf16.msra.mxu0 %v856_v7  ;;  %v1648_v13 = vld [vmem:[%s1730_s23 + $0x60] sm:$0xff]   ;;  %v1650_v15 = vld [vmem:[%s1730_s23 + $0x68] sm:$0xff]   ;;  %v1652_v17 = vld [vmem:[%s1730_s23 + $0x70] sm:$0xff]  }
  0x13   : > { %1556 = vmatpush3.bf16.msra.mxu1 %v524_v9  ;;  %1527 = vmatprep.mubr.msk.bf16.mxu0 %vm296_vm1, %v1645_v10  ;;  %v1653_v18 = vld [vmem:[%s1730_s23 + $0x38] sm:$0xff]   ;;  %v1655_v20 = vld [vmem:[%s1730_s23 + $0x40] sm:$0xff]   ;;  %v1658_v22 = vld [vmem:[%s1730_s23 + $0x10] sm:$0xff]  }
  0x14   : > { %1543 = vmatprep.mubr.msk.bf16.mxu1 %vm296_vm1, %v1646_v11  ;;  %v1654_v19 = vld [vmem:[%s1730_s23 + $0x78] sm:$0xff]   ;;  %v1656_v21 = vld [vmem:[%s1730_s23 + $0x80] sm:$0xff]   ;;  %v1661_v26 = vld [vmem:[%s1730_s23 + $0x28] sm:$0xff]  }
  0x15   : > { %v1657_v23 = vld [vmem:[%s1730_s23] sm:$0xff]   ;;  %v1659_v24 = vld [vmem:[%s1730_s23 + $0x18] sm:$0xff]   ;;  %v1662_v27 = vld [vmem:[%s1730_s23 + $0x30] sm:$0xff]  }
  0x16   : > { %v1660_v25 = vld [vmem:[%s1730_s23 + $0x20] sm:$0xff]   ;;  %v1663_v28 = vld [vmem:[%s1730_s23 + $0x38] sm:$0xff]   ;;  %v1665_v30 = vld [vmem:[%s1730_s23 + $0x48] sm:$0xff]  }
  0x17   : > { %v1664_v29 = vld [vmem:[%s1730_s23 + $0x40] sm:$0xff]   ;;  %v1666_v31 = vld [vmem:[%s1730_s23 + $0x50] sm:$0xff]   ;;  %v1667_v32 = vld [vmem:[%s1730_s23 + $0x58] sm:$0xff]  }
  0x18   : > { %v1668_v33 = vld [vmem:[%s1730_s23 + $0x60] sm:$0xff]   ;;  %v1669_v34 = vld [vmem:[%s1730_s23 + $0x68] sm:$0xff]   ;;  %v1670_v35 = vld [vmem:[%s1730_s23 + $0x70] sm:$0xff]  }
  0x19   : > { %1528 = vmatmul.mubr.msk.bf16.gmra.mxu0 %vm296_vm1, %v1647_v12  ;;  %v1671_v36 = vld [vmem:[%s1730_s23 + $0x78] sm:$0xff]   ;;  %v1672_v37 = vld [vmem:[%s1730_s23 + $0x80] sm:$0xff]   ;;  %v1673_v38 = vld [vmem:[%s1730_s23 + $0x88] sm:$0xff]  }
  0x1a   : > { %1544 = vmatmul.mubr.msk.bf16.gmra.mxu1 %vm296_vm1, %v1648_v13  ;;  %1531 = vmatprep.mubr.msk.bf16.mxu0 %vm296_vm1, %v1649_v14 }
  0x1b   : > { %1547 = vmatprep.mubr.msk.bf16.mxu1 %vm296_vm1, %v1650_v15 }
  0x21   : > { %1532 = vmatmul.mubr.msk.bf16.gmra.mxu0 %vm296_vm1, %v1651_v16 }
  0x22   : > { %1548 = vmatmul.mubr.msk.bf16.gmra.mxu1 %vm296_vm1, %v1652_v17  ;;  %1535 = vmatprep.mubr.msk.bf16.mxu0 %vm296_vm1, %v1653_v18 }
  0x23   : > { %1551 = vmatprep.mubr.msk.bf16.mxu1 %vm296_vm1, %v1654_v19 }
  0x29   : > { %1536 = vmatmul.mubr.msk.bf16.gmra.mxu0 %vm296_vm1, %v1655_v20 }
  0x2a   : > { %1552 = vmatmul.mubr.msk.bf16.gmra.mxu1 %vm296_vm1, %v1656_v21  ;;  %1591 = vmatprep.mubr.msk.bf16.mxu0 %vm296_vm1, %v1658_v22 }
  0x2b   : > { %1557 = vmatprep.mubr.msk.bf16.mxu1 %vm296_vm1, %v1657_v23 }
  0x31   : > { %1592 = vmatmul.mubr.msk.bf16.vlgmr.msra.gmra.mxu0 %vm296_vm1, %v1659_v24 }
  0x32   : > { %1558 = vmatmul.mubr.msk.bf16.vlgmr.msra.gmra.mxu1 %vm296_vm1, %v1639_v4  ;;  %1595 = vmatprep.mubr.msk.bf16.mxu0 %vm296_vm1, %v1660_v25 }
  0x33   : > { %1561 = vmatprep.mubr.msk.bf16.mxu1 %vm296_vm1, %v1642_v6 }
  0x39   : > { %1596 = vmatmul.mubr.msk.bf16.gmra.mxu0 %vm296_vm1, %v1661_v26 }
  0x3a   : > { %1562 = vmatmul.mubr.msk.bf16.gmra.mxu1 %vm296_vm1, %v1645_v10  ;;  %1599 = vmatprep.mubr.msk.bf16.mxu0 %vm296_vm1, %v1662_v27 }
  0x3b   : > { %1565 = vmatprep.mubr.msk.bf16.mxu1 %vm296_vm1, %v1647_v12 }
  0x41   : > { %1600 = vmatmul.mubr.msk.bf16.gmra.mxu0 %vm296_vm1, %v1663_v28 }
  0x42   : > { %1566 = vmatmul.mubr.msk.bf16.gmra.mxu1 %vm296_vm1, %v1649_v14  ;;  %1603 = vmatprep.mubr.msk.bf16.mxu0 %vm296_vm1, %v1664_v29 }
  0x43   : > { %1569 = vmatprep.mubr.msk.bf16.mxu1 %vm296_vm1, %v1651_v16 }
  0x49   : > { %1604 = vmatmul.mubr.msk.bf16.gmra.mxu0 %vm296_vm1, %v1665_v30 }
  0x4a   : > { %1570 = vmatmul.mubr.msk.bf16.gmra.mxu1 %vm296_vm1, %v1653_v18  ;;  %1607 = vmatprep.mubr.msk.bf16.mxu0 %vm296_vm1, %v1666_v31 }
  0x4b   : > { %1573 = vmatprep.mubr.msk.bf16.mxu1 %vm296_vm1, %v1655_v20 }
  0x51   : > { %1608 = vmatmul.mubr.msk.bf16.gmra.mxu0 %vm296_vm1, %v1667_v32 }
  0x52   : > { %1574 = vmatmul.mubr.msk.bf16.gmra.mxu1 %vm296_vm1, %v1734_v5  ;;  %1611 = vmatprep.mubr.msk.bf16.mxu0 %vm296_vm1, %v1668_v33 }
  0x53   : > { %1577 = vmatprep.mubr.msk.bf16.mxu1 %vm296_vm1, %v1742_v8 }
  0x59   : > { %1612 = vmatmul.mubr.msk.bf16.gmra.mxu0 %vm296_vm1, %v1669_v34 }
  0x5a   : > { %1578 = vmatmul.mubr.msk.bf16.gmra.mxu1 %vm296_vm1, %v1646_v11  ;;  %1615 = vmatprep.mubr.msk.bf16.mxu0 %vm296_vm1, %v1670_v35  ;;  %v1876_v11 = vld [vmem:[%s2010_s2] ss:$0 sm:$0xff] }
  0x5b   : > { %1581 = vmatprep.mubr.msk.bf16.mxu1 %vm296_vm1, %v1648_v13 }
  0x61   : > { %1616 = vmatmul.mubr.msk.bf16.gmra.mxu0 %vm296_vm1, %v1671_v36 }
  0x62   : > { %1582 = vmatmul.mubr.msk.bf16.gmra.mxu1 %vm296_vm1, %v1650_v15  ;;  %1619 = vmatprep.mubr.msk.bf16.mxu0 %vm296_vm1, %v1672_v37 }
  0x63   : > { %1585 = vmatprep.mubr.msk.bf16.mxu1 %vm296_vm1, %v1652_v17 }
  0x69   : > { %1620 = vmatmul.mubr.msk.bf16.gmra.mxu0 %vm296_vm1, %v1673_v38 }
  0x6a   : > { %1586 = vmatmul.mubr.msk.bf16.gmra.mxu1 %vm296_vm1, %v1654_v19 }
  0xd1   : > { %v1525_v39 = vpop.f32.mrf.mxu0 }
  0xd2   : > { %v1823_v40 = vpop.f32.mrf.mxu1 }
  0xd3   : > { %v383_v41 = vpop.f32.mrf.mxu0 }
  0xd4   : > { %v1825_v42 = vpop.f32.mrf.mxu1 }
  0xd5   : > { %v1526_v43 = vpop.f32.mrf.mxu0 }
  0xd6   : > { %v1827_v44 = vpop.f32.mrf.mxu1 }
  0xd7   : > { %v386_v45 = vpop.f32.mrf.mxu0 }
  0xd8   : > { %v1829_v46 = vpop.f32.mrf.mxu1 }
  0xd9   : > { %v1529_v47 = vpop.f32.mrf.mxu0 }
  0xda   : > { %v1831_v48 = vpop.f32.mrf.mxu1 }
  0xdb   : > { %v399_v49 = vpop.f32.mrf.mxu0 }
  0xdc   : > { %v1833_v50 = vpop.f32.mrf.mxu1 }
  0xdd   : > { %v1530_v51 = vpop.f32.mrf.mxu0 }
  0xde   : > { %v1835_v52 = vpop.f32.mrf.mxu1 }
  0xdf   : > { %v1837_v53 = vpop.f32.mrf.mxu0 }
  0xe0   : > { %v1839_v54 = vpop.f32.mrf.mxu1 }
  0xe1   : > { %v1841_v55 = vpop.f32.mrf.mxu0 }
  0xe2   : > { %v1843_v56 = vpop.f32.mrf.mxu1 }
  0xe3   : > { %v1845_v57 = vpop.f32.mrf.mxu0 }
  0xe4   : > { %v1847_v58 = vpop.f32.mrf.mxu1 }
  0xe5   : > { %v1849_v59 = vpop.f32.mrf.mxu0 }
  0xe6   : > { %v1851_v60 = vpop.f32.mrf.mxu1 }
  0xe7   : > { %v1853_v61 = vpop.f32.mrf.mxu0 }
  0xe8   : > { %v1855_v62 = vpop.f32.mrf.mxu1 }
  0xe9   : > { %v1857_v63 = vpop.f32.mrf.mxu0 }
  0xea   : > { %v1859_v0 = vpop.f32.mrf.mxu1 }
  0xeb   : > { %v1861_v1 = vpop.f32.mrf.mxu0 }
  0xec   : > { %v1863_v2 = vpop.f32.mrf.mxu1 }
  0xed   : > { %v1865_v3 = vpop.f32.mrf.mxu0 }
  0xee   : > { %v1867_v4 = vpop.f32.mrf.mxu1 }
  0xef   : > { %v1869_v5 = vpop.f32.mrf.mxu0 }
  0xf0   : > { %v1871_v6 = vpop.f32.mrf.mxu1 }
  0xf1   : > { %v1593_v7 = vpop.f32.mrf.mxu0 }
  0xf2   : > { %v1559_v8 = vpop.f32.mrf.mxu1 }
  0xf3   : > { %v569_v9 = vadd.f32 %v1559_v8, %v1525_v39  ;;  %v892_v10 = vpop.f32.mrf.mxu0 }
  0xf4   : > { %v560_v12 = vpop.f32.mrf.mxu1 }
  0xf5   : > { %v1021_v13 = vadd.f32 %v1593_v7, %v569_v9  ;;  %v561_v14 = vadd.f32 %v560_v12, %v383_v41  ;;  %v1594_v15 = vpop.f32.mrf.mxu0 }
  0xf6   : > { %v1560_v16 = vpop.f32.mrf.mxu1 }
  0xf7   : > { %v1060_v17 = vadd.f32 %v1876_v11, %v1021_v13  ;;  %v1019_v18 = vadd.f32 %v892_v10, %v561_v14  ;;  %v572_v19 = vadd.f32 %v1560_v16, %v1526_v43  ;;  %v895_v20 = vpop.f32.mrf.mxu0 }
  0xf8   : > { %v563_v21 = vpop.f32.mrf.mxu1 }
  0xf9   : > { %v1440_v22 = vpack.c.bf16 %v1060_v17, %v1060_v17  ;;  %v1058_v23 = vadd.f32 %v1876_v11, %v1019_v18  ;;  %v1022_v24 = vadd.f32 %v1594_v15, %v572_v19  ;;  %v564_v25 = vadd.f32 %v563_v21, %v386_v45  ;;  %v1597_v26 = vpop.f32.mrf.mxu0 }
  0xfa   : > { %v1563_v27 = vpop.f32.mrf.mxu1 }
  0xfb   : > { %1221 = vst.msk [vmem:[%s1883_s29 + $0x8] sm:$0xf] %vm1218_vm2, %v1440_v22  ;;  %v1438_v28 = vpack.c.bf16 %v1058_v23, %v1058_v23  ;;  %v1061_v29 = vadd.f32 %v1876_v11, %v1022_v24  ;;  %v1020_v30 = vadd.f32 %v895_v20, %v564_v25  ;;  %v585_v31 = vadd.f32 %v1563_v27, %v1529_v47  ;;  %v908_v32 = vpop.f32.mrf.mxu0 }
  0xfc   : > { %v576_v33 = vpop.f32.mrf.mxu1 }
  0xfd   : > { %1219 = vst.msk [vmem:[%s1883_s29] sm:$0xf] %vm1218_vm2, %v1438_v28  ;;  %v1441_v34 = vpack.c.bf16 %v1061_v29, %v1061_v29  ;;  %v1059_v35 = vadd.f32 %v1876_v11, %v1020_v30  ;;  %v1025_v36 = vadd.f32 %v1597_v26, %v585_v31  ;;  %v577_v37 = vadd.f32 %v576_v33, %v399_v49  ;;  %v1598_v38 = vpop.f32.mrf.mxu0 }
  0xfe   : > { %v1564_v39 = vpop.f32.mrf.mxu1 }
  0xff   : > { %1222 = vst.msk [vmem:[%s1883_s29 + $0xc] sm:$0xf] %vm1218_vm2, %v1441_v34  ;;  %v1439_v41 = vpack.c.bf16 %v1059_v35, %v1059_v35  ;;  %v1064_v43 = vadd.f32 %v1876_v11, %v1025_v36  ;;  %v1023_v45 = vadd.f32 %v908_v32, %v577_v37  ;;  %v588_v47 = vadd.f32 %v1564_v39, %v1530_v51  ;;  %v911_v7 = vpop.f32.mrf.mxu0 }
 0x100   : > { %v579_v8 = vpop.f32.mrf.mxu1 }
 0x101   : > { %1220 = vst.msk [vmem:[%s1883_s29 + $0x4] sm:$0xf] %vm1218_vm2, %v1439_v41  ;;  %v1444_v9 = vpack.c.bf16 %v1064_v43, %v1064_v43  ;;  %v1062_v10 = vadd.f32 %v1876_v11, %v1023_v45  ;;  %v1026_v12 = vadd.f32 %v1598_v38, %v588_v47  ;;  %v580_v49 = vadd.f32 %v579_v8, %v1837_v53  ;;  %v1601_v13 = vpop.f32.mrf.mxu0 }
 0x102   : > { %v1567_v14 = vpop.f32.mrf.mxu1 }
 0x103   : > { %1225 = vst.msk [vmem:[%s1883_s29 + $0x18] sm:$0xf] %vm1218_vm2, %v1444_v9  ;;  %v1442_v15 = vpack.c.bf16 %v1062_v10, %v1062_v10  ;;  %v1065_v16 = vadd.f32 %v1876_v11, %v1026_v12  ;;  %v1024_v51 = vadd.f32 %v911_v7, %v580_v49  ;;  %v601_v17 = vadd.f32 %v1567_v14, %v1841_v55  ;;  %v924_v18 = vpop.f32.mrf.mxu0 }
 0x104   : > { %v592_v19 = vpop.f32.mrf.mxu1 }
 0x105   : > { %1223 = vst.msk [vmem:[%s1883_s29 + $0x10] sm:$0xf] %vm1218_vm2, %v1442_v15  ;;  %v1445_v20 = vpack.c.bf16 %v1065_v16, %v1065_v16  ;;  %v1063_v21 = vadd.f32 %v1876_v11, %v1024_v51  ;;  %v1029_v53 = vadd.f32 %v1601_v13, %v601_v17  ;;  %v593_v22 = vadd.f32 %v592_v19, %v1845_v57  ;;  %v1602_v23 = vpop.f32.mrf.mxu0 }
 0x106   : > { %v1568_v24 = vpop.f32.mrf.mxu1 }
 0x107   : > { %1226 = vst.msk [vmem:[%s1883_s29 + $0x1c] sm:$0xf] %vm1218_vm2, %v1445_v20  ;;  %v1443_v25 = vpack.c.bf16 %v1063_v21, %v1063_v21  ;;  %v1068_v26 = vadd.f32 %v1876_v11, %v1029_v53  ;;  %v1027_v55 = vadd.f32 %v924_v18, %v593_v22  ;;  %v604_v27 = vadd.f32 %v1568_v24, %v1849_v59  ;;  %v927_v28 = vpop.f32.mrf.mxu0 }
 0x108   : > { %v595_v29 = vpop.f32.mrf.mxu1 }
 0x109   : > { %1224 = vst.msk [vmem:[%s1883_s29 + $0x14] sm:$0xf] %vm1218_vm2, %v1443_v25  ;;  %v1448_v30 = vpack.c.bf16 %v1068_v26, %v1068_v26  ;;  %v1066_v31 = vadd.f32 %v1876_v11, %v1027_v55  ;;  %v1030_v57 = vadd.f32 %v1602_v23, %v604_v27  ;;  %v596_v32 = vadd.f32 %v595_v29, %v1853_v61  ;;  %v1605_v33 = vpop.f32.mrf.mxu0 }
 0x10a   : > { %v1571_v34 = vpop.f32.mrf.mxu1 }
 0x10b   : > { %1229 = vst.msk [vmem:[%s1883_s29 + $0x28] sm:$0xf] %vm1218_vm2, %v1448_v30  ;;  %v1446_v35 = vpack.c.bf16 %v1066_v31, %v1066_v31  ;;  %v1069_v36 = vadd.f32 %v1876_v11, %v1030_v57  ;;  %v1028_v59 = vadd.f32 %v927_v28, %v596_v32  ;;  %v617_v37 = vadd.f32 %v1571_v34, %v1857_v63  ;;  %v940_v38 = vpop.f32.mrf.mxu0 }
 0x10c   : > { %v608_v39 = vpop.f32.mrf.mxu1 }
 0x10d   : > { %1227 = vst.msk [vmem:[%s1883_s29 + $0x20] sm:$0xf] %vm1218_vm2, %v1446_v35  ;;  %v1449_v41 = vpack.c.bf16 %v1069_v36, %v1069_v36  ;;  %v1067_v43 = vadd.f32 %v1876_v11, %v1028_v59  ;;  %v1033_v61 = vadd.f32 %v1605_v33, %v617_v37  ;;  %v609_v45 = vadd.f32 %v608_v39, %v1861_v1  ;;  %v1606_v47 = vpop.f32.mrf.mxu0 }
 0x10e   : > { %v1572_v7 = vpop.f32.mrf.mxu1 }
 0x10f   : > { %1230 = vst.msk [vmem:[%s1883_s29 + $0x2c] sm:$0xf] %vm1218_vm2, %v1449_v41  ;;  %v1447_v8 = vpack.c.bf16 %v1067_v43, %v1067_v43  ;;  %v1072_v9 = vadd.f32 %v1876_v11, %v1033_v61  ;;  %v1031_v63 = vadd.f32 %v940_v38, %v609_v45  ;;  %v620_v10 = vadd.f32 %v1572_v7, %v1865_v3  ;;  %v943_v12 = vpop.f32.mrf.mxu0 }
 0x110   : > { %v611_v49 = vpop.f32.mrf.mxu1 }
 0x111   : > { %1228 = vst.msk [vmem:[%s1883_s29 + $0x24] sm:$0xf] %vm1218_vm2, %v1447_v8  ;;  %v1452_v13 = vpack.c.bf16 %v1072_v9, %v1072_v9  ;;  %v1070_v14 = vadd.f32 %v1876_v11, %v1031_v63  ;;  %v1034_v1 = vadd.f32 %v1606_v47, %v620_v10  ;;  %v612_v15 = vadd.f32 %v611_v49, %v1869_v5  ;;  %v1609_v16 = vpop.f32.mrf.mxu0 }
 0x112   : > { %v1575_v51 = vpop.f32.mrf.mxu1 }
 0x113   : > { %1233 = vst.msk [vmem:[%s1883_s29 + $0x38] sm:$0xf] %vm1218_vm2, %v1452_v13  ;;  %v1450_v17 = vpack.c.bf16 %v1070_v14, %v1070_v14  ;;  %v1073_v18 = vadd.f32 %v1876_v11, %v1034_v1  ;;  %v1032_v3 = vadd.f32 %v943_v12, %v612_v15  ;;  %v633_v19 = vadd.f32 %v1575_v51, %v1823_v40  ;;  %v956_v20 = vpop.f32.mrf.mxu0 }
 0x114   : > { %v624_v21 = vpop.f32.mrf.mxu1 }
 0x115   : > { %1231 = vst.msk [vmem:[%s1883_s29 + $0x30] sm:$0xf] %vm1218_vm2, %v1450_v17  ;;  %v1453_v53 = vpack.c.bf16 %v1073_v18, %v1073_v18  ;;  %v1071_v22 = vadd.f32 %v1876_v11, %v1032_v3  ;;  %v1037_v5 = vadd.f32 %v1609_v16, %v633_v19  ;;  %v625_v23 = vadd.f32 %v624_v21, %v1825_v42  ;;  %v1610_v24 = vpop.f32.mrf.mxu0 }
 0x116   : > { %v1576_v25 = vpop.f32.mrf.mxu1 }
 0x117   : > { %1234 = vst.msk [vmem:[%s1883_s29 + $0x3c] sm:$0xf] %vm1218_vm2, %v1453_v53  ;;  %v1451_v26 = vpack.c.bf16 %v1071_v22, %v1071_v22  ;;  %v1076_v55 = vadd.f32 %v1876_v11, %v1037_v5  ;;  %v1035_v40 = vadd.f32 %v956_v20, %v625_v23  ;;  %v636_v27 = vadd.f32 %v1576_v25, %v1827_v44  ;;  %v959_v28 = vpop.f32.mrf.mxu0 }
 0x118   : > { %v627_v29 = vpop.f32.mrf.mxu1 }
 0x119   : > { %1232 = vst.msk [vmem:[%s1883_s29 + $0x34] sm:$0xf] %vm1218_vm2, %v1451_v26  ;;  %v1456_v30 = vpack.c.bf16 %v1076_v55, %v1076_v55  ;;  %v1074_v31 = vadd.f32 %v1876_v11, %v1035_v40  ;;  %v1038_v42 = vadd.f32 %v1610_v24, %v636_v27  ;;  %v628_v57 = vadd.f32 %v627_v29, %v1829_v46  ;;  %v1613_v32 = vpop.f32.mrf.mxu0 }
 0x11a   : > { %v1579_v33 = vpop.f32.mrf.mxu1 }
 0x11b   : > { %1237 = vst.msk [vmem:[%s1883_s29 + $0x48] sm:$0xf] %vm1218_vm2, %v1456_v30  ;;  %v1454_v34 = vpack.c.bf16 %v1074_v31, %v1074_v31  ;;  %v1077_v35 = vadd.f32 %v1876_v11, %v1038_v42  ;;  %v1036_v44 = vadd.f32 %v959_v28, %v628_v57  ;;  %v649_v36 = vadd.f32 %v1579_v33, %v1831_v48  ;;  %v972_v59 = vpop.f32.mrf.mxu0 }
 0x11c   : > { %v640_v37 = vpop.f32.mrf.mxu1 }
 0x11d   : > { %1235 = vst.msk [vmem:[%s1883_s29 + $0x40] sm:$0xf] %vm1218_vm2, %v1454_v34  ;;  %v1457_v38 = vpack.c.bf16 %v1077_v35, %v1077_v35  ;;  %v1075_v39 = vadd.f32 %v1876_v11, %v1036_v44  ;;  %v1041_v46 = vadd.f32 %v1613_v32, %v649_v36  ;;  %v641_v41 = vadd.f32 %v640_v37, %v1833_v50  ;;  %v1614_v43 = vpop.f32.mrf.mxu0 }
 0x11e   : > { %v1580_v61 = vpop.f32.mrf.mxu1 }
 0x11f   : > { %1238 = vst.msk [vmem:[%s1883_s29 + $0x4c] sm:$0xf] %vm1218_vm2, %v1457_v38  ;;  %v1455_v45 = vpack.c.bf16 %v1075_v39, %v1075_v39  ;;  %v1080_v47 = vadd.f32 %v1876_v11, %v1041_v46  ;;  %v1039_v48 = vadd.f32 %v972_v59, %v641_v41  ;;  %v652_v7 = vadd.f32 %v1580_v61, %v1835_v52  ;;  %v975_v8 = vpop.f32.mrf.mxu0 }
 0x120   : > { %v643_v9 = vpop.f32.mrf.mxu1 }
 0x121   : > { %1236 = vst.msk [vmem:[%s1883_s29 + $0x44] sm:$0xf] %vm1218_vm2, %v1455_v45  ;;  %v1460_v63 = vpack.c.bf16 %v1080_v47, %v1080_v47  ;;  %v1078_v10 = vadd.f32 %v1876_v11, %v1039_v48  ;;  %v1042_v50 = vadd.f32 %v1614_v43, %v652_v7  ;;  %v644_v12 = vadd.f32 %v643_v9, %v1839_v54  ;;  %v1617_v49 = vpop.f32.mrf.mxu0 }
 0x122   : > { %v1583_v13 = vpop.f32.mrf.mxu1 }
 0x123   : > { %1241 = vst.msk [vmem:[%s1883_s29 + $0x58] sm:$0xf] %vm1218_vm2, %v1460_v63  ;;  %v1458_v14 = vpack.c.bf16 %v1078_v10, %v1078_v10  ;;  %v1081_v1 = vadd.f32 %v1876_v11, %v1042_v50  ;;  %v1040_v52 = vadd.f32 %v975_v8, %v644_v12  ;;  %v665_v15 = vadd.f32 %v1583_v13, %v1843_v56  ;;  %v988_v16 = vpop.f32.mrf.mxu0 }
 0x124   : > { %v656_v51 = vpop.f32.mrf.mxu1 }
 0x125   : > { %1239 = vst.msk [vmem:[%s1883_s29 + $0x50] sm:$0xf] %vm1218_vm2, %v1458_v14  ;;  %v1461_v17 = vpack.c.bf16 %v1081_v1, %v1081_v1  ;;  %v1079_v18 = vadd.f32 %v1876_v11, %v1040_v52  ;;  %v1045_v54 = vadd.f32 %v1617_v49, %v665_v15  ;;  %v657_v3 = vadd.f32 %v656_v51, %v1847_v58  ;;  %v1618_v19 = vpop.f32.mrf.mxu0 }
 0x126   : > { %v1584_v20 = vpop.f32.mrf.mxu1 }
 0x127   : > { %1242 = vst.msk [vmem:[%s1883_s29 + $0x5c] sm:$0xf] %vm1218_vm2, %v1461_v17  ;;  %v1459_v21 = vpack.c.bf16 %v1079_v18, %v1079_v18  ;;  %v1084_v53 = vadd.f32 %v1876_v11, %v1045_v54  ;;  %v1043_v56 = vadd.f32 %v988_v16, %v657_v3  ;;  %v668_v22 = vadd.f32 %v1584_v20, %v1851_v60  ;;  %v991_v5 = vpop.f32.mrf.mxu0 }
 0x128   : > { %v659_v23 = vpop.f32.mrf.mxu1 }
 0x129   : > { %1240 = vst.msk [vmem:[%s1883_s29 + $0x54] sm:$0xf] %vm1218_vm2, %v1459_v21  ;;  %v1464_v24 = vpack.c.bf16 %v1084_v53, %v1084_v53  ;;  %v1082_v25 = vadd.f32 %v1876_v11, %v1043_v56  ;;  %v1046_v58 = vadd.f32 %v1618_v19, %v668_v22  ;;  %v660_v26 = vadd.f32 %v659_v23, %v1855_v62  ;;  %v1621_v55 = vpop.f32.mrf.mxu0 }
 0x12a   : > { %v1587_v40 = vpop.f32.mrf.mxu1 }
 0x12b   : > { %1245 = vst.msk [vmem:[%s1883_s29 + $0x68] sm:$0xf] %vm1218_vm2, %v1464_v24  ;;  %v1462_v27 = vpack.c.bf16 %v1082_v25, %v1082_v25  ;;  %v1085_v28 = vadd.f32 %v1876_v11, %v1046_v58  ;;  %v1044_v60 = vadd.f32 %v991_v5, %v660_v26  ;;  %v681_v29 = vadd.f32 %v1587_v40, %v1859_v0  ;;  %v1004_v30 = vpop.f32.mrf.mxu0 }
 0x12c   : > { %v672_v31 = vpop.f32.mrf.mxu1 }
 0x12d   : > { %1243 = vst.msk [vmem:[%s1883_s29 + $0x60] sm:$0xf] %vm1218_vm2, %v1462_v27  ;;  %v1465_v42 = vpack.c.bf16 %v1085_v28, %v1085_v28  ;;  %v1083_v57 = vadd.f32 %v1876_v11, %v1044_v60  ;;  %v1049_v62 = vadd.f32 %v1621_v55, %v681_v29  ;;  %v673_v32 = vadd.f32 %v672_v31, %v1863_v2  ;;  %v1622_v34 = vpop.f32.mrf.mxu0 }
 0x12e   : > { %v1588_v33 = vpop.f32.mrf.mxu1 }
 0x12f   : > { %1246 = vst.msk [vmem:[%s1883_s29 + $0x6c] sm:$0xf] %vm1218_vm2, %v1465_v42  ;;  %v1463_v35 = vpack.c.bf16 %v1083_v57, %v1083_v57  ;;  %v1088_v0 = vadd.f32 %v1876_v11, %v1049_v62  ;;  %v1047_v44 = vadd.f32 %v1004_v30, %v673_v32  ;;  %v684_v36 = vadd.f32 %v1588_v33, %v1867_v4  ;;  %v1007_v46 = vpop.f32.mrf.mxu0 }
 0x130   : > { %v675_v59 = vpop.f32.mrf.mxu1 }
 0x131   : > { %1244 = vst.msk [vmem:[%s1883_s29 + $0x64] sm:$0xf] %vm1218_vm2, %v1463_v35  ;;  %v1468_v37 = vpack.c.bf16 %v1088_v0, %v1088_v0  ;;  %v1086_v38 = vadd.f32 %v1876_v11, %v1047_v44  ;;  %v1050_v2 = vadd.f32 %v1622_v34, %v684_v36  ;;  %v676_v39 = vadd.f32 %v675_v59, %v1871_v6 }
 0x133   : > { %1249 = vst.msk [vmem:[%s1883_s29 + $0x78] sm:$0xf] %vm1218_vm2, %v1468_v37  ;;  %v1466_v41 = vpack.c.bf16 %v1086_v38, %v1086_v38  ;;  %v1089_v43 = vadd.f32 %v1876_v11, %v1050_v2  ;;  %v1048_v61 = vadd.f32 %v1007_v46, %v676_v39 }
 0x135   : > { %1247 = vst.msk [vmem:[%s1883_s29 + $0x70] sm:$0xf] %vm1218_vm2, %v1466_v41  ;;  %v1469_v4 = vpack.c.bf16 %v1089_v43, %v1089_v43  ;;  %v1087_v45 = vadd.f32 %v1876_v11, %v1048_v61 }
 0x137   : > { %1250 = vst.msk [vmem:[%s1883_s29 + $0x7c] sm:$0xf] %vm1218_vm2, %v1469_v4  ;;  %v1467_v47 = vpack.c.bf16 %v1087_v45, %v1087_v45 }
 0x139   : > { %1248 = vst.msk [vmem:[%s1883_s29 + $0x74] sm:$0xf] %vm1218_vm2, %v1467_v47 }
 0x13a PF: > { %s13_s12 = sadd.s32 1, %s1680_s12  }
 0x13b   : > { %p10_p4 = scmp.ge.s32.totalorder %s13_s12, 4  }
 0x13d   :  { %12 = sbr.rel (!%p10_p4) target bundleno = 1 (0x1), region = 64 }

// kernel: autoencoder_kl_forward.75
= control target key start
LH: loop header
LB: loop body
LE: loop exit
PB: predicated region body
PF: predicated region fallthrough
CT: control target
= control target key end

     0   :  { %s1930_s12 = smov 0   ;;  %s2523_s0 = inlined_call_operand.vmem [shape: bf16[2,288,192], index: 0, kind: input, shape index: {}]   ;;  %s2524_s1 = inlined_call_operand.vmem [shape: bf16[3,192,3], index: 1, kind: input, shape index: {}]   ;;  %s2525_s2 = inlined_call_operand.vmem [shape: f32[1,3], index: 2, kind: input, shape index: {}]   ;;  %s2526_s3 = inlined_call_operand.vmem [shape: f32[2,256,3], index: 3, kind: output, shape index: {}]  }
   0x1 LB: > { %s1567_s13 = sadd.s32 4294967295, %s1907_s12   ;;  %p1571_p0 = scmp.ge.s32.totalorder %s1907_s12, 1  ;;  %s1907_s12 = sphi %s1930_s12, %s13_s12  }
   0x2   : > { %p137_p1 = scmp.lt.s32.totalorder %s1907_s12, 3 }
   0x4   : > { %p138_p2 = pnand %p1571_p0, %p137_p1 }
   0x5   : > { %p161_p3 = scmp.lt.s32.totalorder (!%p138_p2), %s1567_s13, 1 }
   0x6   : > { %141 = sbr.rel (%p138_p2) target bundleno = 448 (0x1c0), region = 32 }
   0xb   : > { %v1811_v0 = vld [vmem:[%s2524_s1 + $0x98] sm:$0xff]   ;;  %v1909_v1 = vmov 0   ;;  %v1812_v2 = vld [vmem:[%s2524_s1 + $0x90] sm:$0xff]   ;;  %s2528_s13 = smov (!%p161_p3, %s1567_s13), 1  ;;  %v1813_v3 = vld [vmem:[%s2524_s1 + $0x88] sm:$0xff]   ;;  %vm471_vm0 = vcmask 523264  }
   0xc   : > { %520 = vmatprep.subr.bf16.mxu0 %v1909_v1  ;;  %1777 = vmatprep.subr.bf16.mxu1 %v1909_v1  ;;  %s1801_s20 = smul.u32 288, %s2528_s13  ;;  %v1814_v4 = vld [vmem:[%s2524_s1 + $0x80] sm:$0xff]   ;;  %v1815_v6 = vld [vmem:[%s2524_s1 + $0x78] sm:$0xff]   ;;  %v1816_v8 = vld [vmem:[%s2524_s1 + $0x70] sm:$0xff]   ;;  %vm1479_vm1 = vcmask 23552  }
   0xd   : > { %521 = vmatpush1.bf16.msra.mxu0 %v1811_v0  ;;  %1789 = vmatpush1.bf16.msra.mxu1 %v1811_v0  ;;  %v1817_v9 = vld [vmem:[%s2524_s1 + $0x68] sm:$0xff]   ;;  %v1818_v10 = vld [vmem:[%s2524_s1 + $0x60] sm:$0xff]   ;;  %v1819_v11 = vld [vmem:[%s2524_s1 + $0xb8] sm:$0xff]  }
   0xe   : > { %522 = vmatprep.subr.bf16.mxu0 %v1909_v1  ;;  %1778 = vmatprep.subr.bf16.mxu1 %v1909_v1  ;;  %s1962_s25 = scalar_lea.vmem %s2523_s0, %s1801_s20  ;;  %v1820_v12 = vld [vmem:[%s2524_s1 + $0xb0] sm:$0xff]   ;;  %v1821_v13 = vld [vmem:[%s2524_s1 + $0xa8] sm:$0xff]   ;;  %v1822_v14 = vld [vmem:[%s2524_s1 + $0xa0] sm:$0xff]  }
   0xf   : > { %v1967_v5 = vld [vmem:[%s1962_s25 + $0x14] ss:$8 sps:$4 sm:$0xff]   ;;  %v2017_v15 = vld [vmem:[%s1962_s25 + $0x10] ss:$8 sps:$4 sm:$0xff]   ;;  %v2031_v19 = vld [vmem:[%s1962_s25 + $0x24] ss:$8 sps:$4 sm:$0xff]  }
  0x10   : > { %v1973_v7 = vld [vmem:[%s1962_s25 + $0x94] ss:$8 sps:$4 sm:$0xff]   ;;  %1643 = vmatprep.mubr.msk.bf16.mxu0 %vm471_vm0, %v1967_v5  ;;  %v2020_v16 = vld [vmem:[%s1962_s25 + $0x90] ss:$8 sps:$4 sm:$0xff]   ;;  %v2034_v20 = vld [vmem:[%s1962_s25 + $0xa4] ss:$8 sps:$4 sm:$0xff]  }
  0x11   : > { %523 = vmatpush1.bf16.msra.mxu0 %v1812_v2  ;;  %1790 = vmatpush1.bf16.msra.mxu1 %v1812_v2  ;;  %v1829_v17 = vld [vmem:[%s2524_s1 + $0x38] sm:$0xff]   ;;  %v1835_v21 = vld [vmem:[%s2524_s1 + $0x30] sm:$0xff]   ;;  %v2048_v23 = vld [vmem:[%s1962_s25 + $0x20] ss:$8 sps:$4 sm:$0xff]  }
  0x12   : > { %524 = vmatprep.subr.bf16.mxu0 %v1909_v1  ;;  %1779 = vmatprep.subr.bf16.mxu1 %v1909_v1  ;;  %v1830_v18 = vld [vmem:[%s2524_s1 + $0xf8] sm:$0xff]   ;;  %v1838_v22 = vld [vmem:[%s2524_s1 + $0xf0] sm:$0xff]   ;;  %v2053_v24 = vld [vmem:[%s1962_s25 + $0xa0] ss:$8 sps:$4 sm:$0xff]  }
  0x13   : > { %1651 = vmatprep.mubr.msk.bf16.mxu1 %vm471_vm0, %v1973_v7  ;;  %v1839_v25 = vld [vmem:[%s2524_s1 + $0x28] sm:$0xff]   ;;  %v2063_v27 = vld [vmem:[%s1962_s25 + $0x34] ss:$8 sps:$4 sm:$0xff]   ;;  %v1847_v29 = vld [vmem:[%s2524_s1 + $0x20] sm:$0xff]  }
  0x14   : > { %v1840_v26 = vld [vmem:[%s2524_s1 + $0xe8] sm:$0xff]   ;;  %v2068_v28 = vld [vmem:[%s1962_s25 + $0xb4] ss:$8 sps:$4 sm:$0xff]   ;;  %v1848_v30 = vld [vmem:[%s2524_s1 + $0xe0] sm:$0xff]  }
  0x15   : > { %525 = vmatpush1.bf16.msra.mxu0 %v1813_v3  ;;  %1791 = vmatpush1.bf16.msra.mxu1 %v1813_v3  ;;  %v2085_v31 = vld [vmem:[%s1962_s25 + $0x30] ss:$8 sps:$4 sm:$0xff]   ;;  %v2091_v33 = vld [vmem:[%s1962_s25 + $0x44] ss:$8 sps:$4 sm:$0xff]   ;;  %v2119_v39 = vld [vmem:[%s1962_s25 + $0x40] ss:$8 sps:$4 sm:$0xff]  }
  0x16   : > { %526 = vmatprep.subr.bf16.mxu0 %v1909_v1  ;;  %1780 = vmatprep.subr.bf16.mxu1 %v1909_v1  ;;  %v2088_v32 = vld [vmem:[%s1962_s25 + $0xb0] ss:$8 sps:$4 sm:$0xff]   ;;  %v2094_v34 = vld [vmem:[%s1962_s25 + $0xc4] ss:$8 sps:$4 sm:$0xff]   ;;  %v2122_v40 = vld [vmem:[%s1962_s25 + $0xc0] ss:$8 sps:$4 sm:$0xff]  }
  0x17   : > { %v1853_v35 = vld [vmem:[%s2524_s1 + $0x18] sm:$0xff]   ;;  %v1857_v37 = vld [vmem:[%s2524_s1 + $0x10] sm:$0xff]   ;;  %v1865_v43 = vld [vmem:[%s2524_s1 + $0x8] sm:$0xff]  }
  0x18   : > { %v1856_v36 = vld [vmem:[%s2524_s1 + $0xd8] sm:$0xff]   ;;  %v1858_v38 = vld [vmem:[%s2524_s1 + $0xd0] sm:$0xff]   ;;  %v1866_v44 = vld [vmem:[%s2524_s1 + $0xc8] sm:$0xff]  }
  0x19   : > { %527 = vmatpush1.bf16.msra.mxu0 %v1814_v4  ;;  %1792 = vmatpush1.bf16.msra.mxu1 %v1814_v4  ;;  %v2125_v41 = vld [vmem:[%s1962_s25 + $0x54] ss:$8 sps:$4 sm:$0xff]   ;;  %v1871_v45 = vld [vmem:[%s2524_s1] sm:$0xff]   ;;  %v2153_v47 = vld [vmem:[%s1962_s25 + $0x50] ss:$8 sps:$4 sm:$0xff]  }
  0x1a   : > { %528 = vmatprep.subr.bf16.mxu0 %v1909_v1  ;;  %1781 = vmatprep.subr.bf16.mxu1 %v1909_v1  ;;  %v2128_v42 = vld [vmem:[%s1962_s25 + $0xd4] ss:$8 sps:$4 sm:$0xff]   ;;  %v1874_v46 = vld [vmem:[%s2524_s1 + $0xc0] sm:$0xff]   ;;  %v2156_v48 = vld [vmem:[%s1962_s25 + $0xd0] ss:$8 sps:$4 sm:$0xff]  }
  0x1b   : > { %v2159_v49 = vld [vmem:[%s1962_s25 + $0x64] ss:$8 sps:$4 sm:$0xff]   ;;  %v1875_v51 = vld [vmem:[%s2524_s1 + $0x58] sm:$0xff]   ;;  %v1883_v53 = vld [vmem:[%s2524_s1 + $0x50] sm:$0xff]  }
  0x1c   : > { %v2162_v50 = vld [vmem:[%s1962_s25 + $0xe4] ss:$8 sps:$4 sm:$0xff]   ;;  %v1876_v52 = vld [vmem:[%s2524_s1 + $0x118] sm:$0xff]   ;;  %v1884_v54 = vld [vmem:[%s2524_s1 + $0x110] sm:$0xff]  }
  0x1d   : > { %529 = vmatpush1.bf16.msra.mxu0 %v1815_v6  ;;  %1793 = vmatpush1.bf16.msra.mxu1 %v1815_v6  ;;  %v1872_v55 = vld [vmem:[%s1962_s25 + $0x60] ss:$8 sps:$4 sm:$0xff]   ;;  %v1877_v57 = vld [vmem:[%s1962_s25 + $0x74] ss:$8 sps:$4 sm:$0xff]   ;;  %v1881_v63 = vld [vmem:[%s1962_s25 + $0x70] ss:$8 sps:$4 sm:$0xff]  }
  0x1e   : > { %530 = vmatprep.subr.bf16.mxu0 %v1909_v1  ;;  %1782 = vmatprep.subr.bf16.mxu1 %v1909_v1  ;;  %v2188_v56 = vld [vmem:[%s1962_s25 + $0xe0] ss:$8 sps:$4 sm:$0xff]   ;;  %v2192_v58 = vld [vmem:[%s1962_s25 + $0xf4] ss:$8 sps:$4 sm:$0xff]   ;;  %v2216_v0 = vld [vmem:[%s1962_s25 + $0xf0] ss:$8 sps:$4 sm:$0xff]  }
  0x1f   : > { %v1889_v59 = vld [vmem:[%s2524_s1 + $0x48] sm:$0xff]   ;;  %v1893_v61 = vld [vmem:[%s2524_s1 + $0x40] sm:$0xff]  }
  0x20   : > { %v1892_v60 = vld [vmem:[%s2524_s1 + $0x108] sm:$0xff]   ;;  %v1894_v62 = vld [vmem:[%s2524_s1 + $0x100] sm:$0xff]  }
  0x21   : > { %531 = vmatpush1.bf16.msra.mxu0 %v1816_v8  ;;  %1794 = vmatpush1.bf16.msra.mxu1 %v1816_v8  ;;  %v1885_v2 = vld [vmem:[%s1962_s25 + $0x84] ss:$8 sps:$4 sm:$0xff]   ;;  %v1890_v4 = vld [vmem:[%s1962_s25 + $0x80] ss:$8 sps:$4 sm:$0xff]  }
  0x22   : > { %532 = vmatprep.subr.bf16.mxu0 %v1909_v1  ;;  %1783 = vmatprep.subr.bf16.mxu1 %v1909_v1  ;;  %v2220_v3 = vld [vmem:[%s1962_s25 + $0x104] ss:$8 sps:$4 sm:$0xff]   ;;  %v2228_v6 = vld [vmem:[%s1962_s25 + $0x100] ss:$8 sps:$4 sm:$0xff]  }
  0x23   : > { %v1895_v8 = vld [vmem:[%s1962_s25] ss:$8 sps:$4 sm:$0xff]  }
  0x25   : > { %533 = vmatpush1.bf16.msra.mxu0 %v1817_v9  ;;  %1795 = vmatpush1.bf16.msra.mxu1 %v1817_v9 }
  0x26   : > { %534 = vmatprep.subr.bf16.mxu0 %v1909_v1  ;;  %1784 = vmatprep.subr.bf16.mxu1 %v1909_v1 }
  0x29   : > { %535 = vmatpush1.bf16.msra.mxu0 %v1818_v10  ;;  %1796 = vmatpush1.bf16.msra.mxu1 %v1818_v10 }
  0x2a   : > { %544 = vmatprep.subr.bf16.mxu0 %v1909_v1  ;;  %1785 = vmatprep.subr.bf16.mxu1 %v1909_v1 }
  0x2d   : > { %545 = vmatpush2.bf16.msra.mxu0 %v1819_v11  ;;  %1797 = vmatpush2.bf16.msra.mxu1 %v1819_v11 }
  0x2e   : > { %546 = vmatprep.subr.bf16.mxu0 %v1909_v1  ;;  %1786 = vmatprep.subr.bf16.mxu1 %v1909_v1 }
  0x31   : > { %547 = vmatpush2.bf16.msra.mxu0 %v1820_v12  ;;  %1798 = vmatpush2.bf16.msra.mxu1 %v1820_v12 }
  0x32   : > { %548 = vmatprep.subr.bf16.mxu0 %v1909_v1  ;;  %1787 = vmatprep.subr.bf16.mxu1 %v1909_v1 }
  0x35   : > { %549 = vmatpush2.bf16.msra.mxu0 %v1821_v13  ;;  %1799 = vmatpush2.bf16.msra.mxu1 %v1821_v13 }
  0x36   : > { %550 = vmatprep.subr.bf16.mxu0 %v1909_v1  ;;  %1788 = vmatprep.subr.bf16.mxu1 %v1909_v1 }
  0x39   : > { %551 = vmatpush2.bf16.msra.mxu0 %v1822_v14  ;;  %1800 = vmatpush2.bf16.msra.mxu1 %v1822_v14 }
  0x3a   : > { %765 = vmatprep.subr.bf16.mxu1 %v1909_v1  ;;  %1247 = vmatprep.subr.bf16.mxu0 %v1909_v1 }
  0x3c   : > { %553 = vmatmul.mubr.bf16.vlgmr.msra.gmra.mxu0 %v2017_v15  ;;  %617 = vmatmul.mubr.bf16.vlgmr.msra.gmra.mxu1 %v2020_v16 }
  0x3d   : > { %766 = vmatpush1.bf16.msra.mxu1 %v1829_v17  ;;  %1248 = vmatpush1.bf16.msra.mxu0 %v1830_v18 }
  0x3e   : > { %767 = vmatprep.subr.bf16.mxu1 %v1909_v1  ;;  %1644 = vmatprep.mubr.msk.bf16.mxu0 %vm471_vm0, %v2031_v19 }
  0x3f   : > { %1652 = vmatprep.mubr.msk.bf16.mxu1 %vm471_vm0, %v2034_v20  ;;  %1249 = vmatprep.subr.bf16.mxu0 %v1909_v1 }
  0x41   : > { %768 = vmatpush1.bf16.msra.mxu1 %v1835_v21  ;;  %1250 = vmatpush1.bf16.msra.mxu0 %v1838_v22 }
  0x42   : > { %769 = vmatprep.subr.bf16.mxu1 %v1909_v1  ;;  %1251 = vmatprep.subr.bf16.mxu0 %v1909_v1 }
  0x44   : > { %561 = vmatmul.mubr.bf16.gmra.mxu0 %v2048_v23  ;;  %625 = vmatmul.mubr.bf16.gmra.mxu1 %v2053_v24 }
  0x45   : > { %770 = vmatpush1.bf16.msra.mxu1 %v1839_v25  ;;  %1252 = vmatpush1.bf16.msra.mxu0 %v1840_v26 }
  0x46   : > { %1645 = vmatprep.mubr.msk.bf16.mxu0 %vm471_vm0, %v2063_v27  ;;  %1653 = vmatprep.mubr.msk.bf16.mxu1 %vm471_vm0, %v2068_v28 }
  0x47   : > { %771 = vmatprep.subr.bf16.mxu1 %v1909_v1  ;;  %1253 = vmatprep.subr.bf16.mxu0 %v1909_v1 }
  0x49   : > { %772 = vmatpush1.bf16.msra.mxu1 %v1847_v29  ;;  %1254 = vmatpush1.bf16.msra.mxu0 %v1848_v30 }
  0x4a   : > { %773 = vmatprep.subr.bf16.mxu1 %v1909_v1  ;;  %1255 = vmatprep.subr.bf16.mxu0 %v1909_v1 }
  0x4c   : > { %569 = vmatmul.mubr.bf16.gmra.mxu0 %v2085_v31  ;;  %633 = vmatmul.mubr.bf16.gmra.mxu1 %v2088_v32 }
  0x4d   : > { %1646 = vmatprep.mubr.msk.bf16.mxu0 %vm471_vm0, %v2091_v33  ;;  %1654 = vmatprep.mubr.msk.bf16.mxu1 %vm471_vm0, %v2094_v34 }
  0x4e   : > { %774 = vmatpush1.bf16.msra.mxu1 %v1853_v35  ;;  %1256 = vmatpush1.bf16.msra.mxu0 %v1856_v36 }
  0x4f   : > { %775 = vmatprep.subr.bf16.mxu1 %v1909_v1  ;;  %1257 = vmatprep.subr.bf16.mxu0 %v1909_v1 }
  0x52   : > { %776 = vmatpush1.bf16.msra.mxu1 %v1857_v37  ;;  %1258 = vmatpush1.bf16.msra.mxu0 %v1858_v38 }
  0x53   : > { %777 = vmatprep.subr.bf16.mxu1 %v1909_v1  ;;  %1259 = vmatprep.subr.bf16.mxu0 %v1909_v1 }
  0x54   : > { %577 = vmatmul.mubr.bf16.gmra.mxu0 %v2119_v39  ;;  %641 = vmatmul.mubr.bf16.gmra.mxu1 %v2122_v40 }
  0x55   : > { %1647 = vmatprep.mubr.msk.bf16.mxu0 %vm471_vm0, %v2125_v41  ;;  %1655 = vmatprep.mubr.msk.bf16.mxu1 %vm471_vm0, %v2128_v42 }
  0x56   : > { %778 = vmatpush1.bf16.msra.mxu1 %v1865_v43  ;;  %1260 = vmatpush1.bf16.msra.mxu0 %v1866_v44 }
  0x57   : > { %779 = vmatprep.subr.bf16.mxu1 %v1909_v1  ;;  %1261 = vmatprep.subr.bf16.mxu0 %v1909_v1 }
  0x5a   : > { %780 = vmatpush1.bf16.msra.mxu1 %v1871_v45  ;;  %1262 = vmatpush1.bf16.msra.mxu0 %v1874_v46 }
  0x5b   : > { %789 = vmatprep.subr.bf16.mxu1 %v1909_v1  ;;  %1271 = vmatprep.subr.bf16.mxu0 %v1909_v1 }
  0x5c   : > { %585 = vmatmul.mubr.bf16.gmra.mxu0 %v2153_v47  ;;  %649 = vmatmul.mubr.bf16.gmra.mxu1 %v2156_v48 }
  0x5d   : > { %1648 = vmatprep.mubr.msk.bf16.mxu0 %vm471_vm0, %v2159_v49  ;;  %1656 = vmatprep.mubr.msk.bf16.mxu1 %vm471_vm0, %v2162_v50 }
  0x5e   : > { %790 = vmatpush2.bf16.msra.mxu1 %v1875_v51  ;;  %1272 = vmatpush2.bf16.msra.mxu0 %v1876_v52 }
  0x5f   : > { %791 = vmatprep.subr.bf16.mxu1 %v1909_v1  ;;  %1273 = vmatprep.subr.bf16.mxu0 %v1909_v1 }
  0x62   : > { %792 = vmatpush2.bf16.msra.mxu1 %v1883_v53  ;;  %1274 = vmatpush2.bf16.msra.mxu0 %v1884_v54 }
  0x63   : > { %793 = vmatprep.subr.bf16.mxu1 %v1909_v1  ;;  %1275 = vmatprep.subr.bf16.mxu0 %v1909_v1 }
  0x64   : > { %593 = vmatmul.mubr.bf16.gmra.mxu0 %v1872_v55  ;;  %657 = vmatmul.mubr.bf16.gmra.mxu1 %v2188_v56 }
  0x65   : > { %1649 = vmatprep.mubr.msk.bf16.mxu0 %vm471_vm0, %v1877_v57  ;;  %1657 = vmatprep.mubr.msk.bf16.mxu1 %vm471_vm0, %v2192_v58 }
  0x66   : > { %794 = vmatpush2.bf16.msra.mxu1 %v1889_v59  ;;  %1276 = vmatpush2.bf16.msra.mxu0 %v1892_v60 }
  0x67   : > { %795 = vmatprep.subr.bf16.mxu1 %v1909_v1  ;;  %1277 = vmatprep.subr.bf16.mxu0 %v1909_v1  ;;  %v1897_v1 = vld [vmem:[%s1962_s25 + $0x4] ss:$8 sps:$4 sm:$0xff]  }
  0x6a   : > { %796 = vmatpush2.bf16.msra.mxu1 %v1893_v61  ;;  %1278 = vmatpush2.bf16.msra.mxu0 %v1894_v62 }
  0x6c   : > { %601 = vmatmul.mubr.bf16.gmra.mxu0 %v1881_v63  ;;  %665 = vmatmul.mubr.bf16.gmra.mxu1 %v2216_v0 }
  0x6d   : > { %1650 = vmatprep.mubr.msk.bf16.mxu0 %vm471_vm0, %v1885_v2  ;;  %1658 = vmatprep.mubr.msk.bf16.mxu1 %vm471_vm0, %v2220_v3 }
  0x74   : > { %609 = vmatmul.mubr.bf16.gmra.mxu0 %v1890_v4  ;;  %673 = vmatmul.mubr.bf16.gmra.mxu1 %v2228_v6 }
  0x75   : > { %1673 = vmatprep.mubr.msk.bf16.mxu1 %vm471_vm0, %v1897_v1  ;;  %1757 = vmatprep.mubr.msk.bf16.mxu0 %vm471_vm0, %v2031_v19 }
  0x7c   : > { %798 = vmatmul.mubr.bf16.vlgmr.msra.gmra.mxu1 %v1895_v8  ;;  %1280 = vmatmul.mubr.bf16.vlgmr.msra.gmra.mxu0 %v2048_v23 }
  0x7d   : > { %1674 = vmatprep.mubr.msk.bf16.mxu1 %vm471_vm0, %v1967_v5  ;;  %1758 = vmatprep.mubr.msk.bf16.mxu0 %vm471_vm0, %v2063_v27  ;;  %v1898_v5 = vld [vmem:[%s1962_s25 + $0x114] ss:$8 sps:$4 sm:$0xff]  }
  0x84   : > { %806 = vmatmul.mubr.bf16.gmra.mxu1 %v2017_v15  ;;  %1288 = vmatmul.mubr.bf16.gmra.mxu0 %v2085_v31 }
  0x85   : > { %1675 = vmatprep.mubr.msk.bf16.mxu1 %vm471_vm0, %v2031_v19  ;;  %1759 = vmatprep.mubr.msk.bf16.mxu0 %vm471_vm0, %v2091_v33 }
  0x8c   : > { %814 = vmatmul.mubr.bf16.gmra.mxu1 %v2048_v23  ;;  %1296 = vmatmul.mubr.bf16.gmra.mxu0 %v2119_v39 }
  0x8d   : > { %1676 = vmatprep.mubr.msk.bf16.mxu1 %vm471_vm0, %v2063_v27  ;;  %1760 = vmatprep.mubr.msk.bf16.mxu0 %vm471_vm0, %v2125_v41 }
  0x94   : > { %822 = vmatmul.mubr.bf16.gmra.mxu1 %v2085_v31  ;;  %1304 = vmatmul.mubr.bf16.gmra.mxu0 %v2153_v47 }
  0x95   : > { %1677 = vmatprep.mubr.msk.bf16.mxu1 %vm471_vm0, %v2091_v33  ;;  %1761 = vmatprep.mubr.msk.bf16.mxu0 %vm471_vm0, %v2159_v49 }
  0x9c   : > { %830 = vmatmul.mubr.bf16.gmra.mxu1 %v2119_v39  ;;  %1312 = vmatmul.mubr.bf16.gmra.mxu0 %v1872_v55 }
  0x9d   : > { %1678 = vmatprep.mubr.msk.bf16.mxu1 %vm471_vm0, %v2125_v41  ;;  %1762 = vmatprep.mubr.msk.bf16.mxu0 %vm471_vm0, %v1877_v57 }
  0xa4   : > { %838 = vmatmul.mubr.bf16.gmra.mxu1 %v2153_v47  ;;  %1320 = vmatmul.mubr.bf16.gmra.mxu0 %v1881_v63 }
  0xa5   : > { %1679 = vmatprep.mubr.msk.bf16.mxu1 %vm471_vm0, %v2159_v49  ;;  %1763 = vmatprep.mubr.msk.bf16.mxu0 %vm471_vm0, %v1885_v2 }
  0xac   : > { %846 = vmatmul.mubr.bf16.gmra.mxu1 %v1872_v55  ;;  %1328 = vmatmul.mubr.bf16.gmra.mxu0 %v1890_v4 }
  0xad   : > { %1680 = vmatprep.mubr.msk.bf16.mxu1 %vm471_vm0, %v1877_v57  ;;  %1764 = vmatprep.mubr.msk.bf16.mxu0 %vm471_vm0, %v1973_v7 }
  0xb4   : > { %854 = vmatmul.mubr.bf16.gmra.mxu1 %v1881_v63  ;;  %1336 = vmatmul.mubr.bf16.gmra.mxu0 %v2020_v16 }
  0xb5   : > { %1681 = vmatprep.mubr.msk.bf16.mxu1 %vm471_vm0, %v1885_v2  ;;  %1765 = vmatprep.mubr.msk.bf16.mxu0 %vm471_vm0, %v2034_v20 }
  0xbc   : > { %862 = vmatmul.mubr.bf16.gmra.mxu1 %v1890_v4  ;;  %1344 = vmatmul.mubr.bf16.gmra.mxu0 %v2053_v24 }
  0xbd   : > { %1682 = vmatprep.mubr.msk.bf16.mxu1 %vm471_vm0, %v1973_v7  ;;  %1766 = vmatprep.mubr.msk.bf16.mxu0 %vm471_vm0, %v2068_v28  ;;  %v1900_v7 = vld [vmem:[%s1962_s25 + $0x110] ss:$8 sps:$4 sm:$0xff]   ;;  %s1776_s25 = sshll.u32 %s2528_s13, 8 }
  0xbe   : > { %s2391_s21 = scalar_lea.vmem %s2526_s3, %s1776_s25 }
  0xc4   : > { %870 = vmatmul.mubr.bf16.gmra.mxu1 %v2020_v16  ;;  %1352 = vmatmul.mubr.bf16.gmra.mxu0 %v2088_v32 }
  0xc5   : > { %1683 = vmatprep.mubr.msk.bf16.mxu1 %vm471_vm0, %v2034_v20  ;;  %1767 = vmatprep.mubr.msk.bf16.mxu0 %vm471_vm0, %v2094_v34 }
  0xcc   : > { %878 = vmatmul.mubr.bf16.gmra.mxu1 %v2053_v24  ;;  %1360 = vmatmul.mubr.bf16.gmra.mxu0 %v2122_v40 }
  0xcd   : > { %1684 = vmatprep.mubr.msk.bf16.mxu1 %vm471_vm0, %v2068_v28  ;;  %1768 = vmatprep.mubr.msk.bf16.mxu0 %vm471_vm0, %v2128_v42 }
  0xd4   : > { %886 = vmatmul.mubr.bf16.gmra.mxu1 %v2088_v32  ;;  %1368 = vmatmul.mubr.bf16.gmra.mxu0 %v2156_v48 }
  0xd5   : > { %1685 = vmatprep.mubr.msk.bf16.mxu1 %vm471_vm0, %v2094_v34  ;;  %1769 = vmatprep.mubr.msk.bf16.mxu0 %vm471_vm0, %v2162_v50 }
  0xdc   : > { %894 = vmatmul.mubr.bf16.gmra.mxu1 %v2122_v40  ;;  %1376 = vmatmul.mubr.bf16.gmra.mxu0 %v2188_v56 }
  0xdd   : > { %1686 = vmatprep.mubr.msk.bf16.mxu1 %vm471_vm0, %v2128_v42  ;;  %1770 = vmatprep.mubr.msk.bf16.mxu0 %vm471_vm0, %v2192_v58 }
  0xe4   : > { %902 = vmatmul.mubr.bf16.gmra.mxu1 %v2156_v48  ;;  %1384 = vmatmul.mubr.bf16.gmra.mxu0 %v2216_v0 }
  0xe5   : > { %1687 = vmatprep.mubr.msk.bf16.mxu1 %vm471_vm0, %v2162_v50  ;;  %1771 = vmatprep.mubr.msk.bf16.mxu0 %vm471_vm0, %v2220_v3 }
  0xec   : > { %910 = vmatmul.mubr.bf16.gmra.mxu1 %v2188_v56  ;;  %1392 = vmatmul.mubr.bf16.gmra.mxu0 %v2228_v6 }
  0xed   : > { %1688 = vmatprep.mubr.msk.bf16.mxu1 %vm471_vm0, %v2192_v58  ;;  %1772 = vmatprep.mubr.msk.bf16.mxu0 %vm471_vm0, %v1898_v5 }
  0xf4   : > { %918 = vmatmul.mubr.bf16.gmra.mxu1 %v2216_v0  ;;  %1400 = vmatmul.mubr.bf16.gmra.mxu0 %v1900_v7 }
  0xfc   : > { %v2317_v9 = vpop.f32.mrf.mxu0  ;;  %v2319_v10 = vpop.f32.mrf.mxu1 }
  0xfe   : > { %v556_v11 = vpop.f32.mrf.mxu0  ;;  %v620_v12 = vpop.f32.mrf.mxu1 }
 0x100   : > { %v2321_v13 = vpop.f32.mrf.mxu0  ;;  %v2323_v14 = vpop.f32.mrf.mxu1 }
 0x102   : > { %v559_v15 = vpop.f32.mrf.mxu0  ;;  %v623_v16 = vpop.f32.mrf.mxu1 }
 0x103   : > { %v2386_v16 = vld [vmem:[%s2525_s2] ss:$0 sm:$0xff] }
 0x104   : > { %v2325_v17 = vpop.f32.mrf.mxu0  ;;  %v2327_v18 = vpop.f32.mrf.mxu1 }
 0x106   : > { %v564_v19 = vpop.f32.mrf.mxu0  ;;  %v628_v20 = vpop.f32.mrf.mxu1 }
 0x108   : > { %v2329_v21 = vpop.f32.mrf.mxu0  ;;  %v2331_v22 = vpop.f32.mrf.mxu1 }
 0x10a   : > { %v567_v23 = vpop.f32.mrf.mxu0  ;;  %v631_v24 = vpop.f32.mrf.mxu1 }
 0x10c   : > { %v2333_v25 = vpop.f32.mrf.mxu0  ;;  %v2335_v26 = vpop.f32.mrf.mxu1 }
 0x10e   : > { %v572_v27 = vpop.f32.mrf.mxu0  ;;  %v636_v28 = vpop.f32.mrf.mxu1 }
 0x110   : > { %v2337_v29 = vpop.f32.mrf.mxu0  ;;  %v2339_v30 = vpop.f32.mrf.mxu1 }
 0x112   : > { %v575_v31 = vpop.f32.mrf.mxu0  ;;  %v639_v32 = vpop.f32.mrf.mxu1 }
 0x114   : > { %v2341_v33 = vpop.f32.mrf.mxu0  ;;  %v2343_v34 = vpop.f32.mrf.mxu1 }
 0x116   : > { %v580_v35 = vpop.f32.mrf.mxu0  ;;  %v644_v36 = vpop.f32.mrf.mxu1 }
 0x118   : > { %v2345_v37 = vpop.f32.mrf.mxu0  ;;  %v2347_v38 = vpop.f32.mrf.mxu1 }
 0x11a   : > { %v583_v39 = vpop.f32.mrf.mxu0  ;;  %v647_v40 = vpop.f32.mrf.mxu1 }
 0x11c   : > { %v2349_v41 = vpop.f32.mrf.mxu0  ;;  %v2351_v42 = vpop.f32.mrf.mxu1 }
 0x11e   : > { %v588_v43 = vpop.f32.mrf.mxu0  ;;  %v652_v44 = vpop.f32.mrf.mxu1 }
 0x120   : > { %v2353_v45 = vpop.f32.mrf.mxu0  ;;  %v2355_v46 = vpop.f32.mrf.mxu1 }
 0x122   : > { %v591_v47 = vpop.f32.mrf.mxu0  ;;  %v655_v48 = vpop.f32.mrf.mxu1 }
 0x124   : > { %v2357_v49 = vpop.f32.mrf.mxu0  ;;  %v2359_v50 = vpop.f32.mrf.mxu1 }
 0x126   : > { %v596_v51 = vpop.f32.mrf.mxu0  ;;  %v660_v52 = vpop.f32.mrf.mxu1 }
 0x128   : > { %v2361_v53 = vpop.f32.mrf.mxu0  ;;  %v2363_v54 = vpop.f32.mrf.mxu1 }
 0x12a   : > { %v599_v55 = vpop.f32.mrf.mxu0  ;;  %v663_v56 = vpop.f32.mrf.mxu1 }
 0x12c   : > { %v2365_v57 = vpop.f32.mrf.mxu0  ;;  %v2367_v58 = vpop.f32.mrf.mxu1 }
 0x12e   : > { %v604_v59 = vpop.f32.mrf.mxu0  ;;  %v668_v60 = vpop.f32.mrf.mxu1 }
 0x130   : > { %v2369_v61 = vpop.f32.mrf.mxu0  ;;  %v2371_v62 = vpop.f32.mrf.mxu1 }
 0x132   : > { %v607_v63 = vpop.f32.mrf.mxu0  ;;  %v671_v0 = vpop.f32.mrf.mxu1 }
 0x134   : > { %v2373_v2 = vpop.f32.mrf.mxu0  ;;  %v2375_v3 = vpop.f32.mrf.mxu1 }
 0x136   : > { %v612_v4 = vpop.f32.mrf.mxu0  ;;  %v676_v6 = vpop.f32.mrf.mxu1 }
 0x138   : > { %v2377_v1 = vpop.f32.mrf.mxu0  ;;  %v2379_v8 = vpop.f32.mrf.mxu1 }
 0x13a   : > { %v615_v5 = vpop.f32.mrf.mxu0  ;;  %v679_v7 = vpop.f32.mrf.mxu1 }
 0x13c   : > { %v799_v11 = vpop.f32.mrf.mxu1  ;;  %v1281_v12 = vpop.f32.mrf.mxu0 }
 0x13d   : > { %v800_v15 = vadd.f32 %v799_v11, %v2317_v9 }
 0x13e   : > { %v801_v19 = vpop.f32.mrf.mxu1  ;;  %v1283_v20 = vpop.f32.mrf.mxu0 }
 0x13f   : > { %v1408_v23 = vadd.f32 %v1281_v12, %v800_v15 }
 0x140   : > { %v802_v24 = vpop.f32.mrf.mxu1  ;;  %v1284_v27 = vpop.f32.mrf.mxu0 }
 0x141   : > { %v1447_v9 = vadd.f32 %v2386_v16, %v1408_v23  ;;  %v803_v28 = vadd.f32 %v802_v24, %v2321_v13 }
 0x142   : > { %v804_v31 = vpop.f32.mrf.mxu1  ;;  %v1286_v32 = vpop.f32.mrf.mxu0 }
 0x143   : > { %1480 = vst.msk [vmem:[%s2391_s21] sm:$0xff] %vm1479_vm1, %v1447_v9  ;;  %v1409_v35 = vadd.f32 %v1284_v27, %v803_v28 }
 0x144   : > { %v807_v36 = vpop.f32.mrf.mxu1  ;;  %v1289_v39 = vpop.f32.mrf.mxu0 }
 0x145   : > { %v1448_v40 = vadd.f32 %v2386_v16, %v1409_v35  ;;  %v808_v43 = vadd.f32 %v807_v36, %v2325_v17 }
 0x146   : > { %v809_v44 = vpop.f32.mrf.mxu1  ;;  %v1291_v47 = vpop.f32.mrf.mxu0 }
 0x147   : > { %1481 = vst.msk [vmem:[%s2391_s21 + $0x8] sm:$0xff] %vm1479_vm1, %v1448_v40  ;;  %v1410_v48 = vadd.f32 %v1289_v39, %v808_v43 }
 0x148   : > { %v810_v51 = vpop.f32.mrf.mxu1  ;;  %v1292_v13 = vpop.f32.mrf.mxu0 }
 0x149   : > { %v1449_v52 = vadd.f32 %v2386_v16, %v1410_v48  ;;  %v811_v55 = vadd.f32 %v810_v51, %v2329_v21 }
 0x14a   : > { %v812_v56 = vpop.f32.mrf.mxu1  ;;  %v1294_v59 = vpop.f32.mrf.mxu0 }
 0x14b   : > { %1482 = vst.msk [vmem:[%s2391_s21 + $0x10] sm:$0xff] %vm1479_vm1, %v1449_v52  ;;  %v1411_v60 = vadd.f32 %v1292_v13, %v811_v55 }
 0x14c   : > { %v815_v63 = vpop.f32.mrf.mxu1  ;;  %v1297_v17 = vpop.f32.mrf.mxu0 }
 0x14d   : > { %v1450_v0 = vadd.f32 %v2386_v16, %v1411_v60  ;;  %v816_v4 = vadd.f32 %v815_v63, %v2333_v25 }
 0x14e   : > { %v817_v6 = vpop.f32.mrf.mxu1  ;;  %v1299_v5 = vpop.f32.mrf.mxu0 }
 0x14f   : > { %1483 = vst.msk [vmem:[%s2391_s21 + $0x18] sm:$0xff] %vm1479_vm1, %v1450_v0  ;;  %v1412_v7 = vadd.f32 %v1297_v17, %v816_v4 }
 0x150   : > { %v818_v11 = vpop.f32.mrf.mxu1  ;;  %v1300_v21 = vpop.f32.mrf.mxu0 }
 0x151   : > { %v1451_v12 = vadd.f32 %v2386_v16, %v1412_v7  ;;  %v819_v15 = vadd.f32 %v818_v11, %v2337_v29 }
 0x152   : > { %v820_v19 = vpop.f32.mrf.mxu1  ;;  %v1302_v20 = vpop.f32.mrf.mxu0 }
 0x153   : > { %1484 = vst.msk [vmem:[%s2391_s21 + $0x20] sm:$0xff] %vm1479_vm1, %v1451_v12  ;;  %v1413_v23 = vadd.f32 %v1300_v21, %v819_v15 }
 0x154   : > { %v823_v24 = vpop.f32.mrf.mxu1  ;;  %v1305_v25 = vpop.f32.mrf.mxu0 }
 0x155   : > { %v1452_v27 = vadd.f32 %v2386_v16, %v1413_v23  ;;  %v824_v9 = vadd.f32 %v823_v24, %v2341_v33 }
 0x156   : > { %v825_v28 = vpop.f32.mrf.mxu1  ;;  %v1307_v31 = vpop.f32.mrf.mxu0 }
 0x157   : > { %1485 = vst.msk [vmem:[%s2391_s21 + $0x28] sm:$0xff] %vm1479_vm1, %v1452_v27  ;;  %v1414_v32 = vadd.f32 %v1305_v25, %v824_v9 }
 0x158   : > { %v826_v35 = vpop.f32.mrf.mxu1  ;;  %v1308_v29 = vpop.f32.mrf.mxu0 }
 0x159   : > { %v1453_v36 = vadd.f32 %v2386_v16, %v1414_v32  ;;  %v827_v39 = vadd.f32 %v826_v35, %v2345_v37 }
 0x15a   : > { %v828_v40 = vpop.f32.mrf.mxu1  ;;  %v1310_v43 = vpop.f32.mrf.mxu0 }
 0x15b   : > { %1486 = vst.msk [vmem:[%s2391_s21 + $0x30] sm:$0xff] %vm1479_vm1, %v1453_v36  ;;  %v1415_v44 = vadd.f32 %v1308_v29, %v827_v39 }
 0x15c   : > { %v831_v47 = vpop.f32.mrf.mxu1  ;;  %v1313_v33 = vpop.f32.mrf.mxu0 }
 0x15d   : > { %v1454_v48 = vadd.f32 %v2386_v16, %v1415_v44  ;;  %v832_v51 = vadd.f32 %v831_v47, %v2349_v41 }
 0x15e   : > { %v833_v13 = vpop.f32.mrf.mxu1  ;;  %v1315_v52 = vpop.f32.mrf.mxu0 }
 0x15f   : > { %1487 = vst.msk [vmem:[%s2391_s21 + $0x38] sm:$0xff] %vm1479_vm1, %v1454_v48  ;;  %v1416_v55 = vadd.f32 %v1313_v33, %v832_v51 }
 0x160   : > { %v834_v56 = vpop.f32.mrf.mxu1  ;;  %v1316_v37 = vpop.f32.mrf.mxu0 }
 0x161   : > { %v1455_v59 = vadd.f32 %v2386_v16, %v1416_v55  ;;  %v835_v60 = vadd.f32 %v834_v56, %v2353_v45 }
 0x162   : > { %v836_v63 = vpop.f32.mrf.mxu1  ;;  %v1318_v17 = vpop.f32.mrf.mxu0 }
 0x163   : > { %1488 = vst.msk [vmem:[%s2391_s21 + $0x40] sm:$0xff] %vm1479_vm1, %v1455_v59  ;;  %v1417_v0 = vadd.f32 %v1316_v37, %v835_v60 }
 0x164   : > { %v839_v4 = vpop.f32.mrf.mxu1  ;;  %v1321_v41 = vpop.f32.mrf.mxu0 }
 0x165   : > { %v1456_v6 = vadd.f32 %v2386_v16, %v1417_v0  ;;  %v840_v5 = vadd.f32 %v839_v4, %v2357_v49 }
 0x166   : > { %v841_v7 = vpop.f32.mrf.mxu1  ;;  %v1323_v11 = vpop.f32.mrf.mxu0 }
 0x167   : > { %1489 = vst.msk [vmem:[%s2391_s21 + $0x48] sm:$0xff] %vm1479_vm1, %v1456_v6  ;;  %v1418_v21 = vadd.f32 %v1321_v41, %v840_v5 }
 0x168   : > { %v842_v12 = vpop.f32.mrf.mxu1  ;;  %v1324_v45 = vpop.f32.mrf.mxu0 }
 0x169   : > { %v1457_v15 = vadd.f32 %v2386_v16, %v1418_v21  ;;  %v843_v19 = vadd.f32 %v842_v12, %v2361_v53 }
 0x16a   : > { %v844_v20 = vpop.f32.mrf.mxu1  ;;  %v1326_v23 = vpop.f32.mrf.mxu0 }
 0x16b   : > { %1490 = vst.msk [vmem:[%s2391_s21 + $0x50] sm:$0xff] %vm1479_vm1, %v1457_v15  ;;  %v1419_v24 = vadd.f32 %v1324_v45, %v843_v19 }
 0x16c   : > { %v847_v25 = vpop.f32.mrf.mxu1  ;;  %v1329_v49 = vpop.f32.mrf.mxu0 }
 0x16d   : > { %v1458_v27 = vadd.f32 %v2386_v16, %v1419_v24  ;;  %v848_v9 = vadd.f32 %v847_v25, %v2365_v57 }
 0x16e   : > { %v849_v28 = vpop.f32.mrf.mxu1  ;;  %v1331_v31 = vpop.f32.mrf.mxu0 }
 0x16f   : > { %1491 = vst.msk [vmem:[%s2391_s21 + $0x58] sm:$0xff] %vm1479_vm1, %v1458_v27  ;;  %v1420_v32 = vadd.f32 %v1329_v49, %v848_v9 }
 0x170   : > { %v850_v35 = vpop.f32.mrf.mxu1  ;;  %v1332_v53 = vpop.f32.mrf.mxu0 }
 0x171   : > { %v1459_v29 = vadd.f32 %v2386_v16, %v1420_v32  ;;  %v851_v36 = vadd.f32 %v850_v35, %v2369_v61 }
 0x172   : > { %v852_v39 = vpop.f32.mrf.mxu1  ;;  %v1334_v40 = vpop.f32.mrf.mxu0 }
 0x173   : > { %1492 = vst.msk [vmem:[%s2391_s21 + $0x60] sm:$0xff] %vm1479_vm1, %v1459_v29  ;;  %v1421_v43 = vadd.f32 %v1332_v53, %v851_v36 }
 0x174   : > { %v855_v44 = vpop.f32.mrf.mxu1  ;;  %v1337_v57 = vpop.f32.mrf.mxu0 }
 0x175   : > { %v1460_v47 = vadd.f32 %v2386_v16, %v1421_v43  ;;  %v856_v33 = vadd.f32 %v855_v44, %v2373_v2 }
 0x176   : > { %v857_v48 = vpop.f32.mrf.mxu1  ;;  %v1339_v51 = vpop.f32.mrf.mxu0 }
 0x177   : > { %1493 = vst.msk [vmem:[%s2391_s21 + $0x68] sm:$0xff] %vm1479_vm1, %v1460_v47  ;;  %v1422_v13 = vadd.f32 %v1337_v57, %v856_v33 }
 0x178   : > { %v858_v52 = vpop.f32.mrf.mxu1  ;;  %v1340_v61 = vpop.f32.mrf.mxu0 }
 0x179   : > { %v1461_v55 = vadd.f32 %v2386_v16, %v1422_v13  ;;  %v859_v56 = vadd.f32 %v858_v52, %v2377_v1 }
 0x17a   : > { %v860_v37 = vpop.f32.mrf.mxu1  ;;  %v1342_v59 = vpop.f32.mrf.mxu0 }
 0x17b   : > { %1494 = vst.msk [vmem:[%s2391_s21 + $0x70] sm:$0xff] %vm1479_vm1, %v1461_v55  ;;  %v1423_v60 = vadd.f32 %v1340_v61, %v859_v56 }
 0x17c   : > { %v863_v63 = vpop.f32.mrf.mxu1  ;;  %v1345_v2 = vpop.f32.mrf.mxu0 }
 0x17d   : > { %v1462_v17 = vadd.f32 %v2386_v16, %v1423_v60  ;;  %v864_v0 = vadd.f32 %v863_v63, %v2319_v10 }
 0x17e   : > { %v865_v4 = vpop.f32.mrf.mxu1  ;;  %v1347_v41 = vpop.f32.mrf.mxu0 }
 0x17f   : > { %1495 = vst.msk [vmem:[%s2391_s21 + $0x78] sm:$0xff] %vm1479_vm1, %v1462_v17  ;;  %v1424_v6 = vadd.f32 %v1345_v2, %v864_v0 }
 0x180   : > { %v866_v5 = vpop.f32.mrf.mxu1  ;;  %v1348_v1 = vpop.f32.mrf.mxu0 }
 0x181   : > { %v1463_v7 = vadd.f32 %v2386_v16, %v1424_v6  ;;  %v867_v11 = vadd.f32 %v866_v5, %v2323_v14 }
 0x182   : > { %v868_v21 = vpop.f32.mrf.mxu1  ;;  %v1350_v12 = vpop.f32.mrf.mxu0 }
 0x183   : > { %1496 = vst.msk [vmem:[%s2391_s21 + $0x80] sm:$0xff] %vm1479_vm1, %v1463_v7  ;;  %v1425_v45 = vadd.f32 %v1348_v1, %v867_v11 }
 0x184   : > { %v871_v15 = vpop.f32.mrf.mxu1  ;;  %v1353_v10 = vpop.f32.mrf.mxu0 }
 0x185   : > { %v1464_v19 = vadd.f32 %v2386_v16, %v1425_v45  ;;  %v872_v20 = vadd.f32 %v871_v15, %v2327_v18 }
 0x186   : > { %v873_v23 = vpop.f32.mrf.mxu1  ;;  %v1355_v24 = vpop.f32.mrf.mxu0 }
 0x187   : > { %1497 = vst.msk [vmem:[%s2391_s21 + $0x88] sm:$0xff] %vm1479_vm1, %v1464_v19  ;;  %v1426_v25 = vadd.f32 %v1353_v10, %v872_v20 }
 0x188   : > { %v874_v49 = vpop.f32.mrf.mxu1  ;;  %v1356_v14 = vpop.f32.mrf.mxu0 }
 0x189   : > { %v1465_v27 = vadd.f32 %v2386_v16, %v1426_v25  ;;  %v875_v9 = vadd.f32 %v874_v49, %v2331_v22 }
 0x18a   : > { %v876_v28 = vpop.f32.mrf.mxu1  ;;  %v1358_v31 = vpop.f32.mrf.mxu0 }
 0x18b   : > { %1498 = vst.msk [vmem:[%s2391_s21 + $0x90] sm:$0xff] %vm1479_vm1, %v1465_v27  ;;  %v1427_v32 = vadd.f32 %v1356_v14, %v875_v9 }
 0x18c   : > { %v879_v35 = vpop.f32.mrf.mxu1  ;;  %v1361_v18 = vpop.f32.mrf.mxu0 }
 0x18d   : > { %v1466_v53 = vadd.f32 %v2386_v16, %v1427_v32  ;;  %v880_v29 = vadd.f32 %v879_v35, %v2335_v26 }
 0x18e   : > { %v881_v36 = vpop.f32.mrf.mxu1  ;;  %v1363_v39 = vpop.f32.mrf.mxu0 }
 0x18f   : > { %1499 = vst.msk [vmem:[%s2391_s21 + $0x98] sm:$0xff] %vm1479_vm1, %v1466_v53  ;;  %v1428_v40 = vadd.f32 %v1361_v18, %v880_v29 }
 0x190   : > { %v882_v43 = vpop.f32.mrf.mxu1  ;;  %v1364_v22 = vpop.f32.mrf.mxu0 }
 0x191   : > { %v1467_v44 = vadd.f32 %v2386_v16, %v1428_v40  ;;  %v883_v57 = vadd.f32 %v882_v43, %v2339_v30 }
 0x192   : > { %v884_v47 = vpop.f32.mrf.mxu1  ;;  %v1366_v33 = vpop.f32.mrf.mxu0 }
 0x193   : > { %1500 = vst.msk [vmem:[%s2391_s21 + $0xa0] sm:$0xff] %vm1479_vm1, %v1467_v44  ;;  %v1429_v48 = vadd.f32 %v1364_v22, %v883_v57 }
 0x194   : > { %v887_v51 = vpop.f32.mrf.mxu1  ;;  %v1369_v26 = vpop.f32.mrf.mxu0 }
 0x195   : > { %v1468_v13 = vadd.f32 %v2386_v16, %v1429_v48  ;;  %v888_v52 = vadd.f32 %v887_v51, %v2343_v34 }
 0x196   : > { %v889_v61 = vpop.f32.mrf.mxu1  ;;  %v1371_v55 = vpop.f32.mrf.mxu0 }
 0x197   : > { %1501 = vst.msk [vmem:[%s2391_s21 + $0xa8] sm:$0xff] %vm1479_vm1, %v1468_v13  ;;  %v1430_v56 = vadd.f32 %v1369_v26, %v888_v52 }
 0x198   : > { %v890_v37 = vpop.f32.mrf.mxu1  ;;  %v1372_v30 = vpop.f32.mrf.mxu0 }
 0x199   : > { %v1469_v59 = vadd.f32 %v2386_v16, %v1430_v56  ;;  %v891_v60 = vadd.f32 %v890_v37, %v2347_v38 }
 0x19a   : > { %v892_v63 = vpop.f32.mrf.mxu1  ;;  %v1374_v2 = vpop.f32.mrf.mxu0 }
 0x19b   : > { %1502 = vst.msk [vmem:[%s2391_s21 + $0xb0] sm:$0xff] %vm1479_vm1, %v1469_v59  ;;  %v1431_v17 = vadd.f32 %v1372_v30, %v891_v60 }
 0x19c   : > { %v895_v0 = vpop.f32.mrf.mxu1  ;;  %v1377_v34 = vpop.f32.mrf.mxu0 }
 0x19d   : > { %v1470_v4 = vadd.f32 %v2386_v16, %v1431_v17  ;;  %v896_v41 = vadd.f32 %v895_v0, %v2351_v42 }
 0x19e   : > { %v897_v6 = vpop.f32.mrf.mxu1  ;;  %v1379_v5 = vpop.f32.mrf.mxu0 }
 0x19f   : > { %1503 = vst.msk [vmem:[%s2391_s21 + $0xb8] sm:$0xff] %vm1479_vm1, %v1470_v4  ;;  %v1432_v1 = vadd.f32 %v1377_v34, %v896_v41 }
 0x1a0   : > { %v898_v7 = vpop.f32.mrf.mxu1  ;;  %v1380_v38 = vpop.f32.mrf.mxu0 }
 0x1a1   : > { %v1471_v11 = vadd.f32 %v2386_v16, %v1432_v1  ;;  %v899_v21 = vadd.f32 %v898_v7, %v2355_v46 }
 0x1a2   : > { %v900_v12 = vpop.f32.mrf.mxu1  ;;  %v1382_v45 = vpop.f32.mrf.mxu0 }
 0x1a3   : > { %1504 = vst.msk [vmem:[%s2391_s21 + $0xc0] sm:$0xff] %vm1479_vm1, %v1471_v11  ;;  %v1433_v15 = vadd.f32 %v1380_v38, %v899_v21 }
 0x1a4   : > { %v903_v10 = vpop.f32.mrf.mxu1  ;;  %v1385_v42 = vpop.f32.mrf.mxu0 }
 0x1a5   : > { %v1472_v19 = vadd.f32 %v2386_v16, %v1433_v15  ;;  %v904_v20 = vadd.f32 %v903_v10, %v2359_v50 }
 0x1a6   : > { %v905_v23 = vpop.f32.mrf.mxu1  ;;  %v1387_v24 = vpop.f32.mrf.mxu0 }
 0x1a7   : > { %1505 = vst.msk [vmem:[%s2391_s21 + $0xc8] sm:$0xff] %vm1479_vm1, %v1472_v19  ;;  %v1434_v25 = vadd.f32 %v1385_v42, %v904_v20 }
 0x1a8   : > { %v906_v49 = vpop.f32.mrf.mxu1  ;;  %v1388_v46 = vpop.f32.mrf.mxu0 }
 0x1a9   : > { %v1473_v14 = vadd.f32 %v2386_v16, %v1434_v25  ;;  %v907_v27 = vadd.f32 %v906_v49, %v2363_v54 }
 0x1aa   : > { %v908_v9 = vpop.f32.mrf.mxu1  ;;  %v1390_v28 = vpop.f32.mrf.mxu0 }
 0x1ab   : > { %1506 = vst.msk [vmem:[%s2391_s21 + $0xd0] sm:$0xff] %vm1479_vm1, %v1473_v14  ;;  %v1435_v31 = vadd.f32 %v1388_v46, %v907_v27 }
 0x1ac   : > { %v911_v32 = vpop.f32.mrf.mxu1  ;;  %v1393_v50 = vpop.f32.mrf.mxu0 }
 0x1ad   : > { %v1474_v35 = vadd.f32 %v2386_v16, %v1435_v31  ;;  %v912_v18 = vadd.f32 %v911_v32, %v2367_v58 }
 0x1ae   : > { %v913_v53 = vpop.f32.mrf.mxu1  ;;  %v1395_v29 = vpop.f32.mrf.mxu0 }
 0x1af   : > { %1507 = vst.msk [vmem:[%s2391_s21 + $0xd8] sm:$0xff] %vm1479_vm1, %v1474_v35  ;;  %v1436_v36 = vadd.f32 %v1393_v50, %v912_v18 }
 0x1b0   : > { %v914_v39 = vpop.f32.mrf.mxu1  ;;  %v1396_v54 = vpop.f32.mrf.mxu0 }
 0x1b1   : > { %v1475_v40 = vadd.f32 %v2386_v16, %v1436_v36  ;;  %v915_v43 = vadd.f32 %v914_v39, %v2371_v62 }
 0x1b2   : > { %v916_v22 = vpop.f32.mrf.mxu1  ;;  %v1398_v44 = vpop.f32.mrf.mxu0 }
 0x1b3   : > { %1508 = vst.msk [vmem:[%s2391_s21 + $0xe0] sm:$0xff] %vm1479_vm1, %v1475_v40  ;;  %v1437_v57 = vadd.f32 %v1396_v54, %v915_v43 }
 0x1b4   : > { %v919_v47 = vpop.f32.mrf.mxu1  ;;  %v1401_v58 = vpop.f32.mrf.mxu0 }
 0x1b5   : > { %v1476_v33 = vadd.f32 %v2386_v16, %v1437_v57  ;;  %v920_v48 = vadd.f32 %v919_v47, %v2375_v3 }
 0x1b6   : > { %v921_v51 = vpop.f32.mrf.mxu1  ;;  %v1403_v26 = vpop.f32.mrf.mxu0 }
 0x1b7   : > { %1509 = vst.msk [vmem:[%s2391_s21 + $0xe8] sm:$0xff] %vm1479_vm1, %v1476_v33  ;;  %v1438_v13 = vadd.f32 %v1401_v58, %v920_v48 }
 0x1b8   : > { %v922_v52 = vpop.f32.mrf.mxu1  ;;  %v1404_v62 = vpop.f32.mrf.mxu0 }
 0x1b9   : > { %v1477_v61 = vadd.f32 %v2386_v16, %v1438_v13  ;;  %v923_v55 = vadd.f32 %v922_v52, %v2379_v8 }
 0x1ba   : > { %v924_v56 = vpop.f32.mrf.mxu1  ;;  %v1406_v37 = vpop.f32.mrf.mxu0 }
 0x1bb   : > { %1510 = vst.msk [vmem:[%s2391_s21 + $0xf0] sm:$0xff] %vm1479_vm1, %v1477_v61  ;;  %v1439_v30 = vadd.f32 %v1404_v62, %v923_v55 }
 0x1bd   : > { %v1478_v59 = vadd.f32 %v2386_v16, %v1439_v30 }
 0x1bf   : > { %1511 = vst.msk [vmem:[%s2391_s21 + $0xf8] sm:$0xff] %vm1479_vm1, %v1478_v59 }
 0x1c0 PF: > { %s13_s12 = sadd.s32 1, %s1907_s12  }
 0x1c1   : > { %p10_p4 = scmp.ge.s32.totalorder %s13_s12, 4  }
 0x1c3   :  { %12 = sbr.rel (!%p10_p4) target bundleno = 1 (0x1), region = 64 }

</bundles_post_ra>
